<compile_context>
chip_gen: v7x
topology: tpu7x:2x2x1
jax: 0.10.0
libtpu: 0.0.40
codegen_flags: <defaults>
</compile_context>

<pallas_src>
import functools

import jax
import jax.numpy as jnp
from jax.experimental import pallas as pl
from jax.experimental.pallas import tpu as pltpu  # noqa: F401  (TPU backend)


def _bigram_kernel(idx_ref, tok_ref, pos_ref, mask_ref,
                   ln1g_ref, ln1b_ref, wqkv_ref, wproj_ref,
                   ln2g_ref, ln2b_ref, w1_ref, b1_ref, w2_ref, b2_ref,
                   lnfg_ref, lnfb_ref, wlm_ref, blm_ref,
                   o_ref, *, n_blocks, n_heads, head_size):
    f32 = jnp.float32
    BT = idx_ref.shape[0]          # B*T rows
    V, E = tok_ref.shape
    nh_hs = n_heads * head_size    # == E
    scale = head_size ** (-0.5)

    # ---- embedding lookup as a lane-dense one-hot matmul on the MXU ----
    idx = idx_ref[...]                                             # (BT, 1) int32
    vocab_iota = jax.lax.broadcasted_iota(jnp.int32, (BT, V), 1)
    onehot = (idx == vocab_iota).astype(f32)                        # (BT, V)
    x = jnp.dot(onehot, tok_ref[...], preferred_element_type=f32)   # (BT, E)
    x = x + pos_ref[...]                                            # add pos emb

    mask = mask_ref[...]            # (BT, BT) additive block-diag causal mask

    def layer_norm(h, g, b):
        mu = jnp.mean(h, axis=-1, keepdims=True)
        c = h - mu
        var = jnp.mean(c * c, axis=-1, keepdims=True)
        return c * jax.lax.rsqrt(var + 1e-5) * g + b

    for blk in range(n_blocks):
        # ---------------- multi-head causal self-attention ----------------
        h = layer_norm(x, ln1g_ref[blk], ln1b_ref[blk])
        # fused QKV: one (BT, E) @ (E, 3*NH*HS) matmul (lane-dense).
        qkv = jnp.dot(h, wqkv_ref[blk], preferred_element_type=f32)
        wp = wproj_ref[blk]                                        # (NH*HS, E)

        attn = jnp.zeros_like(x)
        for hd in range(n_heads):
            lo = hd * head_size
            hi = lo + head_size
            q = qkv[:, lo:hi] * scale                              # (BT, HS)
            k = qkv[:, nh_hs + lo:nh_hs + hi]
            v = qkv[:, 2 * nh_hs + lo:2 * nh_hs + hi]

            # scores over ALL rows at once; cross-batch / future positions are
            # removed by the precomputed additive mask.
            s = jax.lax.dot_general(q, k, (((1,), (1,)), ((), ())),
                                    preferred_element_type=f32)
            s = s + mask
            m = jnp.max(s, axis=-1, keepdims=True)
            p = jnp.exp(s - m)
            denom = jnp.sum(p, axis=-1, keepdims=True)
            p = p * pl.reciprocal(denom, approx=False)

            hv = jnp.dot(p, v, preferred_element_type=f32)         # (BT, HS)
            # projection contribution of this head (replaces concat+matmul).
            attn = attn + jnp.dot(hv, wp[lo:hi, :],
                                  preferred_element_type=f32)
        x = x + attn                                               # residual

        # ------------------------- feed-forward ---------------------------
        h = layer_norm(x, ln2g_ref[blk], ln2b_ref[blk])
        h1 = jnp.maximum(
            jnp.dot(h, w1_ref[blk], preferred_element_type=f32) + b1_ref[blk],
            0.0)
        x = x + jnp.dot(h1, w2_ref[blk],
                        preferred_element_type=f32) + b2_ref[blk]  # residual

    # ---------------- final LayerNorm + lm_head ----------------
    x = layer_norm(x, lnfg_ref[...], lnfb_ref[...])
    logits = jnp.dot(x, wlm_ref[...], preferred_element_type=f32) + blm_ref[...]
    o_ref[...] = logits.astype(o_ref.dtype)      # full-tile, lane-dense store


def bigram_forward(idxs, params, n_heads):
    """idxs: (B, T) int32 token ids.  Returns logits (B, T, vocab)."""
    B, T = idxs.shape
    V, E = params["tok_table"].shape
    n_blocks = params["wqkv"].shape[0]
    head_size = E // n_heads
    BT = B * T

    # wrapper-side layout plumbing (no compute): fold batch into rows.
    idx2d = idxs.reshape(BT, 1).astype(jnp.int32)
    pos_bt = jnp.tile(params["pos_table"][:T], (B, 1))             # (BT, E)

    # additive block-diagonal causal mask, built once outside the kernel.
    r = jnp.arange(BT)
    same_batch = (r[:, None] // T) == (r[None, :] // T)
    causal = (r[:, None] % T) >= (r[None, :] % T)
    mask = jnp.where(same_batch & causal, 0.0, -1e30).astype(jnp.float32)

    kernel = functools.partial(_bigram_kernel, n_blocks=n_blocks,
                               n_heads=n_heads, head_size=head_size)

    logits2d = pl.pallas_call(
        kernel,
        out_shape=jax.ShapeDtypeStruct((BT, V), jnp.float32),
    )(idx2d, params["tok_table"], pos_bt, mask,
      params["ln1_g"], params["ln1_b"], params["wqkv"], params["wproj"],
      params["ln2_g"], params["ln2_b"], params["w1"], params["b1"],
      params["w2"], params["b2"],
      params["lnf_g"], params["lnf_b"], params["w_lm"], params["b_lm"])

    return logits2d.reshape(B, T, V)


def _init_params(key, vocab, n_embd, n_heads, block_size, n_blocks=3):
    """PyTorch-style init: Embedding ~ N(0,1); Linear ~ U(+-1/sqrt(fan_in))."""
    head_size = n_embd // n_heads
    ks = jax.random.split(key, 10)

    def uni(k, shape, fan_in):
        b = 1.0 / (fan_in ** 0.5)
        return jax.random.uniform(k, shape, jnp.float32, -b, b)

    return dict(
        tok_table=jax.random.normal(ks[0], (vocab, n_embd), jnp.float32),
        pos_table=jax.random.normal(ks[1], (block_size, n_embd), jnp.float32),
        ln1_g=jnp.ones((n_blocks, 1, n_embd), jnp.float32),
        ln1_b=jnp.zeros((n_blocks, 1, n_embd), jnp.float32),
        # columns laid out [Q heads | K heads | V heads], head-major inside.
        wqkv=uni(ks[2], (n_blocks, n_embd, 3 * n_heads * head_size), n_embd),
        wproj=uni(ks[3], (n_blocks, n_heads * head_size, n_embd),
                  n_heads * head_size),
        ln2_g=jnp.ones((n_blocks, 1, n_embd), jnp.float32),
        ln2_b=jnp.zeros((n_blocks, 1, n_embd), jnp.float32),
        w1=uni(ks[4], (n_blocks, n_embd, 4 * n_embd), n_embd),
        b1=uni(ks[5], (n_blocks, 1, 4 * n_embd), n_embd),
        w2=uni(ks[6], (n_blocks, 4 * n_embd, n_embd), 4 * n_embd),
        b2=uni(ks[7], (n_blocks, 1, n_embd), 4 * n_embd),
        lnf_g=jnp.ones((1, n_embd), jnp.float32),
        lnf_b=jnp.zeros((1, n_embd), jnp.float32),
        w_lm=uni(ks[8], (n_embd, vocab), n_embd),
        b_lm=uni(ks[9], (1, vocab), n_embd),
    )


def _reference(idxs, params, n_heads):
    """Pure-JAX reference of BigramModel.forward (targets=None, eval mode)."""
    V, E = params["tok_table"].shape
    B, T = idxs.shape
    hs = E // n_heads
    n_blocks = params["wqkv"].shape[0]

    def ln(h, g, b):
        mu = h.mean(-1, keepdims=True)
        var = ((h - mu) ** 2).mean(-1, keepdims=True)
        return (h - mu) / jnp.sqrt(var + 1e-5) * g + b

    x = params["tok_table"][idxs] + params["pos_table"][:T]
    causal = jnp.tril(jnp.ones((T, T), dtype=bool))
    for blk in range(n_blocks):
        h = ln(x, params["ln1_g"][blk], params["ln1_b"][blk])
        wqkv = params["wqkv"][blk]
        heads = []
        for hd in range(n_heads):
            wq = wqkv[:, hd * hs:(hd + 1) * hs]
            wk = wqkv[:, E + hd * hs:E + (hd + 1) * hs]
            wv = wqkv[:, 2 * E + hd * hs:2 * E + (hd + 1) * hs]
            q, k, v = h @ wq, h @ wk, h @ wv
            wei = (q @ jnp.swapaxes(k, -2, -1)) * hs ** (-0.5)
            wei = jnp.where(causal, wei, -jnp.inf)
            wei = jax.nn.softmax(wei, axis=-1)
            heads.append(wei @ v)
        x = x + jnp.concatenate(heads, -1) @ params["wproj"][blk]
        h = ln(x, params["ln2_g"][blk], params["ln2_b"][blk])
        x = x + jnp.maximum(h @ params["w1"][blk] + params["b1"][blk],
                            0.0) @ params["w2"][blk] + params["b2"][blk]
    x = ln(x, params["lnf_g"], params["lnf_b"])
    return x @ params["w_lm"] + params["b_lm"]


if __name__ == "__main__":
    # Small shapes consistent with the module (E divisible by n_heads).
    batch = 2
    block_size = 16          # sequence length T
    vocab_size = 128         # lane-dense logits (last dim = 128)
    n_embeddings = 48
    n_heads = 6              # head_size = 8

    key = jax.random.PRNGKey(0)
    kp, ki = jax.random.split(key)
    params = _init_params(kp, vocab_size, n_embeddings, n_heads, block_size)
    idxs = jax.random.randint(ki, (batch, block_size), 0, vocab_size, jnp.int32)

    logits = bigram_forward(idxs, params, n_heads)
    logits = jax.block_until_ready(logits)

    ref = _reference(idxs, params, n_heads)
    assert logits.shape == (batch, block_size, vocab_size)
    assert jnp.allclose(logits, ref, atol=5e-3, rtol=5e-3), (
        f"mismatch vs reference: max err {jnp.max(jnp.abs(logits - ref)):.3e}")

    # TODO(synk): cross-entropy loss branch (targets is not None) and the
    # autoregressive generate() loop are host-side and not part of the kernel.
    print("KERNEL_OK")
</pallas_src>

<mosaic_0001>
module attributes {stable_mosaic.version = 11 : i64} {
  func.func @_bigram_kernel(%arg0: memref<32x1xi32, #tpu.memory_space<vmem>>, %arg1: memref<128x48xf32, #tpu.memory_space<vmem>>, %arg2: memref<32x48xf32, #tpu.memory_space<vmem>>, %arg3: memref<32x32xf32, #tpu.memory_space<vmem>>, %arg4: memref<3x1x48xf32, #tpu.memory_space<vmem>>, %arg5: memref<3x1x48xf32, #tpu.memory_space<vmem>>, %arg6: memref<3x48x144xf32, #tpu.memory_space<vmem>>, %arg7: memref<3x48x48xf32, #tpu.memory_space<vmem>>, %arg8: memref<3x1x48xf32, #tpu.memory_space<vmem>>, %arg9: memref<3x1x48xf32, #tpu.memory_space<vmem>>, %arg10: memref<3x48x192xf32, #tpu.memory_space<vmem>>, %arg11: memref<3x1x192xf32, #tpu.memory_space<vmem>>, %arg12: memref<3x192x48xf32, #tpu.memory_space<vmem>>, %arg13: memref<3x1x48xf32, #tpu.memory_space<vmem>>, %arg14: memref<1x48xf32, #tpu.memory_space<vmem>>, %arg15: memref<1x48xf32, #tpu.memory_space<vmem>>, %arg16: memref<48x128xf32, #tpu.memory_space<vmem>>, %arg17: memref<1x128xf32, #tpu.memory_space<vmem>>, %arg18: memref<32x128xf32, #tpu.memory_space<vmem>>) attributes {dimension_semantics = [], scalar_prefetch = 0 : i64, scratch_operands = 0 : i64, tpu.core_type = #tpu.core_type<tc>} {
    %c0 = arith.constant 0 : index
    %c0_0 = arith.constant 0 : index
    %0 = vector.load %arg0[%c0, %c0_0] : memref<32x1xi32, #tpu.memory_space<vmem>>, vector<32x1xi32>
    %1 = tpu.iota {dimensions = array<i32: 1>} : vector<32x128xi32>
    %2 = vector.broadcast %0 : vector<32x1xi32> to vector<32x128xi32>
    %3 = arith.cmpi eq, %2, %1 : vector<32x128xi32>
    %4 = arith.extui %3 : vector<32x128xi1> to vector<32x128xi32>
    %5 = arith.sitofp %4 : vector<32x128xi32> to vector<32x128xf32>
    %c0_1 = arith.constant 0 : index
    %c0_2 = arith.constant 0 : index
    %6 = vector.load %arg1[%c0_1, %c0_2] : memref<128x48xf32, #tpu.memory_space<vmem>>, vector<128x48xf32>
    %cst = arith.constant dense<0.000000e+00> : vector<32x48xf32>
    %7 = tpu.matmul %5, %6, %cst {dimension_numbers = #tpu.dot_dimension_numbers<[1], [0], [0], [1], [0, 0, 1, 1], [], []>} : vector<32x128xf32>, vector<128x48xf32>, vector<32x48xf32> -> vector<32x48xf32>
    %c0_3 = arith.constant 0 : index
    %c0_4 = arith.constant 0 : index
    %8 = vector.load %arg2[%c0_3, %c0_4] : memref<32x48xf32, #tpu.memory_space<vmem>>, vector<32x48xf32>
    %9 = arith.addf %7, %8 : vector<32x48xf32>
    %c0_5 = arith.constant 0 : index
    %c0_6 = arith.constant 0 : index
    %10 = vector.load %arg3[%c0_5, %c0_6] : memref<32x32xf32, #tpu.memory_space<vmem>>, vector<32x32xf32>
    %c0_7 = arith.constant 0 : index
    %c0_8 = arith.constant 0 : index
    %c0_9 = arith.constant 0 : index
    %11 = vector.load %arg4[%c0_7, %c0_8, %c0_9] : memref<3x1x48xf32, #tpu.memory_space<vmem>>, vector<1x1x48xf32>
    %12 = vector.shape_cast %11 : vector<1x1x48xf32> to vector<1x48xf32>
    %c0_10 = arith.constant 0 : index
    %c0_11 = arith.constant 0 : index
    %c0_12 = arith.constant 0 : index
    %13 = vector.load %arg5[%c0_10, %c0_11, %c0_12] : memref<3x1x48xf32, #tpu.memory_space<vmem>>, vector<1x1x48xf32>
    %14 = vector.shape_cast %13 : vector<1x1x48xf32> to vector<1x48xf32>
    %cst_13 = arith.constant dense<0.000000e+00> : vector<32xf32>
    %15 = vector.multi_reduction <add>, %9, %cst_13 [1] : vector<32x48xf32> to vector<32xf32>
    %16 = vector.shape_cast %15 : vector<32xf32> to vector<32x1xf32>
    %cst_14 = arith.constant 4.800000e+01 : f32
    %17 = vector.broadcast %cst_14 : f32 to vector<32x1xf32>
    %18 = arith.divf %16, %17 : vector<32x1xf32>
    %19 = vector.broadcast %18 : vector<32x1xf32> to vector<32x48xf32>
    %20 = arith.subf %9, %19 : vector<32x48xf32>
    %21 = arith.mulf %20, %20 : vector<32x48xf32>
    %cst_15 = arith.constant dense<0.000000e+00> : vector<32xf32>
    %22 = vector.multi_reduction <add>, %21, %cst_15 [1] : vector<32x48xf32> to vector<32xf32>
    %23 = vector.shape_cast %22 : vector<32xf32> to vector<32x1xf32>
    %cst_16 = arith.constant 4.800000e+01 : f32
    %24 = vector.broadcast %cst_16 : f32 to vector<32x1xf32>
    %25 = arith.divf %23, %24 : vector<32x1xf32>
    %cst_17 = arith.constant 9.99999974E-6 : f32
    %26 = vector.broadcast %cst_17 : f32 to vector<32x1xf32>
    %27 = arith.addf %25, %26 : vector<32x1xf32>
    %28 = math.rsqrt %27 : vector<32x1xf32>
    %29 = vector.broadcast %28 : vector<32x1xf32> to vector<32x48xf32>
    %30 = arith.mulf %20, %29 : vector<32x48xf32>
    %31 = vector.broadcast %12 : vector<1x48xf32> to vector<32x48xf32>
    %32 = arith.mulf %30, %31 : vector<32x48xf32>
    %33 = vector.broadcast %14 : vector<1x48xf32> to vector<32x48xf32>
    %34 = arith.addf %32, %33 : vector<32x48xf32>
    %c0_18 = arith.constant 0 : index
    %c0_19 = arith.constant 0 : index
    %c0_20 = arith.constant 0 : index
    %35 = vector.load %arg6[%c0_18, %c0_19, %c0_20] : memref<3x48x144xf32, #tpu.memory_space<vmem>>, vector<1x48x144xf32>
    %36 = vector.shape_cast %35 : vector<1x48x144xf32> to vector<48x144xf32>
    %cst_21 = arith.constant dense<0.000000e+00> : vector<32x144xf32>
    %37 = tpu.matmul %34, %36, %cst_21 {dimension_numbers = #tpu.dot_dimension_numbers<[1], [0], [0], [1], [0, 0, 1, 1], [], []>} : vector<32x48xf32>, vector<48x144xf32>, vector<32x144xf32> -> vector<32x144xf32>
    %c0_22 = arith.constant 0 : index
    %c0_23 = arith.constant 0 : index
    %c0_24 = arith.constant 0 : index
    %38 = vector.load %arg7[%c0_22, %c0_23, %c0_24] : memref<3x48x48xf32, #tpu.memory_space<vmem>>, vector<1x48x48xf32>
    %39 = vector.shape_cast %38 : vector<1x48x48xf32> to vector<48x48xf32>
    %cst_25 = arith.constant 0.000000e+00 : f32
    %40 = vector.broadcast %cst_25 : f32 to vector<32x48xf32>
    %41 = vector.extract_strided_slice %37 {offsets = [0, 0], sizes = [32, 8], strides = [1, 1]} : vector<32x144xf32> to vector<32x8xf32>
    %cst_26 = arith.constant 0.353553385 : f32
    %42 = vector.broadcast %cst_26 : f32 to vector<32x8xf32>
    %43 = arith.mulf %41, %42 : vector<32x8xf32>
    %44 = vector.extract_strided_slice %37 {offsets = [0, 48], sizes = [32, 8], strides = [1, 1]} : vector<32x144xf32> to vector<32x8xf32>
    %45 = vector.extract_strided_slice %37 {offsets = [0, 96], sizes = [32, 8], strides = [1, 1]} : vector<32x144xf32> to vector<32x8xf32>
    %cst_27 = arith.constant dense<0.000000e+00> : vector<32x32xf32>
    %46 = tpu.matmul %43, %44, %cst_27 {dimension_numbers = #tpu.dot_dimension_numbers<[1], [1], [0], [0], [0, 0, 1, 0], [], []>} : vector<32x8xf32>, vector<32x8xf32>, vector<32x32xf32> -> vector<32x32xf32>
    %47 = arith.addf %46, %10 : vector<32x32xf32>
    %cst_28 = arith.constant dense<0xFF800000> : vector<32xf32>
    %48 = vector.multi_reduction <maximumf>, %47, %cst_28 [1] : vector<32x32xf32> to vector<32xf32>
    %49 = vector.shape_cast %48 : vector<32xf32> to vector<32x1xf32>
    %50 = vector.broadcast %49 : vector<32x1xf32> to vector<32x32xf32>
    %51 = arith.subf %47, %50 : vector<32x32xf32>
    %52 = math.exp %51 : vector<32x32xf32>
    %cst_29 = arith.constant dense<0.000000e+00> : vector<32xf32>
    %53 = vector.multi_reduction <add>, %52, %cst_29 [1] : vector<32x32xf32> to vector<32xf32>
    %54 = vector.shape_cast %53 : vector<32xf32> to vector<32x1xf32>
    %55 = tpu.reciprocal %54 : vector<32x1xf32> -> vector<32x1xf32>
    %56 = vector.broadcast %55 : vector<32x1xf32> to vector<32x32xf32>
    %57 = arith.mulf %52, %56 : vector<32x32xf32>
    %cst_30 = arith.constant dense<0.000000e+00> : vector<32x8xf32>
    %58 = tpu.matmul %57, %45, %cst_30 {dimension_numbers = #tpu.dot_dimension_numbers<[1], [0], [0], [1], [0, 0, 1, 1], [], []>} : vector<32x32xf32>, vector<32x8xf32>, vector<32x8xf32> -> vector<32x8xf32>
    %59 = vector.extract_strided_slice %39 {offsets = [0, 0], sizes = [8, 48], strides = [1, 1]} : vector<48x48xf32> to vector<8x48xf32>
    %cst_31 = arith.constant dense<0.000000e+00> : vector<32x48xf32>
    %60 = tpu.matmul %58, %59, %cst_31 {dimension_numbers = #tpu.dot_dimension_numbers<[1], [0], [0], [1], [0, 0, 1, 1], [], []>} : vector<32x8xf32>, vector<8x48xf32>, vector<32x48xf32> -> vector<32x48xf32>
    %61 = arith.addf %40, %60 : vector<32x48xf32>
    %62 = vector.extract_strided_slice %37 {offsets = [0, 8], sizes = [32, 8], strides = [1, 1]} : vector<32x144xf32> to vector<32x8xf32>
    %cst_32 = arith.constant 0.353553385 : f32
    %63 = vector.broadcast %cst_32 : f32 to vector<32x8xf32>
    %64 = arith.mulf %62, %63 : vector<32x8xf32>
    %65 = vector.extract_strided_slice %37 {offsets = [0, 56], sizes = [32, 8], strides = [1, 1]} : vector<32x144xf32> to vector<32x8xf32>
    %66 = vector.extract_strided_slice %37 {offsets = [0, 104], sizes = [32, 8], strides = [1, 1]} : vector<32x144xf32> to vector<32x8xf32>
    %cst_33 = arith.constant dense<0.000000e+00> : vector<32x32xf32>
    %67 = tpu.matmul %64, %65, %cst_33 {dimension_numbers = #tpu.dot_dimension_numbers<[1], [1], [0], [0], [0, 0, 1, 0], [], []>} : vector<32x8xf32>, vector<32x8xf32>, vector<32x32xf32> -> vector<32x32xf32>
    %68 = arith.addf %67, %10 : vector<32x32xf32>
    %cst_34 = arith.constant dense<0xFF800000> : vector<32xf32>
    %69 = vector.multi_reduction <maximumf>, %68, %cst_34 [1] : vector<32x32xf32> to vector<32xf32>
    %70 = vector.shape_cast %69 : vector<32xf32> to vector<32x1xf32>
    %71 = vector.broadcast %70 : vector<32x1xf32> to vector<32x32xf32>
    %72 = arith.subf %68, %71 : vector<32x32xf32>
    %73 = math.exp %72 : vector<32x32xf32>
    %cst_35 = arith.constant dense<0.000000e+00> : vector<32xf32>
    %74 = vector.multi_reduction <add>, %73, %cst_35 [1] : vector<32x32xf32> to vector<32xf32>
    %75 = vector.shape_cast %74 : vector<32xf32> to vector<32x1xf32>
    %76 = tpu.reciprocal %75 : vector<32x1xf32> -> vector<32x1xf32>
    %77 = vector.broadcast %76 : vector<32x1xf32> to vector<32x32xf32>
    %78 = arith.mulf %73, %77 : vector<32x32xf32>
    %cst_36 = arith.constant dense<0.000000e+00> : vector<32x8xf32>
    %79 = tpu.matmul %78, %66, %cst_36 {dimension_numbers = #tpu.dot_dimension_numbers<[1], [0], [0], [1], [0, 0, 1, 1], [], []>} : vector<32x32xf32>, vector<32x8xf32>, vector<32x8xf32> -> vector<32x8xf32>
    %80 = vector.extract_strided_slice %39 {offsets = [8, 0], sizes = [8, 48], strides = [1, 1]} : vector<48x48xf32> to vector<8x48xf32>
    %cst_37 = arith.constant dense<0.000000e+00> : vector<32x48xf32>
    %81 = tpu.matmul %79, %80, %cst_37 {dimension_numbers = #tpu.dot_dimension_numbers<[1], [0], [0], [1], [0, 0, 1, 1], [], []>} : vector<32x8xf32>, vector<8x48xf32>, vector<32x48xf32> -> vector<32x48xf32>
    %82 = arith.addf %61, %81 : vector<32x48xf32>
    %83 = vector.extract_strided_slice %37 {offsets = [0, 16], sizes = [32, 8], strides = [1, 1]} : vector<32x144xf32> to vector<32x8xf32>
    %cst_38 = arith.constant 0.353553385 : f32
    %84 = vector.broadcast %cst_38 : f32 to vector<32x8xf32>
    %85 = arith.mulf %83, %84 : vector<32x8xf32>
    %86 = vector.extract_strided_slice %37 {offsets = [0, 64], sizes = [32, 8], strides = [1, 1]} : vector<32x144xf32> to vector<32x8xf32>
    %87 = vector.extract_strided_slice %37 {offsets = [0, 112], sizes = [32, 8], strides = [1, 1]} : vector<32x144xf32> to vector<32x8xf32>
    %cst_39 = arith.constant dense<0.000000e+00> : vector<32x32xf32>
    %88 = tpu.matmul %85, %86, %cst_39 {dimension_numbers = #tpu.dot_dimension_numbers<[1], [1], [0], [0], [0, 0, 1, 0], [], []>} : vector<32x8xf32>, vector<32x8xf32>, vector<32x32xf32> -> vector<32x32xf32>
    %89 = arith.addf %88, %10 : vector<32x32xf32>
    %cst_40 = arith.constant dense<0xFF800000> : vector<32xf32>
    %90 = vector.multi_reduction <maximumf>, %89, %cst_40 [1] : vector<32x32xf32> to vector<32xf32>
    %91 = vector.shape_cast %90 : vector<32xf32> to vector<32x1xf32>
    %92 = vector.broadcast %91 : vector<32x1xf32> to vector<32x32xf32>
    %93 = arith.subf %89, %92 : vector<32x32xf32>
    %94 = math.exp %93 : vector<32x32xf32>
    %cst_41 = arith.constant dense<0.000000e+00> : vector<32xf32>
    %95 = vector.multi_reduction <add>, %94, %cst_41 [1] : vector<32x32xf32> to vector<32xf32>
    %96 = vector.shape_cast %95 : vector<32xf32> to vector<32x1xf32>
    %97 = tpu.reciprocal %96 : vector<32x1xf32> -> vector<32x1xf32>
    %98 = vector.broadcast %97 : vector<32x1xf32> to vector<32x32xf32>
    %99 = arith.mulf %94, %98 : vector<32x32xf32>
    %cst_42 = arith.constant dense<0.000000e+00> : vector<32x8xf32>
    %100 = tpu.matmul %99, %87, %cst_42 {dimension_numbers = #tpu.dot_dimension_numbers<[1], [0], [0], [1], [0, 0, 1, 1], [], []>} : vector<32x32xf32>, vector<32x8xf32>, vector<32x8xf32> -> vector<32x8xf32>
    %101 = vector.extract_strided_slice %39 {offsets = [16, 0], sizes = [8, 48], strides = [1, 1]} : vector<48x48xf32> to vector<8x48xf32>
    %cst_43 = arith.constant dense<0.000000e+00> : vector<32x48xf32>
    %102 = tpu.matmul %100, %101, %cst_43 {dimension_numbers = #tpu.dot_dimension_numbers<[1], [0], [0], [1], [0, 0, 1, 1], [], []>} : vector<32x8xf32>, vector<8x48xf32>, vector<32x48xf32> -> vector<32x48xf32>
    %103 = arith.addf %82, %102 : vector<32x48xf32>
    %104 = vector.extract_strided_slice %37 {offsets = [0, 24], sizes = [32, 8], strides = [1, 1]} : vector<32x144xf32> to vector<32x8xf32>
    %cst_44 = arith.constant 0.353553385 : f32
    %105 = vector.broadcast %cst_44 : f32 to vector<32x8xf32>
    %106 = arith.mulf %104, %105 : vector<32x8xf32>
    %107 = vector.extract_strided_slice %37 {offsets = [0, 72], sizes = [32, 8], strides = [1, 1]} : vector<32x144xf32> to vector<32x8xf32>
    %108 = vector.extract_strided_slice %37 {offsets = [0, 120], sizes = [32, 8], strides = [1, 1]} : vector<32x144xf32> to vector<32x8xf32>
    %cst_45 = arith.constant dense<0.000000e+00> : vector<32x32xf32>
    %109 = tpu.matmul %106, %107, %cst_45 {dimension_numbers = #tpu.dot_dimension_numbers<[1], [1], [0], [0], [0, 0, 1, 0], [], []>} : vector<32x8xf32>, vector<32x8xf32>, vector<32x32xf32> -> vector<32x32xf32>
    %110 = arith.addf %109, %10 : vector<32x32xf32>
    %cst_46 = arith.constant dense<0xFF800000> : vector<32xf32>
    %111 = vector.multi_reduction <maximumf>, %110, %cst_46 [1] : vector<32x32xf32> to vector<32xf32>
    %112 = vector.shape_cast %111 : vector<32xf32> to vector<32x1xf32>
    %113 = vector.broadcast %112 : vector<32x1xf32> to vector<32x32xf32>
    %114 = arith.subf %110, %113 : vector<32x32xf32>
    %115 = math.exp %114 : vector<32x32xf32>
    %cst_47 = arith.constant dense<0.000000e+00> : vector<32xf32>
    %116 = vector.multi_reduction <add>, %115, %cst_47 [1] : vector<32x32xf32> to vector<32xf32>
    %117 = vector.shape_cast %116 : vector<32xf32> to vector<32x1xf32>
    %118 = tpu.reciprocal %117 : vector<32x1xf32> -> vector<32x1xf32>
    %119 = vector.broadcast %118 : vector<32x1xf32> to vector<32x32xf32>
    %120 = arith.mulf %115, %119 : vector<32x32xf32>
    %cst_48 = arith.constant dense<0.000000e+00> : vector<32x8xf32>
    %121 = tpu.matmul %120, %108, %cst_48 {dimension_numbers = #tpu.dot_dimension_numbers<[1], [0], [0], [1], [0, 0, 1, 1], [], []>} : vector<32x32xf32>, vector<32x8xf32>, vector<32x8xf32> -> vector<32x8xf32>
    %122 = vector.extract_strided_slice %39 {offsets = [24, 0], sizes = [8, 48], strides = [1, 1]} : vector<48x48xf32> to vector<8x48xf32>
    %cst_49 = arith.constant dense<0.000000e+00> : vector<32x48xf32>
    %123 = tpu.matmul %121, %122, %cst_49 {dimension_numbers = #tpu.dot_dimension_numbers<[1], [0], [0], [1], [0, 0, 1, 1], [], []>} : vector<32x8xf32>, vector<8x48xf32>, vector<32x48xf32> -> vector<32x48xf32>
    %124 = arith.addf %103, %123 : vector<32x48xf32>
    %125 = vector.extract_strided_slice %37 {offsets = [0, 32], sizes = [32, 8], strides = [1, 1]} : vector<32x144xf32> to vector<32x8xf32>
    %cst_50 = arith.constant 0.353553385 : f32
    %126 = vector.broadcast %cst_50 : f32 to vector<32x8xf32>
    %127 = arith.mulf %125, %126 : vector<32x8xf32>
    %128 = vector.extract_strided_slice %37 {offsets = [0, 80], sizes = [32, 8], strides = [1, 1]} : vector<32x144xf32> to vector<32x8xf32>
    %129 = vector.extract_strided_slice %37 {offsets = [0, 128], sizes = [32, 8], strides = [1, 1]} : vector<32x144xf32> to vector<32x8xf32>
    %cst_51 = arith.constant dense<0.000000e+00> : vector<32x32xf32>
    %130 = tpu.matmul %127, %128, %cst_51 {dimension_numbers = #tpu.dot_dimension_numbers<[1], [1], [0], [0], [0, 0, 1, 0], [], []>} : vector<32x8xf32>, vector<32x8xf32>, vector<32x32xf32> -> vector<32x32xf32>
    %131 = arith.addf %130, %10 : vector<32x32xf32>
    %cst_52 = arith.constant dense<0xFF800000> : vector<32xf32>
    %132 = vector.multi_reduction <maximumf>, %131, %cst_52 [1] : vector<32x32xf32> to vector<32xf32>
    %133 = vector.shape_cast %132 : vector<32xf32> to vector<32x1xf32>
    %134 = vector.broadcast %133 : vector<32x1xf32> to vector<32x32xf32>
    %135 = arith.subf %131, %134 : vector<32x32xf32>
    %136 = math.exp %135 : vector<32x32xf32>
    %cst_53 = arith.constant dense<0.000000e+00> : vector<32xf32>
    %137 = vector.multi_reduction <add>, %136, %cst_53 [1] : vector<32x32xf32> to vector<32xf32>
    %138 = vector.shape_cast %137 : vector<32xf32> to vector<32x1xf32>
    %139 = tpu.reciprocal %138 : vector<32x1xf32> -> vector<32x1xf32>
    %140 = vector.broadcast %139 : vector<32x1xf32> to vector<32x32xf32>
    %141 = arith.mulf %136, %140 : vector<32x32xf32>
    %cst_54 = arith.constant dense<0.000000e+00> : vector<32x8xf32>
    %142 = tpu.matmul %141, %129, %cst_54 {dimension_numbers = #tpu.dot_dimension_numbers<[1], [0], [0], [1], [0, 0, 1, 1], [], []>} : vector<32x32xf32>, vector<32x8xf32>, vector<32x8xf32> -> vector<32x8xf32>
    %143 = vector.extract_strided_slice %39 {offsets = [32, 0], sizes = [8, 48], strides = [1, 1]} : vector<48x48xf32> to vector<8x48xf32>
    %cst_55 = arith.constant dense<0.000000e+00> : vector<32x48xf32>
    %144 = tpu.matmul %142, %143, %cst_55 {dimension_numbers = #tpu.dot_dimension_numbers<[1], [0], [0], [1], [0, 0, 1, 1], [], []>} : vector<32x8xf32>, vector<8x48xf32>, vector<32x48xf32> -> vector<32x48xf32>
    %145 = arith.addf %124, %144 : vector<32x48xf32>
    %146 = vector.extract_strided_slice %37 {offsets = [0, 40], sizes = [32, 8], strides = [1, 1]} : vector<32x144xf32> to vector<32x8xf32>
    %cst_56 = arith.constant 0.353553385 : f32
    %147 = vector.broadcast %cst_56 : f32 to vector<32x8xf32>
    %148 = arith.mulf %146, %147 : vector<32x8xf32>
    %149 = vector.extract_strided_slice %37 {offsets = [0, 88], sizes = [32, 8], strides = [1, 1]} : vector<32x144xf32> to vector<32x8xf32>
    %150 = vector.extract_strided_slice %37 {offsets = [0, 136], sizes = [32, 8], strides = [1, 1]} : vector<32x144xf32> to vector<32x8xf32>
    %cst_57 = arith.constant dense<0.000000e+00> : vector<32x32xf32>
    %151 = tpu.matmul %148, %149, %cst_57 {dimension_numbers = #tpu.dot_dimension_numbers<[1], [1], [0], [0], [0, 0, 1, 0], [], []>} : vector<32x8xf32>, vector<32x8xf32>, vector<32x32xf32> -> vector<32x32xf32>
    %152 = arith.addf %151, %10 : vector<32x32xf32>
    %cst_58 = arith.constant dense<0xFF800000> : vector<32xf32>
    %153 = vector.multi_reduction <maximumf>, %152, %cst_58 [1] : vector<32x32xf32> to vector<32xf32>
    %154 = vector.shape_cast %153 : vector<32xf32> to vector<32x1xf32>
    %155 = vector.broadcast %154 : vector<32x1xf32> to vector<32x32xf32>
    %156 = arith.subf %152, %155 : vector<32x32xf32>
    %157 = math.exp %156 : vector<32x32xf32>
    %cst_59 = arith.constant dense<0.000000e+00> : vector<32xf32>
    %158 = vector.multi_reduction <add>, %157, %cst_59 [1] : vector<32x32xf32> to vector<32xf32>
    %159 = vector.shape_cast %158 : vector<32xf32> to vector<32x1xf32>
    %160 = tpu.reciprocal %159 : vector<32x1xf32> -> vector<32x1xf32>
    %161 = vector.broadcast %160 : vector<32x1xf32> to vector<32x32xf32>
    %162 = arith.mulf %157, %161 : vector<32x32xf32>
    %cst_60 = arith.constant dense<0.000000e+00> : vector<32x8xf32>
    %163 = tpu.matmul %162, %150, %cst_60 {dimension_numbers = #tpu.dot_dimension_numbers<[1], [0], [0], [1], [0, 0, 1, 1], [], []>} : vector<32x32xf32>, vector<32x8xf32>, vector<32x8xf32> -> vector<32x8xf32>
    %164 = vector.extract_strided_slice %39 {offsets = [40, 0], sizes = [8, 48], strides = [1, 1]} : vector<48x48xf32> to vector<8x48xf32>
    %cst_61 = arith.constant dense<0.000000e+00> : vector<32x48xf32>
    %165 = tpu.matmul %163, %164, %cst_61 {dimension_numbers = #tpu.dot_dimension_numbers<[1], [0], [0], [1], [0, 0, 1, 1], [], []>} : vector<32x8xf32>, vector<8x48xf32>, vector<32x48xf32> -> vector<32x48xf32>
    %166 = arith.addf %145, %165 : vector<32x48xf32>
    %167 = arith.addf %9, %166 : vector<32x48xf32>
    %c0_62 = arith.constant 0 : index
    %c0_63 = arith.constant 0 : index
    %c0_64 = arith.constant 0 : index
    %168 = vector.load %arg8[%c0_62, %c0_63, %c0_64] : memref<3x1x48xf32, #tpu.memory_space<vmem>>, vector<1x1x48xf32>
    %169 = vector.shape_cast %168 : vector<1x1x48xf32> to vector<1x48xf32>
    %c0_65 = arith.constant 0 : index
    %c0_66 = arith.constant 0 : index
    %c0_67 = arith.constant 0 : index
    %170 = vector.load %arg9[%c0_65, %c0_66, %c0_67] : memref<3x1x48xf32, #tpu.memory_space<vmem>>, vector<1x1x48xf32>
    %171 = vector.shape_cast %170 : vector<1x1x48xf32> to vector<1x48xf32>
    %cst_68 = arith.constant dense<0.000000e+00> : vector<32xf32>
    %172 = vector.multi_reduction <add>, %167, %cst_68 [1] : vector<32x48xf32> to vector<32xf32>
    %173 = vector.shape_cast %172 : vector<32xf32> to vector<32x1xf32>
    %cst_69 = arith.constant 4.800000e+01 : f32
    %174 = vector.broadcast %cst_69 : f32 to vector<32x1xf32>
    %175 = arith.divf %173, %174 : vector<32x1xf32>
    %176 = vector.broadcast %175 : vector<32x1xf32> to vector<32x48xf32>
    %177 = arith.subf %167, %176 : vector<32x48xf32>
    %178 = arith.mulf %177, %177 : vector<32x48xf32>
    %cst_70 = arith.constant dense<0.000000e+00> : vector<32xf32>
    %179 = vector.multi_reduction <add>, %178, %cst_70 [1] : vector<32x48xf32> to vector<32xf32>
    %180 = vector.shape_cast %179 : vector<32xf32> to vector<32x1xf32>
    %cst_71 = arith.constant 4.800000e+01 : f32
    %181 = vector.broadcast %cst_71 : f32 to vector<32x1xf32>
    %182 = arith.divf %180, %181 : vector<32x1xf32>
    %cst_72 = arith.constant 9.99999974E-6 : f32
    %183 = vector.broadcast %cst_72 : f32 to vector<32x1xf32>
    %184 = arith.addf %182, %183 : vector<32x1xf32>
    %185 = math.rsqrt %184 : vector<32x1xf32>
    %186 = vector.broadcast %185 : vector<32x1xf32> to vector<32x48xf32>
    %187 = arith.mulf %177, %186 : vector<32x48xf32>
    %188 = vector.broadcast %169 : vector<1x48xf32> to vector<32x48xf32>
    %189 = arith.mulf %187, %188 : vector<32x48xf32>
    %190 = vector.broadcast %171 : vector<1x48xf32> to vector<32x48xf32>
    %191 = arith.addf %189, %190 : vector<32x48xf32>
    %c0_73 = arith.constant 0 : index
    %c0_74 = arith.constant 0 : index
    %c0_75 = arith.constant 0 : index
    %192 = vector.load %arg10[%c0_73, %c0_74, %c0_75] : memref<3x48x192xf32, #tpu.memory_space<vmem>>, vector<1x48x192xf32>
    %193 = vector.shape_cast %192 : vector<1x48x192xf32> to vector<48x192xf32>
    %cst_76 = arith.constant dense<0.000000e+00> : vector<32x192xf32>
    %194 = tpu.matmul %191, %193, %cst_76 {dimension_numbers = #tpu.dot_dimension_numbers<[1], [0], [0], [1], [0, 0, 1, 1], [], []>} : vector<32x48xf32>, vector<48x192xf32>, vector<32x192xf32> -> vector<32x192xf32>
    %c0_77 = arith.constant 0 : index
    %c0_78 = arith.constant 0 : index
    %c0_79 = arith.constant 0 : index
    %195 = vector.load %arg11[%c0_77, %c0_78, %c0_79] : memref<3x1x192xf32, #tpu.memory_space<vmem>>, vector<1x1x192xf32>
    %196 = vector.shape_cast %195 : vector<1x1x192xf32> to vector<1x192xf32>
    %197 = vector.broadcast %196 : vector<1x192xf32> to vector<32x192xf32>
    %198 = arith.addf %194, %197 : vector<32x192xf32>
    %cst_80 = arith.constant 0.000000e+00 : f32
    %199 = vector.broadcast %cst_80 : f32 to vector<32x192xf32>
    %200 = arith.maximumf %198, %199 : vector<32x192xf32>
    %c0_81 = arith.constant 0 : index
    %c0_82 = arith.constant 0 : index
    %c0_83 = arith.constant 0 : index
    %201 = vector.load %arg12[%c0_81, %c0_82, %c0_83] : memref<3x192x48xf32, #tpu.memory_space<vmem>>, vector<1x192x48xf32>
    %202 = vector.shape_cast %201 : vector<1x192x48xf32> to vector<192x48xf32>
    %cst_84 = arith.constant dense<0.000000e+00> : vector<32x48xf32>
    %203 = tpu.matmul %200, %202, %cst_84 {dimension_numbers = #tpu.dot_dimension_numbers<[1], [0], [0], [1], [0, 0, 1, 1], [], []>} : vector<32x192xf32>, vector<192x48xf32>, vector<32x48xf32> -> vector<32x48xf32>
    %204 = arith.addf %167, %203 : vector<32x48xf32>
    %c0_85 = arith.constant 0 : index
    %c0_86 = arith.constant 0 : index
    %c0_87 = arith.constant 0 : index
    %205 = vector.load %arg13[%c0_85, %c0_86, %c0_87] : memref<3x1x48xf32, #tpu.memory_space<vmem>>, vector<1x1x48xf32>
    %206 = vector.shape_cast %205 : vector<1x1x48xf32> to vector<1x48xf32>
    %207 = vector.broadcast %206 : vector<1x48xf32> to vector<32x48xf32>
    %208 = arith.addf %204, %207 : vector<32x48xf32>
    %c1 = arith.constant 1 : index
    %c0_88 = arith.constant 0 : index
    %c0_89 = arith.constant 0 : index
    %209 = vector.load %arg4[%c1, %c0_88, %c0_89] : memref<3x1x48xf32, #tpu.memory_space<vmem>>, vector<1x1x48xf32>
    %210 = vector.shape_cast %209 : vector<1x1x48xf32> to vector<1x48xf32>
    %c1_90 = arith.constant 1 : index
    %c0_91 = arith.constant 0 : index
    %c0_92 = arith.constant 0 : index
    %211 = vector.load %arg5[%c1_90, %c0_91, %c0_92] : memref<3x1x48xf32, #tpu.memory_space<vmem>>, vector<1x1x48xf32>
    %212 = vector.shape_cast %211 : vector<1x1x48xf32> to vector<1x48xf32>
    %cst_93 = arith.constant dense<0.000000e+00> : vector<32xf32>
    %213 = vector.multi_reduction <add>, %208, %cst_93 [1] : vector<32x48xf32> to vector<32xf32>
    %214 = vector.shape_cast %213 : vector<32xf32> to vector<32x1xf32>
    %cst_94 = arith.constant 4.800000e+01 : f32
    %215 = vector.broadcast %cst_94 : f32 to vector<32x1xf32>
    %216 = arith.divf %214, %215 : vector<32x1xf32>
    %217 = vector.broadcast %216 : vector<32x1xf32> to vector<32x48xf32>
    %218 = arith.subf %208, %217 : vector<32x48xf32>
    %219 = arith.mulf %218, %218 : vector<32x48xf32>
    %cst_95 = arith.constant dense<0.000000e+00> : vector<32xf32>
    %220 = vector.multi_reduction <add>, %219, %cst_95 [1] : vector<32x48xf32> to vector<32xf32>
    %221 = vector.shape_cast %220 : vector<32xf32> to vector<32x1xf32>
    %cst_96 = arith.constant 4.800000e+01 : f32
    %222 = vector.broadcast %cst_96 : f32 to vector<32x1xf32>
    %223 = arith.divf %221, %222 : vector<32x1xf32>
    %cst_97 = arith.constant 9.99999974E-6 : f32
    %224 = vector.broadcast %cst_97 : f32 to vector<32x1xf32>
    %225 = arith.addf %223, %224 : vector<32x1xf32>
    %226 = math.rsqrt %225 : vector<32x1xf32>
    %227 = vector.broadcast %226 : vector<32x1xf32> to vector<32x48xf32>
    %228 = arith.mulf %218, %227 : vector<32x48xf32>
    %229 = vector.broadcast %210 : vector<1x48xf32> to vector<32x48xf32>
    %230 = arith.mulf %228, %229 : vector<32x48xf32>
    %231 = vector.broadcast %212 : vector<1x48xf32> to vector<32x48xf32>
    %232 = arith.addf %230, %231 : vector<32x48xf32>
    %c1_98 = arith.constant 1 : index
    %c0_99 = arith.constant 0 : index
    %c0_100 = arith.constant 0 : index
    %233 = vector.load %arg6[%c1_98, %c0_99, %c0_100] : memref<3x48x144xf32, #tpu.memory_space<vmem>>, vector<1x48x144xf32>
    %234 = vector.shape_cast %233 : vector<1x48x144xf32> to vector<48x144xf32>
    %cst_101 = arith.constant dense<0.000000e+00> : vector<32x144xf32>
    %235 = tpu.matmul %232, %234, %cst_101 {dimension_numbers = #tpu.dot_dimension_numbers<[1], [0], [0], [1], [0, 0, 1, 1], [], []>} : vector<32x48xf32>, vector<48x144xf32>, vector<32x144xf32> -> vector<32x144xf32>
    %c1_102 = arith.constant 1 : index
    %c0_103 = arith.constant 0 : index
    %c0_104 = arith.constant 0 : index
    %236 = vector.load %arg7[%c1_102, %c0_103, %c0_104] : memref<3x48x48xf32, #tpu.memory_space<vmem>>, vector<1x48x48xf32>
    %237 = vector.shape_cast %236 : vector<1x48x48xf32> to vector<48x48xf32>
    %cst_105 = arith.constant 0.000000e+00 : f32
    %238 = vector.broadcast %cst_105 : f32 to vector<32x48xf32>
    %239 = vector.extract_strided_slice %235 {offsets = [0, 0], sizes = [32, 8], strides = [1, 1]} : vector<32x144xf32> to vector<32x8xf32>
    %cst_106 = arith.constant 0.353553385 : f32
    %240 = vector.broadcast %cst_106 : f32 to vector<32x8xf32>
    %241 = arith.mulf %239, %240 : vector<32x8xf32>
    %242 = vector.extract_strided_slice %235 {offsets = [0, 48], sizes = [32, 8], strides = [1, 1]} : vector<32x144xf32> to vector<32x8xf32>
    %243 = vector.extract_strided_slice %235 {offsets = [0, 96], sizes = [32, 8], strides = [1, 1]} : vector<32x144xf32> to vector<32x8xf32>
    %cst_107 = arith.constant dense<0.000000e+00> : vector<32x32xf32>
    %244 = tpu.matmul %241, %242, %cst_107 {dimension_numbers = #tpu.dot_dimension_numbers<[1], [1], [0], [0], [0, 0, 1, 0], [], []>} : vector<32x8xf32>, vector<32x8xf32>, vector<32x32xf32> -> vector<32x32xf32>
    %245 = arith.addf %244, %10 : vector<32x32xf32>
    %cst_108 = arith.constant dense<0xFF800000> : vector<32xf32>
    %246 = vector.multi_reduction <maximumf>, %245, %cst_108 [1] : vector<32x32xf32> to vector<32xf32>
    %247 = vector.shape_cast %246 : vector<32xf32> to vector<32x1xf32>
    %248 = vector.broadcast %247 : vector<32x1xf32> to vector<32x32xf32>
    %249 = arith.subf %245, %248 : vector<32x32xf32>
    %250 = math.exp %249 : vector<32x32xf32>
    %cst_109 = arith.constant dense<0.000000e+00> : vector<32xf32>
    %251 = vector.multi_reduction <add>, %250, %cst_109 [1] : vector<32x32xf32> to vector<32xf32>
    %252 = vector.shape_cast %251 : vector<32xf32> to vector<32x1xf32>
    %253 = tpu.reciprocal %252 : vector<32x1xf32> -> vector<32x1xf32>
    %254 = vector.broadcast %253 : vector<32x1xf32> to vector<32x32xf32>
    %255 = arith.mulf %250, %254 : vector<32x32xf32>
    %cst_110 = arith.constant dense<0.000000e+00> : vector<32x8xf32>
    %256 = tpu.matmul %255, %243, %cst_110 {dimension_numbers = #tpu.dot_dimension_numbers<[1], [0], [0], [1], [0, 0, 1, 1], [], []>} : vector<32x32xf32>, vector<32x8xf32>, vector<32x8xf32> -> vector<32x8xf32>
    %257 = vector.extract_strided_slice %237 {offsets = [0, 0], sizes = [8, 48], strides = [1, 1]} : vector<48x48xf32> to vector<8x48xf32>
    %cst_111 = arith.constant dense<0.000000e+00> : vector<32x48xf32>
    %258 = tpu.matmul %256, %257, %cst_111 {dimension_numbers = #tpu.dot_dimension_numbers<[1], [0], [0], [1], [0, 0, 1, 1], [], []>} : vector<32x8xf32>, vector<8x48xf32>, vector<32x48xf32> -> vector<32x48xf32>
    %259 = arith.addf %238, %258 : vector<32x48xf32>
    %260 = vector.extract_strided_slice %235 {offsets = [0, 8], sizes = [32, 8], strides = [1, 1]} : vector<32x144xf32> to vector<32x8xf32>
    %cst_112 = arith.constant 0.353553385 : f32
    %261 = vector.broadcast %cst_112 : f32 to vector<32x8xf32>
    %262 = arith.mulf %260, %261 : vector<32x8xf32>
    %263 = vector.extract_strided_slice %235 {offsets = [0, 56], sizes = [32, 8], strides = [1, 1]} : vector<32x144xf32> to vector<32x8xf32>
    %264 = vector.extract_strided_slice %235 {offsets = [0, 104], sizes = [32, 8], strides = [1, 1]} : vector<32x144xf32> to vector<32x8xf32>
    %cst_113 = arith.constant dense<0.000000e+00> : vector<32x32xf32>
    %265 = tpu.matmul %262, %263, %cst_113 {dimension_numbers = #tpu.dot_dimension_numbers<[1], [1], [0], [0], [0, 0, 1, 0], [], []>} : vector<32x8xf32>, vector<32x8xf32>, vector<32x32xf32> -> vector<32x32xf32>
    %266 = arith.addf %265, %10 : vector<32x32xf32>
    %cst_114 = arith.constant dense<0xFF800000> : vector<32xf32>
    %267 = vector.multi_reduction <maximumf>, %266, %cst_114 [1] : vector<32x32xf32> to vector<32xf32>
    %268 = vector.shape_cast %267 : vector<32xf32> to vector<32x1xf32>
    %269 = vector.broadcast %268 : vector<32x1xf32> to vector<32x32xf32>
    %270 = arith.subf %266, %269 : vector<32x32xf32>
    %271 = math.exp %270 : vector<32x32xf32>
    %cst_115 = arith.constant dense<0.000000e+00> : vector<32xf32>
    %272 = vector.multi_reduction <add>, %271, %cst_115 [1] : vector<32x32xf32> to vector<32xf32>
    %273 = vector.shape_cast %272 : vector<32xf32> to vector<32x1xf32>
    %274 = tpu.reciprocal %273 : vector<32x1xf32> -> vector<32x1xf32>
    %275 = vector.broadcast %274 : vector<32x1xf32> to vector<32x32xf32>
    %276 = arith.mulf %271, %275 : vector<32x32xf32>
    %cst_116 = arith.constant dense<0.000000e+00> : vector<32x8xf32>
    %277 = tpu.matmul %276, %264, %cst_116 {dimension_numbers = #tpu.dot_dimension_numbers<[1], [0], [0], [1], [0, 0, 1, 1], [], []>} : vector<32x32xf32>, vector<32x8xf32>, vector<32x8xf32> -> vector<32x8xf32>
    %278 = vector.extract_strided_slice %237 {offsets = [8, 0], sizes = [8, 48], strides = [1, 1]} : vector<48x48xf32> to vector<8x48xf32>
    %cst_117 = arith.constant dense<0.000000e+00> : vector<32x48xf32>
    %279 = tpu.matmul %277, %278, %cst_117 {dimension_numbers = #tpu.dot_dimension_numbers<[1], [0], [0], [1], [0, 0, 1, 1], [], []>} : vector<32x8xf32>, vector<8x48xf32>, vector<32x48xf32> -> vector<32x48xf32>
    %280 = arith.addf %259, %279 : vector<32x48xf32>
    %281 = vector.extract_strided_slice %235 {offsets = [0, 16], sizes = [32, 8], strides = [1, 1]} : vector<32x144xf32> to vector<32x8xf32>
    %cst_118 = arith.constant 0.353553385 : f32
    %282 = vector.broadcast %cst_118 : f32 to vector<32x8xf32>
    %283 = arith.mulf %281, %282 : vector<32x8xf32>
    %284 = vector.extract_strided_slice %235 {offsets = [0, 64], sizes = [32, 8], strides = [1, 1]} : vector<32x144xf32> to vector<32x8xf32>
    %285 = vector.extract_strided_slice %235 {offsets = [0, 112], sizes = [32, 8], strides = [1, 1]} : vector<32x144xf32> to vector<32x8xf32>
    %cst_119 = arith.constant dense<0.000000e+00> : vector<32x32xf32>
    %286 = tpu.matmul %283, %284, %cst_119 {dimension_numbers = #tpu.dot_dimension_numbers<[1], [1], [0], [0], [0, 0, 1, 0], [], []>} : vector<32x8xf32>, vector<32x8xf32>, vector<32x32xf32> -> vector<32x32xf32>
    %287 = arith.addf %286, %10 : vector<32x32xf32>
    %cst_120 = arith.constant dense<0xFF800000> : vector<32xf32>
    %288 = vector.multi_reduction <maximumf>, %287, %cst_120 [1] : vector<32x32xf32> to vector<32xf32>
    %289 = vector.shape_cast %288 : vector<32xf32> to vector<32x1xf32>
    %290 = vector.broadcast %289 : vector<32x1xf32> to vector<32x32xf32>
    %291 = arith.subf %287, %290 : vector<32x32xf32>
    %292 = math.exp %291 : vector<32x32xf32>
    %cst_121 = arith.constant dense<0.000000e+00> : vector<32xf32>
    %293 = vector.multi_reduction <add>, %292, %cst_121 [1] : vector<32x32xf32> to vector<32xf32>
    %294 = vector.shape_cast %293 : vector<32xf32> to vector<32x1xf32>
    %295 = tpu.reciprocal %294 : vector<32x1xf32> -> vector<32x1xf32>
    %296 = vector.broadcast %295 : vector<32x1xf32> to vector<32x32xf32>
    %297 = arith.mulf %292, %296 : vector<32x32xf32>
    %cst_122 = arith.constant dense<0.000000e+00> : vector<32x8xf32>
    %298 = tpu.matmul %297, %285, %cst_122 {dimension_numbers = #tpu.dot_dimension_numbers<[1], [0], [0], [1], [0, 0, 1, 1], [], []>} : vector<32x32xf32>, vector<32x8xf32>, vector<32x8xf32> -> vector<32x8xf32>
    %299 = vector.extract_strided_slice %237 {offsets = [16, 0], sizes = [8, 48], strides = [1, 1]} : vector<48x48xf32> to vector<8x48xf32>
    %cst_123 = arith.constant dense<0.000000e+00> : vector<32x48xf32>
    %300 = tpu.matmul %298, %299, %cst_123 {dimension_numbers = #tpu.dot_dimension_numbers<[1], [0], [0], [1], [0, 0, 1, 1], [], []>} : vector<32x8xf32>, vector<8x48xf32>, vector<32x48xf32> -> vector<32x48xf32>
    %301 = arith.addf %280, %300 : vector<32x48xf32>
    %302 = vector.extract_strided_slice %235 {offsets = [0, 24], sizes = [32, 8], strides = [1, 1]} : vector<32x144xf32> to vector<32x8xf32>
    %cst_124 = arith.constant 0.353553385 : f32
    %303 = vector.broadcast %cst_124 : f32 to vector<32x8xf32>
    %304 = arith.mulf %302, %303 : vector<32x8xf32>
    %305 = vector.extract_strided_slice %235 {offsets = [0, 72], sizes = [32, 8], strides = [1, 1]} : vector<32x144xf32> to vector<32x8xf32>
    %306 = vector.extract_strided_slice %235 {offsets = [0, 120], sizes = [32, 8], strides = [1, 1]} : vector<32x144xf32> to vector<32x8xf32>
    %cst_125 = arith.constant dense<0.000000e+00> : vector<32x32xf32>
    %307 = tpu.matmul %304, %305, %cst_125 {dimension_numbers = #tpu.dot_dimension_numbers<[1], [1], [0], [0], [0, 0, 1, 0], [], []>} : vector<32x8xf32>, vector<32x8xf32>, vector<32x32xf32> -> vector<32x32xf32>
    %308 = arith.addf %307, %10 : vector<32x32xf32>
    %cst_126 = arith.constant dense<0xFF800000> : vector<32xf32>
    %309 = vector.multi_reduction <maximumf>, %308, %cst_126 [1] : vector<32x32xf32> to vector<32xf32>
    %310 = vector.shape_cast %309 : vector<32xf32> to vector<32x1xf32>
    %311 = vector.broadcast %310 : vector<32x1xf32> to vector<32x32xf32>
    %312 = arith.subf %308, %311 : vector<32x32xf32>
    %313 = math.exp %312 : vector<32x32xf32>
    %cst_127 = arith.constant dense<0.000000e+00> : vector<32xf32>
    %314 = vector.multi_reduction <add>, %313, %cst_127 [1] : vector<32x32xf32> to vector<32xf32>
    %315 = vector.shape_cast %314 : vector<32xf32> to vector<32x1xf32>
    %316 = tpu.reciprocal %315 : vector<32x1xf32> -> vector<32x1xf32>
    %317 = vector.broadcast %316 : vector<32x1xf32> to vector<32x32xf32>
    %318 = arith.mulf %313, %317 : vector<32x32xf32>
    %cst_128 = arith.constant dense<0.000000e+00> : vector<32x8xf32>
    %319 = tpu.matmul %318, %306, %cst_128 {dimension_numbers = #tpu.dot_dimension_numbers<[1], [0], [0], [1], [0, 0, 1, 1], [], []>} : vector<32x32xf32>, vector<32x8xf32>, vector<32x8xf32> -> vector<32x8xf32>
    %320 = vector.extract_strided_slice %237 {offsets = [24, 0], sizes = [8, 48], strides = [1, 1]} : vector<48x48xf32> to vector<8x48xf32>
    %cst_129 = arith.constant dense<0.000000e+00> : vector<32x48xf32>
    %321 = tpu.matmul %319, %320, %cst_129 {dimension_numbers = #tpu.dot_dimension_numbers<[1], [0], [0], [1], [0, 0, 1, 1], [], []>} : vector<32x8xf32>, vector<8x48xf32>, vector<32x48xf32> -> vector<32x48xf32>
    %322 = arith.addf %301, %321 : vector<32x48xf32>
    %323 = vector.extract_strided_slice %235 {offsets = [0, 32], sizes = [32, 8], strides = [1, 1]} : vector<32x144xf32> to vector<32x8xf32>
    %cst_130 = arith.constant 0.353553385 : f32
    %324 = vector.broadcast %cst_130 : f32 to vector<32x8xf32>
    %325 = arith.mulf %323, %324 : vector<32x8xf32>
    %326 = vector.extract_strided_slice %235 {offsets = [0, 80], sizes = [32, 8], strides = [1, 1]} : vector<32x144xf32> to vector<32x8xf32>
    %327 = vector.extract_strided_slice %235 {offsets = [0, 128], sizes = [32, 8], strides = [1, 1]} : vector<32x144xf32> to vector<32x8xf32>
    %cst_131 = arith.constant dense<0.000000e+00> : vector<32x32xf32>
    %328 = tpu.matmul %325, %326, %cst_131 {dimension_numbers = #tpu.dot_dimension_numbers<[1], [1], [0], [0], [0, 0, 1, 0], [], []>} : vector<32x8xf32>, vector<32x8xf32>, vector<32x32xf32> -> vector<32x32xf32>
    %329 = arith.addf %328, %10 : vector<32x32xf32>
    %cst_132 = arith.constant dense<0xFF800000> : vector<32xf32>
    %330 = vector.multi_reduction <maximumf>, %329, %cst_132 [1] : vector<32x32xf32> to vector<32xf32>
    %331 = vector.shape_cast %330 : vector<32xf32> to vector<32x1xf32>
    %332 = vector.broadcast %331 : vector<32x1xf32> to vector<32x32xf32>
    %333 = arith.subf %329, %332 : vector<32x32xf32>
    %334 = math.exp %333 : vector<32x32xf32>
    %cst_133 = arith.constant dense<0.000000e+00> : vector<32xf32>
    %335 = vector.multi_reduction <add>, %334, %cst_133 [1] : vector<32x32xf32> to vector<32xf32>
    %336 = vector.shape_cast %335 : vector<32xf32> to vector<32x1xf32>
    %337 = tpu.reciprocal %336 : vector<32x1xf32> -> vector<32x1xf32>
    %338 = vector.broadcast %337 : vector<32x1xf32> to vector<32x32xf32>
    %339 = arith.mulf %334, %338 : vector<32x32xf32>
    %cst_134 = arith.constant dense<0.000000e+00> : vector<32x8xf32>
    %340 = tpu.matmul %339, %327, %cst_134 {dimension_numbers = #tpu.dot_dimension_numbers<[1], [0], [0], [1], [0, 0, 1, 1], [], []>} : vector<32x32xf32>, vector<32x8xf32>, vector<32x8xf32> -> vector<32x8xf32>
    %341 = vector.extract_strided_slice %237 {offsets = [32, 0], sizes = [8, 48], strides = [1, 1]} : vector<48x48xf32> to vector<8x48xf32>
    %cst_135 = arith.constant dense<0.000000e+00> : vector<32x48xf32>
    %342 = tpu.matmul %340, %341, %cst_135 {dimension_numbers = #tpu.dot_dimension_numbers<[1], [0], [0], [1], [0, 0, 1, 1], [], []>} : vector<32x8xf32>, vector<8x48xf32>, vector<32x48xf32> -> vector<32x48xf32>
    %343 = arith.addf %322, %342 : vector<32x48xf32>
    %344 = vector.extract_strided_slice %235 {offsets = [0, 40], sizes = [32, 8], strides = [1, 1]} : vector<32x144xf32> to vector<32x8xf32>
    %cst_136 = arith.constant 0.353553385 : f32
    %345 = vector.broadcast %cst_136 : f32 to vector<32x8xf32>
    %346 = arith.mulf %344, %345 : vector<32x8xf32>
    %347 = vector.extract_strided_slice %235 {offsets = [0, 88], sizes = [32, 8], strides = [1, 1]} : vector<32x144xf32> to vector<32x8xf32>
    %348 = vector.extract_strided_slice %235 {offsets = [0, 136], sizes = [32, 8], strides = [1, 1]} : vector<32x144xf32> to vector<32x8xf32>
    %cst_137 = arith.constant dense<0.000000e+00> : vector<32x32xf32>
    %349 = tpu.matmul %346, %347, %cst_137 {dimension_numbers = #tpu.dot_dimension_numbers<[1], [1], [0], [0], [0, 0, 1, 0], [], []>} : vector<32x8xf32>, vector<32x8xf32>, vector<32x32xf32> -> vector<32x32xf32>
    %350 = arith.addf %349, %10 : vector<32x32xf32>
    %cst_138 = arith.constant dense<0xFF800000> : vector<32xf32>
    %351 = vector.multi_reduction <maximumf>, %350, %cst_138 [1] : vector<32x32xf32> to vector<32xf32>
    %352 = vector.shape_cast %351 : vector<32xf32> to vector<32x1xf32>
    %353 = vector.broadcast %352 : vector<32x1xf32> to vector<32x32xf32>
    %354 = arith.subf %350, %353 : vector<32x32xf32>
    %355 = math.exp %354 : vector<32x32xf32>
    %cst_139 = arith.constant dense<0.000000e+00> : vector<32xf32>
    %356 = vector.multi_reduction <add>, %355, %cst_139 [1] : vector<32x32xf32> to vector<32xf32>
    %357 = vector.shape_cast %356 : vector<32xf32> to vector<32x1xf32>
    %358 = tpu.reciprocal %357 : vector<32x1xf32> -> vector<32x1xf32>
    %359 = vector.broadcast %358 : vector<32x1xf32> to vector<32x32xf32>
    %360 = arith.mulf %355, %359 : vector<32x32xf32>
    %cst_140 = arith.constant dense<0.000000e+00> : vector<32x8xf32>
    %361 = tpu.matmul %360, %348, %cst_140 {dimension_numbers = #tpu.dot_dimension_numbers<[1], [0], [0], [1], [0, 0, 1, 1], [], []>} : vector<32x32xf32>, vector<32x8xf32>, vector<32x8xf32> -> vector<32x8xf32>
    %362 = vector.extract_strided_slice %237 {offsets = [40, 0], sizes = [8, 48], strides = [1, 1]} : vector<48x48xf32> to vector<8x48xf32>
    %cst_141 = arith.constant dense<0.000000e+00> : vector<32x48xf32>
    %363 = tpu.matmul %361, %362, %cst_141 {dimension_numbers = #tpu.dot_dimension_numbers<[1], [0], [0], [1], [0, 0, 1, 1], [], []>} : vector<32x8xf32>, vector<8x48xf32>, vector<32x48xf32> -> vector<32x48xf32>
    %364 = arith.addf %343, %363 : vector<32x48xf32>
    %365 = arith.addf %208, %364 : vector<32x48xf32>
    %c1_142 = arith.constant 1 : index
    %c0_143 = arith.constant 0 : index
    %c0_144 = arith.constant 0 : index
    %366 = vector.load %arg8[%c1_142, %c0_143, %c0_144] : memref<3x1x48xf32, #tpu.memory_space<vmem>>, vector<1x1x48xf32>
    %367 = vector.shape_cast %366 : vector<1x1x48xf32> to vector<1x48xf32>
    %c1_145 = arith.constant 1 : index
    %c0_146 = arith.constant 0 : index
    %c0_147 = arith.constant 0 : index
    %368 = vector.load %arg9[%c1_145, %c0_146, %c0_147] : memref<3x1x48xf32, #tpu.memory_space<vmem>>, vector<1x1x48xf32>
    %369 = vector.shape_cast %368 : vector<1x1x48xf32> to vector<1x48xf32>
    %cst_148 = arith.constant dense<0.000000e+00> : vector<32xf32>
    %370 = vector.multi_reduction <add>, %365, %cst_148 [1] : vector<32x48xf32> to vector<32xf32>
    %371 = vector.shape_cast %370 : vector<32xf32> to vector<32x1xf32>
    %cst_149 = arith.constant 4.800000e+01 : f32
    %372 = vector.broadcast %cst_149 : f32 to vector<32x1xf32>
    %373 = arith.divf %371, %372 : vector<32x1xf32>
    %374 = vector.broadcast %373 : vector<32x1xf32> to vector<32x48xf32>
    %375 = arith.subf %365, %374 : vector<32x48xf32>
    %376 = arith.mulf %375, %375 : vector<32x48xf32>
    %cst_150 = arith.constant dense<0.000000e+00> : vector<32xf32>
    %377 = vector.multi_reduction <add>, %376, %cst_150 [1] : vector<32x48xf32> to vector<32xf32>
    %378 = vector.shape_cast %377 : vector<32xf32> to vector<32x1xf32>
    %cst_151 = arith.constant 4.800000e+01 : f32
    %379 = vector.broadcast %cst_151 : f32 to vector<32x1xf32>
    %380 = arith.divf %378, %379 : vector<32x1xf32>
    %cst_152 = arith.constant 9.99999974E-6 : f32
    %381 = vector.broadcast %cst_152 : f32 to vector<32x1xf32>
    %382 = arith.addf %380, %381 : vector<32x1xf32>
    %383 = math.rsqrt %382 : vector<32x1xf32>
    %384 = vector.broadcast %383 : vector<32x1xf32> to vector<32x48xf32>
    %385 = arith.mulf %375, %384 : vector<32x48xf32>
    %386 = vector.broadcast %367 : vector<1x48xf32> to vector<32x48xf32>
    %387 = arith.mulf %385, %386 : vector<32x48xf32>
    %388 = vector.broadcast %369 : vector<1x48xf32> to vector<32x48xf32>
    %389 = arith.addf %387, %388 : vector<32x48xf32>
    %c1_153 = arith.constant 1 : index
    %c0_154 = arith.constant 0 : index
    %c0_155 = arith.constant 0 : index
    %390 = vector.load %arg10[%c1_153, %c0_154, %c0_155] : memref<3x48x192xf32, #tpu.memory_space<vmem>>, vector<1x48x192xf32>
    %391 = vector.shape_cast %390 : vector<1x48x192xf32> to vector<48x192xf32>
    %cst_156 = arith.constant dense<0.000000e+00> : vector<32x192xf32>
    %392 = tpu.matmul %389, %391, %cst_156 {dimension_numbers = #tpu.dot_dimension_numbers<[1], [0], [0], [1], [0, 0, 1, 1], [], []>} : vector<32x48xf32>, vector<48x192xf32>, vector<32x192xf32> -> vector<32x192xf32>
    %c1_157 = arith.constant 1 : index
    %c0_158 = arith.constant 0 : index
    %c0_159 = arith.constant 0 : index
    %393 = vector.load %arg11[%c1_157, %c0_158, %c0_159] : memref<3x1x192xf32, #tpu.memory_space<vmem>>, vector<1x1x192xf32>
    %394 = vector.shape_cast %393 : vector<1x1x192xf32> to vector<1x192xf32>
    %395 = vector.broadcast %394 : vector<1x192xf32> to vector<32x192xf32>
    %396 = arith.addf %392, %395 : vector<32x192xf32>
    %cst_160 = arith.constant 0.000000e+00 : f32
    %397 = vector.broadcast %cst_160 : f32 to vector<32x192xf32>
    %398 = arith.maximumf %396, %397 : vector<32x192xf32>
    %c1_161 = arith.constant 1 : index
    %c0_162 = arith.constant 0 : index
    %c0_163 = arith.constant 0 : index
    %399 = vector.load %arg12[%c1_161, %c0_162, %c0_163] : memref<3x192x48xf32, #tpu.memory_space<vmem>>, vector<1x192x48xf32>
    %400 = vector.shape_cast %399 : vector<1x192x48xf32> to vector<192x48xf32>
    %cst_164 = arith.constant dense<0.000000e+00> : vector<32x48xf32>
    %401 = tpu.matmul %398, %400, %cst_164 {dimension_numbers = #tpu.dot_dimension_numbers<[1], [0], [0], [1], [0, 0, 1, 1], [], []>} : vector<32x192xf32>, vector<192x48xf32>, vector<32x48xf32> -> vector<32x48xf32>
    %402 = arith.addf %365, %401 : vector<32x48xf32>
    %c1_165 = arith.constant 1 : index
    %c0_166 = arith.constant 0 : index
    %c0_167 = arith.constant 0 : index
    %403 = vector.load %arg13[%c1_165, %c0_166, %c0_167] : memref<3x1x48xf32, #tpu.memory_space<vmem>>, vector<1x1x48xf32>
    %404 = vector.shape_cast %403 : vector<1x1x48xf32> to vector<1x48xf32>
    %405 = vector.broadcast %404 : vector<1x48xf32> to vector<32x48xf32>
    %406 = arith.addf %402, %405 : vector<32x48xf32>
    %c2 = arith.constant 2 : index
    %c0_168 = arith.constant 0 : index
    %c0_169 = arith.constant 0 : index
    %407 = vector.load %arg4[%c2, %c0_168, %c0_169] : memref<3x1x48xf32, #tpu.memory_space<vmem>>, vector<1x1x48xf32>
    %408 = vector.shape_cast %407 : vector<1x1x48xf32> to vector<1x48xf32>
    %c2_170 = arith.constant 2 : index
    %c0_171 = arith.constant 0 : index
    %c0_172 = arith.constant 0 : index
    %409 = vector.load %arg5[%c2_170, %c0_171, %c0_172] : memref<3x1x48xf32, #tpu.memory_space<vmem>>, vector<1x1x48xf32>
    %410 = vector.shape_cast %409 : vector<1x1x48xf32> to vector<1x48xf32>
    %cst_173 = arith.constant dense<0.000000e+00> : vector<32xf32>
    %411 = vector.multi_reduction <add>, %406, %cst_173 [1] : vector<32x48xf32> to vector<32xf32>
    %412 = vector.shape_cast %411 : vector<32xf32> to vector<32x1xf32>
    %cst_174 = arith.constant 4.800000e+01 : f32
    %413 = vector.broadcast %cst_174 : f32 to vector<32x1xf32>
    %414 = arith.divf %412, %413 : vector<32x1xf32>
    %415 = vector.broadcast %414 : vector<32x1xf32> to vector<32x48xf32>
    %416 = arith.subf %406, %415 : vector<32x48xf32>
    %417 = arith.mulf %416, %416 : vector<32x48xf32>
    %cst_175 = arith.constant dense<0.000000e+00> : vector<32xf32>
    %418 = vector.multi_reduction <add>, %417, %cst_175 [1] : vector<32x48xf32> to vector<32xf32>
    %419 = vector.shape_cast %418 : vector<32xf32> to vector<32x1xf32>
    %cst_176 = arith.constant 4.800000e+01 : f32
    %420 = vector.broadcast %cst_176 : f32 to vector<32x1xf32>
    %421 = arith.divf %419, %420 : vector<32x1xf32>
    %cst_177 = arith.constant 9.99999974E-6 : f32
    %422 = vector.broadcast %cst_177 : f32 to vector<32x1xf32>
    %423 = arith.addf %421, %422 : vector<32x1xf32>
    %424 = math.rsqrt %423 : vector<32x1xf32>
    %425 = vector.broadcast %424 : vector<32x1xf32> to vector<32x48xf32>
    %426 = arith.mulf %416, %425 : vector<32x48xf32>
    %427 = vector.broadcast %408 : vector<1x48xf32> to vector<32x48xf32>
    %428 = arith.mulf %426, %427 : vector<32x48xf32>
    %429 = vector.broadcast %410 : vector<1x48xf32> to vector<32x48xf32>
    %430 = arith.addf %428, %429 : vector<32x48xf32>
    %c2_178 = arith.constant 2 : index
    %c0_179 = arith.constant 0 : index
    %c0_180 = arith.constant 0 : index
    %431 = vector.load %arg6[%c2_178, %c0_179, %c0_180] : memref<3x48x144xf32, #tpu.memory_space<vmem>>, vector<1x48x144xf32>
    %432 = vector.shape_cast %431 : vector<1x48x144xf32> to vector<48x144xf32>
    %cst_181 = arith.constant dense<0.000000e+00> : vector<32x144xf32>
    %433 = tpu.matmul %430, %432, %cst_181 {dimension_numbers = #tpu.dot_dimension_numbers<[1], [0], [0], [1], [0, 0, 1, 1], [], []>} : vector<32x48xf32>, vector<48x144xf32>, vector<32x144xf32> -> vector<32x144xf32>
    %c2_182 = arith.constant 2 : index
    %c0_183 = arith.constant 0 : index
    %c0_184 = arith.constant 0 : index
    %434 = vector.load %arg7[%c2_182, %c0_183, %c0_184] : memref<3x48x48xf32, #tpu.memory_space<vmem>>, vector<1x48x48xf32>
    %435 = vector.shape_cast %434 : vector<1x48x48xf32> to vector<48x48xf32>
    %cst_185 = arith.constant 0.000000e+00 : f32
    %436 = vector.broadcast %cst_185 : f32 to vector<32x48xf32>
    %437 = vector.extract_strided_slice %433 {offsets = [0, 0], sizes = [32, 8], strides = [1, 1]} : vector<32x144xf32> to vector<32x8xf32>
    %cst_186 = arith.constant 0.353553385 : f32
    %438 = vector.broadcast %cst_186 : f32 to vector<32x8xf32>
    %439 = arith.mulf %437, %438 : vector<32x8xf32>
    %440 = vector.extract_strided_slice %433 {offsets = [0, 48], sizes = [32, 8], strides = [1, 1]} : vector<32x144xf32> to vector<32x8xf32>
    %441 = vector.extract_strided_slice %433 {offsets = [0, 96], sizes = [32, 8], strides = [1, 1]} : vector<32x144xf32> to vector<32x8xf32>
    %cst_187 = arith.constant dense<0.000000e+00> : vector<32x32xf32>
    %442 = tpu.matmul %439, %440, %cst_187 {dimension_numbers = #tpu.dot_dimension_numbers<[1], [1], [0], [0], [0, 0, 1, 0], [], []>} : vector<32x8xf32>, vector<32x8xf32>, vector<32x32xf32> -> vector<32x32xf32>
    %443 = arith.addf %442, %10 : vector<32x32xf32>
    %cst_188 = arith.constant dense<0xFF800000> : vector<32xf32>
    %444 = vector.multi_reduction <maximumf>, %443, %cst_188 [1] : vector<32x32xf32> to vector<32xf32>
    %445 = vector.shape_cast %444 : vector<32xf32> to vector<32x1xf32>
    %446 = vector.broadcast %445 : vector<32x1xf32> to vector<32x32xf32>
    %447 = arith.subf %443, %446 : vector<32x32xf32>
    %448 = math.exp %447 : vector<32x32xf32>
    %cst_189 = arith.constant dense<0.000000e+00> : vector<32xf32>
    %449 = vector.multi_reduction <add>, %448, %cst_189 [1] : vector<32x32xf32> to vector<32xf32>
    %450 = vector.shape_cast %449 : vector<32xf32> to vector<32x1xf32>
    %451 = tpu.reciprocal %450 : vector<32x1xf32> -> vector<32x1xf32>
    %452 = vector.broadcast %451 : vector<32x1xf32> to vector<32x32xf32>
    %453 = arith.mulf %448, %452 : vector<32x32xf32>
    %cst_190 = arith.constant dense<0.000000e+00> : vector<32x8xf32>
    %454 = tpu.matmul %453, %441, %cst_190 {dimension_numbers = #tpu.dot_dimension_numbers<[1], [0], [0], [1], [0, 0, 1, 1], [], []>} : vector<32x32xf32>, vector<32x8xf32>, vector<32x8xf32> -> vector<32x8xf32>
    %455 = vector.extract_strided_slice %435 {offsets = [0, 0], sizes = [8, 48], strides = [1, 1]} : vector<48x48xf32> to vector<8x48xf32>
    %cst_191 = arith.constant dense<0.000000e+00> : vector<32x48xf32>
    %456 = tpu.matmul %454, %455, %cst_191 {dimension_numbers = #tpu.dot_dimension_numbers<[1], [0], [0], [1], [0, 0, 1, 1], [], []>} : vector<32x8xf32>, vector<8x48xf32>, vector<32x48xf32> -> vector<32x48xf32>
    %457 = arith.addf %436, %456 : vector<32x48xf32>
    %458 = vector.extract_strided_slice %433 {offsets = [0, 8], sizes = [32, 8], strides = [1, 1]} : vector<32x144xf32> to vector<32x8xf32>
    %cst_192 = arith.constant 0.353553385 : f32
    %459 = vector.broadcast %cst_192 : f32 to vector<32x8xf32>
    %460 = arith.mulf %458, %459 : vector<32x8xf32>
    %461 = vector.extract_strided_slice %433 {offsets = [0, 56], sizes = [32, 8], strides = [1, 1]} : vector<32x144xf32> to vector<32x8xf32>
    %462 = vector.extract_strided_slice %433 {offsets = [0, 104], sizes = [32, 8], strides = [1, 1]} : vector<32x144xf32> to vector<32x8xf32>
    %cst_193 = arith.constant dense<0.000000e+00> : vector<32x32xf32>
    %463 = tpu.matmul %460, %461, %cst_193 {dimension_numbers = #tpu.dot_dimension_numbers<[1], [1], [0], [0], [0, 0, 1, 0], [], []>} : vector<32x8xf32>, vector<32x8xf32>, vector<32x32xf32> -> vector<32x32xf32>
    %464 = arith.addf %463, %10 : vector<32x32xf32>
    %cst_194 = arith.constant dense<0xFF800000> : vector<32xf32>
    %465 = vector.multi_reduction <maximumf>, %464, %cst_194 [1] : vector<32x32xf32> to vector<32xf32>
    %466 = vector.shape_cast %465 : vector<32xf32> to vector<32x1xf32>
    %467 = vector.broadcast %466 : vector<32x1xf32> to vector<32x32xf32>
    %468 = arith.subf %464, %467 : vector<32x32xf32>
    %469 = math.exp %468 : vector<32x32xf32>
    %cst_195 = arith.constant dense<0.000000e+00> : vector<32xf32>
    %470 = vector.multi_reduction <add>, %469, %cst_195 [1] : vector<32x32xf32> to vector<32xf32>
    %471 = vector.shape_cast %470 : vector<32xf32> to vector<32x1xf32>
    %472 = tpu.reciprocal %471 : vector<32x1xf32> -> vector<32x1xf32>
    %473 = vector.broadcast %472 : vector<32x1xf32> to vector<32x32xf32>
    %474 = arith.mulf %469, %473 : vector<32x32xf32>
    %cst_196 = arith.constant dense<0.000000e+00> : vector<32x8xf32>
    %475 = tpu.matmul %474, %462, %cst_196 {dimension_numbers = #tpu.dot_dimension_numbers<[1], [0], [0], [1], [0, 0, 1, 1], [], []>} : vector<32x32xf32>, vector<32x8xf32>, vector<32x8xf32> -> vector<32x8xf32>
    %476 = vector.extract_strided_slice %435 {offsets = [8, 0], sizes = [8, 48], strides = [1, 1]} : vector<48x48xf32> to vector<8x48xf32>
    %cst_197 = arith.constant dense<0.000000e+00> : vector<32x48xf32>
    %477 = tpu.matmul %475, %476, %cst_197 {dimension_numbers = #tpu.dot_dimension_numbers<[1], [0], [0], [1], [0, 0, 1, 1], [], []>} : vector<32x8xf32>, vector<8x48xf32>, vector<32x48xf32> -> vector<32x48xf32>
    %478 = arith.addf %457, %477 : vector<32x48xf32>
    %479 = vector.extract_strided_slice %433 {offsets = [0, 16], sizes = [32, 8], strides = [1, 1]} : vector<32x144xf32> to vector<32x8xf32>
    %cst_198 = arith.constant 0.353553385 : f32
    %480 = vector.broadcast %cst_198 : f32 to vector<32x8xf32>
    %481 = arith.mulf %479, %480 : vector<32x8xf32>
    %482 = vector.extract_strided_slice %433 {offsets = [0, 64], sizes = [32, 8], strides = [1, 1]} : vector<32x144xf32> to vector<32x8xf32>
    %483 = vector.extract_strided_slice %433 {offsets = [0, 112], sizes = [32, 8], strides = [1, 1]} : vector<32x144xf32> to vector<32x8xf32>
    %cst_199 = arith.constant dense<0.000000e+00> : vector<32x32xf32>
    %484 = tpu.matmul %481, %482, %cst_199 {dimension_numbers = #tpu.dot_dimension_numbers<[1], [1], [0], [0], [0, 0, 1, 0], [], []>} : vector<32x8xf32>, vector<32x8xf32>, vector<32x32xf32> -> vector<32x32xf32>
    %485 = arith.addf %484, %10 : vector<32x32xf32>
    %cst_200 = arith.constant dense<0xFF800000> : vector<32xf32>
    %486 = vector.multi_reduction <maximumf>, %485, %cst_200 [1] : vector<32x32xf32> to vector<32xf32>
    %487 = vector.shape_cast %486 : vector<32xf32> to vector<32x1xf32>
    %488 = vector.broadcast %487 : vector<32x1xf32> to vector<32x32xf32>
    %489 = arith.subf %485, %488 : vector<32x32xf32>
    %490 = math.exp %489 : vector<32x32xf32>
    %cst_201 = arith.constant dense<0.000000e+00> : vector<32xf32>
    %491 = vector.multi_reduction <add>, %490, %cst_201 [1] : vector<32x32xf32> to vector<32xf32>
    %492 = vector.shape_cast %491 : vector<32xf32> to vector<32x1xf32>
    %493 = tpu.reciprocal %492 : vector<32x1xf32> -> vector<32x1xf32>
    %494 = vector.broadcast %493 : vector<32x1xf32> to vector<32x32xf32>
    %495 = arith.mulf %490, %494 : vector<32x32xf32>
    %cst_202 = arith.constant dense<0.000000e+00> : vector<32x8xf32>
    %496 = tpu.matmul %495, %483, %cst_202 {dimension_numbers = #tpu.dot_dimension_numbers<[1], [0], [0], [1], [0, 0, 1, 1], [], []>} : vector<32x32xf32>, vector<32x8xf32>, vector<32x8xf32> -> vector<32x8xf32>
    %497 = vector.extract_strided_slice %435 {offsets = [16, 0], sizes = [8, 48], strides = [1, 1]} : vector<48x48xf32> to vector<8x48xf32>
    %cst_203 = arith.constant dense<0.000000e+00> : vector<32x48xf32>
    %498 = tpu.matmul %496, %497, %cst_203 {dimension_numbers = #tpu.dot_dimension_numbers<[1], [0], [0], [1], [0, 0, 1, 1], [], []>} : vector<32x8xf32>, vector<8x48xf32>, vector<32x48xf32> -> vector<32x48xf32>
    %499 = arith.addf %478, %498 : vector<32x48xf32>
    %500 = vector.extract_strided_slice %433 {offsets = [0, 24], sizes = [32, 8], strides = [1, 1]} : vector<32x144xf32> to vector<32x8xf32>
    %cst_204 = arith.constant 0.353553385 : f32
    %501 = vector.broadcast %cst_204 : f32 to vector<32x8xf32>
    %502 = arith.mulf %500, %501 : vector<32x8xf32>
    %503 = vector.extract_strided_slice %433 {offsets = [0, 72], sizes = [32, 8], strides = [1, 1]} : vector<32x144xf32> to vector<32x8xf32>
    %504 = vector.extract_strided_slice %433 {offsets = [0, 120], sizes = [32, 8], strides = [1, 1]} : vector<32x144xf32> to vector<32x8xf32>
    %cst_205 = arith.constant dense<0.000000e+00> : vector<32x32xf32>
    %505 = tpu.matmul %502, %503, %cst_205 {dimension_numbers = #tpu.dot_dimension_numbers<[1], [1], [0], [0], [0, 0, 1, 0], [], []>} : vector<32x8xf32>, vector<32x8xf32>, vector<32x32xf32> -> vector<32x32xf32>
    %506 = arith.addf %505, %10 : vector<32x32xf32>
    %cst_206 = arith.constant dense<0xFF800000> : vector<32xf32>
    %507 = vector.multi_reduction <maximumf>, %506, %cst_206 [1] : vector<32x32xf32> to vector<32xf32>
    %508 = vector.shape_cast %507 : vector<32xf32> to vector<32x1xf32>
    %509 = vector.broadcast %508 : vector<32x1xf32> to vector<32x32xf32>
    %510 = arith.subf %506, %509 : vector<32x32xf32>
    %511 = math.exp %510 : vector<32x32xf32>
    %cst_207 = arith.constant dense<0.000000e+00> : vector<32xf32>
    %512 = vector.multi_reduction <add>, %511, %cst_207 [1] : vector<32x32xf32> to vector<32xf32>
    %513 = vector.shape_cast %512 : vector<32xf32> to vector<32x1xf32>
    %514 = tpu.reciprocal %513 : vector<32x1xf32> -> vector<32x1xf32>
    %515 = vector.broadcast %514 : vector<32x1xf32> to vector<32x32xf32>
    %516 = arith.mulf %511, %515 : vector<32x32xf32>
    %cst_208 = arith.constant dense<0.000000e+00> : vector<32x8xf32>
    %517 = tpu.matmul %516, %504, %cst_208 {dimension_numbers = #tpu.dot_dimension_numbers<[1], [0], [0], [1], [0, 0, 1, 1], [], []>} : vector<32x32xf32>, vector<32x8xf32>, vector<32x8xf32> -> vector<32x8xf32>
    %518 = vector.extract_strided_slice %435 {offsets = [24, 0], sizes = [8, 48], strides = [1, 1]} : vector<48x48xf32> to vector<8x48xf32>
    %cst_209 = arith.constant dense<0.000000e+00> : vector<32x48xf32>
    %519 = tpu.matmul %517, %518, %cst_209 {dimension_numbers = #tpu.dot_dimension_numbers<[1], [0], [0], [1], [0, 0, 1, 1], [], []>} : vector<32x8xf32>, vector<8x48xf32>, vector<32x48xf32> -> vector<32x48xf32>
    %520 = arith.addf %499, %519 : vector<32x48xf32>
    %521 = vector.extract_strided_slice %433 {offsets = [0, 32], sizes = [32, 8], strides = [1, 1]} : vector<32x144xf32> to vector<32x8xf32>
    %cst_210 = arith.constant 0.353553385 : f32
    %522 = vector.broadcast %cst_210 : f32 to vector<32x8xf32>
    %523 = arith.mulf %521, %522 : vector<32x8xf32>
    %524 = vector.extract_strided_slice %433 {offsets = [0, 80], sizes = [32, 8], strides = [1, 1]} : vector<32x144xf32> to vector<32x8xf32>
    %525 = vector.extract_strided_slice %433 {offsets = [0, 128], sizes = [32, 8], strides = [1, 1]} : vector<32x144xf32> to vector<32x8xf32>
    %cst_211 = arith.constant dense<0.000000e+00> : vector<32x32xf32>
    %526 = tpu.matmul %523, %524, %cst_211 {dimension_numbers = #tpu.dot_dimension_numbers<[1], [1], [0], [0], [0, 0, 1, 0], [], []>} : vector<32x8xf32>, vector<32x8xf32>, vector<32x32xf32> -> vector<32x32xf32>
    %527 = arith.addf %526, %10 : vector<32x32xf32>
    %cst_212 = arith.constant dense<0xFF800000> : vector<32xf32>
    %528 = vector.multi_reduction <maximumf>, %527, %cst_212 [1] : vector<32x32xf32> to vector<32xf32>
    %529 = vector.shape_cast %528 : vector<32xf32> to vector<32x1xf32>
    %530 = vector.broadcast %529 : vector<32x1xf32> to vector<32x32xf32>
    %531 = arith.subf %527, %530 : vector<32x32xf32>
    %532 = math.exp %531 : vector<32x32xf32>
    %cst_213 = arith.constant dense<0.000000e+00> : vector<32xf32>
    %533 = vector.multi_reduction <add>, %532, %cst_213 [1] : vector<32x32xf32> to vector<32xf32>
    %534 = vector.shape_cast %533 : vector<32xf32> to vector<32x1xf32>
    %535 = tpu.reciprocal %534 : vector<32x1xf32> -> vector<32x1xf32>
    %536 = vector.broadcast %535 : vector<32x1xf32> to vector<32x32xf32>
    %537 = arith.mulf %532, %536 : vector<32x32xf32>
    %cst_214 = arith.constant dense<0.000000e+00> : vector<32x8xf32>
    %538 = tpu.matmul %537, %525, %cst_214 {dimension_numbers = #tpu.dot_dimension_numbers<[1], [0], [0], [1], [0, 0, 1, 1], [], []>} : vector<32x32xf32>, vector<32x8xf32>, vector<32x8xf32> -> vector<32x8xf32>
    %539 = vector.extract_strided_slice %435 {offsets = [32, 0], sizes = [8, 48], strides = [1, 1]} : vector<48x48xf32> to vector<8x48xf32>
    %cst_215 = arith.constant dense<0.000000e+00> : vector<32x48xf32>
    %540 = tpu.matmul %538, %539, %cst_215 {dimension_numbers = #tpu.dot_dimension_numbers<[1], [0], [0], [1], [0, 0, 1, 1], [], []>} : vector<32x8xf32>, vector<8x48xf32>, vector<32x48xf32> -> vector<32x48xf32>
    %541 = arith.addf %520, %540 : vector<32x48xf32>
    %542 = vector.extract_strided_slice %433 {offsets = [0, 40], sizes = [32, 8], strides = [1, 1]} : vector<32x144xf32> to vector<32x8xf32>
    %cst_216 = arith.constant 0.353553385 : f32
    %543 = vector.broadcast %cst_216 : f32 to vector<32x8xf32>
    %544 = arith.mulf %542, %543 : vector<32x8xf32>
    %545 = vector.extract_strided_slice %433 {offsets = [0, 88], sizes = [32, 8], strides = [1, 1]} : vector<32x144xf32> to vector<32x8xf32>
    %546 = vector.extract_strided_slice %433 {offsets = [0, 136], sizes = [32, 8], strides = [1, 1]} : vector<32x144xf32> to vector<32x8xf32>
    %cst_217 = arith.constant dense<0.000000e+00> : vector<32x32xf32>
    %547 = tpu.matmul %544, %545, %cst_217 {dimension_numbers = #tpu.dot_dimension_numbers<[1], [1], [0], [0], [0, 0, 1, 0], [], []>} : vector<32x8xf32>, vector<32x8xf32>, vector<32x32xf32> -> vector<32x32xf32>
    %548 = arith.addf %547, %10 : vector<32x32xf32>
    %cst_218 = arith.constant dense<0xFF800000> : vector<32xf32>
    %549 = vector.multi_reduction <maximumf>, %548, %cst_218 [1] : vector<32x32xf32> to vector<32xf32>
    %550 = vector.shape_cast %549 : vector<32xf32> to vector<32x1xf32>
    %551 = vector.broadcast %550 : vector<32x1xf32> to vector<32x32xf32>
    %552 = arith.subf %548, %551 : vector<32x32xf32>
    %553 = math.exp %552 : vector<32x32xf32>
    %cst_219 = arith.constant dense<0.000000e+00> : vector<32xf32>
    %554 = vector.multi_reduction <add>, %553, %cst_219 [1] : vector<32x32xf32> to vector<32xf32>
    %555 = vector.shape_cast %554 : vector<32xf32> to vector<32x1xf32>
    %556 = tpu.reciprocal %555 : vector<32x1xf32> -> vector<32x1xf32>
    %557 = vector.broadcast %556 : vector<32x1xf32> to vector<32x32xf32>
    %558 = arith.mulf %553, %557 : vector<32x32xf32>
    %cst_220 = arith.constant dense<0.000000e+00> : vector<32x8xf32>
    %559 = tpu.matmul %558, %546, %cst_220 {dimension_numbers = #tpu.dot_dimension_numbers<[1], [0], [0], [1], [0, 0, 1, 1], [], []>} : vector<32x32xf32>, vector<32x8xf32>, vector<32x8xf32> -> vector<32x8xf32>
    %560 = vector.extract_strided_slice %435 {offsets = [40, 0], sizes = [8, 48], strides = [1, 1]} : vector<48x48xf32> to vector<8x48xf32>
    %cst_221 = arith.constant dense<0.000000e+00> : vector<32x48xf32>
    %561 = tpu.matmul %559, %560, %cst_221 {dimension_numbers = #tpu.dot_dimension_numbers<[1], [0], [0], [1], [0, 0, 1, 1], [], []>} : vector<32x8xf32>, vector<8x48xf32>, vector<32x48xf32> -> vector<32x48xf32>
    %562 = arith.addf %541, %561 : vector<32x48xf32>
    %563 = arith.addf %406, %562 : vector<32x48xf32>
    %c2_222 = arith.constant 2 : index
    %c0_223 = arith.constant 0 : index
    %c0_224 = arith.constant 0 : index
    %564 = vector.load %arg8[%c2_222, %c0_223, %c0_224] : memref<3x1x48xf32, #tpu.memory_space<vmem>>, vector<1x1x48xf32>
    %565 = vector.shape_cast %564 : vector<1x1x48xf32> to vector<1x48xf32>
    %c2_225 = arith.constant 2 : index
    %c0_226 = arith.constant 0 : index
    %c0_227 = arith.constant 0 : index
    %566 = vector.load %arg9[%c2_225, %c0_226, %c0_227] : memref<3x1x48xf32, #tpu.memory_space<vmem>>, vector<1x1x48xf32>
    %567 = vector.shape_cast %566 : vector<1x1x48xf32> to vector<1x48xf32>
    %cst_228 = arith.constant dense<0.000000e+00> : vector<32xf32>
    %568 = vector.multi_reduction <add>, %563, %cst_228 [1] : vector<32x48xf32> to vector<32xf32>
    %569 = vector.shape_cast %568 : vector<32xf32> to vector<32x1xf32>
    %cst_229 = arith.constant 4.800000e+01 : f32
    %570 = vector.broadcast %cst_229 : f32 to vector<32x1xf32>
    %571 = arith.divf %569, %570 : vector<32x1xf32>
    %572 = vector.broadcast %571 : vector<32x1xf32> to vector<32x48xf32>
    %573 = arith.subf %563, %572 : vector<32x48xf32>
    %574 = arith.mulf %573, %573 : vector<32x48xf32>
    %cst_230 = arith.constant dense<0.000000e+00> : vector<32xf32>
    %575 = vector.multi_reduction <add>, %574, %cst_230 [1] : vector<32x48xf32> to vector<32xf32>
    %576 = vector.shape_cast %575 : vector<32xf32> to vector<32x1xf32>
    %cst_231 = arith.constant 4.800000e+01 : f32
    %577 = vector.broadcast %cst_231 : f32 to vector<32x1xf32>
    %578 = arith.divf %576, %577 : vector<32x1xf32>
    %cst_232 = arith.constant 9.99999974E-6 : f32
    %579 = vector.broadcast %cst_232 : f32 to vector<32x1xf32>
    %580 = arith.addf %578, %579 : vector<32x1xf32>
    %581 = math.rsqrt %580 : vector<32x1xf32>
    %582 = vector.broadcast %581 : vector<32x1xf32> to vector<32x48xf32>
    %583 = arith.mulf %573, %582 : vector<32x48xf32>
    %584 = vector.broadcast %565 : vector<1x48xf32> to vector<32x48xf32>
    %585 = arith.mulf %583, %584 : vector<32x48xf32>
    %586 = vector.broadcast %567 : vector<1x48xf32> to vector<32x48xf32>
    %587 = arith.addf %585, %586 : vector<32x48xf32>
    %c2_233 = arith.constant 2 : index
    %c0_234 = arith.constant 0 : index
    %c0_235 = arith.constant 0 : index
    %588 = vector.load %arg10[%c2_233, %c0_234, %c0_235] : memref<3x48x192xf32, #tpu.memory_space<vmem>>, vector<1x48x192xf32>
    %589 = vector.shape_cast %588 : vector<1x48x192xf32> to vector<48x192xf32>
    %cst_236 = arith.constant dense<0.000000e+00> : vector<32x192xf32>
    %590 = tpu.matmul %587, %589, %cst_236 {dimension_numbers = #tpu.dot_dimension_numbers<[1], [0], [0], [1], [0, 0, 1, 1], [], []>} : vector<32x48xf32>, vector<48x192xf32>, vector<32x192xf32> -> vector<32x192xf32>
    %c2_237 = arith.constant 2 : index
    %c0_238 = arith.constant 0 : index
    %c0_239 = arith.constant 0 : index
    %591 = vector.load %arg11[%c2_237, %c0_238, %c0_239] : memref<3x1x192xf32, #tpu.memory_space<vmem>>, vector<1x1x192xf32>
    %592 = vector.shape_cast %591 : vector<1x1x192xf32> to vector<1x192xf32>
    %593 = vector.broadcast %592 : vector<1x192xf32> to vector<32x192xf32>
    %594 = arith.addf %590, %593 : vector<32x192xf32>
    %cst_240 = arith.constant 0.000000e+00 : f32
    %595 = vector.broadcast %cst_240 : f32 to vector<32x192xf32>
    %596 = arith.maximumf %594, %595 : vector<32x192xf32>
    %c2_241 = arith.constant 2 : index
    %c0_242 = arith.constant 0 : index
    %c0_243 = arith.constant 0 : index
    %597 = vector.load %arg12[%c2_241, %c0_242, %c0_243] : memref<3x192x48xf32, #tpu.memory_space<vmem>>, vector<1x192x48xf32>
    %598 = vector.shape_cast %597 : vector<1x192x48xf32> to vector<192x48xf32>
    %cst_244 = arith.constant dense<0.000000e+00> : vector<32x48xf32>
    %599 = tpu.matmul %596, %598, %cst_244 {dimension_numbers = #tpu.dot_dimension_numbers<[1], [0], [0], [1], [0, 0, 1, 1], [], []>} : vector<32x192xf32>, vector<192x48xf32>, vector<32x48xf32> -> vector<32x48xf32>
    %600 = arith.addf %563, %599 : vector<32x48xf32>
    %c2_245 = arith.constant 2 : index
    %c0_246 = arith.constant 0 : index
    %c0_247 = arith.constant 0 : index
    %601 = vector.load %arg13[%c2_245, %c0_246, %c0_247] : memref<3x1x48xf32, #tpu.memory_space<vmem>>, vector<1x1x48xf32>
    %602 = vector.shape_cast %601 : vector<1x1x48xf32> to vector<1x48xf32>
    %603 = vector.broadcast %602 : vector<1x48xf32> to vector<32x48xf32>
    %604 = arith.addf %600, %603 : vector<32x48xf32>
    %c0_248 = arith.constant 0 : index
    %c0_249 = arith.constant 0 : index
    %605 = vector.load %arg14[%c0_248, %c0_249] : memref<1x48xf32, #tpu.memory_space<vmem>>, vector<1x48xf32>
    %c0_250 = arith.constant 0 : index
    %c0_251 = arith.constant 0 : index
    %606 = vector.load %arg15[%c0_250, %c0_251] : memref<1x48xf32, #tpu.memory_space<vmem>>, vector<1x48xf32>
    %cst_252 = arith.constant dense<0.000000e+00> : vector<32xf32>
    %607 = vector.multi_reduction <add>, %604, %cst_252 [1] : vector<32x48xf32> to vector<32xf32>
    %608 = vector.shape_cast %607 : vector<32xf32> to vector<32x1xf32>
    %cst_253 = arith.constant 4.800000e+01 : f32
    %609 = vector.broadcast %cst_253 : f32 to vector<32x1xf32>
    %610 = arith.divf %608, %609 : vector<32x1xf32>
    %611 = vector.broadcast %610 : vector<32x1xf32> to vector<32x48xf32>
    %612 = arith.subf %604, %611 : vector<32x48xf32>
    %613 = arith.mulf %612, %612 : vector<32x48xf32>
    %cst_254 = arith.constant dense<0.000000e+00> : vector<32xf32>
    %614 = vector.multi_reduction <add>, %613, %cst_254 [1] : vector<32x48xf32> to vector<32xf32>
    %615 = vector.shape_cast %614 : vector<32xf32> to vector<32x1xf32>
    %cst_255 = arith.constant 4.800000e+01 : f32
    %616 = vector.broadcast %cst_255 : f32 to vector<32x1xf32>
    %617 = arith.divf %615, %616 : vector<32x1xf32>
    %cst_256 = arith.constant 9.99999974E-6 : f32
    %618 = vector.broadcast %cst_256 : f32 to vector<32x1xf32>
    %619 = arith.addf %617, %618 : vector<32x1xf32>
    %620 = math.rsqrt %619 : vector<32x1xf32>
    %621 = vector.broadcast %620 : vector<32x1xf32> to vector<32x48xf32>
    %622 = arith.mulf %612, %621 : vector<32x48xf32>
    %623 = vector.broadcast %605 : vector<1x48xf32> to vector<32x48xf32>
    %624 = arith.mulf %622, %623 : vector<32x48xf32>
    %625 = vector.broadcast %606 : vector<1x48xf32> to vector<32x48xf32>
    %626 = arith.addf %624, %625 : vector<32x48xf32>
    %c0_257 = arith.constant 0 : index
    %c0_258 = arith.constant 0 : index
    %627 = vector.load %arg16[%c0_257, %c0_258] : memref<48x128xf32, #tpu.memory_space<vmem>>, vector<48x128xf32>
    %cst_259 = arith.constant dense<0.000000e+00> : vector<32x128xf32>
    %628 = tpu.matmul %626, %627, %cst_259 {dimension_numbers = #tpu.dot_dimension_numbers<[1], [0], [0], [1], [0, 0, 1, 1], [], []>} : vector<32x48xf32>, vector<48x128xf32>, vector<32x128xf32> -> vector<32x128xf32>
    %c0_260 = arith.constant 0 : index
    %c0_261 = arith.constant 0 : index
    %629 = vector.load %arg17[%c0_260, %c0_261] : memref<1x128xf32, #tpu.memory_space<vmem>>, vector<1x128xf32>
    %630 = vector.broadcast %629 : vector<1x128xf32> to vector<32x128xf32>
    %631 = arith.addf %628, %630 : vector<32x128xf32>
    %c0_262 = arith.constant 0 : index
    %c0_263 = arith.constant 0 : index
    %632 = vector.load %arg18[%c0_262, %c0_263] : memref<32x128xf32, #tpu.memory_space<vmem>>, vector<32x128xf32>
    tpu.vector_store %arg18[%c0_262, %c0_263], %631 {strides = array<i32>} : memref<32x128xf32, #tpu.memory_space<vmem>>, vector<32x128xf32>,
    return
  }
}

</mosaic_0001>

<bundles_post_ra>
// kernel: tpu_custom_call.1
= control target key start
LH: loop header
LB: loop body
LE: loop exit
PB: predicated region body
PF: predicated region fallthrough
CT: control target
= control target key end

     0   :  { %s14094_s0 = inlined_call_operand.vmem [shape: s32[32,1], index: 0, kind: input, shape index: {}]   ;;  %s14095_s1 = inlined_call_operand.vmem [shape: f32[128,48], index: 1, kind: input, shape index: {}]   ;;  %s14096_s2 = inlined_call_operand.vmem [shape: f32[32,48], index: 2, kind: input, shape index: {}]   ;;  %s14097_s3 = inlined_call_operand.vmem [shape: f32[32,32], index: 3, kind: input, shape index: {}]   ;;  %s14098_s4 = inlined_call_operand.vmem [shape: f32[3,1,48], index: 4, kind: input, shape index: {}]   ;;  %s14099_s5 = inlined_call_operand.vmem [shape: f32[3,1,48], index: 5, kind: input, shape index: {}]   ;;  %s14100_s6 = inlined_call_operand.vmem [shape: f32[3,48,144], index: 6, kind: input, shape index: {}]   ;;  %s14101_s7 = inlined_call_operand.vmem [shape: f32[3,48,48], index: 7, kind: input, shape index: {}]   ;;  %s14102_s8 = inlined_call_operand.vmem [shape: f32[3,1,48], index: 8, kind: input, shape index: {}]   ;;  %s14103_s9 = inlined_call_operand.vmem [shape: f32[3,1,48], index: 9, kind: input, shape index: {}]   ;;  %s14104_s10 = inlined_call_operand.vmem [shape: f32[3,48,192], index: 10, kind: input, shape index: {}]   ;;  %s14105_s11 = inlined_call_operand.vmem [shape: f32[3,1,192], index: 11, kind: input, shape index: {}]   ;;  %s14106_s12 = inlined_call_operand.vmem [shape: f32[3,192,48], index: 12, kind: input, shape index: {}]   ;;  %s14107_s13 = inlined_call_operand.vmem [shape: f32[3,1,48], index: 13, kind: input, shape index: {}]   ;;  %s14108_s14 = inlined_call_operand.vmem [shape: f32[1,48], index: 14, kind: input, shape index: {}]   ;;  %s14109_s15 = inlined_call_operand.vmem [shape: f32[1,48], index: 15, kind: input, shape index: {}]   ;;  %s14110_s16 = inlined_call_operand.vmem [shape: f32[48,128], index: 16, kind: input, shape index: {}]   ;;  %s14111_s17 = inlined_call_operand.vmem [shape: f32[1,128], index: 17, kind: input, shape index: {}]   ;;  %s14112_s18 = inlined_call_operand.hbm [shape: f32[32,128], index: 18, kind: output, shape index: {}]  }
   0x1   :  { %14148 = sst [smem:[#allocation5_spill]] %s14094_s0 }
   0x2   :  { %14149 = sst [smem:[#allocation6_spill]] %s14095_s1 }
   0x3   :  { %14150 = sst [smem:[#allocation7_spill]] %s14096_s2 }
   0x4   :  { %14151 = sst [smem:[#allocation8_spill]] %s14108_s14 }
   0x5   :  { %14152 = sst [smem:[#allocation9_spill]] %s14109_s15 }
   0x6   :  { %14153 = sst [smem:[#allocation10_spill]] %s14110_s16 }
   0x7   :  { %14154 = sst [smem:[#allocation11_spill]] %s14111_s17 }
   0x8   :  { %14155 = sst [smem:[#allocation12_spill]] %s14112_s18 }
   0x9   :  { %s14156_s29 = sld [smem:[#allocation5_spill]]  ;;  %v11657_v2 = vmov 0   ;;  %s14157_s20 = sld [smem:[#allocation6_spill]] }
   0xa   :  { %10941 = vset.pattern.permute.xlu0 %v11657_v2  ;;  %10942 = vset.pattern.permute.xlu1 %v11657_v2 }
   0xf   :  { %v60_v0 = vld [vmem:[%s14156_s29] sm:$0xff]  ;;  %v62_v1 = vld [vmem:[%s14156_s29 + $0x10] sm:$0xff]  ;;  %v91_v4 = vld [vmem:[%s14157_s20 + $0x8] sm:$0xff] }
  0x10   :  { %v90_v3 = vld [vmem:[%s14157_s20] sm:$0xff]  ;;  %67 = vperm.xlu0 %10941, %v60_v0   ;;  %73 = vperm.xlu1 %10942, %v62_v1   ;;  %v61_v5 = vld [vmem:[%s14156_s29 + $0x8] sm:$0xff]  ;;  %v92_v7 = vld [vmem:[%s14157_s20 + $0x10] sm:$0xff] }
  0x11   :  { %v10276_v6 = vpack.c.bf16 %v91_v4, %v90_v3  ;;  %v93_v8 = vld [vmem:[%s14157_s20 + $0x18] sm:$0xff]  ;;  %v94_v11 = vld [vmem:[%s14157_s20 + $0x20] sm:$0xff]  ;;  %v95_v12 = vld [vmem:[%s14157_s20 + $0x28] sm:$0xff] }
  0x12   :  { %v63_v9 = vld [vmem:[%s14156_s29 + $0x18] sm:$0xff]  ;;  %v10280_v10 = vpack.c.bf16 %v93_v8, %v92_v7  ;;  %v10284_v13 = vpack.c.bf16 %v95_v12, %v94_v11 }
  0x13   :  { %10277 = vmatprep.subr.bf16.mxu0 %v10276_v6 }
  0x14   :  { %10279 = vmatpush3.bf16.msra.mxu0 %v10276_v6  ;;  %70 = vperm.xlu0 %10941, %v61_v5  }
  0x15   :  { %76 = vperm.xlu1 %10942, %v63_v9  }
  0x16   :  { %23 = vsyncpa [#allocation3], 0  ;;  %10281 = vmatprep.subr.bf16.mxu0 %v10280_v10  ;;  %v96_v14 = vld [vmem:[%s14157_s20 + $0x30] sm:$0xff]  ;;  %v97_v15 = vld [vmem:[%s14157_s20 + $0x38] sm:$0xff]  ;;  %v64_v29 = vlaneseq  ;;  %v11658_v33 = vmov 1.0   ;;  %s14158_s27 = sld [smem:[#allocation7_spill]] }
  0x17   :  { %v10288_v16 = vpack.c.bf16 %v97_v15, %v96_v14  ;;  %v98_v17 = vld [vmem:[%s14157_s20 + $0x40] sm:$0xff]  ;;  %v99_v18 = vld [vmem:[%s14157_s20 + $0x48] sm:$0xff]  ;;  %v100_v20 = vld [vmem:[%s14157_s20 + $0x50] sm:$0xff]  ;;  %vm201_vm4 = vcmask 392192   ;;  %vm410_vm5 = vcmask 64512   ;;  %s14144_s1 = smov 80  }
  0x18   :  { %10283 = vmatpush3.bf16.msra.mxu0 %v10280_v10  ;;  %v10292_v19 = vpack.c.bf16 %v99_v18, %v98_v17  ;;  %v101_v21 = vld [vmem:[%s14157_s20 + $0x58] sm:$0xff]  ;;  %v102_v23 = vld [vmem:[%s14157_s20 + $0x60] sm:$0xff]  ;;  %v103_v24 = vld [vmem:[%s14157_s20 + $0x68] sm:$0xff]  ;;  %v65_v30 = vand.u32 127, %v64_v29  ;;  %vm516_vm7 = vcmask 261120   ;;  %s14142_s25 = smov 32  }
  0x19   :  { %10285 = vmatprep.subr.bf16.mxu0 %v10284_v13  ;;  %v10296_v22 = vpack.c.bf16 %v101_v21, %v100_v20  ;;  %v10300_v25 = vpack.c.bf16 %v103_v24, %v102_v23  ;;  %v104_v26 = vld [vmem:[%s14157_s20 + $0x70] sm:$0xff]  ;;  %v105_v27 = vld [vmem:[%s14157_s20 + $0x78] sm:$0xff]  ;;  %v276_v8 = vld [vmem:[%s14100_s6 + $0x8] sm:$0xff]  ;;  %s14140_s28 = smov 120   ;;  %s14134_s30 = smov 64   ;;  %vm2845_vm8 = vcmask 523264  }
  0x1a   :  { %v10304_v28 = vpack.c.bf16 %v105_v27, %v104_v26  ;;  %v278_v9 = vld [vmem:[%s14100_s6 + $0x18] sm:$0xff]  ;;  %v275_v11 = vld [vmem:[%s14100_s6] sm:$0xff]  ;;  %v277_v12 = vld [vmem:[%s14100_s6 + $0x10] sm:$0xff]  ;;  %s14132_s0 = smov 112   ;;  %s14136_s19 = smov 24  }
  0x1b   :  { %v10308_v10 = vpack.c.bf16 %v278_v9, %v276_v8  ;;  %v280_v14 = vld [vmem:[%s14100_s6 + $0x28] sm:$0xff]  ;;  %v282_v15 = vld [vmem:[%s14100_s6 + $0x38] sm:$0xff]  ;;  %v279_v17 = vld [vmem:[%s14100_s6 + $0x20] sm:$0xff]  ;;  %s14130_s21 = smov 56   ;;  %s14128_s22 = smov 104  }
  0x1c   :  { %10287 = vmatpush3.bf16.msra.mxu0 %v10284_v13  ;;  %v107_v36 = vld [vmem:[%s14158_s27 + $0x8] sm:$0xff]  ;;  %v106_v37 = vld [vmem:[%s14158_s27] sm:$0xff]  ;;  %v108_v43 = vld [vmem:[%s14158_s27 + $0x10] sm:$0xff]  ;;  %v10310_v13 = vpack.c.bf16 %v277_v12, %v275_v11  ;;  %s14126_s23 = smov 16   ;;  %s14124_s26 = smov 48  }
  0x1d   :  { %10289 = vmatprep.subr.bf16.mxu0 %v10288_v16  ;;  %v109_v46 = vld [vmem:[%s14158_s27 + $0x18] sm:$0xff]  ;;  %10309 = vmatprep.subr.bf16.mxu1 %v10308_v10  ;;  %v281_v18 = vld [vmem:[%s14100_s6 + $0x30] sm:$0xff]  ;;  %v284_v20 = vld [vmem:[%s14100_s6 + $0x48] sm:$0xff]  ;;  %s14138_s27 = smov 72   ;;  %s14122_s2 = smov 96  }
  0x1e   :  { %10311 = vmatpush1.bf16.msra.mxu1 %v10310_v13  ;;  %v286_v21 = vld [vmem:[%s14100_s6 + $0x58] sm:$0xff]  ;;  %v285_v24 = vld [vmem:[%s14100_s6 + $0x50] sm:$0xff]  ;;  %vm11974_vm6 = vmpackc.low %vm410_vm5, %vm410_vm5  ;;  %s14120_s20 = smov 8   ;;  %s14118_s29 = smov 40  }
  0x1f   :  { %v10316_v23 = vpack.c.bf16 %v286_v21, %v284_v20  ;;  %s14116_s24 = smov 88   ;;  %s14175_s15 = smov 24  }
  0x20   :  { %10291 = vmatpush3.bf16.msra.mxu0 %v10288_v16  ;;  %v10312_v16 = vpack.c.bf16 %v282_v15, %v280_v14  ;;  %s14177_s17 = sld [smem:[#allocation8_spill]] }
  0x21   :  { %10293 = vmatprep.subr.bf16.mxu0 %v10292_v19 }
  0x22   :  { %10313 = vmatprep.subr.bf16.mxu1 %v10312_v16 }
  0x24   :  { %10295 = vmatpush3.bf16.msra.mxu0 %v10292_v19  ;;  %v10314_v19 = vpack.c.bf16 %v281_v18, %v279_v17 }
  0x25   :  { %10297 = vmatprep.subr.bf16.mxu0 %v10296_v22 }
  0x26   :  { %10315 = vmatpush1.bf16.msra.mxu1 %v10314_v19 }
  0x27   :  { %10317 = vmatprep.subr.bf16.mxu1 %v10316_v23 }
  0x28   :  { %10299 = vmatpush3.bf16.msra.mxu0 %v10296_v22  ;;  %v283_v22 = vld [vmem:[%s14100_s6 + $0x40] sm:$0xff] }
  0x29   :  { %10301 = vmatprep.subr.bf16.mxu0 %v10300_v25  ;;  %v10318_v26 = vpack.c.bf16 %v285_v24, %v283_v22 }
  0x2b   :  { %10319 = vmatpush1.bf16.msra.mxu1 %v10318_v26  ;;  %v12001_v26 = vld [vmem:[%s14097_s3 + $0x8] sm:$0xff] }
  0x2c   :  { %10303 = vmatpush3.bf16.msra.mxu0 %v10300_v25  ;;  %v11659_v25 = vmov 0.0  }
  0x2d   :  { %10305 = vmatprep.subr.bf16.mxu0 %v10304_v28  ;;  %363 = vmatprep.mubr.f32.mxu1 %v11659_v25 }
  0x30   :  { %10307 = vmatpush3.bf16.msra.mxu0 %v10304_v28 }
  0x8f   :  { %v68_v31 = vpop.permute.xlu0 %67  ;;  %v74_v32 = vpop.permute.xlu1 %73 }
  0x90   :  { %vm78_vm0 = vcmp.eq.s32.totalorder %v68_v31, %v65_v30  ;;  %vm80_vm1 = vcmp.eq.s32.totalorder %v74_v32, %v65_v30 }
  0x91   :  { %9604 = vmatprep.mubr.msk.f32.mxu0 %vm78_vm0, %v11658_v33 }
  0x93   :  { %v71_v34 = vpop.permute.xlu0 %70 }
  0x94   :  { %v77_v35 = vpop.permute.xlu1 %76  ;;  %vm79_vm2 = vcmp.eq.s32.totalorder %v71_v34, %v65_v30 }
  0x95   :  { %9605 = vmatmul.mubr.msk.f32.vlgmr.msra.gmra.mrb[0].mxu0 %vm79_vm2, %v11658_v33  ;;  %vm81_vm3 = vcmp.eq.s32.totalorder %v77_v35, %v65_v30 }
  0x96   :  { %9607 = vmatprep.mubr.msk.f32.mxu0 %vm80_vm1, %v11658_v33 }
  0x99   :  { %9608 = vmatmul.mubr.msk.f32.gmra.mrb[2].mxu0 %vm81_vm3, %v11658_v33 }
 0x168   :  { %v9606_v38 = vpop.f32.mrb[0].mxu0 }
 0x169   :  { %v11840_v39 = vadd.f32 %v9606_v38, %v107_v36  ;;  %v176_v40 = vpop.f32.mrb[1].mxu0 }
 0x16a   :  { %v11842_v41 = vadd.f32 %v176_v40, %v106_v37 }
 0x16b   :  { %v205_v42 = vsel %vm201_vm4, %v11840_v39, 0.0 }
 0x16c   :  { %206 = vadd.xlane.f32.xlu1 %v205_v42  ;;  %v9609_v44 = vpop.f32.mrb[2].mxu0  ;;  %v202_v45 = vsel %vm201_vm4, %v11842_v41, 0.0 }
 0x16d   :  { %v186_v47 = vpop.f32.mrb[3].mxu0  ;;  %203 = vadd.xlane.f32.xlu0 %v202_v45  ;;  %v11856_v49 = vadd.f32 %v9609_v44, %v109_v46  ;;  %v8698_v44 = vld [vmem:[%s14098_s4] ss:$0 sm:$0xff] }
 0x16e   :  { %v11854_v48 = vadd.f32 %v186_v47, %v108_v43  ;;  %v8699_v47 = vld [vmem:[%s14099_s5] ss:$0 sm:$0xff] }
 0x16f   :  { %v211_v51 = vsel %vm201_vm4, %v11856_v49, 0.0 }
 0x170   :  { %v208_v50 = vsel %vm201_vm4, %v11854_v48, 0.0 }
 0x171   :  { %209 = vadd.xlane.f32.xlu0 %v208_v50 }
 0x175   :  { %212 = vadd.xlane.f32.xlu0 %v211_v51 }
 0x1f9   :  { %v207_v52 = vpop.xlane.xlu1 %206 }
 0x1fa   :  { %v216_v53 = vmul.f32 0.020833334, %v207_v52  ;;  %v204_v54 = vpop.xlane.xlu0 %203 }
 0x1fb   :  { %v215_v55 = vmul.f32 0.020833334, %v204_v54 }
 0x1fc   :  { %v11863_v56 = vsub.f32 %v11840_v39, %v216_v53 }
 0x1fd   :  { %v11866_v57 = vsub.f32 %v11842_v41, %v215_v55 }
 0x1fe   :  { %v210_v58 = vpop.xlane.xlu0 %209  ;;  %v224_v59 = vmul.f32 %v11863_v56, %v11863_v56 }
 0x1ff   :  { %v217_v60 = vmul.f32 0.020833334, %v210_v58  ;;  %v223_v61 = vmul.f32 %v11866_v57, %v11866_v57 }
 0x200   :  { %v230_v62 = vsel %vm201_vm4, %v224_v59, 0.0 }
 0x201   :  { %v11874_v63 = vsub.f32 %v11854_v48, %v217_v60  ;;  %231 = vadd.xlane.f32.xlu0 %v230_v62  ;;  %v227_v0 = vsel %vm201_vm4, %v223_v61, 0.0 }
 0x202   :  { %228 = vadd.xlane.f32.xlu1 %v227_v0  ;;  %v213_v1 = vpop.xlane.xlu0 %212 }
 0x203   :  { %v218_v2 = vmul.f32 0.020833334, %v213_v1  ;;  %v225_v3 = vmul.f32 %v11874_v63, %v11874_v63 }
 0x205   :  { %v11880_v4 = vsub.f32 %v11856_v49, %v218_v2  ;;  %v233_v5 = vsel %vm201_vm4, %v225_v3, 0.0 }
 0x206   :  { %234 = vadd.xlane.f32.xlu1 %v233_v5 }
 0x207   :  { %v226_v6 = vmul.f32 %v11880_v4, %v11880_v4 }
 0x209   :  { %v236_v7 = vsel %vm201_vm4, %v226_v6, 0.0 }
 0x20a   :  { %237 = vadd.xlane.f32.xlu0 %v236_v7 }
 0x28e   :  { %v232_v27 = vpop.xlane.xlu0 %231 }
 0x28f   :  { %v240_v28 = vmul.f32 0.020833334, %v232_v27  ;;  %v229_v30 = vpop.xlane.xlu1 %228  ;;  %v12006_v27 = vld [vmem:[%s14097_s3] sm:$0xff] }
 0x290   :  { %v239_v31 = vmul.f32 0.020833334, %v229_v30 }
 0x291   :  { %v244_v32 = vadd.f32 1e-05, %v240_v28 }
 0x292   :  { %v243_v33 = vadd.f32 1e-05, %v239_v31 }
 0x293   :  { %11273 = vrsqrt.f32 %v244_v32  ;;  %v235_v34 = vpop.xlane.xlu1 %234 }
 0x294   :  { %11275 = vrsqrt.f32 %v243_v33  ;;  %v241_v35 = vmul.f32 0.020833334, %v235_v34  ;;  %v12013_v33 = vld [vmem:[%s14097_s3 + $0x18] sm:$0xff] }
 0x296   :  { %v245_v36 = vadd.f32 1e-05, %v241_v35 }
 0x297   :  { %v238_v37 = vpop.xlane.xlu0 %237 }
 0x298   :  { %11277 = vrsqrt.f32 %v245_v36  ;;  %v242_v38 = vmul.f32 0.020833334, %v238_v37 }
 0x29a   :  { %v246_v40 = vadd.f32 1e-05, %v242_v38 }
 0x29c   :  { %11279 = vrsqrt.f32 %v246_v40 }
 0x29d   :  { %v11274_v42 = vpop.eup %11273 }
 0x29e   :  { %v11276_v43 = vpop.eup %11275  ;;  %v252_v46 = vmul.f32 %v11274_v42, %v11863_v56  ;;  %v12024_v42 = vld [vmem:[%s14097_s3 + $0x10] sm:$0xff] }
 0x29f   :  { %v251_v45 = vmul.f32 %v11276_v43, %v11866_v57 }
 0x2a0   :  { %v262_v53 = vmul.f32 %v8698_v44, %v252_v46 }
 0x2a1   :  { %v261_v50 = vmul.f32 %v8698_v44, %v251_v45 }
 0x2a2   :  { %v11278_v51 = vpop.eup %11277  ;;  %v272_v58 = vadd.f32 %v8699_v47, %v262_v53 }
 0x2a3   :  { %v271_v52 = vadd.f32 %v8699_v47, %v261_v50  ;;  %v253_v54 = vmul.f32 %v11278_v51, %v11874_v63 }
 0x2a5   :  { %8700 = vmatmul.mubr.msk.f32.vlgmr.msra.gmra.mrb[0].mxu1 %vm201_vm4, %v271_v52  ;;  %v263_v59 = vmul.f32 %v8698_v44, %v253_v54 }
 0x2a6   :  { %v11280_v55 = vpop.eup %11279  ;;  %369 = vmatprep.mubr.f32.mxu1 %v11659_v25 }
 0x2a7   :  { %v254_v57 = vmul.f32 %v11280_v55, %v11880_v4  ;;  %v273_v56 = vadd.f32 %v8699_v47, %v263_v59 }
 0x2a9   :  { %8701 = vmatmul.mubr.msk.f32.gmra.mrb[2].mxu1 %vm201_vm4, %v272_v58  ;;  %v264_v60 = vmul.f32 %v8698_v44, %v254_v57 }
 0x2aa   :  { %375 = vmatprep.mubr.f32.mxu1 %v11659_v25 }
 0x2ab   :  { %v274_v61 = vadd.f32 %v8699_v47, %v264_v60 }
 0x2ad   :  { %8702 = vmatmul.mubr.msk.f32.gmra.mrb[4].mxu1 %vm201_vm4, %v273_v56 }
 0x2ae   :  { %381 = vmatprep.mubr.f32.mxu1 %v11659_v25 }
 0x2b1   :  { %8703 = vmatmul.mubr.msk.f32.gmra.mrb[6].mxu1 %vm201_vm4, %v274_v61 }
 0x378   :  { %v365_v62 = vpop.f32.mrb[0].mxu1 }
 0x379   :  { %v11940_v63 = vpop.f32.mrb[1].mxu1  ;;  %v11942_v0 = vmul.f32 0.35355338, %v365_v62 }
 0x37b   :  { %9618 = vmatprep.mubr.msk.f32.mxu1 %vm410_vm5, %v11942_v0 }
 0x37c   :  { %v371_v1 = vpop.f32.mrb[2].mxu1 }
 0x37d   :  { %v11946_v2 = vpop.f32.mrb[3].mxu1  ;;  %v11948_v3 = vpack.i.bf16 %v371_v1, %v365_v62  ;;  %v11986_v22 = vmul.f32 0.35355338, %v371_v1 }
 0x37e   :  { %v11043_v4 = vpack.i.bf16 %v11946_v2, %v11940_v63  ;;  %v11954_v5 = vpack.c.bf16 %v11946_v2, %v11940_v63 }
 0x37f   :  { %10944 = vrot.lane.b32.xlu1 %v11948_v3, %s14144_s1 }
 0x380   :  { %v377_v6 = vpop.f32.mrb[4].mxu1 }
 0x381   :  { %v11958_v7 = vpop.f32.mrb[5].mxu1  ;;  %v11988_v23 = vmul.f32 0.35355338, %v377_v6 }
 0x384   :  { %v383_v8 = vpop.f32.mrb[6].mxu1 }
 0x385   :  { %v11960_v9 = vpop.f32.mrb[7].mxu1  ;;  %v11962_v10 = vpack.i.bf16 %v383_v8, %v377_v6  ;;  %v11994_v24 = vmul.f32 0.35355338, %v383_v8 }
 0x386   :  { %v11048_v11 = vpack.i.bf16 %v11960_v9, %v11958_v7  ;;  %v11968_v12 = vpack.c.bf16 %v11960_v9, %v11958_v7 }
 0x387   :  { %10949 = vrot.lane.b32.xlu0 %v11962_v10, %s14144_s1 }
 0x3f1   :  { %v10945_v13 = vpop.permute.xlu1 %10944 }
 0x3f2   :  { %v10947_v14 = vunpack.i.h.bf16 %v10945_v13  ;;  %v10946_v15 = vunpack.i.l.bf16 %v10945_v13 }
 0x3f4   :  { %v10320_v17 = vpack.c.bf16 %v10947_v14, %v10946_v15 }
 0x3f6   :  { %10322 = vmatprep.subr.msk.bf16.mxu1 %vm11974_vm6, %v10320_v17 }
 0x3f7   :  { %10325 = vmatpush3.bf16.xpose.msk.msra.mxu1 %vm11974_vm6, %v10320_v17 }
 0x3f9   :  { %v10950_v18 = vpop.permute.xlu0 %10949 }
 0x3fa   :  { %v10952_v19 = vunpack.i.h.bf16 %v10950_v18  ;;  %v10951_v20 = vunpack.i.l.bf16 %v10950_v18 }
 0x3fc   :  { %v10326_v21 = vpack.c.bf16 %v10952_v19, %v10951_v20 }
 0x3fe   :  { %10328 = vmatprep.subr.msk.bf16.mxu1 %vm11974_vm6, %v10326_v21 }
 0x3ff   :  { %10331 = vmatpush3.bf16.xpose.msk.msra.mxu1 %vm11974_vm6, %v10326_v21 }
 0x406   :  { %9619 = vmatmul.mubr.msk.f32.vlgmr.msra.gmra.mrb[8].mxu1 %vm410_vm5, %v11986_v22 }
 0x407   :  { %9621 = vmatprep.mubr.msk.f32.mxu1 %vm410_vm5, %v11988_v23 }
 0x40a   :  { %9622 = vmatmul.mubr.msk.f32.gmra.mrb[10].mxu1 %vm410_vm5, %v11994_v24 }
 0x4d9   :  { %v9620_v28 = vpop.f32.mrb[8].mxu1 }
 0x4da   :  { %v503_v30 = vadd.f32 %v9620_v28, %v12001_v26  ;;  %v497_v31 = vpop.f32.mrb[9].mxu1 }
 0x4db   :  { %v498_v32 = vadd.f32 %v497_v31, %v12006_v27 }
 0x4dc   :  { %v520_v34 = vsel %vm516_vm7, %v503_v30, -inf }
 0x4dd   :  { %521 = vmax.xlane.f32.xlu0 %v520_v34  ;;  %v9623_v35 = vpop.f32.mrb[10].mxu1  ;;  %v517_v36 = vsel %vm516_vm7, %v498_v32, -inf }
 0x4de   :  { %v513_v37 = vadd.f32 %v9623_v35, %v12013_v33  ;;  %v507_v38 = vpop.f32.mrb[11].mxu1  ;;  %518 = vmax.xlane.f32.xlu1 %v517_v36 }
 0x4df   :  { %v508_v43 = vadd.f32 %v507_v38, %v12024_v42 }
 0x4e0   :  { %v526_v40 = vsel %vm516_vm7, %v513_v37, -inf }
 0x4e1   :  { %527 = vmax.xlane.f32.xlu0 %v526_v40  ;;  %v523_v44 = vsel %vm516_vm7, %v508_v43, -inf }
 0x4ef   :  { %10954 = vrot.lane.b32.xlu1 %v11948_v3, %s14142_s25 }
 0x513   :  { %524 = vmax.xlane.f32.xlu1 %v523_v44 }
 0x524   :  { %10964 = vrot.lane.b32.xlu1 %v11948_v3, %s14138_s27 }
 0x528   :  { %10969 = vrot.lane.b32.xlu1 %v11962_v10, %s14138_s27 }
 0x56a   :  { %v522_v45 = vpop.xlane.xlu0 %521 }
 0x56b   :  { %v530_v46 = vsub.f32 %v503_v30, %v522_v45  ;;  %v519_v47 = vpop.xlane.xlu1 %518 }
 0x56c   :  { %v529_v50 = vsub.f32 %v498_v32, %v519_v47 }
 0x56d   :  { %v535_v51 = vmul.f32 1.442695, %v530_v46 }
 0x56e   :  { %v533_v52 = vmul.f32 1.442695, %v529_v50  ;;  %v528_v61 = vpop.xlane.xlu0 %527 }
 0x56f   :  { %11281 = vpow2.f32 %v535_v51  ;;  %v10955_v53 = vpop.permute.xlu1 %10954  ;;  %v532_v62 = vsub.f32 %v513_v37, %v528_v61 }
 0x570   :  { %11283 = vpow2.f32 %v533_v52  ;;  %v10957_v54 = vunpack.i.h.bf16 %v10955_v53  ;;  %v10956_v55 = vunpack.i.l.bf16 %v10955_v53 }
 0x571   :  { %v539_v1 = vmul.f32 1.442695, %v532_v62 }
 0x572   :  { %v10332_v58 = vpack.c.bf16 %v10957_v54, %v10956_v55 }
 0x573   :  { %11285 = vpow2.f32 %v539_v1 }
 0x574   :  { %10333 = vmatprep.subr.bf16.mxu0 %v10332_v58 }
 0x575   :  { %10335 = vmatpush3.bf16.msra.mxu0 %v10332_v58 }
 0x579   :  { %v11282_v59 = vpop.eup %11281 }
 0x57a   :  { %v11284_v57 = vpop.eup %11283  ;;  %v544_v56 = vsel %vm516_vm7, %v11282_v59, 0.0 }
 0x57b   :  { %545 = vadd.xlane.f32.xlu0 %v544_v56  ;;  %v541_v60 = vsel %vm516_vm7, %v11284_v57, 0.0 }
 0x57c   :  { %542 = vadd.xlane.f32.xlu1 %v541_v60 }
 0x57d   :  { %v11286_v14 = vpop.eup %11285 }
 0x57e   :  { %v550_v17 = vsel %vm516_vm7, %v11286_v14, 0.0 }
 0x58d   :  { %672 = vrot.lane.b32.xlu1 %v11986_v22, %s14140_s28 }
 0x591   :  { %10959 = vrot.lane.b32.xlu0 %v11962_v10, %s14142_s25 }
 0x5a0   :  { %v525_v6 = vpop.xlane.xlu1 %524 }
 0x5a1   :  { %v531_v8 = vsub.f32 %v508_v43, %v525_v6 }
 0x5a3   :  { %v537_v13 = vmul.f32 1.442695, %v531_v8 }
 0x5a4   :  { %v10965_v19 = vpop.permute.xlu1 %10964 }
 0x5a5   :  { %11287 = vpow2.f32 %v537_v13  ;;  %v10967_v31 = vunpack.i.h.bf16 %v10965_v19  ;;  %v10966_v32 = vunpack.i.l.bf16 %v10965_v19 }
 0x5a7   :  { %v10340_v37 = vpack.c.bf16 %v10967_v31, %v10966_v32 }
 0x5a8   :  { %v10970_v20 = vpop.permute.xlu1 %10969 }
 0x5a9   :  { %v10972_v44 = vunpack.i.h.bf16 %v10970_v20  ;;  %v10971_v45 = vunpack.i.l.bf16 %v10970_v20 }
 0x5ab   :  { %v10346_v47 = vpack.c.bf16 %v10972_v44, %v10971_v45 }
 0x5af   :  { %v11288_v15 = vpop.eup %11287 }
 0x5b0   :  { %551 = vadd.xlane.f32.xlu0 %v550_v17  ;;  %v547_v18 = vsel %vm516_vm7, %v11288_v15, 0.0 }
 0x5b1   :  { %548 = vadd.xlane.f32.xlu1 %v547_v18 }
 0x5c2   :  { %676 = vrot.lane.b32.xlu1 %v11994_v24, %s14140_s28 }
 0x5c6   :  { %670 = vrot.lane.b32.xlu0 %v11942_v0, %s14140_s28  ;;  %10979 = vrot.lane.b32.xlu1 %v11962_v10, %s14134_s30 }
 0x5ca   :  { %674 = vrot.lane.b32.xlu0 %v11988_v23, %s14140_s28  ;;  %1136 = vrot.lane.b32.xlu1 %v11986_v22, %s14132_s0 }
 0x5ce   :  { %10974 = vrot.lane.b32.xlu0 %v11948_v3, %s14134_s30  ;;  %1140 = vrot.lane.b32.xlu1 %v11994_v24, %s14132_s0  ;;  %s14163_s30 = smov 56  }
 0x5d2   :  { %1134 = vrot.lane.b32.xlu0 %v11942_v0, %s14132_s0 }
 0x5d6   :  { %1138 = vrot.lane.b32.xlu0 %v11988_v23, %s14132_s0  ;;  %s14164_s0 = smov 104  }
 0x608   :  { %v546_v21 = vpop.xlane.xlu0 %545 }
 0x609   :  { %11289 = vrcp.f32 %v546_v21  ;;  %v543_v28 = vpop.xlane.xlu1 %542 }
 0x60a   :  { %11291 = vrcp.f32 %v543_v28 }
 0x60c   :  { %v10960_v30 = vpop.permute.xlu0 %10959 }
 0x60d   :  { %v10962_v34 = vunpack.i.h.bf16 %v10960_v30  ;;  %v10961_v35 = vunpack.i.l.bf16 %v10960_v30  ;;  %v673_v50 = vpop.permute.xlu1 %672 }
 0x60f   :  { %v10336_v36 = vpack.c.bf16 %v10962_v34, %v10961_v35 }
 0x611   :  { %10337 = vmatprep.subr.bf16.mxu0 %v10336_v36 }
 0x612   :  { %10339 = vmatpush3.bf16.msra.mxu0 %v10336_v36 }
 0x613   :  { %v11290_v38 = vpop.eup %11289  ;;  %10342 = vmatprep.subr.msk.bf16.mxu0 %vm11974_vm6, %v10340_v37 }
 0x614   :  { %v11292_v40 = vpop.eup %11291  ;;  %v558_v46 = vmul.f32 %v11290_v38, %v11282_v59 }
 0x615   :  { %v557_v43 = vmul.f32 %v11292_v40, %v11284_v57 }
 0x617   :  { %9632 = vmatprep.mubr.msk.f32.mxu0 %vm516_vm7, %v557_v43 }
 0x618   :  { %9633 = vmatmul.mubr.msk.f32.vlgmr.msra.gmra.mrb[4].mxu0 %vm516_vm7, %v558_v46 }
 0x61b   :  { %10345 = vmatpush3.bf16.xpose.msk.msra.mxu0 %vm11974_vm6, %v10340_v37 }
 0x61c   :  { %10348 = vmatprep.subr.msk.bf16.mxu0 %vm11974_vm6, %v10346_v47 }
 0x623   :  { %10351 = vmatpush3.bf16.xpose.msk.msra.mxu0 %vm11974_vm6, %v10346_v47 }
 0x63d   :  { %v552_v51 = vpop.xlane.xlu0 %551 }
 0x63e   :  { %11293 = vrcp.f32 %v552_v51  ;;  %v549_v52 = vpop.xlane.xlu1 %548 }
 0x63f   :  { %11295 = vrcp.f32 %v549_v52 }
 0x641   :  { %v671_v53 = vpop.permute.xlu0 %670 }
 0x642   :  { %v677_v54 = vpop.permute.xlu1 %676 }
 0x645   :  { %v675_v55 = vpop.permute.xlu0 %674 }
 0x646   :  { %v10980_v56 = vpop.permute.xlu1 %10979 }
 0x647   :  { %v10982_v8 = vunpack.i.h.bf16 %v10980_v56  ;;  %v10981_v13 = vunpack.i.l.bf16 %v10980_v56 }
 0x648   :  { %v11294_v58 = vpop.eup %11293 }
 0x649   :  { %v11296_v59 = vpop.eup %11295  ;;  %v10975_v57 = vpop.permute.xlu0 %10974  ;;  %v560_v1 = vmul.f32 %v11294_v58, %v11286_v14  ;;  %v10366_v17 = vpack.c.bf16 %v10982_v8, %v10981_v13 }
 0x64a   :  { %v10977_v60 = vunpack.i.h.bf16 %v10975_v57  ;;  %v10976_v61 = vunpack.i.l.bf16 %v10975_v57  ;;  %v559_v62 = vmul.f32 %v11296_v59, %v11288_v15  ;;  %v1137_v15 = vpop.permute.xlu1 %1136 }
 0x64c   :  { %v10360_v6 = vpack.c.bf16 %v10977_v60, %v10976_v61  ;;  %9635 = vmatprep.mubr.msk.f32.mxu0 %vm516_vm7, %v559_v62 }
 0x64d   :  { %9636 = vmatmul.mubr.msk.f32.gmra.mrb[6].mxu0 %vm516_vm7, %v560_v1  ;;  %v1135_v14 = vpop.permute.xlu0 %1134 }
 0x64e   :  { %9646 = vmatprep.mubr.msk.f32.mxu0 %vm410_vm5, %v671_v53  ;;  %10362 = vmatprep.subr.msk.bf16.mxu0 %vm11974_vm6, %v10360_v6  ;;  %v1141_v19 = vpop.permute.xlu1 %1140 }
 0x651   :  { %9647 = vmatmul.mubr.msk.f32.vlgmr.msra.gmra.mrb[8].mxu0 %vm410_vm5, %v673_v50  ;;  %v1139_v18 = vpop.permute.xlu0 %1138 }
 0x652   :  { %10365 = vmatpush3.bf16.xpose.msk.msra.mxu0 %vm11974_vm6, %v10360_v6  ;;  %9649 = vmatprep.mubr.msk.f32.mxu0 %vm410_vm5, %v675_v55 }
 0x653   :  { %10368 = vmatprep.subr.msk.bf16.mxu0 %vm11974_vm6, %v10366_v17 }
 0x655   :  { %9650 = vmatmul.mubr.msk.f32.gmra.mrb[10].mxu0 %vm410_vm5, %v677_v54 }
 0x656   :  { %9690 = vmatprep.mubr.msk.f32.mxu0 %vm410_vm5, %v1135_v14 }
 0x65a   :  { %10371 = vmatpush3.bf16.xpose.msk.msra.mxu0 %vm11974_vm6, %v10366_v17 }
 0x661   :  { %9691 = vmatmul.mubr.msk.f32.vlgmr.msra.gmra.mrb[12].mxu0 %vm410_vm5, %v1137_v15 }
 0x662   :  { %9693 = vmatprep.mubr.msk.f32.mxu0 %vm410_vm5, %v1139_v18 }
 0x665   :  { %9694 = vmatmul.mubr.msk.f32.gmra.mrb[14].mxu0 %vm410_vm5, %v1141_v19 }
 0x6eb   :  { %v12086_v20 = vpop.f32.mrb[4].mxu0 }
 0x6ec   :  { %v12088_v21 = vpop.f32.mrb[5].mxu0 }
 0x720   :  { %v12090_v28 = vpop.f32.mrb[6].mxu0 }
 0x721   :  { %v12092_v30 = vpop.f32.mrb[7].mxu0 }
 0x724   :  { %v9648_v31 = vpop.f32.mrb[8].mxu0 }
 0x725   :  { %v774_v32 = vadd.f32 %v9648_v31, %v12001_v26  ;;  %v768_v34 = vpop.f32.mrb[9].mxu0 }
 0x726   :  { %v769_v35 = vadd.f32 %v768_v34, %v12006_v27 }
 0x727   :  { %v790_v36 = vsel %vm516_vm7, %v774_v32, -inf }
 0x728   :  { %791 = vmax.xlane.f32.xlu1 %v790_v36  ;;  %v9651_v37 = vpop.f32.mrb[10].mxu0  ;;  %v787_v38 = vsel %vm516_vm7, %v769_v35, -inf }
 0x729   :  { %v778_v40 = vpop.f32.mrb[11].mxu0  ;;  %788 = vmax.xlane.f32.xlu0 %v787_v38  ;;  %v784_v44 = vadd.f32 %v9651_v37, %v12013_v33 }
 0x72a   :  { %v779_v43 = vadd.f32 %v778_v40, %v12024_v42 }
 0x72b   :  { %v796_v46 = vsel %vm516_vm7, %v784_v44, -inf }
 0x72c   :  { %v793_v45 = vsel %vm516_vm7, %v779_v43, -inf }
 0x72d   :  { %794 = vmax.xlane.f32.xlu0 %v793_v45 }
 0x731   :  { %797 = vmax.xlane.f32.xlu0 %v796_v46 }
 0x734   :  { %v9692_v47 = vpop.f32.mrb[12].mxu0 }
 0x735   :  { %v1232_v50 = vpop.f32.mrb[13].mxu0  ;;  %v12135_v34 = vadd.f32 %v9692_v47, %v12001_v26 }
 0x737   :  { %v1254_v38 = vsel %vm516_vm7, %v12135_v34, -inf }
 0x738   :  { %v9695_v51 = vpop.f32.mrb[14].mxu0 }
 0x739   :  { %v1242_v52 = vpop.f32.mrb[15].mxu0  ;;  %v12143_v37 = vadd.f32 %v9695_v51, %v12013_v33 }
 0x7b5   :  { %v792_v53 = vpop.xlane.xlu1 %791 }
 0x7b6   :  { %v800_v54 = vsub.f32 %v774_v32, %v792_v53  ;;  %v789_v55 = vpop.xlane.xlu0 %788  ;;  %v12132_v32 = vadd.f32 %v1232_v50, %v12006_v27 }
 0x7b7   :  { %v799_v58 = vsub.f32 %v769_v35, %v789_v55  ;;  %v12138_v35 = vadd.f32 %v1242_v52, %v12024_v42 }
 0x7b8   :  { %v805_v59 = vmul.f32 1.442695, %v800_v54  ;;  %v1251_v36 = vsel %vm516_vm7, %v12132_v32, -inf }
 0x7b9   :  { %v803_v57 = vmul.f32 1.442695, %v799_v58  ;;  %v1257_v40 = vsel %vm516_vm7, %v12138_v35, -inf }
 0x7ba   :  { %11297 = vpow2.f32 %v805_v59  ;;  %v795_v56 = vpop.xlane.xlu0 %794 }
 0x7bb   :  { %11299 = vpow2.f32 %v803_v57  ;;  %v801_v60 = vsub.f32 %v779_v43, %v795_v56  ;;  %v1260_v43 = vsel %vm516_vm7, %v12143_v37, -inf }
 0x7bd   :  { %v807_v61 = vmul.f32 1.442695, %v801_v60 }
 0x7be   :  { %v798_v62 = vpop.xlane.xlu0 %797 }
 0x7bf   :  { %11301 = vpow2.f32 %v807_v61  ;;  %v802_v1 = vsub.f32 %v784_v44, %v798_v62 }
 0x7c1   :  { %v809_v6 = vmul.f32 1.442695, %v802_v1 }
 0x7c3   :  { %11303 = vpow2.f32 %v809_v6 }
 0x7c4   :  { %v12102_v8 = vpop.eup %11297 }
 0x7c5   :  { %v11300_v13 = vpop.eup %11299  ;;  %v814_v17 = vsel %vm516_vm7, %v12102_v8, 0.0 }
 0x7c6   :  { %815 = vadd.xlane.f32.xlu0 %v814_v17  ;;  %v811_v14 = vsel %vm516_vm7, %v11300_v13, 0.0 }
 0x7c7   :  { %812 = vadd.xlane.f32.xlu1 %v811_v14 }
 0x7c9   :  { %v12107_v15 = vpop.eup %11301 }
 0x7ca   :  { %v817_v18 = vsel %vm516_vm7, %v12107_v15, 0.0 }
 0x7cb   :  { %818 = vadd.xlane.f32.xlu1 %v817_v18 }
 0x7cd   :  { %v12111_v19 = vpop.eup %11303 }
 0x7ce   :  { %v820_v31 = vsel %vm516_vm7, %v12111_v19, 0.0 }
 0x7cf   :  { %821 = vadd.xlane.f32.xlu0 %v820_v31 }
 0x7dc   :  { %10984 = vrot.lane.b32.xlu1 %v11948_v3, %s14136_s19 }
 0x7e0   :  { %10994 = vrot.lane.b32.xlu1 %v11948_v3, %s14130_s21 }
 0x7e4   :  { %10999 = vrot.lane.b32.xlu1 %v11962_v10, %s14130_s21  ;;  %s14161_s21 = smov 64  }
 0x7e5   :  { %10989 = vrot.lane.b32.xlu0 %v11962_v10, %s14136_s19 }
 0x7e8   :  { %1507 = vrot.lane.b32.xlu1 %v11986_v22, %s14128_s22 }
 0x7e9   :  { %1505 = vrot.lane.b32.xlu0 %v11942_v0, %s14128_s22 }
 0x7ec   :  { %1511 = vrot.lane.b32.xlu1 %v11994_v24, %s14128_s22 }
 0x7ed   :  { %1509 = vrot.lane.b32.xlu0 %v11988_v23, %s14128_s22  ;;  %s14162_s22 = smov 112  }
 0x80c   :  { %1252 = vmax.xlane.f32.xlu0 %v1251_v36 }
 0x810   :  { %1255 = vmax.xlane.f32.xlu1 %v1254_v38  ;;  %1258 = vmax.xlane.f32.xlu0 %v1257_v40 }
 0x814   :  { %1261 = vmax.xlane.f32.xlu0 %v1260_v43 }
 0x853   :  { %v816_v45 = vpop.xlane.xlu0 %815 }
 0x854   :  { %v813_v44 = vpop.xlane.xlu1 %812 }
 0x855   :  { %11305 = vrcp.f32 %v813_v44 }
 0x856   :  { %11307 = vrcp.f32 %v816_v45 }
 0x858   :  { %v819_v46 = vpop.xlane.xlu1 %818 }
 0x859   :  { %11309 = vrcp.f32 %v819_v46 }
 0x85c   :  { %v10985_v47 = vpop.permute.xlu1 %10984  ;;  %v822_v50 = vpop.xlane.xlu0 %821 }
 0x85d   :  { %v10987_v51 = vunpack.i.h.bf16 %v10985_v47  ;;  %v10986_v52 = vunpack.i.l.bf16 %v10985_v47  ;;  %11311 = vrcp.f32 %v822_v50 }
 0x85f   :  { %v11306_v53 = vpop.eup %11305  ;;  %v10352_v54 = vpack.c.bf16 %v10987_v51, %v10986_v52 }
 0x860   :  { %v10995_v55 = vpop.permute.xlu1 %10994  ;;  %v10990_v58 = vpop.permute.xlu0 %10989  ;;  %v827_v59 = vmul.f32 %v11306_v53, %v11300_v13 }
 0x861   :  { %v10997_v57 = vunpack.i.h.bf16 %v10995_v55  ;;  %v10996_v56 = vunpack.i.l.bf16 %v10995_v55  ;;  %v10992_v60 = vunpack.i.h.bf16 %v10990_v58  ;;  %v10991_v61 = vunpack.i.l.bf16 %v10990_v58  ;;  %10353 = vmatprep.subr.bf16.mxu1 %v10352_v54  ;;  %v11308_v6 = vpop.eup %11307 }
 0x862   :  { %10355 = vmatpush3.bf16.msra.mxu1 %v10352_v54  ;;  %9660 = vmatprep.mubr.msk.f32.mxu1 %vm516_vm7, %v827_v59  ;;  %v828_v13 = vmul.f32 %v11308_v6, %v12102_v8  ;;  %v388_v6 = vld [vmem:[%s14101_s7] sm:$0xff] }
 0x863   :  { %v10380_v62 = vpack.c.bf16 %v10997_v57, %v10996_v56  ;;  %v10356_v1 = vpack.c.bf16 %v10992_v60, %v10991_v61  ;;  %v11310_v18 = vpop.eup %11309 }
 0x864   :  { %v11000_v17 = vpop.permute.xlu1 %10999  ;;  %v1506_v14 = vpop.permute.xlu0 %1505  ;;  %v829_v43 = vmul.f32 %v11310_v18, %v12107_v15 }
 0x865   :  { %v11002_v31 = vunpack.i.h.bf16 %v11000_v17  ;;  %v11001_v36 = vunpack.i.l.bf16 %v11000_v17  ;;  %10357 = vmatprep.subr.bf16.mxu1 %v10356_v1  ;;  %10382 = vmatprep.subr.msk.bf16.mxu0 %vm11974_vm6, %v10380_v62 }
 0x866   :  { %9726 = vmatprep.mubr.msk.f32.mxu0 %vm410_vm5, %v1506_v14  ;;  %10359 = vmatpush3.bf16.msra.mxu1 %v10356_v1  ;;  %v389_v1 = vld [vmem:[%s14101_s7 + $0x8] sm:$0xff] }
 0x867   :  { %v10386_v38 = vpack.c.bf16 %v11002_v31, %v11001_v36  ;;  %10385 = vmatpush3.bf16.xpose.msk.msra.mxu0 %vm11974_vm6, %v10380_v62  ;;  %v11312_v40 = vpop.eup %11311  ;;  %9666 = vmatprep.subr.mxu1 %v389_v1 }
 0x868   :  { %v830_v44 = vmul.f32 %v11312_v40, %v12111_v19  ;;  %v1508_v8 = vpop.permute.xlu1 %1507  ;;  %v1510_v45 = vpop.permute.xlu0 %1509 }
 0x869   :  { %9661 = vmatmul.mubr.msk.f32.vlgmr.msra.gmra.mrb[12].mxu1 %vm516_vm7, %v828_v13  ;;  %10388 = vmatprep.subr.msk.bf16.mxu0 %vm11974_vm6, %v10386_v38 }
 0x86a   :  { %9663 = vmatprep.mubr.msk.f32.mxu1 %vm516_vm7, %v829_v43  ;;  %9667 = vmatpush3.msra.mxu1 %v389_v1 }
 0x86b   :  { %9674 = vmatprep.subr.mxu1 %v388_v6 }
 0x86c   :  { %v1512_v15 = vpop.permute.xlu1 %1511 }
 0x86d   :  { %9664 = vmatmul.mubr.msk.f32.gmra.mrb[14].mxu1 %vm516_vm7, %v830_v44 }
 0x86f   :  { %10391 = vmatpush3.bf16.xpose.msk.msra.mxu0 %vm11974_vm6, %v10386_v38 }
 0x876   :  { %9727 = vmatmul.mubr.msk.f32.vlgmr.msra.gmra.mrb[16].mxu0 %vm410_vm5, %v1508_v8 }
 0x877   :  { %9729 = vmatprep.mubr.msk.f32.mxu0 %vm410_vm5, %v1510_v45 }
 0x87a   :  { %9730 = vmatmul.mubr.msk.f32.gmra.mrb[18].mxu0 %vm410_vm5, %v1512_v15 }
 0x899   :  { %v1253_v46 = vpop.xlane.xlu0 %1252 }
 0x89a   :  { %v1263_v47 = vsub.f32 %v12132_v32, %v1253_v46 }
 0x89c   :  { %v1267_v50 = vmul.f32 1.442695, %v1263_v47 }
 0x89d   :  { %v1256_v51 = vpop.xlane.xlu1 %1255  ;;  %v1259_v19 = vpop.xlane.xlu0 %1258 }
 0x89e   :  { %11313 = vpow2.f32 %v1267_v50  ;;  %v1264_v52 = vsub.f32 %v12135_v34, %v1256_v51  ;;  %v1265_v53 = vsub.f32 %v12138_v35, %v1259_v19 }
 0x8a0   :  { %v1269_v54 = vmul.f32 1.442695, %v1264_v52  ;;  %v1271_v55 = vmul.f32 1.442695, %v1265_v53 }
 0x8a1   :  { %v1262_v58 = vpop.xlane.xlu0 %1261 }
 0x8a2   :  { %11315 = vpow2.f32 %v1269_v54  ;;  %v1266_v59 = vsub.f32 %v12143_v37, %v1262_v58 }
 0x8a3   :  { %11317 = vpow2.f32 %v1271_v55 }
 0x8a4   :  { %v1273_v57 = vmul.f32 1.442695, %v1266_v59 }
 0x8a6   :  { %11319 = vpow2.f32 %v1273_v57 }
 0x8a8   :  { %v12174_v56 = vpop.eup %11313 }
 0x8a9   :  { %v1275_v32 = vsel %vm516_vm7, %v12174_v56, 0.0 }
 0x8aa   :  { %1276 = vadd.xlane.f32.xlu1 %v1275_v32 }
 0x8ac   :  { %v12178_v60 = vpop.eup %11315 }
 0x8ad   :  { %v12180_v34 = vpop.eup %11317  ;;  %v1278_v35 = vsel %vm516_vm7, %v12178_v60, 0.0 }
 0x8ae   :  { %1279 = vadd.xlane.f32.xlu0 %v1278_v35  ;;  %v1281_v37 = vsel %vm516_vm7, %v12180_v34, 0.0 }
 0x8af   :  { %1282 = vadd.xlane.f32.xlu1 %v1281_v37 }
 0x8b0   :  { %v12186_v61 = vpop.eup %11319 }
 0x8b1   :  { %v1284_v62 = vsel %vm516_vm7, %v12186_v61, 0.0 }
 0x8b2   :  { %1285 = vadd.xlane.f32.xlu0 %v1284_v62 }
 0x8c0   :  { %11004 = vrot.lane.b32.xlu1 %v11948_v3, %s14126_s23 }
 0x8c4   :  { %11014 = vrot.lane.b32.xlu1 %v11948_v3, %s14124_s26 }
 0x8c8   :  { %11019 = vrot.lane.b32.xlu1 %v11962_v10, %s14124_s26  ;;  %11009 = vrot.lane.b32.xlu0 %v11962_v10, %s14126_s23  ;;  %s14165_s23 = smov 16   ;;  %s14166_s26 = smov 48  }
 0x8cc   :  { %1878 = vrot.lane.b32.xlu1 %v11986_v22, %s14122_s2  ;;  %1876 = vrot.lane.b32.xlu0 %v11942_v0, %s14122_s2 }
 0x8d0   :  { %1882 = vrot.lane.b32.xlu1 %v11994_v24, %s14122_s2  ;;  %1880 = vrot.lane.b32.xlu0 %v11988_v23, %s14122_s2  ;;  %s14179_s2 = sld [smem:[#allocation11_spill]] }
 0x937   :  { %v1277_v17 = vpop.xlane.xlu1 %1276 }
 0x938   :  { %11321 = vrcp.f32 %v1277_v17 }
 0x93b   :  { %v1280_v14 = vpop.xlane.xlu0 %1279 }
 0x93c   :  { %v1283_v18 = vpop.xlane.xlu1 %1282  ;;  %v9662_v31 = vpop.f32.mrb[12].mxu1  ;;  %11323 = vrcp.f32 %v1280_v14 }
 0x93d   :  { %v921_v36 = vpop.f32.mrb[13].mxu1  ;;  %11325 = vrcp.f32 %v1283_v18 }
 0x93e   :  { %9668 = vmatprep.mubr.msk.f32.mxu1 %vm410_vm5, %v921_v36 }
 0x93f   :  { %v1286_v13 = vpop.xlane.xlu0 %1285  ;;  %9669 = vmatmul.mubr.msk.f32.vlgmr.msra.gmra.mrb[16].mxu1 %vm410_vm5, %v9662_v31 }
 0x940   :  { %v11005_v38 = vpop.permute.xlu1 %11004  ;;  %v9665_v40 = vpop.f32.mrb[14].mxu1  ;;  %9675 = vmatpush3.msra.mxu1 %v388_v6  ;;  %11327 = vrcp.f32 %v1286_v13 }
 0x941   :  { %v11007_v43 = vunpack.i.h.bf16 %v11005_v38  ;;  %v11006_v44 = vunpack.i.l.bf16 %v11005_v38  ;;  %v931_v8 = vpop.f32.mrb[15].mxu1 }
 0x942   :  { %9671 = vmatprep.mubr.msk.f32.mxu1 %vm410_vm5, %v931_v8  ;;  %v11322_v53 = vpop.eup %11321 }
 0x943   :  { %v11010_v45 = vpop.permute.xlu0 %11009  ;;  %9672 = vmatmul.mubr.msk.f32.gmra.mrb[18].mxu1 %vm410_vm5, %v9665_v40  ;;  %v10372_v15 = vpack.c.bf16 %v11007_v43, %v11006_v44 }
 0x944   :  { %v11015_v46 = vpop.permute.xlu1 %11014  ;;  %v11012_v47 = vunpack.i.h.bf16 %v11010_v45  ;;  %v11011_v50 = vunpack.i.l.bf16 %v11010_v45  ;;  %9676 = vmatprep.mubr.msk.f32.mxu1 %vm410_vm5, %v12088_v21 }
 0x945   :  { %v11017_v51 = vunpack.i.h.bf16 %v11015_v46  ;;  %v11016_v19 = vunpack.i.l.bf16 %v11015_v46  ;;  %10373 = vmatprep.subr.bf16.mxu1 %v10372_v15 }
 0x946   :  { %v10376_v52 = vpack.c.bf16 %v11012_v47, %v11011_v50  ;;  %v11324_v21 = vpop.eup %11323 }
 0x947   :  { %v10400_v54 = vpack.c.bf16 %v11017_v51, %v11016_v19  ;;  %v1877_v55 = vpop.permute.xlu0 %1876  ;;  %9677 = vmatmul.mubr.msk.f32.vlgmr.msra.gmra.mrb[16].mxu1 %vm410_vm5, %v12086_v20  ;;  %v1291_v20 = vmul.f32 %v11322_v53, %v12174_v56  ;;  %v11326_v62 = vpop.eup %11325  ;;  %v1292_v17 = vmul.f32 %v11324_v21, %v12178_v60 }
 0x948   :  { %v11020_v58 = vpop.permute.xlu1 %11019  ;;  %10375 = vmatpush3.bf16.msra.mxu1 %v10372_v15  ;;  %9679 = vmatprep.mubr.msk.f32.mxu1 %vm410_vm5, %v12092_v30  ;;  %v1293_v36 = vmul.f32 %v11326_v62, %v12180_v34 }
 0x949   :  { %v11022_v59 = vunpack.i.h.bf16 %v11020_v58  ;;  %v11021_v57 = vunpack.i.l.bf16 %v11020_v58  ;;  %10377 = vmatprep.subr.bf16.mxu1 %v10376_v52  ;;  %v9728_v32 = vpop.f32.mrb[16].mxu0  ;;  %10402 = vmatprep.subr.msk.bf16.mxu0 %vm11974_vm6, %v10400_v54 }
 0x94a   :  { %v1609_v35 = vadd.f32 %v9728_v32, %v12001_v26  ;;  %9762 = vmatprep.mubr.msk.f32.mxu0 %vm410_vm5, %v1877_v55  ;;  %v1603_v37 = vpop.f32.mrb[17].mxu0  ;;  %10405 = vmatpush3.bf16.xpose.msk.msra.mxu0 %vm11974_vm6, %v10400_v54  ;;  %v11328_v18 = vpop.eup %11327 }
 0x94b   :  { %v10406_v30 = vpack.c.bf16 %v11022_v59, %v11021_v57  ;;  %v1604_v1 = vadd.f32 %v1603_v37, %v12006_v27  ;;  %9680 = vmatmul.mubr.msk.f32.gmra.mrb[18].mxu1 %vm410_vm5, %v12090_v28  ;;  %v1294_v38 = vmul.f32 %v11328_v18, %v12186_v61  ;;  %v1881_v43 = vpop.permute.xlu0 %1880  ;;  %v390_v61 = vld [vmem:[%s14101_s7 + $0x10] sm:$0xff] }
 0x94c   :  { %10379 = vmatpush3.bf16.msra.mxu1 %v10376_v52  ;;  %v1625_v6 = vsel %vm516_vm7, %v1609_v35, -inf  ;;  %9704 = vmatprep.mubr.msk.f32.mxu1 %vm516_vm7, %v1291_v20  ;;  %v1879_v40 = vpop.permute.xlu1 %1878 }
 0x94d   :  { %v9731_v14 = vpop.f32.mrb[18].mxu0  ;;  %1626 = vmax.xlane.f32.xlu1 %v1625_v6  ;;  %10408 = vmatprep.subr.msk.bf16.mxu0 %vm11974_vm6, %v10406_v30  ;;  %v1622_v56 = vsel %vm516_vm7, %v1604_v1, -inf }
 0x94e   :  { %v1613_v31 = vpop.f32.mrb[19].mxu0  ;;  %1623 = vmax.xlane.f32.xlu0 %v1622_v56  ;;  %v1619_v60 = vadd.f32 %v9731_v14, %v12013_v33  ;;  %9710 = vmatprep.subr.mxu1 %v390_v61 }
 0x94f   :  { %v1614_v28 = vadd.f32 %v1613_v31, %v12024_v42  ;;  %9705 = vmatmul.mubr.msk.f32.vlgmr.msra.gmra.mrb[20].mxu1 %vm516_vm7, %v1292_v17 }
 0x950   :  { %9707 = vmatprep.mubr.msk.f32.mxu1 %vm516_vm7, %v1293_v36  ;;  %v1631_v34 = vsel %vm516_vm7, %v1619_v60, -inf  ;;  %v1883_v44 = vpop.permute.xlu1 %1882  ;;  %9711 = vmatpush3.msra.mxu1 %v390_v61 }
 0x951   :  { %v1628_v13 = vsel %vm516_vm7, %v1614_v28, -inf }
 0x952   :  { %10411 = vmatpush3.bf16.xpose.msk.msra.mxu0 %vm11974_vm6, %v10406_v30  ;;  %1629 = vmax.xlane.f32.xlu0 %v1628_v13 }
 0x953   :  { %9708 = vmatmul.mubr.msk.f32.gmra.mrb[22].mxu1 %vm516_vm7, %v1294_v38 }
 0x956   :  { %1632 = vmax.xlane.f32.xlu0 %v1631_v34 }
 0x959   :  { %9763 = vmatmul.mubr.msk.f32.vlgmr.msra.gmra.mrb[20].mxu0 %vm410_vm5, %v1879_v40 }
 0x95a   :  { %9765 = vmatprep.mubr.msk.f32.mxu0 %vm410_vm5, %v1881_v43 }
 0x95d   :  { %9766 = vmatmul.mubr.msk.f32.gmra.mrb[22].mxu0 %vm410_vm5, %v1883_v44 }
 0x9da   :  { %v1627_v8 = vpop.xlane.xlu1 %1626 }
 0x9db   :  { %v1635_v45 = vsub.f32 %v1609_v35, %v1627_v8  ;;  %v1624_v15 = vpop.xlane.xlu0 %1623 }
 0x9dc   :  { %v1634_v46 = vsub.f32 %v1604_v1, %v1624_v15 }
 0x9dd   :  { %v1640_v47 = vmul.f32 1.442695, %v1635_v45 }
 0x9de   :  { %v1638_v50 = vmul.f32 1.442695, %v1634_v46 }
 0x9df   :  { %11329 = vpow2.f32 %v1640_v47  ;;  %v1630_v51 = vpop.xlane.xlu0 %1629 }
 0x9e0   :  { %11331 = vpow2.f32 %v1638_v50  ;;  %v1636_v19 = vsub.f32 %v1614_v28, %v1630_v51 }
 0x9e2   :  { %v1642_v52 = vmul.f32 1.442695, %v1636_v19 }
 0x9e3   :  { %v1633_v53 = vpop.xlane.xlu0 %1632 }
 0x9e4   :  { %11333 = vpow2.f32 %v1642_v52  ;;  %v1637_v54 = vsub.f32 %v1619_v60, %v1633_v53  ;;  %v391_v52 = vld [vmem:[%s14101_s7 + $0x18] sm:$0xff] }
 0x9e6   :  { %v1644_v55 = vmul.f32 1.442695, %v1637_v54 }
 0x9e8   :  { %11335 = vpow2.f32 %v1644_v55 }
 0x9e9   :  { %v12255_v58 = vpop.eup %11329 }
 0x9ea   :  { %v11332_v59 = vpop.eup %11331  ;;  %v1649_v57 = vsel %vm516_vm7, %v12255_v58, 0.0 }
 0x9eb   :  { %1650 = vadd.xlane.f32.xlu0 %v1649_v57  ;;  %v1646_v32 = vsel %vm516_vm7, %v11332_v59, 0.0 }
 0x9ec   :  { %1647 = vadd.xlane.f32.xlu1 %v1646_v32 }
 0x9ee   :  { %v12260_v21 = vpop.eup %11333 }
 0x9ef   :  { %v1652_v35 = vsel %vm516_vm7, %v12260_v21, 0.0 }
 0x9f0   :  { %1653 = vadd.xlane.f32.xlu1 %v1652_v35 }
 0x9f2   :  { %v12264_v37 = vpop.eup %11335 }
 0x9f3   :  { %v1655_v20 = vsel %vm516_vm7, %v12264_v37, 0.0 }
 0x9f4   :  { %1656 = vadd.xlane.f32.xlu0 %v1655_v20 }
 0xa01   :  { %11024 = vrot.lane.b32.xlu1 %v11948_v3, %s14120_s20 }
 0xa05   :  { %11034 = vrot.lane.b32.xlu1 %v11948_v3, %s14118_s29 }
 0xa09   :  { %11039 = vrot.lane.b32.xlu1 %v11962_v10, %s14118_s29  ;;  %s14167_s29 = smov 96  }
 0xa0a   :  { %11029 = vrot.lane.b32.xlu0 %v11962_v10, %s14120_s20  ;;  %s14168_s20 = smov 8  }
 0xa0d   :  { %2237 = vrot.lane.b32.xlu1 %v11986_v22, %s14116_s24 }
 0xa0e   :  { %2235 = vrot.lane.b32.xlu0 %v11942_v0, %s14116_s24 }
 0xa11   :  { %2241 = vrot.lane.b32.xlu1 %v11994_v24, %s14116_s24 }
 0xa12   :  { %2239 = vrot.lane.b32.xlu0 %v11988_v23, %s14116_s24 }
 0xa22   :  { %v9706_v3 = vpop.f32.mrb[20].mxu1 }
 0xa23   :  { %v1385_v62 = vpop.f32.mrb[21].mxu1 }
 0xa24   :  { %9712 = vmatprep.mubr.msk.f32.mxu1 %vm410_vm5, %v1385_v62 }
 0xa25   :  { %9713 = vmatmul.mubr.msk.f32.vlgmr.msra.gmra.mrb[16].mxu1 %vm410_vm5, %v9706_v3 }
 0xa26   :  { %v9709_v10 = vpop.f32.mrb[22].mxu1 }
 0xa27   :  { %v1395_v30 = vpop.f32.mrb[23].mxu1 }
 0xa28   :  { %9715 = vmatprep.mubr.msk.f32.mxu1 %vm410_vm5, %v1395_v30 }
 0xa29   :  { %9716 = vmatmul.mubr.msk.f32.gmra.mrb[18].mxu1 %vm410_vm5, %v9709_v10 }
 0xa2c   :  { %v9764_v22 = vpop.f32.mrb[20].mxu0 }
 0xa2d   :  { %v1974_v0 = vpop.f32.mrb[21].mxu0  ;;  %v12292_v24 = vadd.f32 %v9764_v22, %v12001_v26 }
 0xa2e   :  { %v12289_v1 = vadd.f32 %v1974_v0, %v12006_v27 }
 0xa2f   :  { %v1996_v18 = vsel %vm516_vm7, %v12292_v24, -inf }
 0xa30   :  { %v9767_v23 = vpop.f32.mrb[22].mxu0  ;;  %v1993_v6 = vsel %vm516_vm7, %v12289_v1, -inf }
 0xa31   :  { %v1984_v17 = vpop.f32.mrb[23].mxu0  ;;  %1994 = vmax.xlane.f32.xlu0 %v1993_v6  ;;  %v12300_v56 = vadd.f32 %v9767_v23, %v12013_v33 }
 0xa32   :  { %v12297_v14 = vadd.f32 %v1984_v17, %v12024_v42 }
 0xa33   :  { %v2002_v26 = vsel %vm516_vm7, %v12300_v56, -inf }
 0xa34   :  { %v1999_v27 = vsel %vm516_vm7, %v12297_v14, -inf }
 0xa35   :  { %1997 = vmax.xlane.f32.xlu1 %v1996_v18  ;;  %2000 = vmax.xlane.f32.xlu0 %v1999_v27 }
 0xa39   :  { %2003 = vmax.xlane.f32.xlu0 %v2002_v26 }
 0xa78   :  { %v1651_v36 = vpop.xlane.xlu0 %1650 }
 0xa79   :  { %v1648_v31 = vpop.xlane.xlu1 %1647 }
 0xa7a   :  { %11337 = vrcp.f32 %v1648_v31 }
 0xa7b   :  { %11339 = vrcp.f32 %v1651_v36 }
 0xa7d   :  { %v1654_v42 = vpop.xlane.xlu1 %1653 }
 0xa7e   :  { %11341 = vrcp.f32 %v1654_v42 }
 0xa81   :  { %v11025_v33 = vpop.permute.xlu1 %11024  ;;  %v1657_v28 = vpop.xlane.xlu0 %1656 }
 0xa82   :  { %v11027_v60 = vunpack.i.h.bf16 %v11025_v33  ;;  %v11026_v13 = vunpack.i.l.bf16 %v11025_v33  ;;  %11343 = vrcp.f32 %v1657_v28 }
 0xa84   :  { %v11338_v38 = vpop.eup %11337  ;;  %v10392_v34 = vpack.c.bf16 %v11027_v60, %v11026_v13 }
 0xa85   :  { %v11035_v40 = vpop.permute.xlu1 %11034  ;;  %v11030_v43 = vpop.permute.xlu0 %11029  ;;  %v1662_v44 = vmul.f32 %v11338_v38, %v11332_v59 }
 0xa86   :  { %v11037_v61 = vunpack.i.h.bf16 %v11035_v40  ;;  %v11036_v8 = vunpack.i.l.bf16 %v11035_v40  ;;  %v11032_v45 = vunpack.i.h.bf16 %v11030_v43  ;;  %v11031_v15 = vunpack.i.l.bf16 %v11030_v43  ;;  %10393 = vmatprep.subr.bf16.mxu1 %v10392_v34  ;;  %v11340_v50 = vpop.eup %11339 }
 0xa87   :  { %10395 = vmatpush3.bf16.msra.mxu1 %v10392_v34  ;;  %9740 = vmatprep.mubr.msk.f32.mxu1 %vm516_vm7, %v1662_v44  ;;  %v1663_v59 = vmul.f32 %v11340_v50, %v12255_v58 }
 0xa88   :  { %v10420_v46 = vpack.c.bf16 %v11037_v61, %v11036_v8  ;;  %v10396_v47 = vpack.c.bf16 %v11032_v45, %v11031_v15  ;;  %v11342_v53 = vpop.eup %11341 }
 0xa89   :  { %v11040_v51 = vpop.permute.xlu1 %11039  ;;  %v2236_v19 = vpop.permute.xlu0 %2235  ;;  %v1664_v35 = vmul.f32 %v11342_v53, %v12260_v21 }
 0xa8a   :  { %v11042_v54 = vunpack.i.h.bf16 %v11040_v51  ;;  %v11041_v55 = vunpack.i.l.bf16 %v11040_v51  ;;  %10397 = vmatprep.subr.bf16.mxu1 %v10396_v47  ;;  %10422 = vmatprep.subr.msk.bf16.mxu0 %vm11974_vm6, %v10420_v46  ;;  %v12352_v51 = vld [vmem:[%s14097_s3 + $0x8] sm:$0xff] }
 0xa8b   :  { %9798 = vmatprep.mubr.msk.f32.mxu0 %vm410_vm5, %v2236_v19  ;;  %10399 = vmatpush3.bf16.msra.mxu1 %v10396_v47 }
 0xa8c   :  { %v10426_v57 = vpack.c.bf16 %v11042_v54, %v11041_v55  ;;  %10425 = vmatpush3.bf16.xpose.msk.msra.mxu0 %vm11974_vm6, %v10420_v46  ;;  %9746 = vmatprep.subr.mxu1 %v391_v52  ;;  %v11344_v32 = vpop.eup %11343 }
 0xa8d   :  { %v1665_v58 = vmul.f32 %v11344_v32, %v12264_v37  ;;  %v2238_v20 = vpop.permute.xlu1 %2237  ;;  %v2240_v3 = vpop.permute.xlu0 %2239  ;;  %v11619_v32 = vld [vmem:[%s14097_s3 + $0x18] sm:$0xff] }
 0xa8e   :  { %9741 = vmatmul.mubr.msk.f32.vlgmr.msra.gmra.mrb[24].mxu1 %vm516_vm7, %v1663_v59  ;;  %10428 = vmatprep.subr.msk.bf16.mxu0 %vm11974_vm6, %v10426_v57 }
 0xa8f   :  { %9743 = vmatprep.mubr.msk.f32.mxu1 %vm516_vm7, %v1664_v35  ;;  %9747 = vmatpush3.msra.mxu1 %v391_v52 }
 0xa90   :  { %10413 = vmatprep.subr.bf16.mxu1 %v11954_v5 }
 0xa91   :  { %v2242_v21 = vpop.permute.xlu1 %2241 }
 0xa92   :  { %9744 = vmatmul.mubr.msk.f32.gmra.mrb[26].mxu1 %vm516_vm7, %v1665_v58 }
 0xa94   :  { %10431 = vmatpush3.bf16.xpose.msk.msra.mxu0 %vm11974_vm6, %v10426_v57 }
 0xa9b   :  { %9799 = vmatmul.mubr.msk.f32.vlgmr.msra.gmra.mrb[24].mxu0 %vm410_vm5, %v2238_v20  ;;  %v11620_v20 = vld [vmem:[%s14097_s3 + $0x10] sm:$0xff] }
 0xa9c   :  { %9801 = vmatprep.mubr.msk.f32.mxu0 %vm410_vm5, %v2240_v3 }
 0xa9f   :  { %9802 = vmatmul.mubr.msk.f32.gmra.mrb[26].mxu0 %vm410_vm5, %v2242_v21 }
 0xaa0   :  { %2788 = vmatprep.mubr.f32.mxu0 %v11659_v25 }
 0xabe   :  { %v1995_v62 = vpop.xlane.xlu0 %1994 }
 0xabf   :  { %v2005_v10 = vsub.f32 %v12289_v1, %v1995_v62 }
 0xac1   :  { %v2009_v37 = vmul.f32 1.442695, %v2005_v10  ;;  %v392_v10 = vld [vmem:[%s14101_s7 + $0x20] sm:$0xff] }
 0xac2   :  { %v1998_v30 = vpop.xlane.xlu1 %1997  ;;  %v2001_v22 = vpop.xlane.xlu0 %2000 }
 0xac3   :  { %11345 = vpow2.f32 %v2009_v37  ;;  %v2006_v0 = vsub.f32 %v12292_v24, %v1998_v30  ;;  %v2007_v23 = vsub.f32 %v12297_v14, %v2001_v22 }
 0xac5   :  { %v2011_v6 = vmul.f32 1.442695, %v2006_v0  ;;  %v2013_v17 = vmul.f32 1.442695, %v2007_v23 }
 0xac6   :  { %v2004_v18 = vpop.xlane.xlu0 %2003 }
 0xac7   :  { %11347 = vpow2.f32 %v2011_v6  ;;  %v2008_v27 = vsub.f32 %v12300_v56, %v2004_v18 }
 0xac8   :  { %11349 = vpow2.f32 %v2013_v17 }
 0xac9   :  { %v2015_v26 = vmul.f32 1.442695, %v2008_v27 }
 0xacb   :  { %11351 = vpow2.f32 %v2015_v26 }
 0xacd   :  { %v11346_v31 = vpop.eup %11345 }
 0xace   :  { %v2017_v1 = vsel %vm516_vm7, %v11346_v31, 0.0 }
 0xacf   :  { %2018 = vadd.xlane.f32.xlu1 %v2017_v1 }
 0xad1   :  { %v11348_v36 = vpop.eup %11347 }
 0xad2   :  { %v11350_v42 = vpop.eup %11349  ;;  %v2020_v33 = vsel %vm516_vm7, %v11348_v36, 0.0 }
 0xad3   :  { %2021 = vadd.xlane.f32.xlu0 %v2020_v33  ;;  %v2023_v24 = vsel %vm516_vm7, %v11350_v42, 0.0 }
 0xad4   :  { %2024 = vadd.xlane.f32.xlu1 %v2023_v24 }
 0xad5   :  { %v11352_v14 = vpop.eup %11351 }
 0xad6   :  { %v2026_v28 = vsel %vm516_vm7, %v11352_v14, 0.0 }
 0xad7   :  { %2027 = vadd.xlane.f32.xlu0 %v2026_v28 }
 0xb5c   :  { %v2019_v56 = vpop.xlane.xlu1 %2018 }
 0xb5d   :  { %11353 = vrcp.f32 %v2019_v56 }
 0xb60   :  { %v2022_v60 = vpop.xlane.xlu0 %2021 }
 0xb61   :  { %v2025_v13 = vpop.xlane.xlu1 %2024  ;;  %11355 = vrcp.f32 %v2022_v60  ;;  %v9742_v38 = vpop.f32.mrb[24].mxu1 }
 0xb62   :  { %11357 = vrcp.f32 %v2025_v13  ;;  %v1756_v34 = vpop.f32.mrb[25].mxu1 }
 0xb63   :  { %9748 = vmatprep.mubr.msk.f32.mxu1 %vm410_vm5, %v1756_v34 }
 0xb64   :  { %v2028_v40 = vpop.xlane.xlu0 %2027  ;;  %9749 = vmatmul.mubr.msk.f32.vlgmr.msra.gmra.mrb[16].mxu1 %vm410_vm5, %v9742_v38 }
 0xb65   :  { %11359 = vrcp.f32 %v2028_v40  ;;  %10415 = vmatpush3.bf16.msra.mxu1 %v11954_v5  ;;  %v9745_v43 = vpop.f32.mrb[26].mxu1 }
 0xb66   :  { %10417 = vmatprep.subr.bf16.mxu1 %v11968_v12  ;;  %v1766_v44 = vpop.f32.mrb[27].mxu1 }
 0xb67   :  { %v11354_v61 = vpop.eup %11353  ;;  %9751 = vmatprep.mubr.msk.f32.mxu1 %vm410_vm5, %v1766_v44 }
 0xb68   :  { %9752 = vmatmul.mubr.msk.f32.gmra.mrb[18].mxu1 %vm410_vm5, %v9745_v43  ;;  %v2033_v8 = vmul.f32 %v11354_v61, %v11346_v31 }
 0xb69   :  { %10419 = vmatpush3.bf16.msra.mxu1 %v11968_v12  ;;  %v11618_v12 = vld [vmem:[%s14097_s3] sm:$0xff] }
 0xb6a   :  { %9776 = vmatprep.mubr.msk.f32.mxu1 %vm516_vm7, %v2033_v8  ;;  %9782 = vmatprep.subr.mxu1 %v392_v10 }
 0xb6b   :  { %v11356_v45 = vpop.eup %11355 }
 0xb6c   :  { %v11358_v15 = vpop.eup %11357  ;;  %v2034_v46 = vmul.f32 %v11356_v45, %v11348_v36 }
 0xb6d   :  { %v2035_v47 = vmul.f32 %v11358_v15, %v11350_v42 }
 0xb6e   :  { %v9800_v50 = vpop.f32.mrb[24].mxu0  ;;  %9777 = vmatmul.mubr.msk.f32.vlgmr.msra.gmra.mrb[28].mxu1 %vm516_vm7, %v2034_v46 }
 0xb6f   :  { %v11360_v5 = vpop.eup %11359  ;;  %v2339_v19 = vadd.f32 %v12352_v51, %v9800_v50  ;;  %v2333_v52 = vpop.f32.mrb[25].mxu0  ;;  %9779 = vmatprep.mubr.msk.f32.mxu1 %vm516_vm7, %v2035_v47  ;;  %9783 = vmatpush3.msra.mxu1 %v392_v10 }
 0xb70   :  { %v2334_v53 = vadd.f32 %v11618_v12, %v2333_v52  ;;  %v2036_v54 = vmul.f32 %v11360_v5, %v11352_v14  ;;  %v393_v5 = vld [vmem:[%s14101_s7 + $0x28] sm:$0xff] }
 0xb71   :  { %v2355_v55 = vsel %vm516_vm7, %v2339_v19, -inf }
 0xb72   :  { %v9803_v59 = vpop.f32.mrb[26].mxu0  ;;  %2356 = vmax.xlane.f32.xlu0 %v2355_v55  ;;  %v2352_v57 = vsel %vm516_vm7, %v2334_v53, -inf  ;;  %9780 = vmatmul.mubr.msk.f32.gmra.mrb[30].mxu1 %vm516_vm7, %v2036_v54 }
 0xb73   :  { %v2349_v35 = vadd.f32 %v11619_v32, %v9803_v59  ;;  %v2343_v58 = vpop.f32.mrb[27].mxu0  ;;  %2353 = vmax.xlane.f32.xlu1 %v2352_v57 }
 0xb74   :  { %v2344_v3 = vadd.f32 %v11620_v20, %v2343_v58 }
 0xb75   :  { %v2361_v21 = vsel %vm516_vm7, %v2349_v35, -inf }
 0xb76   :  { %2362 = vmax.xlane.f32.xlu0 %v2361_v21  ;;  %v2358_v62 = vsel %vm516_vm7, %v2344_v3, -inf }
 0xb77   :  { %2359 = vmax.xlane.f32.xlu1 %v2358_v62 }
 0xbff   :  { %v2357_v37 = vpop.xlane.xlu0 %2356 }
 0xc00   :  { %v2365_v30 = vsub.f32 %v2339_v19, %v2357_v37  ;;  %v2354_v22 = vpop.xlane.xlu1 %2353 }
 0xc01   :  { %v2364_v0 = vsub.f32 %v2334_v53, %v2354_v22 }
 0xc02   :  { %v2370_v23 = vmul.f32 1.442695, %v2365_v30 }
 0xc03   :  { %v2368_v6 = vmul.f32 1.442695, %v2364_v0  ;;  %v2363_v17 = vpop.xlane.xlu0 %2362 }
 0xc04   :  { %11361 = vpow2.f32 %v2370_v23  ;;  %v2367_v18 = vsub.f32 %v2349_v35, %v2363_v17  ;;  %v2360_v27 = vpop.xlane.xlu1 %2359 }
 0xc05   :  { %11363 = vpow2.f32 %v2368_v6  ;;  %v2366_v26 = vsub.f32 %v2344_v3, %v2360_v27 }
 0xc06   :  { %v2374_v31 = vmul.f32 1.442695, %v2367_v18 }
 0xc07   :  { %v2372_v1 = vmul.f32 1.442695, %v2366_v26 }
 0xc08   :  { %11365 = vpow2.f32 %v2374_v31 }
 0xc09   :  { %11367 = vpow2.f32 %v2372_v1 }
 0xc0e   :  { %v11362_v36 = vpop.eup %11361 }
 0xc0f   :  { %v11364_v42 = vpop.eup %11363  ;;  %v2379_v33 = vsel %vm516_vm7, %v11362_v36, 0.0 }
 0xc10   :  { %2380 = vadd.xlane.f32.xlu0 %v2379_v33  ;;  %v2376_v24 = vsel %vm516_vm7, %v11364_v42, 0.0 }
 0xc11   :  { %2377 = vadd.xlane.f32.xlu1 %v2376_v24 }
 0xc12   :  { %v11366_v14 = vpop.eup %11365 }
 0xc13   :  { %v11368_v28 = vpop.eup %11367  ;;  %v2385_v56 = vsel %vm516_vm7, %v11366_v14, 0.0 }
 0xc14   :  { %2386 = vadd.xlane.f32.xlu0 %v2385_v56  ;;  %v2382_v60 = vsel %vm516_vm7, %v11368_v28, 0.0 }
 0xc15   :  { %2383 = vadd.xlane.f32.xlu1 %v2382_v60 }
 0xc26   :  { %11044 = vrot.lane.b32.xlu1 %v11043_v4, %s14140_s28 }
 0xc2a   :  { %11049 = vrot.lane.b32.xlu0 %v11048_v11, %s14140_s28 }
 0xc41   :  { %v9778_v13 = vpop.f32.mrb[28].mxu1 }
 0xc42   :  { %v2115_v38 = vpop.f32.mrb[29].mxu1 }
 0xc43   :  { %9784 = vmatprep.mubr.msk.f32.mxu1 %vm410_vm5, %v2115_v38  ;;  %v2689_v38 = vld [vmem:[%s14104_s10 + $0x8] sm:$0xff] }
 0xc44   :  { %9785 = vmatmul.mubr.msk.f32.vlgmr.msra.gmra.mrb[16].mxu1 %vm410_vm5, %v9778_v13 }
 0xc45   :  { %v9781_v34 = vpop.f32.mrb[30].mxu1 }
 0xc46   :  { %v2125_v40 = vpop.f32.mrb[31].mxu1 }
 0xc47   :  { %9787 = vmatprep.mubr.msk.f32.mxu1 %vm410_vm5, %v2125_v40 }
 0xc48   :  { %9788 = vmatmul.mubr.msk.f32.gmra.mrb[18].mxu1 %vm410_vm5, %v9781_v34  ;;  %v2691_v34 = vld [vmem:[%s14104_s10 + $0x18] sm:$0xff] }
 0xc49   :  { %v10440_v40 = vpack.c.bf16 %v2691_v34, %v2689_v38 }
 0xc4b   :  { %10441 = vmatprep.subr.bf16.mxu0 %v10440_v40  ;;  %v2828_v40 = vld [vmem:[%s14106_s12 + $0x38] sm:$0xff] }
 0xc9d   :  { %v2381_v43 = vpop.xlane.xlu0 %2380 }
 0xc9e   :  { %v2378_v63 = vpop.xlane.xlu1 %2377 }
 0xc9f   :  { %11369 = vrcp.f32 %v2378_v63  ;;  %v2690_v63 = vld [vmem:[%s14104_s10 + $0x10] sm:$0xff] }
 0xca0   :  { %11371 = vrcp.f32 %v2381_v43  ;;  %v2688_v43 = vld [vmem:[%s14104_s10] sm:$0xff] }
 0xca1   :  { %v2387_v2 = vpop.xlane.xlu0 %2386 }
 0xca2   :  { %v2384_v4 = vpop.xlane.xlu1 %2383 }
 0xca3   :  { %11373 = vrcp.f32 %v2384_v4  ;;  %v2693_v4 = vld [vmem:[%s14104_s10 + $0x28] sm:$0xff] }
 0xca4   :  { %11375 = vrcp.f32 %v2387_v2  ;;  %v10442_v2 = vpack.c.bf16 %v2690_v63, %v2688_v43 }
 0xca5   :  { %v11050_v7 = vpop.permute.xlu0 %11049 }
 0xca6   :  { %v11045_v9 = vpop.permute.xlu1 %11044  ;;  %v11052_v11 = vunpack.i.h.bf16 %v11050_v7  ;;  %v11051_v44 = vunpack.i.l.bf16 %v11050_v7  ;;  %10443 = vmatpush1.bf16.msra.mxu0 %v10442_v2  ;;  %v2695_v7 = vld [vmem:[%s14104_s10 + $0x38] sm:$0xff]  ;;  %v2829_v2 = vld [vmem:[%s14106_s12 + $0x40] sm:$0xff] }
 0xca7   :  { %v11047_v61 = vunpack.i.h.bf16 %v11045_v9  ;;  %v11046_v8 = vunpack.i.l.bf16 %v11045_v9  ;;  %v10444_v9 = vpack.c.bf16 %v2695_v7, %v2693_v4  ;;  %v2830_v4 = vld [vmem:[%s14106_s12 + $0x48] sm:$0xff] }
 0xca8   :  { %v10436_v47 = vpack.c.bf16 %v11052_v11, %v11051_v44  ;;  %v2692_v11 = vld [vmem:[%s14104_s10 + $0x20] sm:$0xff]  ;;  %v2694_v44 = vld [vmem:[%s14104_s10 + $0x30] sm:$0xff]  ;;  %v10465_v7 = vpack.c.bf16 %v2830_v4, %v2829_v2 }
 0xca9   :  { %v11370_v45 = vpop.eup %11369  ;;  %v10432_v15 = vpack.c.bf16 %v11047_v61, %v11046_v8  ;;  %v10446_v61 = vpack.c.bf16 %v2694_v44, %v2692_v11  ;;  %10445 = vmatprep.subr.bf16.mxu0 %v10444_v9  ;;  %v2697_v8 = vld [vmem:[%s14104_s10 + $0x48] sm:$0xff]  ;;  %v2831_v9 = vld [vmem:[%s14106_s12 + $0x50] sm:$0xff]  ;;  %v2832_v11 = vld [vmem:[%s14106_s12 + $0x58] sm:$0xff] }
 0xcaa   :  { %v2392_v46 = vmul.f32 %v11370_v45, %v11364_v42  ;;  %v11372_v50 = vpop.eup %11371  ;;  %v2699_v45 = vld [vmem:[%s14104_s10 + $0x58] sm:$0xff]  ;;  %v10468_v44 = vpack.c.bf16 %v2832_v11, %v2831_v9 }
 0xcab   :  { %10433 = vmatprep.subr.bf16.mxu1 %v10432_v15  ;;  %v2393_v52 = vmul.f32 %v11372_v50, %v11362_v36  ;;  %10447 = vmatpush1.bf16.msra.mxu0 %v10446_v61  ;;  %v2833_v61 = vld [vmem:[%s14106_s12 + $0x60] sm:$0xff] }
 0xcac   :  { %10435 = vmatpush3.bf16.msra.mxu1 %v10432_v15  ;;  %9812 = vmatprep.mubr.msk.f32.mxu1 %vm516_vm7, %v2392_v46  ;;  %v10448_v15 = vpack.c.bf16 %v2699_v45, %v2697_v8  ;;  %v2696_v46 = vld [vmem:[%s14104_s10 + $0x40] sm:$0xff]  ;;  %v2834_v8 = vld [vmem:[%s14106_s12 + $0x68] sm:$0xff] }
 0xcad   :  { %10437 = vmatprep.subr.bf16.mxu1 %v10436_v47  ;;  %v11374_v19 = vpop.eup %11373  ;;  %v10471_v45 = vpack.c.bf16 %v2834_v8, %v2833_v61 }
 0xcae   :  { %v11376_v12 = vpop.eup %11375  ;;  %v2394_v53 = vmul.f32 %v11374_v19, %v11368_v28  ;;  %10449 = vmatprep.subr.bf16.mxu0 %v10448_v15  ;;  %v2835_v15 = vld [vmem:[%s14106_s12 + $0x70] sm:$0xff] }
 0xcaf   :  { %v2395_v54 = vmul.f32 %v11376_v12, %v11366_v14 }
 0xcb0   :  { %10439 = vmatpush3.bf16.msra.mxu1 %v10436_v47  ;;  %v2698_v47 = vld [vmem:[%s14104_s10 + $0x50] sm:$0xff] }
 0xcb1   :  { %9818 = vmatprep.subr.mxu1 %v393_v5  ;;  %v10450_v50 = vpack.c.bf16 %v2698_v47, %v2696_v46  ;;  %v2836_v46 = vld [vmem:[%s14106_s12 + $0x78] sm:$0xff] }
 0xcb2   :  { %v10474_v47 = vpack.c.bf16 %v2836_v46, %v2835_v15 }
 0xcb3   :  { %9813 = vmatmul.mubr.msk.f32.vlgmr.msra.gmra.mrb[32].mxu1 %vm516_vm7, %v2393_v52  ;;  %10451 = vmatpush1.bf16.msra.mxu0 %v10450_v50  ;;  %v2837_v50 = vld [vmem:[%s14106_s12 + $0x80] sm:$0xff] }
 0xcb4   :  { %9815 = vmatprep.mubr.msk.f32.mxu1 %vm516_vm7, %v2394_v53  ;;  %9819 = vmatpush3.msra.mxu1 %v393_v5  ;;  %v11675_v5 = vmov 0.0|0.0  }
 0xcb5   :  { %10452 = vmatprep.subr.bf16.mxu0 %v11675_v5 }
 0xcb7   :  { %9816 = vmatmul.mubr.msk.f32.gmra.mrb[34].mxu1 %vm516_vm7, %v2395_v54 }
 0xd86   :  { %v9814_v55 = vpop.f32.mrb[32].mxu1 }
 0xd87   :  { %v2490_v59 = vpop.f32.mrb[33].mxu1 }
 0xd88   :  { %9820 = vmatprep.mubr.msk.f32.mxu1 %vm410_vm5, %v2490_v59 }
 0xd89   :  { %9821 = vmatmul.mubr.msk.f32.vlgmr.msra.gmra.mrb[16].mxu1 %vm410_vm5, %v9814_v55 }
 0xd8a   :  { %v9817_v57 = vpop.f32.mrb[34].mxu1 }
 0xd8b   :  { %v2500_v32 = vpop.f32.mrb[35].mxu1 }
 0xd8c   :  { %9823 = vmatprep.mubr.msk.f32.mxu1 %vm410_vm5, %v2500_v32 }
 0xd8d   :  { %9824 = vmatmul.mubr.msk.f32.gmra.mrb[18].mxu1 %vm410_vm5, %v9817_v57 }
 0xd8e   :  { %3123 = vmatprep.mubr.f32.mxu1 %v11659_v25 }
 0xe5c   :  { %v9822_v35 = vpop.f32.mrb[16].mxu1 }
 0xe5d   :  { %v12402_v58 = vadd.f32 %v9822_v35, %v11840_v39  ;;  %v2587_v20 = vpop.f32.mrb[17].mxu1 }
 0xe5e   :  { %v12405_v3 = vadd.f32 %v2587_v20, %v11842_v41 }
 0xe5f   :  { %v2619_v21 = vsel %vm201_vm4, %v12402_v58, 0.0 }
 0xe60   :  { %2620 = vadd.xlane.f32.xlu0 %v2619_v21  ;;  %v9825_v62 = vpop.f32.mrb[18].mxu1  ;;  %v2616_v10 = vsel %vm201_vm4, %v12405_v3, 0.0 }
 0xe61   :  { %v12412_v37 = vadd.f32 %v9825_v62, %v11856_v49  ;;  %2617 = vadd.xlane.f32.xlu1 %v2616_v10  ;;  %v2597_v30 = vpop.f32.mrb[19].mxu1 }
 0xe62   :  { %v12415_v39 = vadd.f32 %v2597_v30, %v11854_v48  ;;  %v8800_v30 = vld [vmem:[%s14102_s8] ss:$0 sm:$0xff] }
 0xe63   :  { %v2625_v41 = vsel %vm201_vm4, %v12412_v37, 0.0 }
 0xe64   :  { %2626 = vadd.xlane.f32.xlu0 %v2625_v41  ;;  %v2622_v22 = vsel %vm201_vm4, %v12415_v39, 0.0 }
 0xe65   :  { %2623 = vadd.xlane.f32.xlu1 %v2622_v22 }
 0xeed   :  { %v2621_v0 = vpop.xlane.xlu0 %2620 }
 0xeee   :  { %v2629_v23 = vmul.f32 0.020833334, %v2621_v0  ;;  %v2618_v6 = vpop.xlane.xlu1 %2617  ;;  %v2821_v0 = vld [vmem:[%s14106_s12] sm:$0xff] }
 0xeef   :  { %v2628_v17 = vmul.f32 0.020833334, %v2618_v6  ;;  %v8801_v6 = vld [vmem:[%s14103_s9] ss:$0 sm:$0xff] }
 0xef0   :  { %v12422_v49 = vsub.f32 %v12402_v58, %v2629_v23  ;;  %v2822_v23 = vld [vmem:[%s14106_s12 + $0x8] sm:$0xff] }
 0xef1   :  { %v12425_v18 = vsub.f32 %v12405_v3, %v2628_v17  ;;  %v2627_v48 = vpop.xlane.xlu0 %2626 }
 0xef2   :  { %v2631_v27 = vmul.f32 0.020833334, %v2627_v48  ;;  %v2624_v26 = vpop.xlane.xlu1 %2623  ;;  %v2637_v31 = vmul.f32 %v12422_v49, %v12422_v49 }
 0xef3   :  { %v2630_v1 = vmul.f32 0.020833334, %v2624_v26  ;;  %v2636_v36 = vmul.f32 %v12425_v18, %v12425_v18 }
 0xef4   :  { %v12432_v42 = vsub.f32 %v12412_v37, %v2631_v27  ;;  %v2643_v33 = vsel %vm201_vm4, %v2637_v31, 0.0  ;;  %v10453_v27 = vpack.c.bf16 %v2822_v23, %v2821_v0 }
 0xef5   :  { %v12436_v24 = vsub.f32 %v12415_v39, %v2630_v1  ;;  %2644 = vadd.xlane.f32.xlu0 %v2643_v33  ;;  %v2640_v14 = vsel %vm201_vm4, %v2636_v36, 0.0  ;;  %v2824_v1 = vld [vmem:[%s14106_s12 + $0x18] sm:$0xff] }
 0xef6   :  { %2641 = vadd.xlane.f32.xlu1 %v2640_v14  ;;  %v2639_v28 = vmul.f32 %v12432_v42, %v12432_v42 }
 0xef7   :  { %v2638_v56 = vmul.f32 %v12436_v24, %v12436_v24 }
 0xef8   :  { %v2649_v60 = vsel %vm201_vm4, %v2639_v28, 0.0 }
 0xef9   :  { %2650 = vadd.xlane.f32.xlu0 %v2649_v60  ;;  %v2646_v13 = vsel %vm201_vm4, %v2638_v56, 0.0  ;;  %v2826_v60 = vld [vmem:[%s14106_s12 + $0x28] sm:$0xff] }
 0xefa   :  { %2647 = vadd.xlane.f32.xlu1 %v2646_v13 }
 0xf82   :  { %v2645_v19 = vpop.xlane.xlu0 %2644 }
 0xf83   :  { %v2653_v52 = vmul.f32 0.020833334, %v2645_v19  ;;  %v2642_v12 = vpop.xlane.xlu1 %2641  ;;  %v2838_v19 = vld [vmem:[%s14106_s12 + $0x88] sm:$0xff] }
 0xf84   :  { %v2652_v53 = vmul.f32 0.020833334, %v2642_v12  ;;  %v2839_v12 = vld [vmem:[%s14106_s12 + $0x90] sm:$0xff] }
 0xf85   :  { %v2657_v54 = vadd.f32 1e-05, %v2653_v52  ;;  %v10477_v52 = vpack.c.bf16 %v2838_v19, %v2837_v50 }
 0xf86   :  { %v2656_v55 = vadd.f32 1e-05, %v2652_v53  ;;  %v2651_v59 = vpop.xlane.xlu0 %2650  ;;  %v2840_v53 = vld [vmem:[%s14106_s12 + $0x98] sm:$0xff] }
 0xf87   :  { %11377 = vrsqrt.f32 %v2657_v54  ;;  %v2655_v57 = vmul.f32 0.020833334, %v2651_v59  ;;  %v2648_v32 = vpop.xlane.xlu1 %2647  ;;  %v10480_v54 = vpack.c.bf16 %v2840_v53, %v2839_v12  ;;  %v2842_v59 = vld [vmem:[%s14106_s12 + $0xa8] sm:$0xff] }
 0xf88   :  { %11379 = vrsqrt.f32 %v2656_v55  ;;  %v2654_v35 = vmul.f32 0.020833334, %v2648_v32  ;;  %v2841_v55 = vld [vmem:[%s14106_s12 + $0xa0] sm:$0xff]  ;;  %v2843_v32 = vld [vmem:[%s14106_s12 + $0xb0] sm:$0xff] }
 0xf89   :  { %v2659_v20 = vadd.f32 1e-05, %v2655_v57  ;;  %v10483_v57 = vpack.c.bf16 %v2842_v59, %v2841_v55 }
 0xf8a   :  { %v2658_v21 = vadd.f32 1e-05, %v2654_v35  ;;  %v2844_v35 = vld [vmem:[%s14106_s12 + $0xb8] sm:$0xff] }
 0xf8c   :  { %11381 = vrsqrt.f32 %v2658_v21  ;;  %v2703_v21 = vshrl.u32 %v64_v29, 7 }
 0xf8d   :  { %11383 = vrsqrt.f32 %v2659_v20  ;;  %v10486_v20 = vpack.c.bf16 %v2844_v35, %v2843_v32 }
 0xf91   :  { %v11378_v62 = vpop.eup %11377 }
 0xf92   :  { %v11380_v10 = vpop.eup %11379  ;;  %v2665_v22 = vmul.f32 %v11378_v62, %v12422_v49  ;;  %v2823_v49 = vld [vmem:[%s14106_s12 + $0x10] sm:$0xff]  ;;  %v12583_v62 = vsub.s32 0, %v2703_v21 }
 0xf93   :  { %v2664_v41 = vmul.f32 %v11380_v10, %v12425_v18  ;;  %v10456_v33 = vpack.c.bf16 %v2824_v1, %v2823_v49  ;;  %v2700_v10 = vld [vmem:[%s14105_s11] sm:$0x3] }
 0xf94   :  { %v2675_v31 = vmul.f32 %v8800_v30, %v2665_v22 }
 0xf95   :  { %v2674_v17 = vmul.f32 %v8800_v30, %v2664_v41  ;;  %v2705_v41 = vrot.slane %v2700_v10, %v12583_v62 }
 0xf96   :  { %v11382_v48 = vpop.eup %11381  ;;  %v2685_v14 = vadd.f32 %v8801_v6, %v2675_v31 }
 0xf97   :  { %v2684_v26 = vadd.f32 %v8801_v6, %v2674_v17  ;;  %v2666_v18 = vmul.f32 %v11382_v48, %v12436_v24  ;;  %v11384_v36 = vpop.eup %11383  ;;  %v2825_v24 = vld [vmem:[%s14106_s12 + $0x20] sm:$0xff] }
 0xf98   :  { %v2667_v56 = vmul.f32 %v11384_v36, %v12432_v42  ;;  %v10459_v13 = vpack.c.bf16 %v2826_v60, %v2825_v24  ;;  %v2827_v42 = vld [vmem:[%s14106_s12 + $0x30] sm:$0xff] }
 0xf99   :  { %8802 = vmatmul.mubr.msk.f32.vlgmr.msra.gmra.mrb[28].mxu0 %vm201_vm4, %v2684_v26  ;;  %v2676_v28 = vmul.f32 %v8800_v30, %v2666_v18  ;;  %v10462_v43 = vpack.c.bf16 %v2828_v40, %v2827_v42 }
 0xf9a   :  { %2794 = vmatprep.mubr.f32.mxu0 %v11659_v25  ;;  %10454 = vmatpush1.bf16.msra.mxu0 %v10453_v27  ;;  %v2677_v34 = vmul.f32 %v8800_v30, %v2667_v56  ;;  %v12588_v30 = vsub.s32 1, %v2703_v21 }
 0xf9b   :  { %10455 = vmatprep.subr.bf16.mxu0 %v11675_v5  ;;  %v2686_v38 = vadd.f32 %v8801_v6, %v2676_v28 }
 0xf9c   :  { %v2687_v63 = vadd.f32 %v8801_v6, %v2677_v34  ;;  %v2709_v22 = vrot.slane %v2700_v10, %v12588_v30 }
 0xf9d   :  { %8803 = vmatmul.mubr.msk.f32.gmra.mrb[30].mxu0 %vm201_vm4, %v2685_v14 }
 0xf9e   :  { %2800 = vmatprep.mubr.f32.mxu0 %v11659_v25  ;;  %10457 = vmatpush1.bf16.msra.mxu0 %v10456_v33 }
 0xf9f   :  { %10458 = vmatprep.subr.bf16.mxu0 %v11675_v5 }
 0xfa1   :  { %8804 = vmatmul.mubr.msk.f32.gmra.mrb[32].mxu0 %vm201_vm4, %v2686_v38 }
 0xfa2   :  { %2806 = vmatprep.mubr.f32.mxu0 %v11659_v25  ;;  %10460 = vmatpush1.bf16.msra.mxu0 %v10459_v13 }
 0xfa3   :  { %10461 = vmatprep.subr.bf16.mxu0 %v11675_v5 }
 0xfa5   :  { %8805 = vmatmul.mubr.msk.f32.gmra.mrb[34].mxu0 %vm201_vm4, %v2687_v63  ;;  %v8810_v63 = vld [vmem:[%s14107_s13] ss:$0 sm:$0xff] }
 0xfa6   :  { %10463 = vmatpush1.bf16.msra.mxu0 %v10462_v43 }
 0xfa7   :  { %10464 = vmatprep.subr.bf16.mxu0 %v11675_v5 }
 0xfaa   :  { %10466 = vmatpush1.bf16.msra.mxu0 %v10465_v7 }
 0xfab   :  { %10467 = vmatprep.subr.bf16.mxu0 %v11675_v5 }
 0xfae   :  { %10469 = vmatpush1.bf16.msra.mxu0 %v10468_v44 }
 0xfaf   :  { %10470 = vmatprep.subr.bf16.mxu0 %v11675_v5 }
 0xfb2   :  { %10472 = vmatpush1.bf16.msra.mxu0 %v10471_v45 }
 0xfb3   :  { %10473 = vmatprep.subr.bf16.mxu0 %v11675_v5 }
 0xfb6   :  { %10475 = vmatpush1.bf16.msra.mxu0 %v10474_v47 }
 0xfb7   :  { %10476 = vmatprep.subr.bf16.mxu0 %v11675_v5 }
 0xfba   :  { %10478 = vmatpush1.bf16.msra.mxu0 %v10477_v52 }
 0xfbb   :  { %10479 = vmatprep.subr.bf16.mxu0 %v11675_v5 }
 0xfbe   :  { %10481 = vmatpush1.bf16.msra.mxu0 %v10480_v54 }
 0xfbf   :  { %10482 = vmatprep.subr.bf16.mxu0 %v11675_v5 }
 0xfc2   :  { %10484 = vmatpush1.bf16.msra.mxu0 %v10483_v57 }
 0xfc3   :  { %10485 = vmatprep.subr.bf16.mxu0 %v11675_v5 }
 0xfc6   :  { %10487 = vmatpush1.bf16.msra.mxu0 %v10486_v20 }
0x106c   :  { %v2790_v0 = vpop.f32.mrb[28].mxu0 }
0x106d   :  { %v2791_v23 = vadd.f32 %v2790_v0, %v2705_v41  ;;  %v2792_v6 = vpop.f32.mrb[29].mxu0 }
0x106e   :  { %v2793_v17 = vadd.f32 %v2792_v6, %v2709_v22 }
0x106f   :  { %v2813_v29 = vmax.f32 %v2791_v23, 0.0 }
0x1070   :  { %v2814_v48 = vmax.f32 %v2793_v17, 0.0  ;;  %v2796_v27 = vpop.f32.mrb[30].mxu0 }
0x1071   :  { %v2797_v26 = vadd.f32 %v2796_v27, %v2705_v41  ;;  %v2798_v31 = vpop.f32.mrb[31].mxu0 }
0x1072   :  { %v2799_v18 = vadd.f32 %v2798_v31, %v2709_v22  ;;  %8806 = vmatprep.mubr.msk.f32.mxu0 %vm2845_vm8, %v2814_v48  ;;  %v8818_v31 = vld [vmem:[%s14100_s6 + $0x78] sm:$0xff] }
0x1073   :  { %2923 = vmatmul.mubr.f32.vlgmr.msra.gmra.mrb[36].mxu0 %v2813_v29  ;;  %v2815_v36 = vmax.f32 %v2797_v26, 0.0  ;;  %v8816_v26 = vld [vmem:[%s14100_s6 + $0x68] sm:$0xff] }
0x1074   :  { %v2816_v49 = vmax.f32 %v2799_v18, 0.0  ;;  %v2802_v1 = vpop.f32.mrb[32].mxu0  ;;  %v10488_v18 = vpack.c.bf16 %v8818_v31, %v8816_v26 }
0x1075   :  { %v2803_v33 = vadd.f32 %v2802_v1, %v2705_v41  ;;  %v2804_v14 = vpop.f32.mrb[33].mxu0  ;;  %v8817_v1 = vld [vmem:[%s14100_s6 + $0x70] sm:$0xff] }
0x1076   :  { %v2805_v28 = vadd.f32 %v2804_v14, %v2709_v22  ;;  %8807 = vmatprep.mubr.msk.f32.mxu0 %vm2845_vm8, %v2816_v49  ;;  %v8815_v49 = vld [vmem:[%s14100_s6 + $0x60] sm:$0xff]  ;;  %10489 = vmatprep.subr.bf16.mxu1 %v10488_v18  ;;  %v8822_v14 = vld [vmem:[%s14100_s6 + $0x98] sm:$0xff] }
0x1077   :  { %2928 = vmatmul.mubr.f32.gmra.mrb[38].mxu0 %v2815_v36  ;;  %v2817_v60 = vmax.f32 %v2803_v33, 0.0  ;;  %v10490_v36 = vpack.c.bf16 %v8817_v1, %v8815_v49  ;;  %v8820_v33 = vld [vmem:[%s14100_s6 + $0x88] sm:$0xff] }
0x1078   :  { %v2818_v56 = vmax.f32 %v2805_v28, 0.0  ;;  %v2808_v24 = vpop.f32.mrb[34].mxu0  ;;  %v10492_v28 = vpack.c.bf16 %v8822_v14, %v8820_v33 }
0x1079   :  { %v2809_v13 = vadd.f32 %v2808_v24, %v2705_v41  ;;  %v2810_v38 = vpop.f32.mrb[35].mxu0  ;;  %10491 = vmatpush1.bf16.msra.mxu1 %v10490_v36  ;;  %v8821_v24 = vld [vmem:[%s14100_s6 + $0x90] sm:$0xff] }
0x107a   :  { %v2811_v34 = vadd.f32 %v2810_v38, %v2709_v22  ;;  %8808 = vmatprep.mubr.msk.f32.mxu0 %vm2845_vm8, %v2818_v56  ;;  %v8819_v56 = vld [vmem:[%s14100_s6 + $0x80] sm:$0xff]  ;;  %10493 = vmatprep.subr.bf16.mxu1 %v10492_v28  ;;  %v8826_v38 = vld [vmem:[%s14100_s6 + $0xb8] sm:$0xff] }
0x107b   :  { %2933 = vmatmul.mubr.f32.gmra.mrb[40].mxu0 %v2817_v60  ;;  %v2819_v40 = vmax.f32 %v2809_v13, 0.0  ;;  %v10494_v60 = vpack.c.bf16 %v8821_v24, %v8819_v56  ;;  %v8824_v13 = vld [vmem:[%s14100_s6 + $0xa8] sm:$0xff] }
0x107c   :  { %v2820_v42 = vmax.f32 %v2811_v34, 0.0  ;;  %v10496_v34 = vpack.c.bf16 %v8826_v38, %v8824_v13 }
0x107d   :  { %10495 = vmatpush1.bf16.msra.mxu1 %v10494_v60 }
0x107e   :  { %8809 = vmatprep.mubr.msk.f32.mxu0 %vm2845_vm8, %v2820_v42  ;;  %v8823_v42 = vld [vmem:[%s14100_s6 + $0xa0] sm:$0xff]  ;;  %10497 = vmatprep.subr.bf16.mxu1 %v10496_v34 }
0x107f   :  { %2938 = vmatmul.mubr.f32.gmra.mrb[42].mxu0 %v2819_v40  ;;  %v8825_v40 = vld [vmem:[%s14100_s6 + $0xb0] sm:$0xff] }
0x1146   :  { %v2924_v43 = vpop.f32.mrb[36].mxu0 }
0x1147   :  { %v2943_v2 = vadd.f32 %v2924_v43, %v12405_v3  ;;  %v2926_v4 = vpop.f32.mrb[37].mxu0  ;;  %v10498_v43 = vpack.c.bf16 %v8825_v40, %v8823_v42 }
0x1149   :  { %v12600_v7 = vadd.f32 %v8810_v63, %v2943_v2  ;;  %10499 = vmatpush1.bf16.msra.mxu1 %v10498_v43 }
0x114a   :  { %v2929_v9 = vpop.f32.mrb[38].mxu0 }
0x114b   :  { %v2944_v11 = vadd.f32 %v2929_v9, %v12402_v58  ;;  %v2931_v44 = vpop.f32.mrb[39].mxu0  ;;  %v2962_v61 = vsel %vm201_vm4, %v12600_v7, 0.0 }
0x114c   :  { %2963 = vadd.xlane.f32.xlu1 %v2962_v61 }
0x114d   :  { %v12605_v8 = vadd.f32 %v8810_v63, %v2944_v11 }
0x114e   :  { %v2934_v45 = vpop.f32.mrb[40].mxu0 }
0x114f   :  { %v2945_v15 = vadd.f32 %v2934_v45, %v12415_v39  ;;  %v2936_v46 = vpop.f32.mrb[41].mxu0  ;;  %v2965_v3 = vsel %vm201_vm4, %v12605_v8, 0.0 }
0x1150   :  { %2966 = vadd.xlane.f32.xlu0 %v2965_v3 }
0x1151   :  { %v12610_v47 = vadd.f32 %v8810_v63, %v2945_v15 }
0x1152   :  { %v2939_v50 = vpop.f32.mrb[42].mxu0 }
0x1153   :  { %v2946_v58 = vadd.f32 %v2939_v50, %v12412_v37  ;;  %v2941_v19 = vpop.f32.mrb[43].mxu0  ;;  %v2968_v52 = vsel %vm201_vm4, %v12610_v47, 0.0 }
0x1154   :  { %2969 = vadd.xlane.f32.xlu1 %v2968_v52 }
0x1155   :  { %v12615_v12 = vadd.f32 %v8810_v63, %v2946_v58  ;;  %v8813_v58 = vld [vmem:[%s14098_s4 + $0x1] ss:$0 sm:$0xff] }
0x1157   :  { %v2971_v39 = vsel %vm201_vm4, %v12615_v12, 0.0 }
0x1158   :  { %2972 = vadd.xlane.f32.xlu0 %v2971_v39  ;;  %v8814_v39 = vld [vmem:[%s14099_s5 + $0x1] ss:$0 sm:$0xff] }
0x11d9   :  { %v2964_v53 = vpop.xlane.xlu1 %2963 }
0x11da   :  { %v2974_v54 = vmul.f32 0.020833334, %v2964_v53 }
0x11dc   :  { %v12620_v55 = vsub.f32 %v12600_v7, %v2974_v54 }
0x11dd   :  { %v2967_v59 = vpop.xlane.xlu0 %2966 }
0x11de   :  { %v2975_v57 = vmul.f32 0.020833334, %v2967_v59  ;;  %v2982_v37 = vmul.f32 %v12620_v55, %v12620_v55 }
0x11e0   :  { %v12625_v32 = vsub.f32 %v12605_v8, %v2975_v57  ;;  %v2986_v35 = vsel %vm201_vm4, %v2982_v37, 0.0 }
0x11e1   :  { %2987 = vadd.xlane.f32.xlu1 %v2986_v35  ;;  %v2970_v20 = vpop.xlane.xlu1 %2969 }
0x11e2   :  { %v2976_v21 = vmul.f32 0.020833334, %v2970_v20  ;;  %v2983_v10 = vmul.f32 %v12625_v32, %v12625_v32 }
0x11e4   :  { %v12631_v41 = vsub.f32 %v12610_v47, %v2976_v21  ;;  %v2989_v22 = vsel %vm201_vm4, %v2983_v10, 0.0 }
0x11e5   :  { %2990 = vadd.xlane.f32.xlu0 %v2989_v22  ;;  %v2973_v0 = vpop.xlane.xlu0 %2972 }
0x11e6   :  { %v2977_v23 = vmul.f32 0.020833334, %v2973_v0  ;;  %v2984_v6 = vmul.f32 %v12631_v41, %v12631_v41 }
0x11e8   :  { %v12637_v17 = vsub.f32 %v12615_v12, %v2977_v23  ;;  %v2992_v48 = vsel %vm201_vm4, %v2984_v6, 0.0 }
0x11e9   :  { %2993 = vadd.xlane.f32.xlu1 %v2992_v48 }
0x11ea   :  { %v2985_v27 = vmul.f32 %v12637_v17, %v12637_v17 }
0x11ec   :  { %v2995_v29 = vsel %vm201_vm4, %v2985_v27, 0.0 }
0x11ed   :  { %2996 = vadd.xlane.f32.xlu0 %v2995_v29 }
0x126e   :  { %v2988_v63 = vpop.xlane.xlu1 %2987 }
0x126f   :  { %v2998_v2 = vmul.f32 0.020833334, %v2988_v63 }
0x1271   :  { %v3002_v4 = vadd.f32 1e-05, %v2998_v2 }
0x1272   :  { %v2991_v9 = vpop.xlane.xlu0 %2990 }
0x1273   :  { %11385 = vrsqrt.f32 %v3002_v4  ;;  %v2999_v11 = vmul.f32 0.020833334, %v2991_v9 }
0x1275   :  { %v3003_v44 = vadd.f32 1e-05, %v2999_v11 }
0x1276   :  { %v2994_v61 = vpop.xlane.xlu1 %2993 }
0x1277   :  { %11387 = vrsqrt.f32 %v3003_v44  ;;  %v3000_v45 = vmul.f32 0.020833334, %v2994_v61 }
0x1279   :  { %v3004_v15 = vadd.f32 1e-05, %v3000_v45 }
0x127a   :  { %v2997_v46 = vpop.xlane.xlu0 %2996 }
0x127b   :  { %11389 = vrsqrt.f32 %v3004_v15  ;;  %v3001_v3 = vmul.f32 0.020833334, %v2997_v46 }
0x127d   :  { %v11386_v50 = vpop.eup %11385  ;;  %v3005_v19 = vadd.f32 1e-05, %v3001_v3 }
0x127e   :  { %v3010_v52 = vmul.f32 %v11386_v50, %v12620_v55 }
0x127f   :  { %11391 = vrsqrt.f32 %v3005_v19 }
0x1280   :  { %v3020_v53 = vmul.f32 %v8813_v58, %v3010_v52 }
0x1281   :  { %v11388_v54 = vpop.eup %11387 }
0x1282   :  { %v3030_v59 = vadd.f32 %v8814_v39, %v3020_v53  ;;  %v3011_v57 = vmul.f32 %v11388_v54, %v12625_v32 }
0x1284   :  { %8827 = vmatmul.mubr.msk.f32.vlgmr.msra.gmra.mrb[36].mxu1 %vm201_vm4, %v3030_v59  ;;  %v3021_v37 = vmul.f32 %v8813_v58, %v3011_v57 }
0x1285   :  { %v11390_v35 = vpop.eup %11389  ;;  %3129 = vmatprep.mubr.f32.mxu1 %v11659_v25 }
0x1286   :  { %v3031_v20 = vadd.f32 %v8814_v39, %v3021_v37  ;;  %v3012_v21 = vmul.f32 %v11390_v35, %v12631_v41 }
0x1288   :  { %8828 = vmatmul.mubr.msk.f32.gmra.mrb[38].mxu1 %vm201_vm4, %v3031_v20  ;;  %v3022_v55 = vmul.f32 %v8813_v58, %v3012_v21 }
0x1289   :  { %v11392_v10 = vpop.eup %11391  ;;  %3135 = vmatprep.mubr.f32.mxu1 %v11659_v25 }
0x128a   :  { %v3032_v22 = vadd.f32 %v8814_v39, %v3022_v55  ;;  %v3013_v0 = vmul.f32 %v11392_v10, %v12637_v17  ;;  %v12779_v10 = vld [vmem:[%s14097_s3 + $0x8] sm:$0xff] }
0x128c   :  { %8829 = vmatmul.mubr.msk.f32.gmra.mrb[40].mxu1 %vm201_vm4, %v3032_v22  ;;  %v3023_v32 = vmul.f32 %v8813_v58, %v3013_v0 }
0x128d   :  { %3141 = vmatprep.mubr.f32.mxu1 %v11659_v25 }
0x128e   :  { %v3033_v23 = vadd.f32 %v8814_v39, %v3023_v32  ;;  %v12785_v32 = vld [vmem:[%s14097_s3] sm:$0xff] }
0x1290   :  { %8830 = vmatmul.mubr.msk.f32.gmra.mrb[42].mxu1 %vm201_vm4, %v3033_v23 }
0x1357   :  { %v3125_v6 = vpop.f32.mrb[36].mxu1 }
0x1358   :  { %v12696_v48 = vpop.f32.mrb[37].mxu1  ;;  %v12698_v41 = vmul.f32 0.35355338, %v3125_v6 }
0x135a   :  { %9834 = vmatprep.mubr.msk.f32.mxu1 %vm410_vm5, %v12698_v41 }
0x135b   :  { %v3131_v27 = vpop.f32.mrb[38].mxu1 }
0x135c   :  { %v12702_v29 = vpop.f32.mrb[39].mxu1  ;;  %v12704_v17 = vpack.i.bf16 %v3131_v27, %v3125_v6  ;;  %v12732_v56 = vmul.f32 0.35355338, %v3131_v27 }
0x135d   :  { %v11153_v26 = vpack.i.bf16 %v12702_v29, %v12696_v48  ;;  %v12710_v31 = vpack.c.bf16 %v12702_v29, %v12696_v48 }
0x135e   :  { %11054 = vrot.lane.b32.xlu1 %v12704_v17, %s14144_s1 }
0x135f   :  { %v3137_v18 = vpop.f32.mrb[40].mxu1 }
0x1360   :  { %v12714_v49 = vpop.f32.mrb[41].mxu1  ;;  %v12738_v24 = vmul.f32 0.35355338, %v3137_v18 }
0x1362   :  { %11064 = vrot.lane.b32.xlu1 %v12704_v17, %s14138_s27 }
0x1363   :  { %v3143_v1 = vpop.f32.mrb[42].mxu1 }
0x1364   :  { %v12718_v36 = vpop.f32.mrb[43].mxu1  ;;  %v12720_v33 = vpack.i.bf16 %v3143_v1, %v3137_v18  ;;  %v12740_v60 = vmul.f32 0.35355338, %v3143_v1 }
0x1365   :  { %v11158_v14 = vpack.i.bf16 %v12718_v36, %v12714_v49  ;;  %v12726_v28 = vpack.c.bf16 %v12718_v36, %v12714_v49 }
0x1366   :  { %11069 = vrot.lane.b32.xlu1 %v12720_v33, %s14138_s27  ;;  %11059 = vrot.lane.b32.xlu0 %v12720_v33, %s14144_s1  ;;  %s14170_s27 = smov 88   ;;  %s14174_s1 = smov 120  }
0x136a   :  { %3431 = vrot.lane.b32.xlu1 %v12732_v56, %s14140_s28  ;;  %3429 = vrot.lane.b32.xlu0 %v12698_v41, %s14140_s28 }
0x136e   :  { %3433 = vrot.lane.b32.xlu0 %v12738_v24, %s14140_s28  ;;  %3435 = vrot.lane.b32.xlu1 %v12740_v60, %s14140_s28 }
0x1372   :  { %11074 = vrot.lane.b32.xlu1 %v12704_v17, %s14142_s25 }
0x13d0   :  { %v11055_v13 = vpop.permute.xlu1 %11054 }
0x13d1   :  { %v11057_v38 = vunpack.i.h.bf16 %v11055_v13  ;;  %v11056_v34 = vunpack.i.l.bf16 %v11055_v13  ;;  %v12794_v13 = vld [vmem:[%s14097_s3 + $0x18] sm:$0xff] }
0x13d3   :  { %v10500_v42 = vpack.c.bf16 %v11057_v38, %v11056_v34 }
0x13d4   :  { %v11065_v40 = vpop.permute.xlu1 %11064 }
0x13d5   :  { %v11067_v43 = vunpack.i.h.bf16 %v11065_v40  ;;  %v11066_v63 = vunpack.i.l.bf16 %v11065_v40  ;;  %10502 = vmatprep.subr.msk.bf16.mxu1 %vm11974_vm6, %v10500_v42 }
0x13d6   :  { %10505 = vmatpush3.bf16.xpose.msk.msra.mxu1 %vm11974_vm6, %v10500_v42 }
0x13d7   :  { %v10520_v2 = vpack.c.bf16 %v11067_v43, %v11066_v63  ;;  %v12805_v43 = vld [vmem:[%s14097_s3 + $0x10] sm:$0xff] }
0x13d8   :  { %v11070_v4 = vpop.permute.xlu1 %11069  ;;  %v11060_v9 = vpop.permute.xlu0 %11059 }
0x13d9   :  { %v11072_v11 = vunpack.i.h.bf16 %v11070_v4  ;;  %v11071_v44 = vunpack.i.l.bf16 %v11070_v4  ;;  %v11062_v61 = vunpack.i.h.bf16 %v11060_v9  ;;  %v11061_v45 = vunpack.i.l.bf16 %v11060_v9  ;;  %10522 = vmatprep.subr.msk.bf16.mxu0 %vm11974_vm6, %v10520_v2 }
0x13da   :  { %10525 = vmatpush3.bf16.xpose.msk.msra.mxu0 %vm11974_vm6, %v10520_v2 }
0x13db   :  { %v10526_v15 = vpack.c.bf16 %v11072_v11, %v11071_v44  ;;  %v10506_v46 = vpack.c.bf16 %v11062_v61, %v11061_v45 }
0x13dc   :  { %v3432_v3 = vpop.permute.xlu1 %3431  ;;  %v3430_v50 = vpop.permute.xlu0 %3429 }
0x13dd   :  { %10508 = vmatprep.subr.msk.bf16.mxu1 %vm11974_vm6, %v10506_v46  ;;  %10528 = vmatprep.subr.msk.bf16.mxu0 %vm11974_vm6, %v10526_v15 }
0x13de   :  { %9862 = vmatprep.mubr.msk.f32.mxu0 %vm410_vm5, %v3430_v50  ;;  %10511 = vmatpush3.bf16.xpose.msk.msra.mxu1 %vm11974_vm6, %v10506_v46 }
0x13e0   :  { %v3436_v58 = vpop.permute.xlu1 %3435  ;;  %v3434_v54 = vpop.permute.xlu0 %3433 }
0x13e2   :  { %10531 = vmatpush3.bf16.xpose.msk.msra.mxu0 %vm11974_vm6, %v10526_v15 }
0x13e4   :  { %v11075_v19 = vpop.permute.xlu1 %11074 }
0x13e5   :  { %v11077_v52 = vunpack.i.h.bf16 %v11075_v19  ;;  %v11076_v39 = vunpack.i.l.bf16 %v11075_v19  ;;  %9835 = vmatmul.mubr.msk.f32.vlgmr.msra.gmra.mrb[44].mxu1 %vm410_vm5, %v12732_v56 }
0x13e6   :  { %9837 = vmatprep.mubr.msk.f32.mxu1 %vm410_vm5, %v12738_v24 }
0x13e7   :  { %v10512_v53 = vpack.c.bf16 %v11077_v52, %v11076_v39 }
0x13e9   :  { %9838 = vmatmul.mubr.msk.f32.gmra.mrb[46].mxu1 %vm410_vm5, %v12740_v60  ;;  %10513 = vmatprep.subr.bf16.mxu1 %v10512_v53 }
0x13ea   :  { %9863 = vmatmul.mubr.msk.f32.vlgmr.msra.gmra.mrb[44].mxu0 %vm410_vm5, %v3432_v3  ;;  %10515 = vmatpush3.bf16.msra.mxu1 %v10512_v53 }
0x13eb   :  { %9865 = vmatprep.mubr.msk.f32.mxu0 %vm410_vm5, %v3434_v54 }
0x13ee   :  { %9866 = vmatmul.mubr.msk.f32.gmra.mrb[46].mxu0 %vm410_vm5, %v3436_v58 }
0x14b8   :  { %v9836_v59 = vpop.f32.mrb[44].mxu1 }
0x14b9   :  { %v3263_v57 = vadd.f32 %v12352_v51, %v9836_v59  ;;  %v3257_v37 = vpop.f32.mrb[45].mxu1 }
0x14ba   :  { %v3258_v23 = vadd.f32 %v12785_v32, %v3257_v37 }
0x14bb   :  { %v3279_v35 = vsel %vm516_vm7, %v3263_v57, -inf }
0x14bc   :  { %3280 = vmax.xlane.f32.xlu1 %v3279_v35  ;;  %v9839_v20 = vpop.f32.mrb[46].mxu1  ;;  %v3276_v34 = vsel %vm516_vm7, %v3258_v23, -inf }
0x14bd   :  { %v9864_v21 = vpop.f32.mrb[44].mxu0  ;;  %v3267_v55 = vpop.f32.mrb[47].mxu1  ;;  %v3273_v38 = vadd.f32 %v12794_v13, %v9839_v20 }
0x14be   :  { %v3533_v22 = vadd.f32 %v12779_v10, %v9864_v21  ;;  %v3527_v0 = vpop.f32.mrb[45].mxu0  ;;  %v12808_v63 = vadd.f32 %v12805_v43, %v3267_v55 }
0x14bf   :  { %v3528_v51 = vadd.f32 %v12785_v32, %v3527_v0  ;;  %v3285_v40 = vsel %vm516_vm7, %v3273_v38, -inf }
0x14c0   :  { %v3549_v6 = vsel %vm516_vm7, %v3533_v22, -inf  ;;  %v3282_v4 = vsel %vm516_vm7, %v12808_v63, -inf }
0x14c1   :  { %3550 = vmax.xlane.f32.xlu0 %v3549_v6  ;;  %v9867_v27 = vpop.f32.mrb[46].mxu0  ;;  %v3546_v18 = vsel %vm516_vm7, %v3528_v51, -inf }
0x14c2   :  { %v3537_v1 = vpop.f32.mrb[47].mxu0  ;;  %3547 = vmax.xlane.f32.xlu1 %v3546_v18  ;;  %v12799_v42 = vadd.f32 %v12794_v13, %v9867_v27 }
0x14c3   :  { %v12819_v9 = vadd.f32 %v12805_v43, %v3537_v1 }
0x14c4   :  { %v3555_v2 = vsel %vm516_vm7, %v12799_v42, -inf }
0x14c5   :  { %3277 = vmax.xlane.f32.xlu0 %v3276_v34  ;;  %v3552_v11 = vsel %vm516_vm7, %v12819_v9, -inf }
0x14c9   :  { %3286 = vmax.xlane.f32.xlu0 %v3285_v40 }
0x14cd   :  { %3556 = vmax.xlane.f32.xlu0 %v3555_v2 }
0x14d1   :  { %3283 = vmax.xlane.f32.xlu0 %v3282_v4 }
0x14d3   :  { %11084 = vrot.lane.b32.xlu1 %v12704_v17, %s14136_s19 }
0x14e7   :  { %11079 = vrot.lane.b32.xlu0 %v12720_v33, %s14142_s25  ;;  %s14172_s25 = smov 32  }
0x14f7   :  { %3553 = vmax.xlane.f32.xlu1 %v3552_v11 }
0x1549   :  { %v3281_v44 = vpop.xlane.xlu1 %3280 }
0x154a   :  { %v3289_v61 = vsub.f32 %v3263_v57, %v3281_v44 }
0x154c   :  { %v3294_v45 = vmul.f32 1.442695, %v3289_v61 }
0x154e   :  { %11393 = vpow2.f32 %v3294_v45  ;;  %v3551_v15 = vpop.xlane.xlu0 %3550 }
0x154f   :  { %v3559_v46 = vsub.f32 %v3533_v22, %v3551_v15  ;;  %v3548_v3 = vpop.xlane.xlu1 %3547 }
0x1550   :  { %v3558_v58 = vsub.f32 %v3528_v51, %v3548_v3 }
0x1551   :  { %v3564_v50 = vmul.f32 1.442695, %v3559_v46 }
0x1552   :  { %v3278_v19 = vpop.xlane.xlu0 %3277  ;;  %v3562_v53 = vmul.f32 1.442695, %v3558_v58 }
0x1553   :  { %11395 = vpow2.f32 %v3564_v50  ;;  %v3288_v52 = vsub.f32 %v3258_v23, %v3278_v19  ;;  %v11085_v0 = vpop.permute.xlu1 %11084 }
0x1554   :  { %v11087_v27 = vunpack.i.h.bf16 %v11085_v0  ;;  %v11086_v18 = vunpack.i.l.bf16 %v11085_v0 }
0x1555   :  { %v3292_v39 = vmul.f32 1.442695, %v3288_v52 }
0x1556   :  { %v3287_v54 = vpop.xlane.xlu0 %3286  ;;  %v10532_v44 = vpack.c.bf16 %v11087_v27, %v11086_v18 }
0x1557   :  { %11397 = vpow2.f32 %v3292_v39  ;;  %v3291_v59 = vsub.f32 %v3273_v38, %v3287_v54 }
0x1558   :  { %v12823_v37 = vpop.eup %11393  ;;  %11399 = vpow2.f32 %v3562_v53 }
0x1559   :  { %v3298_v35 = vmul.f32 1.442695, %v3291_v59  ;;  %v3303_v57 = vsel %vm516_vm7, %v12823_v37, 0.0 }
0x155a   :  { %v3557_v20 = vpop.xlane.xlu0 %3556  ;;  %3304 = vadd.xlane.f32.xlu0 %v3303_v57 }
0x155b   :  { %11401 = vpow2.f32 %v3298_v35  ;;  %v3561_v61 = vsub.f32 %v12799_v42, %v3557_v20 }
0x155d   :  { %v12827_v21 = vpop.eup %11395  ;;  %v3568_v45 = vmul.f32 1.442695, %v3561_v61 }
0x155e   :  { %v3284_v55 = vpop.xlane.xlu0 %3283  ;;  %v3573_v22 = vsel %vm516_vm7, %v12827_v21, 0.0 }
0x155f   :  { %3574 = vadd.xlane.f32.xlu0 %v3573_v22  ;;  %v3290_v15 = vsub.f32 %v12808_v63, %v3284_v55  ;;  %11403 = vpow2.f32 %v3568_v45 }
0x1561   :  { %v12831_v51 = vpop.eup %11397  ;;  %v3296_v46 = vmul.f32 1.442695, %v3290_v15 }
0x1562   :  { %v11080_v23 = vpop.permute.xlu0 %11079  ;;  %v3300_v6 = vsel %vm516_vm7, %v12831_v51, 0.0  ;;  %v12835_v34 = vpop.eup %11399 }
0x1563   :  { %v11082_v1 = vunpack.i.h.bf16 %v11080_v23  ;;  %v11081_v38 = vunpack.i.l.bf16 %v11080_v23  ;;  %3301 = vadd.xlane.f32.xlu1 %v3300_v6  ;;  %v3570_v11 = vsel %vm516_vm7, %v12835_v34, 0.0  ;;  %11405 = vpow2.f32 %v3296_v46 }
0x1565   :  { %v12837_v40 = vpop.eup %11401  ;;  %v10516_v2 = vpack.c.bf16 %v11082_v1, %v11081_v38 }
0x1566   :  { %v3309_v4 = vsel %vm516_vm7, %v12837_v40, 0.0 }
0x1567   :  { %3310 = vadd.xlane.f32.xlu0 %v3309_v4  ;;  %10517 = vmatprep.subr.bf16.mxu1 %v10516_v2 }
0x1568   :  { %3571 = vadd.xlane.f32.xlu1 %v3570_v11  ;;  %10519 = vmatpush3.bf16.msra.mxu1 %v10516_v2 }
0x1569   :  { %10533 = vmatprep.subr.bf16.mxu1 %v10532_v44  ;;  %v12851_v3 = vpop.eup %11403 }
0x156a   :  { %v3579_v50 = vsel %vm516_vm7, %v12851_v3, 0.0 }
0x156d   :  { %v11406_v58 = vpop.eup %11405 }
0x156e   :  { %v3306_v19 = vsel %vm516_vm7, %v11406_v58, 0.0 }
0x1579   :  { %11094 = vrot.lane.b32.xlu1 %v12704_v17, %s14161_s21 }
0x157d   :  { %11099 = vrot.lane.b32.xlu1 %v12720_v33, %s14161_s21  ;;  %11089 = vrot.lane.b32.xlu0 %v12720_v33, %s14136_s19  ;;  %s14169_s19 = smov 40  }
0x1584   :  { %v3554_v42 = vpop.xlane.xlu1 %3553 }
0x1585   :  { %v3560_v63 = vsub.f32 %v12819_v9, %v3554_v42 }
0x1587   :  { %v3566_v52 = vmul.f32 1.442695, %v3560_v63 }
0x1589   :  { %11407 = vpow2.f32 %v3566_v52 }
0x1593   :  { %v12869_v39 = vpop.eup %11407 }
0x1594   :  { %v3576_v53 = vsel %vm516_vm7, %v12869_v39, 0.0 }
0x159c   :  { %3580 = vadd.xlane.f32.xlu0 %v3579_v50 }
0x15a1   :  { %3307 = vadd.xlane.f32.xlu1 %v3306_v19 }
0x15b2   :  { %3895 = vrot.lane.b32.xlu1 %v12732_v56, %s14162_s22  ;;  %3893 = vrot.lane.b32.xlu0 %v12698_v41, %s14162_s22 }
0x15b6   :  { %3897 = vrot.lane.b32.xlu0 %v12738_v24, %s14162_s22 }
0x15ba   :  { %11104 = vrot.lane.b32.xlu0 %v12704_v17, %s14163_s30 }
0x15be   :  { %4264 = vrot.lane.b32.xlu0 %v12698_v41, %s14164_s0 }
0x15c2   :  { %4268 = vrot.lane.b32.xlu0 %v12738_v24, %s14164_s0 }
0x15d6   :  { %3577 = vadd.xlane.f32.xlu1 %v3576_v53 }
0x15e7   :  { %3899 = vrot.lane.b32.xlu1 %v12740_v60, %s14162_s22  ;;  %v3305_v54 = vpop.xlane.xlu0 %3304 }
0x15e8   :  { %11409 = vrcp.f32 %v3305_v54 }
0x15eb   :  { %11109 = vrot.lane.b32.xlu1 %v12720_v33, %s14163_s30 }
0x15ec   :  { %v3575_v9 = vpop.xlane.xlu0 %3574 }
0x15ef   :  { %4266 = vrot.lane.b32.xlu1 %v12732_v56, %s14164_s0 }
0x15f0   :  { %v3302_v59 = vpop.xlane.xlu1 %3301 }
0x15f1   :  { %11411 = vrcp.f32 %v3302_v59 }
0x15f2   :  { %v11410_v55 = vpop.eup %11409 }
0x15f3   :  { %4270 = vrot.lane.b32.xlu1 %v12740_v60, %s14164_s0  ;;  %v3317_v18 = vmul.f32 %v11410_v55, %v12823_v37 }
0x15f4   :  { %v3311_v35 = vpop.xlane.xlu0 %3310 }
0x15f5   :  { %v3572_v57 = vpop.xlane.xlu1 %3571  ;;  %11413 = vrcp.f32 %v3311_v35 }
0x15f6   :  { %11415 = vrcp.f32 %v3572_v57 }
0x15f8   :  { %v11090_v20 = vpop.permute.xlu0 %11089 }
0x15f9   :  { %v11092_v0 = vunpack.i.h.bf16 %v11090_v20  ;;  %v11091_v23 = vunpack.i.l.bf16 %v11090_v20  ;;  %v11095_v6 = vpop.permute.xlu1 %11094 }
0x15fa   :  { %v11097_v1 = vunpack.i.h.bf16 %v11095_v6  ;;  %v11096_v38 = vunpack.i.l.bf16 %v11095_v6 }
0x15fb   :  { %v11412_v22 = vpop.eup %11411  ;;  %v10536_v2 = vpack.c.bf16 %v11092_v0, %v11091_v23 }
0x15fc   :  { %v3316_v27 = vmul.f32 %v11412_v22, %v12831_v51  ;;  %v10540_v4 = vpack.c.bf16 %v11097_v1, %v11096_v38 }
0x15fd   :  { %v11100_v11 = vpop.permute.xlu1 %11099 }
0x15fe   :  { %9848 = vmatprep.mubr.msk.f32.mxu1 %vm516_vm7, %v3316_v27  ;;  %v11102_v52 = vunpack.i.h.bf16 %v11100_v11  ;;  %v11101_v53 = vunpack.i.l.bf16 %v11100_v11 }
0x15ff   :  { %9849 = vmatmul.mubr.msk.f32.vlgmr.msra.gmra.mrb[48].mxu1 %vm516_vm7, %v3317_v18  ;;  %v11414_v45 = vpop.eup %11413 }
0x1600   :  { %10535 = vmatpush3.bf16.msra.mxu1 %v10532_v44  ;;  %v11416_v15 = vpop.eup %11415  ;;  %v3319_v44 = vmul.f32 %v11414_v45, %v12837_v40 }
0x1601   :  { %10537 = vmatprep.subr.bf16.mxu1 %v10536_v2  ;;  %v3586_v63 = vmul.f32 %v11416_v15, %v12835_v34 }
0x1604   :  { %10539 = vmatpush3.bf16.msra.mxu1 %v10536_v2  ;;  %v8832_v2 = vld [vmem:[%s14101_s7 + $0x38] sm:$0xff] }
0x1605   :  { %10542 = vmatprep.subr.msk.bf16.mxu1 %vm11974_vm6, %v10540_v4  ;;  %9882 = vmatprep.subr.mxu0 %v8832_v2 }
0x1606   :  { %9883 = vmatpush3.msra.mxu0 %v8832_v2 }
0x1629   :  { %v3581_v37 = vpop.xlane.xlu0 %3580 }
0x162d   :  { %v3894_v61 = vpop.permute.xlu0 %3893 }
0x162e   :  { %v3308_v51 = vpop.xlane.xlu1 %3307 }
0x162f   :  { %11417 = vrcp.f32 %v3308_v51 }
0x1630   :  { %11419 = vrcp.f32 %v3575_v9  ;;  %v10546_v9 = vpack.c.bf16 %v11102_v52, %v11101_v53 }
0x1631   :  { %v3898_v42 = vpop.permute.xlu0 %3897  ;;  %11421 = vrcp.f32 %v3581_v37 }
0x1639   :  { %v11418_v46 = vpop.eup %11417 }
0x163a   :  { %v3318_v50 = vmul.f32 %v11418_v46, %v11406_v58  ;;  %v11420_v19 = vpop.eup %11419  ;;  %v11105_v58 = vpop.permute.xlu0 %11104 }
0x163b   :  { %v3587_v54 = vmul.f32 %v11420_v19, %v12827_v21  ;;  %v11107_v40 = vunpack.i.h.bf16 %v11105_v58  ;;  %v11106_v34 = vunpack.i.l.bf16 %v11105_v58  ;;  %v3896_v21 = vpop.permute.xlu1 %3895  ;;  %v11422_v20 = vpop.eup %11421 }
0x163c   :  { %9851 = vmatprep.mubr.msk.f32.mxu1 %vm516_vm7, %v3318_v50  ;;  %v3589_v23 = vmul.f32 %v11422_v20, %v12851_v3 }
0x163d   :  { %9852 = vmatmul.mubr.msk.f32.gmra.mrb[50].mxu1 %vm516_vm7, %v3319_v44  ;;  %v10560_v59 = vpack.c.bf16 %v11107_v40, %v11106_v34 }
0x163e   :  { %9876 = vmatprep.mubr.msk.f32.mxu1 %vm516_vm7, %v3586_v63  ;;  %v4265_v3 = vpop.permute.xlu0 %4264 }
0x1641   :  { %9877 = vmatmul.mubr.msk.f32.vlgmr.msra.gmra.mrb[52].mxu1 %vm516_vm7, %v3587_v54 }
0x1642   :  { %10545 = vmatpush3.bf16.xpose.msk.msra.mxu1 %vm11974_vm6, %v10540_v4  ;;  %v4269_v1 = vpop.permute.xlu0 %4268  ;;  %v8831_v4 = vld [vmem:[%s14101_s7 + $0x30] sm:$0xff] }
0x1643   :  { %10548 = vmatprep.subr.msk.bf16.mxu1 %vm11974_vm6, %v10546_v9  ;;  %9890 = vmatprep.subr.mxu0 %v8831_v4 }
0x164a   :  { %10551 = vmatpush3.bf16.xpose.msk.msra.mxu1 %vm11974_vm6, %v10546_v9 }
0x164b   :  { %10562 = vmatprep.subr.msk.bf16.mxu1 %vm11974_vm6, %v10560_v59 }
0x1663   :  { %v3578_v35 = vpop.xlane.xlu1 %3577 }
0x1664   :  { %11423 = vrcp.f32 %v3578_v35 }
0x1667   :  { %v3900_v57 = vpop.permute.xlu1 %3899 }
0x166b   :  { %v11110_v22 = vpop.permute.xlu1 %11109 }
0x166c   :  { %v11112_v6 = vunpack.i.h.bf16 %v11110_v22  ;;  %v11111_v27 = vunpack.i.l.bf16 %v11110_v22 }
0x166e   :  { %v11424_v55 = vpop.eup %11423  ;;  %v10566_v18 = vpack.c.bf16 %v11112_v6, %v11111_v27 }
0x166f   :  { %v3588_v0 = vmul.f32 %v11424_v55, %v12869_v39  ;;  %v4267_v39 = vpop.permute.xlu1 %4266 }
0x1671   :  { %9879 = vmatprep.mubr.msk.f32.mxu1 %vm516_vm7, %v3588_v0 }
0x1672   :  { %9880 = vmatmul.mubr.msk.f32.gmra.mrb[54].mxu1 %vm516_vm7, %v3589_v23 }
0x1673   :  { %9906 = vmatprep.mubr.msk.f32.mxu1 %vm410_vm5, %v3894_v61  ;;  %v4271_v38 = vpop.permute.xlu1 %4270 }
0x1676   :  { %9907 = vmatmul.mubr.msk.f32.vlgmr.msra.gmra.mrb[56].mxu1 %vm410_vm5, %v3896_v21 }
0x1677   :  { %10565 = vmatpush3.bf16.xpose.msk.msra.mxu1 %vm11974_vm6, %v10560_v59  ;;  %9909 = vmatprep.mubr.msk.f32.mxu1 %vm410_vm5, %v3898_v42 }
0x1678   :  { %10568 = vmatprep.subr.msk.bf16.mxu1 %vm11974_vm6, %v10566_v18 }
0x167a   :  { %9910 = vmatmul.mubr.msk.f32.gmra.mrb[58].mxu1 %vm410_vm5, %v3900_v57 }
0x167b   :  { %9942 = vmatprep.mubr.msk.f32.mxu1 %vm410_vm5, %v4265_v3 }
0x167f   :  { %10571 = vmatpush3.bf16.xpose.msk.msra.mxu1 %vm11974_vm6, %v10566_v18 }
0x1686   :  { %9943 = vmatmul.mubr.msk.f32.vlgmr.msra.gmra.mrb[60].mxu1 %vm410_vm5, %v4267_v39 }
0x1687   :  { %9945 = vmatprep.mubr.msk.f32.mxu1 %vm410_vm5, %v4269_v1 }
0x168a   :  { %9946 = vmatmul.mubr.msk.f32.gmra.mrb[62].mxu1 %vm410_vm5, %v4271_v38 }
0x16d2   :  { %v9850_v11 = vpop.f32.mrb[48].mxu1 }
0x16d3   :  { %v3410_v51 = vpop.f32.mrb[49].mxu1 }
0x1710   :  { %v9853_v37 = vpop.f32.mrb[50].mxu1 }
0x1711   :  { %v3420_v61 = vpop.f32.mrb[51].mxu1 }
0x1714   :  { %v9878_v45 = vpop.f32.mrb[52].mxu1 }
0x1715   :  { %v3680_v15 = vpop.f32.mrb[53].mxu1 }
0x1716   :  { %9884 = vmatprep.mubr.msk.f32.mxu0 %vm410_vm5, %v3680_v15 }
0x1717   :  { %9885 = vmatmul.mubr.msk.f32.vlgmr.msra.gmra.mrb[48].mxu0 %vm410_vm5, %v9878_v45 }
0x1718   :  { %9891 = vmatpush3.msra.mxu0 %v8831_v4 }
0x1745   :  { %v9881_v46 = vpop.f32.mrb[54].mxu1 }
0x1746   :  { %v3690_v50 = vpop.f32.mrb[55].mxu1 }
0x1747   :  { %9887 = vmatprep.mubr.msk.f32.mxu0 %vm410_vm5, %v3690_v50 }
0x1748   :  { %9888 = vmatmul.mubr.msk.f32.gmra.mrb[50].mxu0 %vm410_vm5, %v9881_v46 }
0x1749   :  { %9892 = vmatprep.mubr.msk.f32.mxu0 %vm410_vm5, %v3410_v51  ;;  %v9908_v44 = vpop.f32.mrb[56].mxu1 }
0x174a   :  { %v3997_v19 = vadd.f32 %v12779_v10, %v9908_v44  ;;  %v3991_v42 = vpop.f32.mrb[57].mxu1 }
0x174b   :  { %v3992_v63 = vadd.f32 %v12785_v32, %v3991_v42 }
0x174c   :  { %9893 = vmatmul.mubr.msk.f32.vlgmr.msra.gmra.mrb[48].mxu0 %vm410_vm5, %v9850_v11  ;;  %v4013_v52 = vsel %vm516_vm7, %v3997_v19, -inf }
0x174d   :  { %4014 = vmax.xlane.f32.xlu1 %v4013_v52  ;;  %9895 = vmatprep.mubr.msk.f32.mxu0 %vm410_vm5, %v3420_v61  ;;  %v9911_v53 = vpop.f32.mrb[58].mxu1  ;;  %v4010_v54 = vsel %vm516_vm7, %v3992_v63, -inf }
0x174e   :  { %v4001_v9 = vpop.f32.mrb[59].mxu1  ;;  %4011 = vmax.xlane.f32.xlu0 %v4010_v54  ;;  %v4007_v40 = vadd.f32 %v12794_v13, %v9911_v53 }
0x174f   :  { %v4002_v58 = vadd.f32 %v12805_v43, %v4001_v9 }
0x1750   :  { %9896 = vmatmul.mubr.msk.f32.gmra.mrb[50].mxu0 %vm410_vm5, %v9853_v37  ;;  %v4019_v59 = vsel %vm516_vm7, %v4007_v40, -inf }
0x1751   :  { %v4016_v34 = vsel %vm516_vm7, %v4002_v58, -inf }
0x1752   :  { %4017 = vmax.xlane.f32.xlu0 %v4016_v34 }
0x1756   :  { %4020 = vmax.xlane.f32.xlu0 %v4019_v59 }
0x1759   :  { %v9944_v21 = vpop.f32.mrb[60].mxu1 }
0x175a   :  { %v4362_v35 = vpop.f32.mrb[61].mxu1  ;;  %v12975_v44 = vadd.f32 %v12779_v10, %v9944_v21 }
0x175b   :  { %v12972_v50 = vadd.f32 %v12785_v32, %v4362_v35 }
0x175c   :  { %v4384_v52 = vsel %vm516_vm7, %v12975_v44, -inf }
0x175d   :  { %v9947_v57 = vpop.f32.mrb[62].mxu1  ;;  %v4381_v42 = vsel %vm516_vm7, %v12972_v50, -inf }
0x175e   :  { %v4372_v20 = vpop.f32.mrb[63].mxu1 }
0x17da   :  { %v4015_v55 = vpop.xlane.xlu1 %4014 }
0x17db   :  { %v4023_v22 = vsub.f32 %v3997_v19, %v4015_v55  ;;  %v4012_v0 = vpop.xlane.xlu0 %4011  ;;  %v12978_v19 = vadd.f32 %v12805_v43, %v4372_v20 }
0x17dc   :  { %v4022_v23 = vsub.f32 %v3992_v63, %v4012_v0  ;;  %v12983_v63 = vadd.f32 %v12794_v13, %v9947_v57 }
0x17dd   :  { %v4028_v6 = vmul.f32 1.442695, %v4023_v22  ;;  %v4387_v53 = vsel %vm516_vm7, %v12978_v19, -inf }
0x17de   :  { %v4026_v27 = vmul.f32 1.442695, %v4022_v23  ;;  %v4390_v54 = vsel %vm516_vm7, %v12983_v63, -inf }
0x17df   :  { %11425 = vpow2.f32 %v4028_v6  ;;  %v4018_v18 = vpop.xlane.xlu0 %4017 }
0x17e0   :  { %11427 = vpow2.f32 %v4026_v27  ;;  %v4024_v3 = vsub.f32 %v4002_v58, %v4018_v18 }
0x17e2   :  { %v4030_v39 = vmul.f32 1.442695, %v4024_v3 }
0x17e3   :  { %v4021_v1 = vpop.xlane.xlu0 %4020 }
0x17e4   :  { %11429 = vpow2.f32 %v4030_v39  ;;  %v4025_v38 = vsub.f32 %v4007_v40, %v4021_v1 }
0x17e6   :  { %v4032_v2 = vmul.f32 1.442695, %v4025_v38 }
0x17e8   :  { %11431 = vpow2.f32 %v4032_v2 }
0x17e9   :  { %v12942_v4 = vpop.eup %11425 }
0x17ea   :  { %v11428_v11 = vpop.eup %11427  ;;  %v4037_v51 = vsel %vm516_vm7, %v12942_v4, 0.0 }
0x17eb   :  { %4038 = vadd.xlane.f32.xlu0 %v4037_v51  ;;  %v4034_v37 = vsel %vm516_vm7, %v11428_v11, 0.0 }
0x17ec   :  { %4035 = vadd.xlane.f32.xlu1 %v4034_v37 }
0x17ee   :  { %v12947_v61 = vpop.eup %11429 }
0x17ef   :  { %v4040_v45 = vsel %vm516_vm7, %v12947_v61, 0.0 }
0x17f0   :  { %4041 = vadd.xlane.f32.xlu1 %v4040_v45 }
0x17f2   :  { %v12951_v15 = vpop.eup %11431 }
0x17f3   :  { %v4043_v46 = vsel %vm516_vm7, %v12951_v15, 0.0 }
0x17f4   :  { %4044 = vadd.xlane.f32.xlu0 %v4043_v46 }
0x1801   :  { %11114 = vrot.lane.b32.xlu1 %v12704_v17, %s14165_s23 }
0x1805   :  { %11124 = vrot.lane.b32.xlu1 %v12704_v17, %s14166_s26 }
0x1809   :  { %11129 = vrot.lane.b32.xlu1 %v12720_v33, %s14166_s26 }
0x180a   :  { %11119 = vrot.lane.b32.xlu0 %v12720_v33, %s14165_s23 }
0x180d   :  { %4637 = vrot.lane.b32.xlu1 %v12732_v56, %s14167_s29 }
0x180e   :  { %4635 = vrot.lane.b32.xlu0 %v12698_v41, %s14167_s29 }
0x1811   :  { %4641 = vrot.lane.b32.xlu1 %v12740_v60, %s14167_s29 }
0x1812   :  { %4639 = vrot.lane.b32.xlu0 %v12738_v24, %s14167_s29 }
0x1831   :  { %4382 = vmax.xlane.f32.xlu0 %v4381_v42 }
0x1835   :  { %4385 = vmax.xlane.f32.xlu1 %v4384_v52  ;;  %4388 = vmax.xlane.f32.xlu0 %v4387_v53 }
0x1839   :  { %4391 = vmax.xlane.f32.xlu0 %v4390_v54 }
0x1878   :  { %v4039_v58 = vpop.xlane.xlu0 %4038 }
0x1879   :  { %v4036_v9 = vpop.xlane.xlu1 %4035 }
0x187a   :  { %11433 = vrcp.f32 %v4036_v9 }
0x187b   :  { %11435 = vrcp.f32 %v4039_v58 }
0x187d   :  { %v4042_v40 = vpop.xlane.xlu1 %4041 }
0x187e   :  { %11437 = vrcp.f32 %v4042_v40 }
0x1881   :  { %v11115_v34 = vpop.permute.xlu1 %11114  ;;  %v4045_v59 = vpop.xlane.xlu0 %4044 }
0x1882   :  { %v11117_v21 = vunpack.i.h.bf16 %v11115_v34  ;;  %v11116_v35 = vunpack.i.l.bf16 %v11115_v34  ;;  %11439 = vrcp.f32 %v4045_v59 }
0x1884   :  { %v11434_v57 = vpop.eup %11433  ;;  %v10552_v20 = vpack.c.bf16 %v11117_v21, %v11116_v35 }
0x1885   :  { %v11125_v55 = vpop.permute.xlu1 %11124  ;;  %v11120_v22 = vpop.permute.xlu0 %11119  ;;  %v4050_v0 = vmul.f32 %v11434_v57, %v11428_v11 }
0x1886   :  { %v11127_v23 = vunpack.i.h.bf16 %v11125_v55  ;;  %v11126_v6 = vunpack.i.l.bf16 %v11125_v55  ;;  %v11122_v27 = vunpack.i.h.bf16 %v11120_v22  ;;  %v11121_v18 = vunpack.i.l.bf16 %v11120_v22  ;;  %10553 = vmatprep.subr.bf16.mxu0 %v10552_v20  ;;  %v11436_v1 = vpop.eup %11435 }
0x1887   :  { %10555 = vmatpush3.bf16.msra.mxu0 %v10552_v20  ;;  %9920 = vmatprep.mubr.msk.f32.mxu0 %vm516_vm7, %v4050_v0  ;;  %v4051_v11 = vmul.f32 %v11436_v1, %v12942_v4 }
0x1888   :  { %v10580_v3 = vpack.c.bf16 %v11127_v23, %v11126_v6  ;;  %v10556_v39 = vpack.c.bf16 %v11122_v27, %v11121_v18  ;;  %v11438_v51 = vpop.eup %11437  ;;  %v8833_v18 = vld [vmem:[%s14101_s7 + $0x40] sm:$0xff] }
0x1889   :  { %v11130_v38 = vpop.permute.xlu1 %11129  ;;  %v4636_v2 = vpop.permute.xlu0 %4635  ;;  %v4052_v52 = vmul.f32 %v11438_v51, %v12947_v61 }
0x188a   :  { %v11132_v37 = vunpack.i.h.bf16 %v11130_v38  ;;  %v11131_v45 = vunpack.i.l.bf16 %v11130_v38  ;;  %10557 = vmatprep.subr.bf16.mxu0 %v10556_v39  ;;  %10582 = vmatprep.subr.msk.bf16.mxu1 %vm11974_vm6, %v10580_v3 }
0x188b   :  { %9978 = vmatprep.mubr.msk.f32.mxu1 %vm410_vm5, %v4636_v2  ;;  %10559 = vmatpush3.bf16.msra.mxu0 %v10556_v39 }
0x188c   :  { %v10586_v46 = vpack.c.bf16 %v11132_v37, %v11131_v45  ;;  %10585 = vmatpush3.bf16.xpose.msk.msra.mxu1 %vm11974_vm6, %v10580_v3  ;;  %v11440_v42 = vpop.eup %11439  ;;  %9926 = vmatprep.subr.mxu0 %v8833_v18 }
0x188d   :  { %v4053_v53 = vmul.f32 %v11440_v42, %v12951_v15  ;;  %v4638_v4 = vpop.permute.xlu1 %4637  ;;  %v4640_v54 = vpop.permute.xlu0 %4639 }
0x188e   :  { %9921 = vmatmul.mubr.msk.f32.vlgmr.msra.gmra.mrb[52].mxu0 %vm516_vm7, %v4051_v11  ;;  %10588 = vmatprep.subr.msk.bf16.mxu1 %vm11974_vm6, %v10586_v46 }
0x188f   :  { %9923 = vmatprep.mubr.msk.f32.mxu0 %vm516_vm7, %v4052_v52  ;;  %9927 = vmatpush3.msra.mxu0 %v8833_v18 }
0x1891   :  { %v4642_v61 = vpop.permute.xlu1 %4641 }
0x1892   :  { %9924 = vmatmul.mubr.msk.f32.gmra.mrb[54].mxu0 %vm516_vm7, %v4053_v53 }
0x1894   :  { %10591 = vmatpush3.bf16.xpose.msk.msra.mxu1 %vm11974_vm6, %v10586_v46 }
0x189b   :  { %9979 = vmatmul.mubr.msk.f32.vlgmr.msra.gmra.mrb[64].mxu1 %vm410_vm5, %v4638_v4 }
0x189c   :  { %9981 = vmatprep.mubr.msk.f32.mxu1 %vm410_vm5, %v4640_v54 }
0x189f   :  { %9982 = vmatmul.mubr.msk.f32.gmra.mrb[66].mxu1 %vm410_vm5, %v4642_v61 }
0x18be   :  { %v4383_v9 = vpop.xlane.xlu0 %4382 }
0x18bf   :  { %v4393_v58 = vsub.f32 %v12972_v50, %v4383_v9 }
0x18c1   :  { %v4397_v40 = vmul.f32 1.442695, %v4393_v58 }
0x18c2   :  { %v4386_v34 = vpop.xlane.xlu1 %4385  ;;  %v4389_v15 = vpop.xlane.xlu0 %4388 }
0x18c3   :  { %11441 = vpow2.f32 %v4397_v40  ;;  %v4394_v59 = vsub.f32 %v12975_v44, %v4386_v34  ;;  %v4395_v21 = vsub.f32 %v12978_v19, %v4389_v15  ;;  %v8834_v34 = vld [vmem:[%s14101_s7 + $0x48] sm:$0xff] }
0x18c5   :  { %v4399_v35 = vmul.f32 1.442695, %v4394_v59  ;;  %v4401_v57 = vmul.f32 1.442695, %v4395_v21 }
0x18c6   :  { %v4392_v20 = vpop.xlane.xlu0 %4391 }
0x18c7   :  { %11443 = vpow2.f32 %v4399_v35  ;;  %v4396_v55 = vsub.f32 %v12983_v63, %v4392_v20 }
0x18c8   :  { %11445 = vpow2.f32 %v4401_v57 }
0x18c9   :  { %v4403_v22 = vmul.f32 1.442695, %v4396_v55 }
0x18cb   :  { %11447 = vpow2.f32 %v4403_v22 }
0x18cd   :  { %v11442_v0 = vpop.eup %11441 }
0x18ce   :  { %v4405_v50 = vsel %vm516_vm7, %v11442_v0, 0.0 }
0x18cf   :  { %4406 = vadd.xlane.f32.xlu1 %v4405_v50 }
0x18d1   :  { %v13015_v23 = vpop.eup %11443 }
0x18d2   :  { %v13017_v6 = vpop.eup %11445  ;;  %v4408_v44 = vsel %vm516_vm7, %v13015_v23, 0.0 }
0x18d3   :  { %4409 = vadd.xlane.f32.xlu0 %v4408_v44  ;;  %v4411_v19 = vsel %vm516_vm7, %v13017_v6, 0.0 }
0x18d4   :  { %4412 = vadd.xlane.f32.xlu1 %v4411_v19 }
0x18d5   :  { %v13023_v63 = vpop.eup %11447 }
0x18d6   :  { %v4414_v27 = vsel %vm516_vm7, %v13023_v63, 0.0 }
0x18d7   :  { %4415 = vadd.xlane.f32.xlu0 %v4414_v27 }
0x18e5   :  { %11134 = vrot.lane.b32.xlu1 %v12704_v17, %s14168_s20 }
0x18e9   :  { %11144 = vrot.lane.b32.xlu1 %v12704_v17, %s14169_s19 }
0x18ed   :  { %11149 = vrot.lane.b32.xlu1 %v12720_v33, %s14169_s19  ;;  %11139 = vrot.lane.b32.xlu0 %v12720_v33, %s14168_s20 }
0x18f1   :  { %4996 = vrot.lane.b32.xlu1 %v12732_v56, %s14170_s27  ;;  %4994 = vrot.lane.b32.xlu0 %v12698_v41, %s14170_s27 }
0x18f5   :  { %5000 = vrot.lane.b32.xlu1 %v12740_v60, %s14170_s27  ;;  %4998 = vrot.lane.b32.xlu0 %v12738_v24, %s14170_s27 }
0x195c   :  { %v4407_v3 = vpop.xlane.xlu1 %4406 }
0x195d   :  { %11449 = vrcp.f32 %v4407_v3 }
0x1960   :  { %v4410_v17 = vpop.xlane.xlu0 %4409 }
0x1961   :  { %v4413_v39 = vpop.xlane.xlu1 %4412  ;;  %v9922_v1 = vpop.f32.mrb[52].mxu0  ;;  %11451 = vrcp.f32 %v4410_v17 }
0x1962   :  { %v4144_v38 = vpop.f32.mrb[53].mxu0  ;;  %11453 = vrcp.f32 %v4413_v39 }
0x1963   :  { %9928 = vmatprep.mubr.msk.f32.mxu0 %vm410_vm5, %v4144_v38 }
0x1964   :  { %v4416_v33 = vpop.xlane.xlu0 %4415  ;;  %9929 = vmatmul.mubr.msk.f32.vlgmr.msra.gmra.mrb[48].mxu0 %vm410_vm5, %v9922_v1 }
0x1965   :  { %v11135_v41 = vpop.permute.xlu1 %11134  ;;  %v9925_v56 = vpop.f32.mrb[54].mxu0  ;;  %11455 = vrcp.f32 %v4416_v33 }
0x1966   :  { %v11137_v2 = vunpack.i.h.bf16 %v11135_v41  ;;  %v11136_v60 = vunpack.i.l.bf16 %v11135_v41  ;;  %v4154_v51 = vpop.f32.mrb[55].mxu0 }
0x1967   :  { %v11450_v37 = vpop.eup %11449  ;;  %9931 = vmatprep.mubr.msk.f32.mxu0 %vm410_vm5, %v4154_v51 }
0x1968   :  { %v11140_v24 = vpop.permute.xlu0 %11139  ;;  %9932 = vmatmul.mubr.msk.f32.gmra.mrb[50].mxu0 %vm410_vm5, %v9925_v56  ;;  %v10572_v45 = vpack.c.bf16 %v11137_v2, %v11136_v60  ;;  %v4421_v11 = vmul.f32 %v11450_v37, %v11442_v0 }
0x1969   :  { %v11145_v46 = vpop.permute.xlu1 %11144  ;;  %v11142_v42 = vunpack.i.h.bf16 %v11140_v24  ;;  %v11141_v52 = vunpack.i.l.bf16 %v11140_v24 }
0x196a   :  { %v11147_v53 = vunpack.i.h.bf16 %v11145_v46  ;;  %v11146_v4 = vunpack.i.l.bf16 %v11145_v46  ;;  %10573 = vmatprep.subr.bf16.mxu0 %v10572_v45  ;;  %9956 = vmatprep.mubr.msk.f32.mxu0 %vm516_vm7, %v4421_v11 }
0x196b   :  { %10575 = vmatpush3.bf16.msra.mxu0 %v10572_v45  ;;  %v10576_v54 = vpack.c.bf16 %v11142_v42, %v11141_v52  ;;  %v11452_v58 = vpop.eup %11451 }
0x196c   :  { %v10600_v61 = vpack.c.bf16 %v11147_v53, %v11146_v4  ;;  %v4995_v9 = vpop.permute.xlu0 %4994  ;;  %v11454_v35 = vpop.eup %11453  ;;  %v4422_v55 = vmul.f32 %v11452_v58, %v13015_v23 }
0x196d   :  { %v11150_v40 = vpop.permute.xlu1 %11149  ;;  %10577 = vmatprep.subr.bf16.mxu0 %v10576_v54  ;;  %10014 = vmatprep.mubr.msk.f32.mxu1 %vm410_vm5, %v4995_v9  ;;  %v4423_v18 = vmul.f32 %v11454_v35, %v13017_v6 }
0x196e   :  { %v11152_v15 = vunpack.i.h.bf16 %v11150_v40  ;;  %v11151_v59 = vunpack.i.l.bf16 %v11150_v40  ;;  %v9980_v21 = vpop.f32.mrb[64].mxu1  ;;  %10602 = vmatprep.subr.msk.bf16.mxu1 %vm11974_vm6, %v10600_v61 }
0x196f   :  { %v4739_v57 = vadd.f32 %v12779_v10, %v9980_v21  ;;  %10579 = vmatpush3.bf16.msra.mxu0 %v10576_v54  ;;  %v4733_v20 = vpop.f32.mrb[65].mxu1  ;;  %10605 = vmatpush3.bf16.xpose.msk.msra.mxu1 %vm11974_vm6, %v10600_v61  ;;  %v11456_v50 = vpop.eup %11455 }
0x1970   :  { %v10606_v22 = vpack.c.bf16 %v11152_v15, %v11151_v59  ;;  %v4734_v0 = vadd.f32 %v12785_v32, %v4733_v20  ;;  %9962 = vmatprep.subr.mxu0 %v8834_v34  ;;  %v4424_v17 = vmul.f32 %v11456_v50, %v13023_v63  ;;  %v4999_v33 = vpop.permute.xlu0 %4998 }
0x1971   :  { %v4755_v44 = vsel %vm516_vm7, %v4739_v57, -inf  ;;  %v4997_v38 = vpop.permute.xlu1 %4996 }
0x1972   :  { %v9983_v19 = vpop.f32.mrb[66].mxu1  ;;  %4756 = vmax.xlane.f32.xlu1 %v4755_v44  ;;  %9957 = vmatmul.mubr.msk.f32.vlgmr.msra.gmra.mrb[56].mxu0 %vm516_vm7, %v4422_v55  ;;  %v4752_v27 = vsel %vm516_vm7, %v4734_v0, -inf }
0x1973   :  { %10608 = vmatprep.subr.msk.bf16.mxu1 %vm11974_vm6, %v10606_v22  ;;  %v4743_v3 = vpop.f32.mrb[67].mxu1  ;;  %4753 = vmax.xlane.f32.xlu0 %v4752_v27  ;;  %v4749_v39 = vadd.f32 %v12794_v13, %v9983_v19 }
0x1974   :  { %v4744_v23 = vadd.f32 %v12805_v43, %v4743_v3  ;;  %9959 = vmatprep.mubr.msk.f32.mxu0 %vm516_vm7, %v4423_v18  ;;  %9963 = vmatpush3.msra.mxu0 %v8834_v34 }
0x1975   :  { %10593 = vmatprep.subr.bf16.mxu0 %v12710_v31  ;;  %v4761_v1 = vsel %vm516_vm7, %v4749_v39, -inf  ;;  %v5001_v63 = vpop.permute.xlu1 %5000 }
0x1976   :  { %9960 = vmatmul.mubr.msk.f32.gmra.mrb[58].mxu0 %vm516_vm7, %v4424_v17  ;;  %v4758_v6 = vsel %vm516_vm7, %v4744_v23, -inf }
0x1977   :  { %10611 = vmatpush3.bf16.xpose.msk.msra.mxu1 %vm11974_vm6, %v10606_v22  ;;  %4759 = vmax.xlane.f32.xlu0 %v4758_v6 }
0x197b   :  { %4762 = vmax.xlane.f32.xlu0 %v4761_v1 }
0x197e   :  { %10015 = vmatmul.mubr.msk.f32.vlgmr.msra.gmra.mrb[68].mxu1 %vm410_vm5, %v4997_v38 }
0x197f   :  { %10017 = vmatprep.mubr.msk.f32.mxu1 %vm410_vm5, %v4999_v33 }
0x1982   :  { %10018 = vmatmul.mubr.msk.f32.gmra.mrb[70].mxu1 %vm410_vm5, %v5001_v63 }
0x1983   :  { %5551 = vmatprep.mubr.f32.mxu1 %v11659_v25 }
0x19ff   :  { %v4757_v41 = vpop.xlane.xlu1 %4756 }
0x1a00   :  { %v4765_v56 = vsub.f32 %v4739_v57, %v4757_v41  ;;  %v4754_v2 = vpop.xlane.xlu0 %4753 }
0x1a01   :  { %v4764_v60 = vsub.f32 %v4734_v0, %v4754_v2 }
0x1a02   :  { %v4770_v51 = vmul.f32 1.442695, %v4765_v56 }
0x1a03   :  { %v4768_v37 = vmul.f32 1.442695, %v4764_v60 }
0x1a04   :  { %11457 = vpow2.f32 %v4770_v51  ;;  %v4760_v24 = vpop.xlane.xlu0 %4759 }
0x1a05   :  { %11459 = vpow2.f32 %v4768_v37  ;;  %v4766_v45 = vsub.f32 %v4744_v23, %v4760_v24 }
0x1a07   :  { %v4772_v11 = vmul.f32 1.442695, %v4766_v45 }
0x1a08   :  { %v4763_v46 = vpop.xlane.xlu0 %4762 }
0x1a09   :  { %11461 = vpow2.f32 %v4772_v11  ;;  %v4767_v42 = vsub.f32 %v4749_v39, %v4763_v46 }
0x1a0b   :  { %v4774_v52 = vmul.f32 1.442695, %v4767_v42 }
0x1a0d   :  { %11463 = vpow2.f32 %v4774_v52 }
0x1a0e   :  { %v11458_v53 = vpop.eup %11457 }
0x1a0f   :  { %v11460_v4 = vpop.eup %11459  ;;  %v4779_v54 = vsel %vm516_vm7, %v11458_v53, 0.0 }
0x1a10   :  { %4780 = vadd.xlane.f32.xlu0 %v4779_v54  ;;  %v4776_v61 = vsel %vm516_vm7, %v11460_v4, 0.0 }
0x1a11   :  { %4777 = vadd.xlane.f32.xlu1 %v4776_v61 }
0x1a13   :  { %v11462_v9 = vpop.eup %11461 }
0x1a14   :  { %v4782_v58 = vsel %vm516_vm7, %v11462_v9, 0.0 }
0x1a15   :  { %4783 = vadd.xlane.f32.xlu1 %v4782_v58 }
0x1a17   :  { %v11464_v40 = vpop.eup %11463 }
0x1a18   :  { %v4785_v34 = vsel %vm516_vm7, %v11464_v40, 0.0 }
0x1a19   :  { %4786 = vadd.xlane.f32.xlu0 %v4785_v34  ;;  %v8835_v34 = vld [vmem:[%s14101_s7 + $0x50] sm:$0xff] }
0x1a45   :  { %v9958_v15 = vpop.f32.mrb[56].mxu0 }
0x1a46   :  { %v4515_v59 = vpop.f32.mrb[57].mxu0 }
0x1a47   :  { %9964 = vmatprep.mubr.msk.f32.mxu0 %vm410_vm5, %v4515_v59 }
0x1a48   :  { %9965 = vmatmul.mubr.msk.f32.vlgmr.msra.gmra.mrb[48].mxu0 %vm410_vm5, %v9958_v15 }
0x1a49   :  { %10595 = vmatpush3.bf16.msra.mxu0 %v12710_v31  ;;  %v9961_v21 = vpop.f32.mrb[58].mxu0 }
0x1a4a   :  { %10597 = vmatprep.subr.bf16.mxu0 %v12726_v28  ;;  %v4525_v35 = vpop.f32.mrb[59].mxu0 }
0x1a4b   :  { %9967 = vmatprep.mubr.msk.f32.mxu0 %vm410_vm5, %v4525_v35 }
0x1a4c   :  { %9968 = vmatmul.mubr.msk.f32.gmra.mrb[50].mxu0 %vm410_vm5, %v9961_v21 }
0x1a4d   :  { %10599 = vmatpush3.bf16.msra.mxu0 %v12726_v28 }
0x1a4e   :  { %9998 = vmatprep.subr.mxu0 %v8835_v34 }
0x1a51   :  { %v10016_v57 = vpop.f32.mrb[68].mxu1 }
0x1a52   :  { %v5098_v20 = vadd.f32 %v12779_v10, %v10016_v57  ;;  %v5092_v55 = vpop.f32.mrb[69].mxu1 }
0x1a53   :  { %v5093_v22 = vadd.f32 %v12785_v32, %v5092_v55 }
0x1a54   :  { %v5114_v0 = vsel %vm516_vm7, %v5098_v20, -inf }
0x1a55   :  { %v10019_v50 = vpop.f32.mrb[70].mxu1  ;;  %5115 = vmax.xlane.f32.xlu0 %v5114_v0  ;;  %v5111_v31 = vsel %vm516_vm7, %v5093_v22, -inf }
0x1a56   :  { %v5108_v44 = vadd.f32 %v12794_v13, %v10019_v50  ;;  %v5102_v19 = vpop.f32.mrb[71].mxu1  ;;  %5112 = vmax.xlane.f32.xlu1 %v5111_v31 }
0x1a57   :  { %v5103_v27 = vadd.f32 %v12805_v43, %v5102_v19 }
0x1a58   :  { %v5120_v28 = vsel %vm516_vm7, %v5108_v44, -inf }
0x1a59   :  { %5121 = vmax.xlane.f32.xlu0 %v5120_v28  ;;  %v5117_v10 = vsel %vm516_vm7, %v5103_v27, -inf }
0x1a5a   :  { %5118 = vmax.xlane.f32.xlu1 %v5117_v10 }
0x1a9d   :  { %v4781_v18 = vpop.xlane.xlu0 %4780 }
0x1a9e   :  { %11465 = vrcp.f32 %v4781_v18  ;;  %v4778_v32 = vpop.xlane.xlu1 %4777 }
0x1a9f   :  { %11467 = vrcp.f32 %v4778_v32 }
0x1aa2   :  { %v4784_v3 = vpop.xlane.xlu1 %4783 }
0x1aa3   :  { %11469 = vrcp.f32 %v4784_v3 }
0x1aa6   :  { %v4787_v23 = vpop.xlane.xlu0 %4786 }
0x1aa7   :  { %11471 = vrcp.f32 %v4787_v23 }
0x1aa8   :  { %v11466_v17 = vpop.eup %11465 }
0x1aa9   :  { %v11468_v13 = vpop.eup %11467  ;;  %v4793_v6 = vmul.f32 %v11466_v17, %v11458_v53 }
0x1aaa   :  { %v4792_v39 = vmul.f32 %v11468_v13, %v11460_v4 }
0x1aac   :  { %9992 = vmatprep.mubr.msk.f32.mxu0 %vm516_vm7, %v4792_v39 }
0x1aad   :  { %v11470_v43 = vpop.eup %11469  ;;  %9993 = vmatmul.mubr.msk.f32.vlgmr.msra.gmra.mrb[60].mxu0 %vm516_vm7, %v4793_v6 }
0x1aae   :  { %v4794_v1 = vmul.f32 %v11470_v43, %v11462_v9  ;;  %9999 = vmatpush3.msra.mxu0 %v8835_v34 }
0x1ab0   :  { %9995 = vmatprep.mubr.msk.f32.mxu0 %vm516_vm7, %v4794_v1 }
0x1ab1   :  { %v11472_v38 = vpop.eup %11471 }
0x1ab2   :  { %v4795_v33 = vmul.f32 %v11472_v38, %v11464_v40 }
0x1ab4   :  { %9996 = vmatmul.mubr.msk.f32.gmra.mrb[62].mxu0 %vm516_vm7, %v4795_v33 }
0x1ae2   :  { %v5116_v63 = vpop.xlane.xlu0 %5115 }
0x1ae3   :  { %v5124_v41 = vsub.f32 %v5098_v20, %v5116_v63  ;;  %v5113_v56 = vpop.xlane.xlu1 %5112 }
0x1ae4   :  { %v5123_v2 = vsub.f32 %v5093_v22, %v5113_v56 }
0x1ae5   :  { %v5129_v60 = vmul.f32 1.442695, %v5124_v41 }
0x1ae6   :  { %v5127_v51 = vmul.f32 1.442695, %v5123_v2  ;;  %v5122_v37 = vpop.xlane.xlu0 %5121 }
0x1ae7   :  { %11473 = vpow2.f32 %v5129_v60  ;;  %v5126_v24 = vsub.f32 %v5108_v44, %v5122_v37  ;;  %v5119_v45 = vpop.xlane.xlu1 %5118 }
0x1ae8   :  { %11475 = vpow2.f32 %v5127_v51  ;;  %v5125_v11 = vsub.f32 %v5103_v27, %v5119_v45  ;;  %v8836_v27 = vld [vmem:[%s14101_s7 + $0x58] sm:$0xff] }
0x1ae9   :  { %v5133_v46 = vmul.f32 1.442695, %v5126_v24 }
0x1aea   :  { %v5131_v42 = vmul.f32 1.442695, %v5125_v11 }
0x1aeb   :  { %11477 = vpow2.f32 %v5133_v46 }
0x1aec   :  { %11479 = vpow2.f32 %v5131_v42 }
0x1af1   :  { %v11474_v52 = vpop.eup %11473 }
0x1af2   :  { %v11476_v53 = vpop.eup %11475  ;;  %v5138_v4 = vsel %vm516_vm7, %v11474_v52, 0.0 }
0x1af3   :  { %5139 = vadd.xlane.f32.xlu0 %v5138_v4  ;;  %v5135_v54 = vsel %vm516_vm7, %v11476_v53, 0.0 }
0x1af4   :  { %5136 = vadd.xlane.f32.xlu1 %v5135_v54 }
0x1af5   :  { %v11478_v61 = vpop.eup %11477 }
0x1af6   :  { %v11480_v9 = vpop.eup %11479  ;;  %v5144_v58 = vsel %vm516_vm7, %v11478_v61, 0.0 }
0x1af7   :  { %5145 = vadd.xlane.f32.xlu0 %v5144_v58  ;;  %v5141_v40 = vsel %vm516_vm7, %v11480_v9, 0.0 }
0x1af8   :  { %5142 = vadd.xlane.f32.xlu1 %v5141_v40 }
0x1b09   :  { %11154 = vrot.lane.b32.xlu1 %v11153_v26, %s14140_s28 }
0x1b0d   :  { %11159 = vrot.lane.b32.xlu0 %v11158_v14, %s14140_s28 }
0x1b80   :  { %v5140_v15 = vpop.xlane.xlu0 %5139  ;;  %v9994_v59 = vpop.f32.mrb[60].mxu0 }
0x1b81   :  { %v5137_v21 = vpop.xlane.xlu1 %5136  ;;  %v4874_v35 = vpop.f32.mrb[61].mxu0 }
0x1b82   :  { %11481 = vrcp.f32 %v5137_v21  ;;  %10000 = vmatprep.mubr.msk.f32.mxu0 %vm410_vm5, %v4874_v35  ;;  %v8938_v21 = vld [vmem:[%s14104_s10 + $0x68] sm:$0xff]  ;;  %v8940_v35 = vld [vmem:[%s14104_s10 + $0x78] sm:$0xff] }
0x1b83   :  { %10001 = vmatmul.mubr.msk.f32.vlgmr.msra.gmra.mrb[48].mxu0 %vm410_vm5, %v9994_v59  ;;  %11483 = vrcp.f32 %v5140_v15 }
0x1b84   :  { %v5146_v57 = vpop.xlane.xlu0 %5145 }
0x1b85   :  { %v5143_v20 = vpop.xlane.xlu1 %5142 }
0x1b86   :  { %11485 = vrcp.f32 %v5143_v20  ;;  %v8937_v20 = vld [vmem:[%s14104_s10 + $0x60] sm:$0xff] }
0x1b87   :  { %v9997_v55 = vpop.f32.mrb[62].mxu0  ;;  %11487 = vrcp.f32 %v5146_v57  ;;  %v10620_v57 = vpack.c.bf16 %v8940_v35, %v8938_v21 }
0x1b88   :  { %v11160_v48 = vpop.permute.xlu0 %11159  ;;  %v4884_v29 = vpop.f32.mrb[63].mxu0 }
0x1b89   :  { %v11155_v26 = vpop.permute.xlu1 %11154  ;;  %10003 = vmatprep.mubr.msk.f32.mxu0 %vm410_vm5, %v4884_v29  ;;  %v11162_v49 = vunpack.i.h.bf16 %v11160_v48  ;;  %v11161_v36 = vunpack.i.l.bf16 %v11160_v48  ;;  %10621 = vmatprep.subr.bf16.mxu1 %v10620_v57  ;;  %v8942_v29 = vld [vmem:[%s14104_s10 + $0x88] sm:$0xff] }
0x1b8a   :  { %v11157_v14 = vunpack.i.h.bf16 %v11155_v26  ;;  %v11156_v22 = vunpack.i.l.bf16 %v11155_v26  ;;  %10004 = vmatmul.mubr.msk.f32.gmra.mrb[50].mxu0 %vm410_vm5, %v9997_v55  ;;  %v8939_v55 = vld [vmem:[%s14104_s10 + $0x70] sm:$0xff]  ;;  %v8944_v26 = vld [vmem:[%s14104_s10 + $0x98] sm:$0xff] }
0x1b8b   :  { %v10616_v44 = vpack.c.bf16 %v11162_v49, %v11161_v36  ;;  %v10622_v48 = vpack.c.bf16 %v8939_v55, %v8937_v20  ;;  %v10624_v49 = vpack.c.bf16 %v8944_v26, %v8942_v29  ;;  %v8941_v36 = vld [vmem:[%s14104_s10 + $0x80] sm:$0xff] }
0x1b8c   :  { %v11482_v0 = vpop.eup %11481  ;;  %v10612_v50 = vpack.c.bf16 %v11157_v14, %v11156_v22  ;;  %v8943_v14 = vld [vmem:[%s14104_s10 + $0x90] sm:$0xff] }
0x1b8d   :  { %v5151_v31 = vmul.f32 %v11482_v0, %v11476_v53  ;;  %v11484_v19 = vpop.eup %11483  ;;  %10623 = vmatpush1.bf16.msra.mxu1 %v10622_v48  ;;  %v10626_v22 = vpack.c.bf16 %v8943_v14, %v8941_v36  ;;  %v8946_v0 = vld [vmem:[%s14104_s10 + $0xa8] sm:$0xff] }
0x1b8e   :  { %10613 = vmatprep.subr.bf16.mxu0 %v10612_v50  ;;  %v5152_v10 = vmul.f32 %v11484_v19, %v11474_v52  ;;  %10625 = vmatprep.subr.bf16.mxu1 %v10624_v49  ;;  %v8947_v19 = vld [vmem:[%s14104_s10 + $0xb0] sm:$0xff] }
0x1b8f   :  { %10615 = vmatpush3.bf16.msra.mxu0 %v10612_v50  ;;  %10028 = vmatprep.mubr.msk.f32.mxu0 %vm516_vm7, %v5151_v31  ;;  %v8948_v50 = vld [vmem:[%s14104_s10 + $0xb8] sm:$0xff] }
0x1b90   :  { %10617 = vmatprep.subr.bf16.mxu0 %v10616_v44  ;;  %v11486_v28 = vpop.eup %11485  ;;  %v10628_v31 = vpack.c.bf16 %v8948_v50, %v8946_v0 }
0x1b91   :  { %v11488_v18 = vpop.eup %11487  ;;  %v5153_v32 = vmul.f32 %v11486_v28, %v11480_v9  ;;  %10627 = vmatpush1.bf16.msra.mxu1 %v10626_v22  ;;  %v8954_v28 = vld [vmem:[%s14106_s12 + $0xc0] sm:$0xff] }
0x1b92   :  { %v5154_v3 = vmul.f32 %v11488_v18, %v11478_v61  ;;  %10629 = vmatprep.subr.bf16.mxu1 %v10628_v31  ;;  %v8956_v18 = vld [vmem:[%s14106_s12 + $0xd0] sm:$0xff]  ;;  %v8935_v22 = vld [vmem:[%s14102_s8 + $0x1] ss:$0 sm:$0xff] }
0x1b93   :  { %10619 = vmatpush3.bf16.msra.mxu0 %v10616_v44  ;;  %v8945_v44 = vld [vmem:[%s14104_s10 + $0xa0] sm:$0xff] }
0x1b94   :  { %10034 = vmatprep.subr.mxu0 %v8836_v27  ;;  %v8936_v31 = vld [vmem:[%s14103_s9 + $0x1] ss:$0 sm:$0xff] }
0x1b96   :  { %10029 = vmatmul.mubr.msk.f32.vlgmr.msra.gmra.mrb[64].mxu0 %vm516_vm7, %v5152_v10  ;;  %v8955_v10 = vld [vmem:[%s14106_s12 + $0xc8] sm:$0xff] }
0x1b97   :  { %10031 = vmatprep.mubr.msk.f32.mxu0 %vm516_vm7, %v5153_v32  ;;  %10035 = vmatpush3.msra.mxu0 %v8836_v27  ;;  %v10630_v27 = vpack.c.bf16 %v8947_v19, %v8945_v44  ;;  %v10633_v32 = vpack.c.bf16 %v8955_v10, %v8954_v28 }
0x1b98   :  { %10632 = vmatprep.subr.bf16.mxu0 %v11675_v5 }
0x1b99   :  { %10631 = vmatpush1.bf16.msra.mxu1 %v10630_v27 }
0x1b9a   :  { %10032 = vmatmul.mubr.msk.f32.gmra.mrb[66].mxu0 %vm516_vm7, %v5154_v3  ;;  %v8957_v3 = vld [vmem:[%s14106_s12 + $0xd8] sm:$0xff] }
0x1c69   :  { %v10030_v23 = vpop.f32.mrb[64].mxu0 }
0x1c6a   :  { %v5249_v17 = vpop.f32.mrb[65].mxu0 }
0x1c6b   :  { %10036 = vmatprep.mubr.msk.f32.mxu0 %vm410_vm5, %v5249_v17  ;;  %v8958_v17 = vld [vmem:[%s14106_s12 + $0xe0] sm:$0xff] }
0x1c6c   :  { %10037 = vmatmul.mubr.msk.f32.vlgmr.msra.gmra.mrb[48].mxu0 %vm410_vm5, %v10030_v23  ;;  %v10636_v23 = vpack.c.bf16 %v8957_v3, %v8956_v18 }
0x1c6d   :  { %v10033_v13 = vpop.f32.mrb[66].mxu0  ;;  %10634 = vmatpush1.bf16.msra.mxu0 %v10633_v32 }
0x1c6e   :  { %v5259_v39 = vpop.f32.mrb[67].mxu0  ;;  %10635 = vmatprep.subr.bf16.mxu0 %v11675_v5 }
0x1c6f   :  { %10039 = vmatprep.mubr.msk.f32.mxu0 %vm410_vm5, %v5259_v39 }
0x1c70   :  { %10040 = vmatmul.mubr.msk.f32.gmra.mrb[50].mxu0 %vm410_vm5, %v10033_v13  ;;  %v8959_v13 = vld [vmem:[%s14106_s12 + $0xe8] sm:$0xff] }
0x1c71   :  { %10637 = vmatpush1.bf16.msra.mxu0 %v10636_v23  ;;  %v10639_v39 = vpack.c.bf16 %v8959_v13, %v8958_v17  ;;  %v8974_v17 = vld [vmem:[%s14106_s12 + $0x160] sm:$0xff] }
0x1c72   :  { %10638 = vmatprep.subr.bf16.mxu0 %v11675_v5 }
0x1c75   :  { %10640 = vmatpush1.bf16.msra.mxu0 %v10639_v39  ;;  %v8976_v39 = vld [vmem:[%s14106_s12 + $0x170] sm:$0xff] }
0x1c76   :  { %10641 = vmatprep.subr.bf16.mxu0 %v11675_v5 }
0x1d3f   :  { %v10038_v6 = vpop.f32.mrb[48].mxu0 }
0x1d40   :  { %v13137_v43 = vadd.f32 %v10038_v6, %v12605_v8  ;;  %v5346_v1 = vpop.f32.mrb[49].mxu0  ;;  %v8960_v6 = vld [vmem:[%s14106_s12 + $0xf0] sm:$0xff] }
0x1d41   :  { %v13140_v38 = vadd.f32 %v5346_v1, %v12600_v7  ;;  %v8961_v1 = vld [vmem:[%s14106_s12 + $0xf8] sm:$0xff] }
0x1d42   :  { %v5380_v33 = vsel %vm201_vm4, %v13137_v43, 0.0 }
0x1d43   :  { %5381 = vadd.xlane.f32.xlu0 %v5380_v33  ;;  %v10041_v63 = vpop.f32.mrb[50].mxu0  ;;  %v5377_v41 = vsel %vm201_vm4, %v13140_v38, 0.0  ;;  %v10642_v33 = vpack.c.bf16 %v8961_v1, %v8960_v6  ;;  %v8977_v6 = vld [vmem:[%s14106_s12 + $0x178] sm:$0xff] }
0x1d44   :  { %v13147_v56 = vadd.f32 %v10041_v63, %v12615_v12  ;;  %5378 = vadd.xlane.f32.xlu1 %v5377_v41  ;;  %v5356_v2 = vpop.f32.mrb[51].mxu0  ;;  %v8962_v63 = vld [vmem:[%s14106_s12 + $0x100] sm:$0xff]  ;;  %v8963_v41 = vld [vmem:[%s14106_s12 + $0x108] sm:$0xff]  ;;  %v10666_v1 = vpack.c.bf16 %v8977_v6, %v8976_v39 }
0x1d45   :  { %v13150_v8 = vadd.f32 %v5356_v2, %v12610_v47  ;;  %10643 = vmatpush1.bf16.msra.mxu0 %v10642_v33  ;;  %v10645_v2 = vpack.c.bf16 %v8963_v41, %v8962_v63  ;;  %v8949_v33 = vld [vmem:[%s14105_s11 + $0x2] sm:$0x3] }
0x1d46   :  { %v5386_v7 = vsel %vm201_vm4, %v13147_v56, 0.0  ;;  %10644 = vmatprep.subr.bf16.mxu0 %v11675_v5  ;;  %v5468_v63 = vrot.slane %v8949_v33, %v12583_v62  ;;  %v5472_v41 = vrot.slane %v8949_v33, %v12588_v30 }
0x1d47   :  { %5387 = vadd.xlane.f32.xlu0 %v5386_v7  ;;  %v5383_v60 = vsel %vm201_vm4, %v13150_v8, 0.0  ;;  %v8964_v7 = vld [vmem:[%s14106_s12 + $0x110] sm:$0xff] }
0x1d48   :  { %5384 = vadd.xlane.f32.xlu1 %v5383_v60  ;;  %v8965_v60 = vld [vmem:[%s14106_s12 + $0x118] sm:$0xff] }
0x1d49   :  { %10646 = vmatpush1.bf16.msra.mxu0 %v10645_v2 }
0x1d4a   :  { %10647 = vmatprep.subr.bf16.mxu0 %v11675_v5 }
0x1dd0   :  { %v5382_v51 = vpop.xlane.xlu0 %5381 }
0x1dd1   :  { %v5390_v37 = vmul.f32 0.020833334, %v5382_v51  ;;  %v5379_v24 = vpop.xlane.xlu1 %5378  ;;  %v10648_v51 = vpack.c.bf16 %v8965_v60, %v8964_v7 }
0x1dd2   :  { %v5389_v45 = vmul.f32 0.020833334, %v5379_v24  ;;  %v8967_v24 = vld [vmem:[%s14106_s12 + $0x128] sm:$0xff] }
0x1dd3   :  { %v13157_v12 = vsub.f32 %v13137_v43, %v5390_v37  ;;  %v8966_v37 = vld [vmem:[%s14106_s12 + $0x120] sm:$0xff]  ;;  %10649 = vmatpush1.bf16.msra.mxu0 %v10648_v51 }
0x1dd4   :  { %v13160_v11 = vsub.f32 %v13140_v38, %v5389_v45  ;;  %v5388_v47 = vpop.xlane.xlu0 %5387  ;;  %v10651_v45 = vpack.c.bf16 %v8967_v24, %v8966_v37  ;;  %10650 = vmatprep.subr.bf16.mxu0 %v11675_v5 }
0x1dd5   :  { %v5392_v46 = vmul.f32 0.020833334, %v5388_v47  ;;  %v5385_v42 = vpop.xlane.xlu1 %5384  ;;  %v5398_v52 = vmul.f32 %v13157_v12, %v13157_v12  ;;  %v8968_v47 = vld [vmem:[%s14106_s12 + $0x130] sm:$0xff] }
0x1dd6   :  { %v5391_v53 = vmul.f32 0.020833334, %v5385_v42  ;;  %v5397_v4 = vmul.f32 %v13160_v11, %v13160_v11 }
0x1dd7   :  { %v13167_v54 = vsub.f32 %v13147_v56, %v5392_v46  ;;  %v5404_v61 = vsel %vm201_vm4, %v5398_v52, 0.0  ;;  %v8969_v46 = vld [vmem:[%s14106_s12 + $0x138] sm:$0xff]  ;;  %10652 = vmatpush1.bf16.msra.mxu0 %v10651_v45  ;;  %v8970_v52 = vld [vmem:[%s14106_s12 + $0x140] sm:$0xff] }
0x1dd8   :  { %v13171_v9 = vsub.f32 %v13150_v8, %v5391_v53  ;;  %5405 = vadd.xlane.f32.xlu0 %v5404_v61  ;;  %v5401_v58 = vsel %vm201_vm4, %v5397_v4, 0.0  ;;  %v10654_v42 = vpack.c.bf16 %v8969_v46, %v8968_v47  ;;  %10653 = vmatprep.subr.bf16.mxu0 %v11675_v5  ;;  %v8971_v53 = vld [vmem:[%s14106_s12 + $0x148] sm:$0xff]  ;;  %v8972_v61 = vld [vmem:[%s14106_s12 + $0x150] sm:$0xff] }
0x1dd9   :  { %5402 = vadd.xlane.f32.xlu1 %v5401_v58  ;;  %v5400_v40 = vmul.f32 %v13167_v54, %v13167_v54  ;;  %v10657_v4 = vpack.c.bf16 %v8971_v53, %v8970_v52  ;;  %v8973_v58 = vld [vmem:[%s14106_s12 + $0x158] sm:$0xff] }
0x1dda   :  { %v5399_v34 = vmul.f32 %v13171_v9, %v13171_v9 }
0x1ddb   :  { %v5410_v15 = vsel %vm201_vm4, %v5400_v40, 0.0  ;;  %10655 = vmatpush1.bf16.msra.mxu0 %v10654_v42  ;;  %v10660_v40 = vpack.c.bf16 %v8973_v58, %v8972_v61 }
0x1ddc   :  { %5411 = vadd.xlane.f32.xlu0 %v5410_v15  ;;  %v5407_v59 = vsel %vm201_vm4, %v5399_v34, 0.0  ;;  %10656 = vmatprep.subr.bf16.mxu0 %v11675_v5 }
0x1ddd   :  { %5408 = vadd.xlane.f32.xlu1 %v5407_v59 }
0x1ddf   :  { %10658 = vmatpush1.bf16.msra.mxu0 %v10657_v4 }
0x1de0   :  { %10659 = vmatprep.subr.bf16.mxu0 %v11675_v5 }
0x1de3   :  { %10661 = vmatpush1.bf16.msra.mxu0 %v10660_v40 }
0x1de4   :  { %10662 = vmatprep.subr.bf16.mxu0 %v11675_v5 }
0x1e65   :  { %v5406_v34 = vpop.xlane.xlu0 %5405 }
0x1e66   :  { %v5414_v15 = vmul.f32 0.020833334, %v5406_v34  ;;  %v5403_v59 = vpop.xlane.xlu1 %5402 }
0x1e67   :  { %v5413_v21 = vmul.f32 0.020833334, %v5403_v59 }
0x1e68   :  { %v5418_v35 = vadd.f32 1e-05, %v5414_v15 }
0x1e69   :  { %v5417_v57 = vadd.f32 1e-05, %v5413_v21  ;;  %v5412_v20 = vpop.xlane.xlu0 %5411 }
0x1e6a   :  { %11489 = vrsqrt.f32 %v5418_v35  ;;  %v5416_v55 = vmul.f32 0.020833334, %v5412_v20  ;;  %v5409_v48 = vpop.xlane.xlu1 %5408 }
0x1e6b   :  { %11491 = vrsqrt.f32 %v5417_v57  ;;  %v5415_v29 = vmul.f32 0.020833334, %v5409_v48 }
0x1e6c   :  { %v5420_v26 = vadd.f32 1e-05, %v5416_v55 }
0x1e6d   :  { %v5419_v49 = vadd.f32 1e-05, %v5415_v29  ;;  %v8983_v29 = vld [vmem:[%s14107_s13 + $0x1] ss:$0 sm:$0xff] }
0x1e6f   :  { %11493 = vrsqrt.f32 %v5419_v49 }
0x1e70   :  { %11495 = vrsqrt.f32 %v5420_v26 }
0x1e74   :  { %v11490_v36 = vpop.eup %11489 }
0x1e75   :  { %v11492_v14 = vpop.eup %11491  ;;  %v5426_v50 = vmul.f32 %v11490_v36, %v13157_v12 }
0x1e76   :  { %v5425_v0 = vmul.f32 %v11492_v14, %v13160_v11 }
0x1e77   :  { %v5436_v28 = vmul.f32 %v8935_v22, %v5426_v50 }
0x1e78   :  { %v5435_v44 = vmul.f32 %v8935_v22, %v5425_v0 }
0x1e79   :  { %v11494_v19 = vpop.eup %11493  ;;  %v5446_v32 = vadd.f32 %v8936_v31, %v5436_v28 }
0x1e7a   :  { %v5445_v27 = vadd.f32 %v8936_v31, %v5435_v44  ;;  %v5427_v10 = vmul.f32 %v11494_v19, %v13171_v9  ;;  %v11496_v18 = vpop.eup %11495 }
0x1e7b   :  { %v5428_v11 = vmul.f32 %v11496_v18, %v13167_v54  ;;  %v8975_v54 = vld [vmem:[%s14106_s12 + $0x168] sm:$0xff] }
0x1e7c   :  { %8950 = vmatmul.mubr.msk.f32.vlgmr.msra.gmra.mrb[72].mxu1 %vm201_vm4, %v5445_v27  ;;  %v5437_v3 = vmul.f32 %v8935_v22, %v5427_v10  ;;  %v10663_v13 = vpack.c.bf16 %v8975_v54, %v8974_v17 }
0x1e7d   :  { %5557 = vmatprep.mubr.f32.mxu1 %v11659_v25  ;;  %v5438_v23 = vmul.f32 %v8935_v22, %v5428_v11 }
0x1e7e   :  { %v5447_v12 = vadd.f32 %v8936_v31, %v5437_v3  ;;  %10664 = vmatpush1.bf16.msra.mxu0 %v10663_v13 }
0x1e7f   :  { %v5448_v9 = vadd.f32 %v8936_v31, %v5438_v23  ;;  %10665 = vmatprep.subr.bf16.mxu0 %v11675_v5 }
0x1e80   :  { %8951 = vmatmul.mubr.msk.f32.gmra.mrb[74].mxu1 %vm201_vm4, %v5446_v32 }
0x1e81   :  { %5563 = vmatprep.mubr.f32.mxu1 %v11659_v25 }
0x1e82   :  { %10667 = vmatpush1.bf16.msra.mxu0 %v10666_v1 }
0x1e84   :  { %8952 = vmatmul.mubr.msk.f32.gmra.mrb[76].mxu1 %vm201_vm4, %v5447_v12 }
0x1e85   :  { %5569 = vmatprep.mubr.f32.mxu1 %v11659_v25 }
0x1e88   :  { %8953 = vmatmul.mubr.msk.f32.gmra.mrb[78].mxu1 %vm201_vm4, %v5448_v9 }
0x1e89   :  { %5887 = vmatprep.mubr.f32.mxu1 %v11659_v25 }
0x1f4f   :  { %v5553_v2 = vpop.f32.mrb[72].mxu1 }
0x1f50   :  { %v5554_v7 = vadd.f32 %v5553_v2, %v5468_v63  ;;  %v5555_v60 = vpop.f32.mrb[73].mxu1 }
0x1f51   :  { %v5556_v51 = vadd.f32 %v5555_v60, %v5472_v41 }
0x1f52   :  { %v5576_v45 = vmax.f32 %v5554_v7, 0.0 }
0x1f53   :  { %v5577_v37 = vmax.f32 %v5556_v51, 0.0  ;;  %v5559_v24 = vpop.f32.mrb[74].mxu1 }
0x1f54   :  { %v5560_v47 = vadd.f32 %v5559_v24, %v5468_v63  ;;  %v5561_v46 = vpop.f32.mrb[75].mxu1 }
0x1f55   :  { %v5562_v42 = vadd.f32 %v5561_v46, %v5472_v41  ;;  %8978 = vmatprep.mubr.msk.f32.mxu0 %vm2845_vm8, %v5577_v37 }
0x1f56   :  { %5686 = vmatmul.mubr.f32.vlgmr.msra.gmra.mrb[68].mxu0 %v5576_v45  ;;  %v5578_v4 = vmax.f32 %v5560_v47, 0.0  ;;  %v8989_v45 = vld [vmem:[%s14100_s6 + $0xc8] sm:$0xff]  ;;  %v8991_v47 = vld [vmem:[%s14100_s6 + $0xd8] sm:$0xff] }
0x1f57   :  { %v5579_v52 = vmax.f32 %v5562_v42, 0.0  ;;  %v5565_v53 = vpop.f32.mrb[76].mxu1  ;;  %v10668_v46 = vpack.c.bf16 %v8991_v47, %v8989_v45  ;;  %v8988_v42 = vld [vmem:[%s14100_s6 + $0xc0] sm:$0xff] }
0x1f58   :  { %v5566_v61 = vadd.f32 %v5565_v53, %v5468_v63  ;;  %v5567_v58 = vpop.f32.mrb[77].mxu1 }
0x1f59   :  { %v5568_v40 = vadd.f32 %v5567_v58, %v5472_v41  ;;  %8979 = vmatprep.mubr.msk.f32.mxu0 %vm2845_vm8, %v5579_v52  ;;  %v8990_v52 = vld [vmem:[%s14100_s6 + $0xd0] sm:$0xff]  ;;  %10669 = vmatprep.subr.bf16.mxu1 %v10668_v46 }
0x1f5a   :  { %5691 = vmatmul.mubr.f32.gmra.mrb[70].mxu0 %v5578_v4  ;;  %v5580_v59 = vmax.f32 %v5566_v61, 0.0  ;;  %v10670_v53 = vpack.c.bf16 %v8990_v52, %v8988_v42  ;;  %v8993_v4 = vld [vmem:[%s14100_s6 + $0xe8] sm:$0xff]  ;;  %v8995_v61 = vld [vmem:[%s14100_s6 + $0xf8] sm:$0xff] }
0x1f5b   :  { %v5581_v34 = vmax.f32 %v5568_v40, 0.0  ;;  %v5571_v15 = vpop.f32.mrb[78].mxu1  ;;  %v10672_v58 = vpack.c.bf16 %v8995_v61, %v8993_v4  ;;  %v8992_v40 = vld [vmem:[%s14100_s6 + $0xe0] sm:$0xff] }
0x1f5c   :  { %v5572_v21 = vadd.f32 %v5571_v15, %v5468_v63  ;;  %v5573_v35 = vpop.f32.mrb[79].mxu1  ;;  %10671 = vmatpush1.bf16.msra.mxu1 %v10670_v53 }
0x1f5d   :  { %v5574_v57 = vadd.f32 %v5573_v35, %v5472_v41  ;;  %8980 = vmatprep.mubr.msk.f32.mxu0 %vm2845_vm8, %v5581_v34  ;;  %v8994_v34 = vld [vmem:[%s14100_s6 + $0xf0] sm:$0xff]  ;;  %10673 = vmatprep.subr.bf16.mxu1 %v10672_v58 }
0x1f5e   :  { %5696 = vmatmul.mubr.f32.gmra.mrb[72].mxu0 %v5580_v59  ;;  %v5582_v55 = vmax.f32 %v5572_v21, 0.0  ;;  %v10674_v15 = vpack.c.bf16 %v8994_v34, %v8992_v40  ;;  %v8997_v59 = vld [vmem:[%s14100_s6 + $0x108] sm:$0xff]  ;;  %v8999_v21 = vld [vmem:[%s14100_s6 + $0x118] sm:$0xff] }
0x1f5f   :  { %v5583_v20 = vmax.f32 %v5574_v57, 0.0  ;;  %v10676_v35 = vpack.c.bf16 %v8999_v21, %v8997_v59  ;;  %v8996_v57 = vld [vmem:[%s14100_s6 + $0x100] sm:$0xff] }
0x1f60   :  { %10675 = vmatpush1.bf16.msra.mxu1 %v10674_v15 }
0x1f61   :  { %8981 = vmatprep.mubr.msk.f32.mxu0 %vm2845_vm8, %v5583_v20  ;;  %v8998_v20 = vld [vmem:[%s14100_s6 + $0x110] sm:$0xff]  ;;  %10677 = vmatprep.subr.bf16.mxu1 %v10676_v35  ;;  %s14173_s6 = smov 72  }
0x1f62   :  { %5701 = vmatmul.mubr.f32.gmra.mrb[74].mxu0 %v5582_v55  ;;  %v10678_v55 = vpack.c.bf16 %v8998_v20, %v8996_v57 }
0x1f64   :  { %10679 = vmatpush1.bf16.msra.mxu1 %v10678_v55 }
0x2029   :  { %v5687_v48 = vpop.f32.mrb[68].mxu0 }
0x202a   :  { %v5706_v26 = vadd.f32 %v5687_v48, %v13140_v38  ;;  %v5689_v49 = vpop.f32.mrb[69].mxu0 }
0x202c   :  { %v13330_v36 = vadd.f32 %v8983_v29, %v5706_v26 }
0x202d   :  { %v5692_v14 = vpop.f32.mrb[70].mxu0 }
0x202e   :  { %v5707_v22 = vadd.f32 %v5692_v14, %v13137_v43  ;;  %v5694_v0 = vpop.f32.mrb[71].mxu0  ;;  %v5726_v50 = vsel %vm201_vm4, %v13330_v36, 0.0 }
0x202f   :  { %5727 = vadd.xlane.f32.xlu1 %v5726_v50 }
0x2030   :  { %v13335_v31 = vadd.f32 %v8983_v29, %v5707_v22 }
0x2031   :  { %v5697_v44 = vpop.f32.mrb[72].mxu0 }
0x2032   :  { %v5708_v19 = vadd.f32 %v5697_v44, %v13150_v8  ;;  %v5699_v27 = vpop.f32.mrb[73].mxu0  ;;  %v5729_v38 = vsel %vm201_vm4, %v13335_v31, 0.0 }
0x2033   :  { %5730 = vadd.xlane.f32.xlu0 %v5729_v38 }
0x2034   :  { %v13340_v28 = vadd.f32 %v8983_v29, %v5708_v19 }
0x2035   :  { %v5702_v10 = vpop.f32.mrb[74].mxu0 }
0x2036   :  { %v5709_v43 = vadd.f32 %v5702_v10, %v13147_v56  ;;  %v5704_v18 = vpop.f32.mrb[75].mxu0  ;;  %v5732_v32 = vsel %vm201_vm4, %v13340_v28, 0.0  ;;  %v8986_v10 = vld [vmem:[%s14098_s4 + $0x2] ss:$0 sm:$0xff]  ;;  %s14171_s4 = smov 80  }
0x2037   :  { %5733 = vadd.xlane.f32.xlu1 %v5732_v32  ;;  %v8987_v32 = vld [vmem:[%s14099_s5 + $0x2] ss:$0 sm:$0xff] }
0x2038   :  { %v13345_v3 = vadd.f32 %v8983_v29, %v5709_v43 }
0x203a   :  { %v5735_v8 = vsel %vm201_vm4, %v13345_v3, 0.0 }
0x203b   :  { %5736 = vadd.xlane.f32.xlu0 %v5735_v8 }
0x20bc   :  { %v5728_v11 = vpop.xlane.xlu1 %5727 }
0x20bd   :  { %v5738_v12 = vmul.f32 0.020833334, %v5728_v11 }
0x20bf   :  { %v13350_v23 = vsub.f32 %v13330_v36, %v5738_v12 }
0x20c0   :  { %v5731_v9 = vpop.xlane.xlu0 %5730 }
0x20c1   :  { %v5739_v17 = vmul.f32 0.020833334, %v5731_v9  ;;  %v5746_v56 = vmul.f32 %v13350_v23, %v13350_v23 }
0x20c3   :  { %v13355_v54 = vsub.f32 %v13335_v31, %v5739_v17  ;;  %v5750_v13 = vsel %vm201_vm4, %v5746_v56, 0.0 }
0x20c4   :  { %5751 = vadd.xlane.f32.xlu1 %v5750_v13  ;;  %v5734_v39 = vpop.xlane.xlu1 %5733 }
0x20c5   :  { %v5740_v6 = vmul.f32 0.020833334, %v5734_v39  ;;  %v5747_v1 = vmul.f32 %v13355_v54, %v13355_v54 }
0x20c7   :  { %v13361_v33 = vsub.f32 %v13340_v28, %v5740_v6  ;;  %v5753_v63 = vsel %vm201_vm4, %v5747_v1, 0.0 }
0x20c8   :  { %5754 = vadd.xlane.f32.xlu0 %v5753_v63  ;;  %v5737_v41 = vpop.xlane.xlu0 %5736 }
0x20c9   :  { %v5741_v2 = vmul.f32 0.020833334, %v5737_v41  ;;  %v5748_v7 = vmul.f32 %v13361_v33, %v13361_v33 }
0x20cb   :  { %v13367_v60 = vsub.f32 %v13345_v3, %v5741_v2  ;;  %v5756_v51 = vsel %vm201_vm4, %v5748_v7, 0.0 }
0x20cc   :  { %5757 = vadd.xlane.f32.xlu1 %v5756_v51 }
0x20cd   :  { %v5749_v37 = vmul.f32 %v13367_v60, %v13367_v60 }
0x20cf   :  { %v5759_v24 = vsel %vm201_vm4, %v5749_v37, 0.0 }
0x20d0   :  { %5760 = vadd.xlane.f32.xlu0 %v5759_v24 }
0x2151   :  { %v5752_v48 = vpop.xlane.xlu1 %5751 }
0x2152   :  { %v5762_v29 = vmul.f32 0.020833334, %v5752_v48 }
0x2154   :  { %v5766_v26 = vadd.f32 1e-05, %v5762_v29 }
0x2155   :  { %v5755_v49 = vpop.xlane.xlu0 %5754 }
0x2156   :  { %11497 = vrsqrt.f32 %v5766_v26  ;;  %v5763_v14 = vmul.f32 0.020833334, %v5755_v49  ;;  %v13481_v26 = vld [vmem:[%s14097_s3 + $0x8] sm:$0xff] }
0x2158   :  { %v5767_v22 = vadd.f32 1e-05, %v5763_v14 }
0x2159   :  { %v5758_v0 = vpop.xlane.xlu1 %5757 }
0x215a   :  { %11499 = vrsqrt.f32 %v5767_v22  ;;  %v5764_v50 = vmul.f32 0.020833334, %v5758_v0  ;;  %v13487_v22 = vld [vmem:[%s14097_s3] sm:$0xff] }
0x215c   :  { %v5768_v44 = vadd.f32 1e-05, %v5764_v50 }
0x215d   :  { %v5761_v19 = vpop.xlane.xlu0 %5760 }
0x215e   :  { %11501 = vrsqrt.f32 %v5768_v44  ;;  %v5765_v27 = vmul.f32 0.020833334, %v5761_v19 }
0x2160   :  { %v11498_v38 = vpop.eup %11497  ;;  %v5769_v43 = vadd.f32 1e-05, %v5765_v27  ;;  %v13495_v27 = vld [vmem:[%s14097_s3 + $0x18] sm:$0xff] }
0x2161   :  { %v5774_v18 = vmul.f32 %v11498_v38, %v13350_v23 }
0x2162   :  { %11503 = vrsqrt.f32 %v5769_v43 }
0x2163   :  { %v5784_v8 = vmul.f32 %v8986_v10, %v5774_v18  ;;  %v13504_v18 = vld [vmem:[%s14097_s3 + $0x10] sm:$0xff] }
0x2164   :  { %v11500_v11 = vpop.eup %11499 }
0x2165   :  { %v5794_v12 = vadd.f32 %v8987_v32, %v5784_v8  ;;  %v5775_v9 = vmul.f32 %v11500_v11, %v13355_v54 }
0x2167   :  { %9000 = vmatmul.mubr.msk.f32.vlgmr.msra.gmra.mrb[80].mxu1 %vm201_vm4, %v5794_v12  ;;  %v5785_v17 = vmul.f32 %v8986_v10, %v5775_v9 }
0x2168   :  { %v11502_v56 = vpop.eup %11501  ;;  %5893 = vmatprep.mubr.f32.mxu1 %v11659_v25 }
0x2169   :  { %v5795_v13 = vadd.f32 %v8987_v32, %v5785_v17  ;;  %v5776_v39 = vmul.f32 %v11502_v56, %v13361_v33 }
0x216b   :  { %9001 = vmatmul.mubr.msk.f32.gmra.mrb[82].mxu1 %vm201_vm4, %v5795_v13  ;;  %v5786_v23 = vmul.f32 %v8986_v10, %v5776_v39 }
0x216c   :  { %v11504_v6 = vpop.eup %11503  ;;  %5899 = vmatprep.mubr.f32.mxu1 %v11659_v25 }
0x216d   :  { %v5796_v1 = vadd.f32 %v8987_v32, %v5786_v23  ;;  %v5777_v63 = vmul.f32 %v11504_v6, %v13367_v60 }
0x216f   :  { %9002 = vmatmul.mubr.msk.f32.gmra.mrb[84].mxu1 %vm201_vm4, %v5796_v1  ;;  %v5787_v54 = vmul.f32 %v8986_v10, %v5777_v63 }
0x2170   :  { %5905 = vmatprep.mubr.f32.mxu1 %v11659_v25 }
0x2171   :  { %v5797_v41 = vadd.f32 %v8987_v32, %v5787_v54 }
0x2173   :  { %9003 = vmatmul.mubr.msk.f32.gmra.mrb[86].mxu1 %vm201_vm4, %v5797_v41 }
0x223a   :  { %v5889_v2 = vpop.f32.mrb[80].mxu1 }
0x223b   :  { %v13426_v7 = vpop.f32.mrb[81].mxu1  ;;  %v13428_v33 = vmul.f32 0.35355338, %v5889_v2 }
0x223d   :  { %10050 = vmatprep.mubr.msk.f32.mxu1 %vm410_vm5, %v13428_v33 }
0x223e   :  { %v5895_v51 = vpop.f32.mrb[82].mxu1 }
0x223f   :  { %v13432_v37 = vpop.f32.mrb[83].mxu1  ;;  %v13434_v60 = vpack.i.bf16 %v5895_v51, %v5889_v2  ;;  %v13466_v20 = vmul.f32 0.35355338, %v5895_v51 }
0x2240   :  { %v11263_v24 = vpack.i.bf16 %v13432_v37, %v13426_v7  ;;  %v13440_v45 = vpack.c.bf16 %v13432_v37, %v13426_v7 }
0x2241   :  { %11164 = vrot.lane.b32.xlu1 %v13434_v60, %s14171_s4 }
0x2242   :  { %v5901_v47 = vpop.f32.mrb[84].mxu1 }
0x2243   :  { %v13444_v46 = vpop.f32.mrb[85].mxu1  ;;  %v13468_v55 = vmul.f32 0.35355338, %v5901_v47 }
0x2246   :  { %v5907_v42 = vpop.f32.mrb[86].mxu1 }
0x2247   :  { %v13446_v52 = vpop.f32.mrb[87].mxu1  ;;  %v13448_v53 = vpack.i.bf16 %v5907_v42, %v5901_v47  ;;  %v13474_v48 = vmul.f32 0.35355338, %v5907_v42 }
0x2248   :  { %v11268_v4 = vpack.i.bf16 %v13446_v52, %v13444_v46  ;;  %v13454_v61 = vpack.c.bf16 %v13446_v52, %v13444_v46 }
0x2249   :  { %11169 = vrot.lane.b32.xlu0 %v13448_v53, %s14171_s4 }
0x22b3   :  { %v11165_v58 = vpop.permute.xlu1 %11164 }
0x22b4   :  { %v11167_v40 = vunpack.i.h.bf16 %v11165_v58  ;;  %v11166_v34 = vunpack.i.l.bf16 %v11165_v58 }
0x22b6   :  { %v10680_v15 = vpack.c.bf16 %v11167_v40, %v11166_v34 }
0x22b8   :  { %10682 = vmatprep.subr.msk.bf16.mxu1 %vm11974_vm6, %v10680_v15 }
0x22b9   :  { %10685 = vmatpush3.bf16.xpose.msk.msra.mxu1 %vm11974_vm6, %v10680_v15 }
0x22bb   :  { %v11170_v59 = vpop.permute.xlu0 %11169 }
0x22bc   :  { %v11172_v21 = vunpack.i.h.bf16 %v11170_v59  ;;  %v11171_v35 = vunpack.i.l.bf16 %v11170_v59 }
0x22be   :  { %v10686_v57 = vpack.c.bf16 %v11172_v21, %v11171_v35 }
0x22c0   :  { %10688 = vmatprep.subr.msk.bf16.mxu1 %vm11974_vm6, %v10686_v57 }
0x22c1   :  { %10691 = vmatpush3.bf16.xpose.msk.msra.mxu1 %vm11974_vm6, %v10686_v57 }
0x22c8   :  { %10051 = vmatmul.mubr.msk.f32.vlgmr.msra.gmra.mrb[88].mxu1 %vm410_vm5, %v13466_v20 }
0x22c9   :  { %10053 = vmatprep.mubr.msk.f32.mxu1 %vm410_vm5, %v13468_v55 }
0x22cc   :  { %10054 = vmatmul.mubr.msk.f32.gmra.mrb[90].mxu1 %vm410_vm5, %v13474_v48 }
0x239b   :  { %v10052_v29 = vpop.f32.mrb[88].mxu1 }
0x239c   :  { %v6027_v49 = vadd.f32 %v13481_v26, %v10052_v29  ;;  %v6021_v14 = vpop.f32.mrb[89].mxu1 }
0x239d   :  { %v6022_v0 = vadd.f32 %v13487_v22, %v6021_v14 }
0x239e   :  { %v6043_v50 = vsel %vm516_vm7, %v6027_v49, -inf }
0x239f   :  { %6044 = vmax.xlane.f32.xlu0 %v6043_v50  ;;  %v10055_v44 = vpop.f32.mrb[90].mxu1  ;;  %v6040_v19 = vsel %vm516_vm7, %v6022_v0, -inf }
0x23a0   :  { %v6037_v38 = vadd.f32 %v13495_v27, %v10055_v44  ;;  %v6031_v10 = vpop.f32.mrb[91].mxu1  ;;  %6041 = vmax.xlane.f32.xlu1 %v6040_v19 }
0x23a1   :  { %v6032_v32 = vadd.f32 %v13504_v18, %v6031_v10 }
0x23a2   :  { %v6049_v43 = vsel %vm516_vm7, %v6037_v38, -inf }
0x23a3   :  { %6050 = vmax.xlane.f32.xlu0 %v6049_v43  ;;  %v6046_v8 = vsel %vm516_vm7, %v6032_v32, -inf }
0x23b1   :  { %11174 = vrot.lane.b32.xlu1 %v13434_v60, %s14172_s25 }
0x23d5   :  { %6047 = vmax.xlane.f32.xlu1 %v6046_v8 }
0x23e6   :  { %11184 = vrot.lane.b32.xlu1 %v13434_v60, %s14173_s6 }
0x242c   :  { %v6045_v11 = vpop.xlane.xlu0 %6044 }
0x242d   :  { %v6053_v12 = vsub.f32 %v6027_v49, %v6045_v11  ;;  %v6042_v9 = vpop.xlane.xlu1 %6041 }
0x242e   :  { %v6052_v17 = vsub.f32 %v6022_v0, %v6042_v9 }
0x242f   :  { %v6058_v56 = vmul.f32 1.442695, %v6053_v12 }
0x2430   :  { %v6056_v13 = vmul.f32 1.442695, %v6052_v17  ;;  %v6051_v51 = vpop.xlane.xlu0 %6050 }
0x2431   :  { %11505 = vpow2.f32 %v6058_v56  ;;  %v11175_v39 = vpop.permute.xlu1 %11174  ;;  %v6055_v47 = vsub.f32 %v6037_v38, %v6051_v51 }
0x2432   :  { %11507 = vpow2.f32 %v6056_v13  ;;  %v11177_v23 = vunpack.i.h.bf16 %v11175_v39  ;;  %v11176_v6 = vunpack.i.l.bf16 %v11175_v39 }
0x2433   :  { %v6062_v42 = vmul.f32 1.442695, %v6055_v47 }
0x2434   :  { %v10692_v1 = vpack.c.bf16 %v11177_v23, %v11176_v6 }
0x2435   :  { %11509 = vpow2.f32 %v6062_v42 }
0x2436   :  { %10693 = vmatprep.subr.bf16.mxu1 %v10692_v1 }
0x2437   :  { %10695 = vmatpush3.bf16.msra.mxu1 %v10692_v1 }
0x243b   :  { %v11506_v63 = vpop.eup %11505 }
0x243c   :  { %v11508_v54 = vpop.eup %11507  ;;  %v6067_v41 = vsel %vm516_vm7, %v11506_v63, 0.0 }
0x243d   :  { %6068 = vadd.xlane.f32.xlu0 %v6067_v41  ;;  %v6064_v2 = vsel %vm516_vm7, %v11508_v54, 0.0 }
0x243e   :  { %6065 = vadd.xlane.f32.xlu1 %v6064_v2 }
0x243f   :  { %v11510_v15 = vpop.eup %11509 }
0x2440   :  { %v6073_v21 = vsel %vm516_vm7, %v11510_v15, 0.0 }
0x244f   :  { %11189 = vrot.lane.b32.xlu1 %v13448_v53, %s14173_s6 }
0x2453   :  { %11179 = vrot.lane.b32.xlu0 %v13448_v53, %s14172_s25 }
0x2462   :  { %v6048_v58 = vpop.xlane.xlu1 %6047 }
0x2463   :  { %v6054_v40 = vsub.f32 %v6032_v32, %v6048_v58 }
0x2465   :  { %v6060_v34 = vmul.f32 1.442695, %v6054_v40 }
0x2466   :  { %v11185_v57 = vpop.permute.xlu1 %11184 }
0x2467   :  { %11511 = vpow2.f32 %v6060_v34  ;;  %v11187_v0 = vunpack.i.h.bf16 %v11185_v57  ;;  %v11186_v50 = vunpack.i.l.bf16 %v11185_v57 }
0x2469   :  { %v10700_v10 = vpack.c.bf16 %v11187_v0, %v11186_v50 }
0x2471   :  { %v11512_v59 = vpop.eup %11511 }
0x2472   :  { %6074 = vadd.xlane.f32.xlu0 %v6073_v21  ;;  %v6070_v35 = vsel %vm516_vm7, %v11512_v59, 0.0 }
0x2473   :  { %6071 = vadd.xlane.f32.xlu1 %v6070_v35 }
0x2484   :  { %6195 = vrot.lane.b32.xlu1 %v13466_v20, %s14174_s1 }
0x2488   :  { %6193 = vrot.lane.b32.xlu0 %v13428_v33, %s14174_s1  ;;  %6199 = vrot.lane.b32.xlu1 %v13474_v48, %s14174_s1 }
0x248c   :  { %6197 = vrot.lane.b32.xlu0 %v13468_v55, %s14174_s1 }
0x24ca   :  { %v6069_v29 = vpop.xlane.xlu0 %6068 }
0x24cb   :  { %11513 = vrcp.f32 %v6069_v29  ;;  %v6066_v49 = vpop.xlane.xlu1 %6065 }
0x24cc   :  { %11515 = vrcp.f32 %v6066_v49 }
0x24ce   :  { %v11180_v14 = vpop.permute.xlu0 %11179 }
0x24cf   :  { %v11182_v44 = vunpack.i.h.bf16 %v11180_v14  ;;  %v11181_v19 = vunpack.i.l.bf16 %v11180_v14  ;;  %v11190_v32 = vpop.permute.xlu1 %11189 }
0x24d0   :  { %v11192_v9 = vunpack.i.h.bf16 %v11190_v32  ;;  %v11191_v17 = vunpack.i.l.bf16 %v11190_v32 }
0x24d1   :  { %v10696_v38 = vpack.c.bf16 %v11182_v44, %v11181_v19 }
0x24d2   :  { %v10706_v56 = vpack.c.bf16 %v11192_v9, %v11191_v17 }
0x24d3   :  { %10697 = vmatprep.subr.bf16.mxu1 %v10696_v38 }
0x24d4   :  { %10699 = vmatpush3.bf16.msra.mxu1 %v10696_v38 }
0x24d5   :  { %v11514_v43 = vpop.eup %11513  ;;  %10702 = vmatprep.subr.msk.bf16.mxu1 %vm11974_vm6, %v10700_v10 }
0x24d6   :  { %v11516_v8 = vpop.eup %11515  ;;  %v6081_v12 = vmul.f32 %v11514_v43, %v11506_v63 }
0x24d7   :  { %v6080_v11 = vmul.f32 %v11516_v8, %v11508_v54 }
0x24d9   :  { %10064 = vmatprep.mubr.msk.f32.mxu1 %vm516_vm7, %v6080_v11 }
0x24da   :  { %10065 = vmatmul.mubr.msk.f32.vlgmr.msra.gmra.mrb[92].mxu1 %vm516_vm7, %v6081_v12 }
0x24dd   :  { %10705 = vmatpush3.bf16.xpose.msk.msra.mxu1 %vm11974_vm6, %v10700_v10 }
0x24de   :  { %10708 = vmatprep.subr.msk.bf16.mxu1 %vm11974_vm6, %v10706_v56 }
0x24e5   :  { %10711 = vmatpush3.bf16.xpose.msk.msra.mxu1 %vm11974_vm6, %v10706_v56 }
0x24ff   :  { %v6075_v13 = vpop.xlane.xlu0 %6074 }
0x2500   :  { %11517 = vrcp.f32 %v6075_v13  ;;  %v6072_v39 = vpop.xlane.xlu1 %6071 }
0x2501   :  { %11519 = vrcp.f32 %v6072_v39 }
0x2503   :  { %v6194_v63 = vpop.permute.xlu0 %6193 }
0x2504   :  { %v6196_v41 = vpop.permute.xlu1 %6195 }
0x2507   :  { %v6198_v2 = vpop.permute.xlu0 %6197 }
0x2508   :  { %v6200_v51 = vpop.permute.xlu1 %6199 }
0x250a   :  { %v11518_v23 = vpop.eup %11517 }
0x250b   :  { %v11520_v6 = vpop.eup %11519  ;;  %v6083_v54 = vmul.f32 %v11518_v23, %v11510_v15 }
0x250c   :  { %v6082_v1 = vmul.f32 %v11520_v6, %v11512_v59 }
0x250e   :  { %10067 = vmatprep.mubr.msk.f32.mxu1 %vm516_vm7, %v6082_v1 }
0x250f   :  { %10068 = vmatmul.mubr.msk.f32.gmra.mrb[94].mxu1 %vm516_vm7, %v6083_v54 }
0x2510   :  { %10078 = vmatprep.mubr.msk.f32.mxu1 %vm410_vm5, %v6194_v63 }
0x2513   :  { %10079 = vmatmul.mubr.msk.f32.vlgmr.msra.gmra.mrb[96].mxu1 %vm410_vm5, %v6196_v41 }
0x2514   :  { %10081 = vmatprep.mubr.msk.f32.mxu1 %vm410_vm5, %v6198_v2 }
0x2517   :  { %10082 = vmatmul.mubr.msk.f32.gmra.mrb[98].mxu1 %vm410_vm5, %v6200_v51 }
0x25ad   :  { %v13542_v47 = vpop.f32.mrb[92].mxu1 }
0x25ae   :  { %v13544_v42 = vpop.f32.mrb[93].mxu1 }
0x25e2   :  { %v13546_v58 = vpop.f32.mrb[94].mxu1 }
0x25e3   :  { %v13548_v40 = vpop.f32.mrb[95].mxu1 }
0x25e6   :  { %v10080_v34 = vpop.f32.mrb[96].mxu1 }
0x25e7   :  { %v6297_v15 = vadd.f32 %v13481_v26, %v10080_v34  ;;  %v6291_v59 = vpop.f32.mrb[97].mxu1 }
0x25e8   :  { %v6292_v21 = vadd.f32 %v13487_v22, %v6291_v59 }
0x25e9   :  { %v6313_v35 = vsel %vm516_vm7, %v6297_v15, -inf }
0x25ea   :  { %6314 = vmax.xlane.f32.xlu1 %v6313_v35  ;;  %v10083_v57 = vpop.f32.mrb[98].mxu1  ;;  %v6310_v29 = vsel %vm516_vm7, %v6292_v21, -inf }
0x25eb   :  { %v6301_v49 = vpop.f32.mrb[99].mxu1  ;;  %6311 = vmax.xlane.f32.xlu0 %v6310_v29  ;;  %v6307_v0 = vadd.f32 %v13495_v27, %v10083_v57 }
0x25ec   :  { %v6302_v14 = vadd.f32 %v13504_v18, %v6301_v49 }
0x25ed   :  { %v6319_v44 = vsel %vm516_vm7, %v6307_v0, -inf }
0x25ee   :  { %v6316_v50 = vsel %vm516_vm7, %v6302_v14, -inf }
0x25ef   :  { %6317 = vmax.xlane.f32.xlu0 %v6316_v50 }
0x25f3   :  { %6320 = vmax.xlane.f32.xlu0 %v6319_v44 }
0x25fb   :  { %11194 = vrot.lane.b32.xlu1 %v13434_v60, %s14175_s15 }
0x25ff   :  { %11204 = vrot.lane.b32.xlu1 %v13434_v60, %s14161_s21 }
0x2603   :  { %11209 = vrot.lane.b32.xlu1 %v13448_v53, %s14161_s21 }
0x2677   :  { %v6315_v19 = vpop.xlane.xlu1 %6314 }
0x2678   :  { %v6323_v38 = vsub.f32 %v6297_v15, %v6315_v19  ;;  %v6312_v10 = vpop.xlane.xlu0 %6311 }
0x2679   :  { %v6322_v43 = vsub.f32 %v6292_v21, %v6312_v10 }
0x267a   :  { %v6328_v32 = vmul.f32 1.442695, %v6323_v38 }
0x267b   :  { %v6326_v8 = vmul.f32 1.442695, %v6322_v43  ;;  %v11195_v11 = vpop.permute.xlu1 %11194 }
0x267c   :  { %11521 = vpow2.f32 %v6328_v32  ;;  %v11197_v12 = vunpack.i.h.bf16 %v11195_v11  ;;  %v11196_v9 = vunpack.i.l.bf16 %v11195_v11  ;;  %v6318_v6 = vpop.xlane.xlu0 %6317 }
0x267d   :  { %11523 = vpow2.f32 %v6326_v8  ;;  %v6324_v54 = vsub.f32 %v6302_v14, %v6318_v6 }
0x267e   :  { %v10712_v17 = vpack.c.bf16 %v11197_v12, %v11196_v9 }
0x267f   :  { %v6330_v2 = vmul.f32 1.442695, %v6324_v54  ;;  %v11205_v21 = vpop.permute.xlu1 %11204 }
0x2680   :  { %10713 = vmatprep.subr.bf16.mxu0 %v10712_v17  ;;  %v6321_v1 = vpop.xlane.xlu0 %6320  ;;  %v11207_v14 = vunpack.i.h.bf16 %v11205_v21 }
0x2681   :  { %10715 = vmatpush3.bf16.msra.mxu0 %v10712_v17  ;;  %v6325_v63 = vsub.f32 %v6307_v0, %v6321_v1  ;;  %v11206_v0 = vunpack.i.l.bf16 %v11205_v21 }
0x2683   :  { %v6332_v41 = vmul.f32 1.442695, %v6325_v63  ;;  %v11210_v35 = vpop.permute.xlu1 %11209  ;;  %v10720_v38 = vpack.c.bf16 %v11207_v14, %v11206_v0 }
0x2684   :  { %v11212_v8 = vunpack.i.h.bf16 %v11210_v35  ;;  %v11211_v11 = vunpack.i.l.bf16 %v11210_v35 }
0x2685   :  { %11525 = vpow2.f32 %v6332_v41 }
0x2686   :  { %v11522_v56 = vpop.eup %11521  ;;  %11527 = vpow2.f32 %v6330_v2  ;;  %v10726_v9 = vpack.c.bf16 %v11212_v8, %v11211_v11 }
0x2687   :  { %v11524_v13 = vpop.eup %11523  ;;  %v6337_v39 = vsel %vm516_vm7, %v11522_v56, 0.0 }
0x2688   :  { %6338 = vadd.xlane.f32.xlu0 %v6337_v39  ;;  %v6334_v23 = vsel %vm516_vm7, %v11524_v13, 0.0 }
0x2689   :  { %6335 = vadd.xlane.f32.xlu1 %v6334_v23 }
0x268f   :  { %v11526_v51 = vpop.eup %11525 }
0x2690   :  { %v11528_v34 = vpop.eup %11527  ;;  %v6343_v15 = vsel %vm516_vm7, %v11526_v51, 0.0 }
0x2691   :  { %v6340_v59 = vsel %vm516_vm7, %v11528_v34, 0.0 }
0x269a   :  { %6659 = vrot.lane.b32.xlu1 %v13466_v20, %s14162_s22 }
0x269e   :  { %11199 = vrot.lane.b32.xlu0 %v13448_v53, %s14175_s15  ;;  %s14176_s15 = sld [smem:[#allocation10_spill]] }
0x26bd   :  { %6344 = vadd.xlane.f32.xlu0 %v6343_v15 }
0x26be   :  { %6341 = vadd.xlane.f32.xlu1 %v6340_v59 }
0x26cf   :  { %6663 = vrot.lane.b32.xlu1 %v13474_v48, %s14162_s22 }
0x26d3   :  { %11219 = vrot.lane.b32.xlu1 %v13448_v53, %s14163_s30  ;;  %6657 = vrot.lane.b32.xlu0 %v13428_v33, %s14162_s22 }
0x26d7   :  { %7030 = vrot.lane.b32.xlu1 %v13466_v20, %s14164_s0  ;;  %6661 = vrot.lane.b32.xlu0 %v13468_v55, %s14162_s22 }
0x26db   :  { %7034 = vrot.lane.b32.xlu1 %v13474_v48, %s14164_s0  ;;  %11214 = vrot.lane.b32.xlu0 %v13434_v60, %s14163_s30 }
0x26df   :  { %7028 = vrot.lane.b32.xlu0 %v13428_v33, %s14164_s0 }
0x26e3   :  { %7032 = vrot.lane.b32.xlu0 %v13468_v55, %s14164_s0 }
0x2715   :  { %v6339_v57 = vpop.xlane.xlu0 %6338 }
0x2716   :  { %11529 = vrcp.f32 %v6339_v57  ;;  %v6336_v29 = vpop.xlane.xlu1 %6335 }
0x2717   :  { %11531 = vrcp.f32 %v6336_v29 }
0x2719   :  { %v11200_v49 = vpop.permute.xlu0 %11199 }
0x271a   :  { %v11202_v50 = vunpack.i.h.bf16 %v11200_v49  ;;  %v11201_v44 = vunpack.i.l.bf16 %v11200_v49  ;;  %v6660_v17 = vpop.permute.xlu1 %6659 }
0x271c   :  { %v10716_v19 = vpack.c.bf16 %v11202_v50, %v11201_v44  ;;  %v9005_v50 = vld [vmem:[%s14101_s7 + $0x68] sm:$0xff]  ;;  %v9004_v44 = vld [vmem:[%s14101_s7 + $0x60] sm:$0xff] }
0x271d   :  { %10098 = vmatprep.subr.mxu1 %v9005_v50 }
0x271e   :  { %10717 = vmatprep.subr.bf16.mxu0 %v10716_v19  ;;  %10099 = vmatpush3.msra.mxu1 %v9005_v50 }
0x271f   :  { %10719 = vmatpush3.bf16.msra.mxu0 %v10716_v19  ;;  %10106 = vmatprep.subr.mxu1 %v9004_v44 }
0x2720   :  { %v11530_v10 = vpop.eup %11529  ;;  %10722 = vmatprep.subr.msk.bf16.mxu0 %vm11974_vm6, %v10720_v38 }
0x2721   :  { %v11532_v43 = vpop.eup %11531  ;;  %v6351_v12 = vmul.f32 %v11530_v10, %v11522_v56 }
0x2722   :  { %v6350_v32 = vmul.f32 %v11532_v43, %v11524_v13 }
0x2724   :  { %10092 = vmatprep.mubr.msk.f32.mxu0 %vm516_vm7, %v6350_v32 }
0x2725   :  { %10093 = vmatmul.mubr.msk.f32.vlgmr.msra.gmra.mrb[76].mxu0 %vm516_vm7, %v6351_v12 }
0x2728   :  { %10725 = vmatpush3.bf16.xpose.msk.msra.mxu0 %vm11974_vm6, %v10720_v38 }
0x2729   :  { %10728 = vmatprep.subr.msk.bf16.mxu0 %vm11974_vm6, %v10726_v9 }
0x2730   :  { %10731 = vmatpush3.bf16.xpose.msk.msra.mxu0 %vm11974_vm6, %v10726_v9 }
0x274a   :  { %v6345_v39 = vpop.xlane.xlu0 %6344 }
0x274b   :  { %11533 = vrcp.f32 %v6345_v39  ;;  %v6342_v13 = vpop.xlane.xlu1 %6341 }
0x274c   :  { %11535 = vrcp.f32 %v6342_v13 }
0x274e   :  { %v6658_v56 = vpop.permute.xlu0 %6657 }
0x274f   :  { %v6664_v23 = vpop.permute.xlu1 %6663 }
0x2752   :  { %v6662_v6 = vpop.permute.xlu0 %6661 }
0x2753   :  { %v11220_v41 = vpop.permute.xlu1 %11219 }
0x2754   :  { %v11222_v57 = vunpack.i.h.bf16 %v11220_v41  ;;  %v11221_v29 = vunpack.i.l.bf16 %v11220_v41 }
0x2755   :  { %v11534_v1 = vpop.eup %11533 }
0x2756   :  { %v11536_v63 = vpop.eup %11535  ;;  %v11215_v54 = vpop.permute.xlu0 %11214  ;;  %v6353_v21 = vmul.f32 %v11534_v1, %v11526_v51  ;;  %v10746_v49 = vpack.c.bf16 %v11222_v57, %v11221_v29 }
0x2757   :  { %v11217_v2 = vunpack.i.h.bf16 %v11215_v54  ;;  %v11216_v15 = vunpack.i.l.bf16 %v11215_v54  ;;  %v6352_v59 = vmul.f32 %v11536_v63, %v11528_v34  ;;  %v7031_v34 = vpop.permute.xlu1 %7030 }
0x2759   :  { %v10740_v35 = vpack.c.bf16 %v11217_v2, %v11216_v15  ;;  %10095 = vmatprep.mubr.msk.f32.mxu0 %vm516_vm7, %v6352_v59 }
0x275a   :  { %10096 = vmatmul.mubr.msk.f32.gmra.mrb[78].mxu0 %vm516_vm7, %v6353_v21  ;;  %v7029_v51 = vpop.permute.xlu0 %7028 }
0x275b   :  { %10122 = vmatprep.mubr.msk.f32.mxu0 %vm410_vm5, %v6658_v56  ;;  %10742 = vmatprep.subr.msk.bf16.mxu0 %vm11974_vm6, %v10740_v35  ;;  %v7035_v0 = vpop.permute.xlu1 %7034 }
0x275e   :  { %10123 = vmatmul.mubr.msk.f32.vlgmr.msra.gmra.mrb[80].mxu0 %vm410_vm5, %v6660_v17  ;;  %v7033_v14 = vpop.permute.xlu0 %7032 }
0x275f   :  { %10745 = vmatpush3.bf16.xpose.msk.msra.mxu0 %vm11974_vm6, %v10740_v35  ;;  %10125 = vmatprep.mubr.msk.f32.mxu0 %vm410_vm5, %v6662_v6 }
0x2760   :  { %10748 = vmatprep.subr.msk.bf16.mxu0 %vm11974_vm6, %v10746_v49 }
0x2762   :  { %10126 = vmatmul.mubr.msk.f32.gmra.mrb[82].mxu0 %vm410_vm5, %v6664_v23 }
0x2763   :  { %10158 = vmatprep.mubr.msk.f32.mxu0 %vm410_vm5, %v7029_v51 }
0x2767   :  { %10751 = vmatpush3.bf16.xpose.msk.msra.mxu0 %vm11974_vm6, %v10746_v49 }
0x276e   :  { %10159 = vmatmul.mubr.msk.f32.vlgmr.msra.gmra.mrb[84].mxu0 %vm410_vm5, %v7031_v34 }
0x276f   :  { %10161 = vmatprep.mubr.msk.f32.mxu0 %vm410_vm5, %v7033_v14 }
0x2772   :  { %10162 = vmatmul.mubr.msk.f32.gmra.mrb[86].mxu0 %vm410_vm5, %v7035_v0 }
0x27f8   :  { %v10094_v19 = vpop.f32.mrb[76].mxu0 }
0x27f9   :  { %v6444_v38 = vpop.f32.mrb[77].mxu0 }
0x27fa   :  { %10100 = vmatprep.mubr.msk.f32.mxu1 %vm410_vm5, %v6444_v38 }
0x27fb   :  { %10101 = vmatmul.mubr.msk.f32.vlgmr.msra.gmra.mrb[100].mxu1 %vm410_vm5, %v10094_v19 }
0x27fc   :  { %10107 = vmatpush3.msra.mxu1 %v9004_v44 }
0x282d   :  { %v10097_v10 = vpop.f32.mrb[78].mxu0 }
0x282e   :  { %v6454_v43 = vpop.f32.mrb[79].mxu0 }
0x282f   :  { %10103 = vmatprep.mubr.msk.f32.mxu1 %vm410_vm5, %v6454_v43 }
0x2830   :  { %10104 = vmatmul.mubr.msk.f32.gmra.mrb[102].mxu1 %vm410_vm5, %v10097_v10 }
0x2831   :  { %10108 = vmatprep.mubr.msk.f32.mxu1 %vm410_vm5, %v13544_v42  ;;  %v10124_v32 = vpop.f32.mrb[80].mxu0 }
0x2832   :  { %v6761_v8 = vadd.f32 %v13481_v26, %v10124_v32  ;;  %v6755_v11 = vpop.f32.mrb[81].mxu0 }
0x2833   :  { %v6756_v12 = vadd.f32 %v13487_v22, %v6755_v11 }
0x2834   :  { %10109 = vmatmul.mubr.msk.f32.vlgmr.msra.gmra.mrb[100].mxu1 %vm410_vm5, %v13542_v47  ;;  %v6777_v9 = vsel %vm516_vm7, %v6761_v8, -inf }
0x2835   :  { %6778 = vmax.xlane.f32.xlu1 %v6777_v9  ;;  %10111 = vmatprep.mubr.msk.f32.mxu1 %vm410_vm5, %v13548_v40  ;;  %v10127_v17 = vpop.f32.mrb[82].mxu0  ;;  %v6774_v39 = vsel %vm516_vm7, %v6756_v12, -inf }
0x2836   :  { %v6765_v13 = vpop.f32.mrb[83].mxu0  ;;  %6775 = vmax.xlane.f32.xlu0 %v6774_v39  ;;  %v6771_v56 = vadd.f32 %v13495_v27, %v10127_v17 }
0x2837   :  { %v6766_v42 = vadd.f32 %v13504_v18, %v6765_v13 }
0x2838   :  { %10112 = vmatmul.mubr.msk.f32.gmra.mrb[102].mxu1 %vm410_vm5, %v13546_v58  ;;  %v6783_v23 = vsel %vm516_vm7, %v6771_v56, -inf }
0x2839   :  { %v6780_v47 = vsel %vm516_vm7, %v6766_v42, -inf }
0x283a   :  { %6781 = vmax.xlane.f32.xlu0 %v6780_v47 }
0x283e   :  { %6784 = vmax.xlane.f32.xlu0 %v6783_v23 }
0x2841   :  { %v10160_v6 = vpop.f32.mrb[84].mxu0 }
0x2842   :  { %v7126_v40 = vpop.f32.mrb[85].mxu0  ;;  %v13677_v32 = vadd.f32 %v13481_v26, %v10160_v6 }
0x2843   :  { %v13674_v43 = vadd.f32 %v13487_v22, %v7126_v40 }
0x2844   :  { %v7148_v9 = vsel %vm516_vm7, %v13677_v32, -inf }
0x2845   :  { %v10163_v1 = vpop.f32.mrb[86].mxu0  ;;  %v7145_v11 = vsel %vm516_vm7, %v13674_v43, -inf }
0x2846   :  { %v7136_v63 = vpop.f32.mrb[87].mxu0 }
0x28c2   :  { %v6779_v54 = vpop.xlane.xlu1 %6778 }
0x28c3   :  { %v6787_v41 = vsub.f32 %v6761_v8, %v6779_v54  ;;  %v6776_v2 = vpop.xlane.xlu0 %6775  ;;  %v13680_v8 = vadd.f32 %v13504_v18, %v7136_v63 }
0x28c4   :  { %v6786_v15 = vsub.f32 %v6756_v12, %v6776_v2  ;;  %v13685_v12 = vadd.f32 %v13495_v27, %v10163_v1 }
0x28c5   :  { %v6792_v59 = vmul.f32 1.442695, %v6787_v41  ;;  %v7151_v17 = vsel %vm516_vm7, %v13680_v8, -inf }
0x28c6   :  { %v6790_v21 = vmul.f32 1.442695, %v6786_v15  ;;  %v7154_v39 = vsel %vm516_vm7, %v13685_v12, -inf }
0x28c7   :  { %11537 = vpow2.f32 %v6792_v59  ;;  %v6782_v58 = vpop.xlane.xlu0 %6781 }
0x28c8   :  { %11539 = vpow2.f32 %v6790_v21  ;;  %v6788_v35 = vsub.f32 %v6766_v42, %v6782_v58 }
0x28ca   :  { %v6794_v57 = vmul.f32 1.442695, %v6788_v35 }
0x28cb   :  { %v6785_v29 = vpop.xlane.xlu0 %6784 }
0x28cc   :  { %11541 = vpow2.f32 %v6794_v57  ;;  %v6789_v49 = vsub.f32 %v6771_v56, %v6785_v29 }
0x28ce   :  { %v6796_v51 = vmul.f32 1.442695, %v6789_v49 }
0x28d0   :  { %11543 = vpow2.f32 %v6796_v51 }
0x28d1   :  { %v13644_v34 = vpop.eup %11537 }
0x28d2   :  { %v11540_v14 = vpop.eup %11539  ;;  %v6801_v0 = vsel %vm516_vm7, %v13644_v34, 0.0 }
0x28d3   :  { %6802 = vadd.xlane.f32.xlu0 %v6801_v0  ;;  %v6798_v50 = vsel %vm516_vm7, %v11540_v14, 0.0 }
0x28d4   :  { %6799 = vadd.xlane.f32.xlu1 %v6798_v50 }
0x28d6   :  { %v13649_v44 = vpop.eup %11541 }
0x28d7   :  { %v6804_v19 = vsel %vm516_vm7, %v13649_v44, 0.0 }
0x28d8   :  { %6805 = vadd.xlane.f32.xlu1 %v6804_v19 }
0x28da   :  { %v13653_v38 = vpop.eup %11543 }
0x28db   :  { %v6807_v10 = vsel %vm516_vm7, %v13653_v38, 0.0 }
0x28dc   :  { %6808 = vadd.xlane.f32.xlu0 %v6807_v10 }
0x28e9   :  { %11224 = vrot.lane.b32.xlu1 %v13434_v60, %s14165_s23 }
0x28ed   :  { %11234 = vrot.lane.b32.xlu1 %v13434_v60, %s14166_s26 }
0x28f1   :  { %11239 = vrot.lane.b32.xlu1 %v13448_v53, %s14166_s26 }
0x28f2   :  { %11229 = vrot.lane.b32.xlu0 %v13448_v53, %s14165_s23 }
0x28f5   :  { %7401 = vrot.lane.b32.xlu1 %v13466_v20, %s14167_s29 }
0x28f6   :  { %7399 = vrot.lane.b32.xlu0 %v13428_v33, %s14167_s29 }
0x28f9   :  { %7405 = vrot.lane.b32.xlu1 %v13474_v48, %s14167_s29 }
0x28fa   :  { %7403 = vrot.lane.b32.xlu0 %v13468_v55, %s14167_s29 }
0x2919   :  { %7146 = vmax.xlane.f32.xlu0 %v7145_v11 }
0x291d   :  { %7149 = vmax.xlane.f32.xlu1 %v7148_v9  ;;  %7152 = vmax.xlane.f32.xlu0 %v7151_v17 }
0x2921   :  { %7155 = vmax.xlane.f32.xlu0 %v7154_v39 }
0x2960   :  { %v6803_v42 = vpop.xlane.xlu0 %6802 }
0x2961   :  { %v6800_v13 = vpop.xlane.xlu1 %6799 }
0x2962   :  { %11545 = vrcp.f32 %v6800_v13 }
0x2963   :  { %11547 = vrcp.f32 %v6803_v42 }
0x2965   :  { %v6806_v56 = vpop.xlane.xlu1 %6805 }
0x2966   :  { %11549 = vrcp.f32 %v6806_v56 }
0x2969   :  { %v11225_v47 = vpop.permute.xlu1 %11224  ;;  %v6809_v23 = vpop.xlane.xlu0 %6808 }
0x296a   :  { %v11227_v6 = vunpack.i.h.bf16 %v11225_v47  ;;  %v11226_v40 = vunpack.i.l.bf16 %v11225_v47  ;;  %11551 = vrcp.f32 %v6809_v23 }
0x296c   :  { %v11546_v1 = vpop.eup %11545  ;;  %v10732_v63 = vpack.c.bf16 %v11227_v6, %v11226_v40 }
0x296d   :  { %v11235_v54 = vpop.permute.xlu1 %11234  ;;  %v11230_v41 = vpop.permute.xlu0 %11229  ;;  %v6814_v2 = vmul.f32 %v11546_v1, %v11540_v14 }
0x296e   :  { %v11237_v15 = vunpack.i.h.bf16 %v11235_v54  ;;  %v11236_v59 = vunpack.i.l.bf16 %v11235_v54  ;;  %v11232_v21 = vunpack.i.h.bf16 %v11230_v41  ;;  %v11231_v58 = vunpack.i.l.bf16 %v11230_v41  ;;  %10733 = vmatprep.subr.bf16.mxu1 %v10732_v63  ;;  %v11548_v29 = vpop.eup %11547 }
0x296f   :  { %10735 = vmatpush3.bf16.msra.mxu1 %v10732_v63  ;;  %10136 = vmatprep.mubr.msk.f32.mxu1 %vm516_vm7, %v6814_v2  ;;  %v6815_v14 = vmul.f32 %v11548_v29, %v13644_v34 }
0x2970   :  { %v10760_v35 = vpack.c.bf16 %v11237_v15, %v11236_v59  ;;  %v10736_v57 = vpack.c.bf16 %v11232_v21, %v11231_v58  ;;  %v11550_v0 = vpop.eup %11549  ;;  %v9006_v58 = vld [vmem:[%s14101_s7 + $0x70] sm:$0xff] }
0x2971   :  { %v11240_v49 = vpop.permute.xlu1 %11239  ;;  %v7400_v51 = vpop.permute.xlu0 %7399  ;;  %v6816_v9 = vmul.f32 %v11550_v0, %v13649_v44 }
0x2972   :  { %v11242_v50 = vunpack.i.h.bf16 %v11240_v49  ;;  %v11241_v19 = vunpack.i.l.bf16 %v11240_v49  ;;  %10737 = vmatprep.subr.bf16.mxu1 %v10736_v57  ;;  %10762 = vmatprep.subr.msk.bf16.mxu0 %vm11974_vm6, %v10760_v35 }
0x2973   :  { %10194 = vmatprep.mubr.msk.f32.mxu0 %vm410_vm5, %v7400_v51  ;;  %10739 = vmatpush3.bf16.msra.mxu1 %v10736_v57 }
0x2974   :  { %v10766_v10 = vpack.c.bf16 %v11242_v50, %v11241_v19  ;;  %10765 = vmatpush3.bf16.xpose.msk.msra.mxu0 %vm11974_vm6, %v10760_v35  ;;  %v11552_v11 = vpop.eup %11551  ;;  %10142 = vmatprep.subr.mxu1 %v9006_v58 }
0x2975   :  { %v6817_v17 = vmul.f32 %v11552_v11, %v13653_v38  ;;  %v7402_v34 = vpop.permute.xlu1 %7401  ;;  %v7404_v39 = vpop.permute.xlu0 %7403 }
0x2976   :  { %10137 = vmatmul.mubr.msk.f32.vlgmr.msra.gmra.mrb[104].mxu1 %vm516_vm7, %v6815_v14  ;;  %10768 = vmatprep.subr.msk.bf16.mxu0 %vm11974_vm6, %v10766_v10 }
0x2977   :  { %10139 = vmatprep.mubr.msk.f32.mxu1 %vm516_vm7, %v6816_v9  ;;  %10143 = vmatpush3.msra.mxu1 %v9006_v58 }
0x2979   :  { %v7406_v44 = vpop.permute.xlu1 %7405 }
0x297a   :  { %10140 = vmatmul.mubr.msk.f32.gmra.mrb[106].mxu1 %vm516_vm7, %v6817_v17 }
0x297c   :  { %10771 = vmatpush3.bf16.xpose.msk.msra.mxu0 %vm11974_vm6, %v10766_v10 }
0x2983   :  { %10195 = vmatmul.mubr.msk.f32.vlgmr.msra.gmra.mrb[88].mxu0 %vm410_vm5, %v7402_v34 }
0x2984   :  { %10197 = vmatprep.mubr.msk.f32.mxu0 %vm410_vm5, %v7404_v39 }
0x2987   :  { %10198 = vmatmul.mubr.msk.f32.gmra.mrb[90].mxu0 %vm410_vm5, %v7406_v44 }
0x29a6   :  { %v7147_v13 = vpop.xlane.xlu0 %7146 }
0x29a7   :  { %v7157_v42 = vsub.f32 %v13674_v43, %v7147_v13 }
0x29a9   :  { %v7161_v56 = vmul.f32 1.442695, %v7157_v42 }
0x29aa   :  { %v7150_v47 = vpop.xlane.xlu1 %7149  ;;  %v7153_v38 = vpop.xlane.xlu0 %7152 }
0x29ab   :  { %11553 = vpow2.f32 %v7161_v56  ;;  %v7158_v23 = vsub.f32 %v13677_v32, %v7150_v47  ;;  %v7159_v6 = vsub.f32 %v13680_v8, %v7153_v38  ;;  %v9007_v47 = vld [vmem:[%s14101_s7 + $0x78] sm:$0xff] }
0x29ad   :  { %v7163_v40 = vmul.f32 1.442695, %v7158_v23  ;;  %v7165_v1 = vmul.f32 1.442695, %v7159_v6 }
0x29ae   :  { %v7156_v63 = vpop.xlane.xlu0 %7155 }
0x29af   :  { %11555 = vpow2.f32 %v7163_v40  ;;  %v7160_v54 = vsub.f32 %v13685_v12, %v7156_v63 }
0x29b0   :  { %11557 = vpow2.f32 %v7165_v1 }
0x29b1   :  { %v7167_v41 = vmul.f32 1.442695, %v7160_v54 }
0x29b3   :  { %11559 = vpow2.f32 %v7167_v41 }
0x29b5   :  { %v11554_v2 = vpop.eup %11553 }
0x29b6   :  { %v7169_v43 = vsel %vm516_vm7, %v11554_v2, 0.0 }
0x29b7   :  { %7170 = vadd.xlane.f32.xlu1 %v7169_v43 }
0x29b9   :  { %v13717_v15 = vpop.eup %11555 }
0x29ba   :  { %v13719_v59 = vpop.eup %11557  ;;  %v7172_v32 = vsel %vm516_vm7, %v13717_v15, 0.0 }
0x29bb   :  { %7173 = vadd.xlane.f32.xlu0 %v7172_v32  ;;  %v7175_v8 = vsel %vm516_vm7, %v13719_v59, 0.0 }
0x29bc   :  { %7176 = vadd.xlane.f32.xlu1 %v7175_v8 }
0x29bd   :  { %v13725_v12 = vpop.eup %11559 }
0x29be   :  { %v7178_v21 = vsel %vm516_vm7, %v13725_v12, 0.0 }
0x29bf   :  { %7179 = vadd.xlane.f32.xlu0 %v7178_v21 }
0x29cd   :  { %11244 = vrot.lane.b32.xlu1 %v13434_v60, %s14168_s20 }
0x29d1   :  { %11254 = vrot.lane.b32.xlu1 %v13434_v60, %s14169_s19 }
0x29d5   :  { %11259 = vrot.lane.b32.xlu1 %v13448_v53, %s14169_s19  ;;  %11249 = vrot.lane.b32.xlu0 %v13448_v53, %s14168_s20 }
0x29d9   :  { %7760 = vrot.lane.b32.xlu1 %v13466_v20, %s14170_s27  ;;  %7758 = vrot.lane.b32.xlu0 %v13428_v33, %s14170_s27 }
0x29dd   :  { %7764 = vrot.lane.b32.xlu1 %v13474_v48, %s14170_s27  ;;  %7762 = vrot.lane.b32.xlu0 %v13468_v55, %s14170_s27 }
0x2a44   :  { %v7171_v35 = vpop.xlane.xlu1 %7170 }
0x2a45   :  { %11561 = vrcp.f32 %v7171_v35 }
0x2a48   :  { %v7174_v60 = vpop.xlane.xlu0 %7173 }
0x2a49   :  { %v7177_v57 = vpop.xlane.xlu1 %7176  ;;  %v10138_v29 = vpop.f32.mrb[104].mxu1  ;;  %11563 = vrcp.f32 %v7174_v60 }
0x2a4a   :  { %v6908_v49 = vpop.f32.mrb[105].mxu1  ;;  %11565 = vrcp.f32 %v7177_v57 }
0x2a4b   :  { %10144 = vmatprep.mubr.msk.f32.mxu1 %vm410_vm5, %v6908_v49 }
0x2a4c   :  { %v7180_v53 = vpop.xlane.xlu0 %7179  ;;  %10145 = vmatmul.mubr.msk.f32.vlgmr.msra.gmra.mrb[100].mxu1 %vm410_vm5, %v10138_v29 }
0x2a4d   :  { %v11245_v33 = vpop.permute.xlu1 %11244  ;;  %v10141_v20 = vpop.f32.mrb[106].mxu1  ;;  %11567 = vrcp.f32 %v7180_v53 }
0x2a4e   :  { %v11247_v51 = vunpack.i.h.bf16 %v11245_v33  ;;  %v11246_v48 = vunpack.i.l.bf16 %v11245_v33  ;;  %v6918_v0 = vpop.f32.mrb[107].mxu1 }
0x2a4f   :  { %v11562_v50 = vpop.eup %11561  ;;  %10147 = vmatprep.mubr.msk.f32.mxu1 %vm410_vm5, %v6918_v0 }
0x2a50   :  { %v10752_v55 = vpack.c.bf16 %v11247_v51, %v11246_v48  ;;  %v11250_v19 = vpop.permute.xlu0 %11249  ;;  %10148 = vmatmul.mubr.msk.f32.gmra.mrb[102].mxu1 %vm410_vm5, %v10141_v20  ;;  %v7185_v14 = vmul.f32 %v11562_v50, %v11554_v2 }
0x2a51   :  { %v11255_v10 = vpop.permute.xlu1 %11254  ;;  %v11252_v11 = vunpack.i.h.bf16 %v11250_v19  ;;  %v11251_v9 = vunpack.i.l.bf16 %v11250_v19 }
0x2a52   :  { %v11257_v17 = vunpack.i.h.bf16 %v11255_v10  ;;  %v11256_v34 = vunpack.i.l.bf16 %v11255_v10  ;;  %10753 = vmatprep.subr.bf16.mxu1 %v10752_v55  ;;  %10172 = vmatprep.mubr.msk.f32.mxu1 %vm516_vm7, %v7185_v14 }
0x2a53   :  { %v10756_v39 = vpack.c.bf16 %v11252_v11, %v11251_v9  ;;  %10755 = vmatpush3.bf16.msra.mxu1 %v10752_v55  ;;  %v11564_v42 = vpop.eup %11563 }
0x2a54   :  { %v10780_v44 = vpack.c.bf16 %v11257_v17, %v11256_v34  ;;  %v7759_v13 = vpop.permute.xlu0 %7758  ;;  %v11566_v40 = vpop.eup %11565  ;;  %v7186_v54 = vmul.f32 %v11564_v42, %v13717_v15 }
0x2a55   :  { %v11260_v56 = vpop.permute.xlu1 %11259  ;;  %10757 = vmatprep.subr.bf16.mxu1 %v10756_v39  ;;  %10230 = vmatprep.mubr.msk.f32.mxu0 %vm410_vm5, %v7759_v13  ;;  %v7187_v21 = vmul.f32 %v11566_v40, %v13719_v59 }
0x2a56   :  { %v11262_v38 = vunpack.i.h.bf16 %v11260_v56  ;;  %v11261_v23 = vunpack.i.l.bf16 %v11260_v56  ;;  %v10196_v6 = vpop.f32.mrb[88].mxu0  ;;  %10782 = vmatprep.subr.msk.bf16.mxu0 %vm11974_vm6, %v10780_v44 }
0x2a57   :  { %v7503_v1 = vadd.f32 %v13481_v26, %v10196_v6  ;;  %10759 = vmatpush3.bf16.msra.mxu1 %v10756_v39  ;;  %v7497_v63 = vpop.f32.mrb[89].mxu0  ;;  %10785 = vmatpush3.bf16.xpose.msk.msra.mxu0 %vm11974_vm6, %v10780_v44  ;;  %v11568_v43 = vpop.eup %11567 }
0x2a58   :  { %v10786_v41 = vpack.c.bf16 %v11262_v38, %v11261_v23  ;;  %v7498_v2 = vadd.f32 %v13487_v22, %v7497_v63  ;;  %10178 = vmatprep.subr.mxu1 %v9007_v47  ;;  %v7188_v22 = vmul.f32 %v11568_v43, %v13725_v12  ;;  %v7763_v57 = vpop.permute.xlu0 %7762  ;;  %v11629_v38 = vld [vmem:[%s14097_s3 + $0x8] sm:$0xff]  ;;  %v11632_v43 = vld [vmem:[%s14097_s3 + $0x10] sm:$0xff] }
0x2a59   :  { %v7519_v32 = vsel %vm516_vm7, %v7503_v1, -inf }
0x2a5a   :  { %v10199_v8 = vpop.f32.mrb[90].mxu0  ;;  %7520 = vmax.xlane.f32.xlu1 %v7519_v32  ;;  %10173 = vmatmul.mubr.msk.f32.vlgmr.msra.gmra.mrb[108].mxu1 %vm516_vm7, %v7186_v54  ;;  %v7516_v26 = vsel %vm516_vm7, %v7498_v2, -inf }
0x2a5b   :  { %10788 = vmatprep.subr.msk.bf16.mxu0 %vm11974_vm6, %v10786_v41  ;;  %v7507_v58 = vpop.f32.mrb[91].mxu0  ;;  %7517 = vmax.xlane.f32.xlu0 %v7516_v26  ;;  %v7513_v35 = vadd.f32 %v13495_v27, %v10199_v8 }
0x2a5c   :  { %v7508_v15 = vadd.f32 %v13504_v18, %v7507_v58  ;;  %10175 = vmatprep.mubr.msk.f32.mxu1 %vm516_vm7, %v7187_v21  ;;  %10179 = vmatpush3.msra.mxu1 %v9007_v47  ;;  %v7761_v18 = vpop.permute.xlu1 %7760 }
0x2a5d   :  { %10773 = vmatprep.subr.bf16.mxu1 %v13440_v45  ;;  %v7525_v60 = vsel %vm516_vm7, %v7513_v35, -inf }
0x2a5e   :  { %10176 = vmatmul.mubr.msk.f32.gmra.mrb[110].mxu1 %vm516_vm7, %v7188_v22  ;;  %v7522_v59 = vsel %vm516_vm7, %v7508_v15, -inf }
0x2a5f   :  { %10791 = vmatpush3.bf16.xpose.msk.msra.mxu0 %vm11974_vm6, %v10786_v41  ;;  %7523 = vmax.xlane.f32.xlu0 %v7522_v59 }
0x2a60   :  { %v7765_v12 = vpop.permute.xlu1 %7764 }
0x2a63   :  { %7526 = vmax.xlane.f32.xlu0 %v7525_v60 }
0x2a66   :  { %10231 = vmatmul.mubr.msk.f32.vlgmr.msra.gmra.mrb[92].mxu0 %vm410_vm5, %v7761_v18 }
0x2a67   :  { %10233 = vmatprep.mubr.msk.f32.mxu0 %vm410_vm5, %v7763_v57 }
0x2a6a   :  { %10234 = vmatmul.mubr.msk.f32.gmra.mrb[94].mxu0 %vm410_vm5, %v7765_v12 }
0x2a6b   :  { %8315 = vmatprep.mubr.f32.mxu0 %v11659_v25 }
0x2ae7   :  { %v7521_v27 = vpop.xlane.xlu1 %7520 }
0x2ae8   :  { %v7529_v29 = vsub.f32 %v7503_v1, %v7521_v27  ;;  %v7518_v49 = vpop.xlane.xlu0 %7517 }
0x2ae9   :  { %v7528_v16 = vsub.f32 %v7498_v2, %v7518_v49 }
0x2aea   :  { %v7534_v53 = vmul.f32 1.442695, %v7529_v29 }
0x2aeb   :  { %v7532_v33 = vmul.f32 1.442695, %v7528_v16 }
0x2aec   :  { %11569 = vpow2.f32 %v7534_v53  ;;  %v7524_v20 = vpop.xlane.xlu0 %7523 }
0x2aed   :  { %11571 = vpow2.f32 %v7532_v33  ;;  %v7530_v51 = vsub.f32 %v7508_v15, %v7524_v20 }
0x2aef   :  { %v7536_v48 = vmul.f32 1.442695, %v7530_v51 }
0x2af0   :  { %v7527_v0 = vpop.xlane.xlu0 %7526 }
0x2af1   :  { %11573 = vpow2.f32 %v7536_v48  ;;  %v7531_v50 = vsub.f32 %v7513_v35, %v7527_v0 }
0x2af3   :  { %v7538_v55 = vmul.f32 1.442695, %v7531_v50 }
0x2af5   :  { %11575 = vpow2.f32 %v7538_v55 }
0x2af6   :  { %v11570_v19 = vpop.eup %11569 }
0x2af7   :  { %v11572_v14 = vpop.eup %11571  ;;  %v7543_v10 = vsel %vm516_vm7, %v11570_v19, 0.0 }
0x2af8   :  { %7544 = vadd.xlane.f32.xlu0 %v7543_v10  ;;  %v7540_v11 = vsel %vm516_vm7, %v11572_v14, 0.0 }
0x2af9   :  { %7541 = vadd.xlane.f32.xlu1 %v7540_v11 }
0x2afb   :  { %v11574_v9 = vpop.eup %11573 }
0x2afc   :  { %v7546_v17 = vsel %vm516_vm7, %v11574_v9, 0.0 }
0x2afd   :  { %7547 = vadd.xlane.f32.xlu1 %v7546_v17 }
0x2aff   :  { %v11576_v34 = vpop.eup %11575 }
0x2b00   :  { %v7549_v39 = vsel %vm516_vm7, %v11576_v34, 0.0 }
0x2b01   :  { %7550 = vadd.xlane.f32.xlu0 %v7549_v39 }
0x2b2d   :  { %v10174_v44 = vpop.f32.mrb[108].mxu1 }
0x2b2e   :  { %v7279_v13 = vpop.f32.mrb[109].mxu1 }
0x2b2f   :  { %10180 = vmatprep.mubr.msk.f32.mxu1 %vm410_vm5, %v7279_v13 }
0x2b30   :  { %10181 = vmatmul.mubr.msk.f32.vlgmr.msra.gmra.mrb[100].mxu1 %vm410_vm5, %v10174_v44 }
0x2b31   :  { %10775 = vmatpush3.bf16.msra.mxu1 %v13440_v45  ;;  %v10177_v42 = vpop.f32.mrb[110].mxu1  ;;  %v11630_v45 = vld [vmem:[%s14097_s3] sm:$0xff] }
0x2b32   :  { %10777 = vmatprep.subr.bf16.mxu1 %v13454_v61  ;;  %v7289_v56 = vpop.f32.mrb[111].mxu1 }
0x2b33   :  { %10183 = vmatprep.mubr.msk.f32.mxu1 %vm410_vm5, %v7289_v56 }
0x2b34   :  { %10184 = vmatmul.mubr.msk.f32.gmra.mrb[102].mxu1 %vm410_vm5, %v10177_v42  ;;  %v9008_v42 = vld [vmem:[%s14101_s7 + $0x80] sm:$0xff] }
0x2b35   :  { %10779 = vmatpush3.bf16.msra.mxu1 %v13454_v61  ;;  %v11631_v61 = vld [vmem:[%s14097_s3 + $0x18] sm:$0xff]  ;;  %s11676_s3 = smov [#allocation2]  }
0x2b36   :  { %10214 = vmatprep.subr.mxu1 %v9008_v42  ;;  %s8679_s25 = sshll.u32 %s11676_s3, 4  ;;  %s8680_s25 = int_to_ptr.vmem [resolvable:$true] %s8679_s25 }
0x2b37   :  { %s11633_s28 = scalar_lea.vmem %s8680_s25, 512  ;;  %p11638_p1 = scmp.lt.s32.totalorder %s8680_s25, %s8680_s25 }
0x2b38   :  { %p11634_p0 = scmp.ne.s32.totalorder %s8680_s25, %s11633_s28  ;;  %p11639_p2 = scmp.lt.s32.totalorder %s11633_s28, %s11633_s28 }
0x2b39   :  { %v10232_v47 = vpop.f32.mrb[92].mxu0 }
0x2b3a   :  { %v7862_v23 = vadd.f32 %v11629_v38, %v10232_v47  ;;  %v7856_v6 = vpop.f32.mrb[93].mxu0  ;;  %p11640_p3 = por %p11639_p2, %p11638_p1 }
0x2b3b   :  { %v7857_v40 = vadd.f32 %v11630_v45, %v7856_v6 }
0x2b3c   :  { %v7878_v1 = vsel %vm516_vm7, %v7862_v23, -inf  ;;  %p11641_p4 = pnand %p11640_p3, %p11634_p0 }
0x2b3d   :  { %v10235_v63 = vpop.f32.mrb[94].mxu0  ;;  %7879 = vmax.xlane.f32.xlu0 %v7878_v1  ;;  %v7875_v54 = vsel %vm516_vm7, %v7857_v40, -inf }
0x2b3e   :  { %v7872_v41 = vadd.f32 %v11631_v61, %v10235_v63  ;;  %v7866_v2 = vpop.f32.mrb[95].mxu0  ;;  %7876 = vmax.xlane.f32.xlu1 %v7875_v54 }
0x2b3f   :  { %v7867_v32 = vadd.f32 %v11632_v43, %v7866_v2  ;;  %v9009_v43 = vld [vmem:[%s14101_s7 + $0x88] sm:$0xff] }
0x2b40   :  { %v7884_v8 = vsel %vm516_vm7, %v7872_v41, -inf }
0x2b41   :  { %7885 = vmax.xlane.f32.xlu0 %v7884_v8  ;;  %v7881_v26 = vsel %vm516_vm7, %v7867_v32, -inf }
0x2b42   :  { %7882 = vmax.xlane.f32.xlu1 %v7881_v26 }
0x2b85   :  { %v7545_v21 = vpop.xlane.xlu0 %7544 }
0x2b86   :  { %11577 = vrcp.f32 %v7545_v21  ;;  %v7542_v58 = vpop.xlane.xlu1 %7541 }
0x2b87   :  { %11579 = vrcp.f32 %v7542_v58 }
0x2b8a   :  { %v7548_v15 = vpop.xlane.xlu1 %7547 }
0x2b8b   :  { %11581 = vrcp.f32 %v7548_v15 }
0x2b8e   :  { %v7551_v22 = vpop.xlane.xlu0 %7550 }
0x2b8f   :  { %11583 = vrcp.f32 %v7551_v22 }
0x2b90   :  { %v11578_v35 = vpop.eup %11577 }
0x2b91   :  { %v11580_v59 = vpop.eup %11579  ;;  %v7557_v18 = vmul.f32 %v11578_v35, %v11570_v19 }
0x2b92   :  { %v7556_v60 = vmul.f32 %v11580_v59, %v11572_v14 }
0x2b94   :  { %10208 = vmatprep.mubr.msk.f32.mxu1 %vm516_vm7, %v7556_v60 }
0x2b95   :  { %v11582_v57 = vpop.eup %11581  ;;  %10209 = vmatmul.mubr.msk.f32.vlgmr.msra.gmra.mrb[112].mxu1 %vm516_vm7, %v7557_v18 }
0x2b96   :  { %v7558_v12 = vmul.f32 %v11582_v57, %v11574_v9  ;;  %10215 = vmatpush3.msra.mxu1 %v9008_v42 }
0x2b98   :  { %10211 = vmatprep.mubr.msk.f32.mxu1 %vm516_vm7, %v7558_v12 }
0x2b99   :  { %v11584_v27 = vpop.eup %11583 }
0x2b9a   :  { %v7559_v29 = vmul.f32 %v11584_v27, %v11576_v34 }
0x2b9c   :  { %10212 = vmatmul.mubr.msk.f32.gmra.mrb[114].mxu1 %vm516_vm7, %v7559_v29 }
0x2bca   :  { %v7880_v49 = vpop.xlane.xlu0 %7879 }
0x2bcb   :  { %v7888_v16 = vsub.f32 %v7862_v23, %v7880_v49  ;;  %v7877_v53 = vpop.xlane.xlu1 %7876 }
0x2bcc   :  { %v7887_v33 = vsub.f32 %v7857_v40, %v7877_v53 }
0x2bcd   :  { %v7893_v20 = vmul.f32 1.442695, %v7888_v16 }
0x2bce   :  { %v7891_v51 = vmul.f32 1.442695, %v7887_v33  ;;  %v7886_v48 = vpop.xlane.xlu0 %7885 }
0x2bcf   :  { %11585 = vpow2.f32 %v7893_v20  ;;  %v7890_v0 = vsub.f32 %v7872_v41, %v7886_v48  ;;  %v7883_v50 = vpop.xlane.xlu1 %7882 }
0x2bd0   :  { %11587 = vpow2.f32 %v7891_v51  ;;  %v7889_v55 = vsub.f32 %v7867_v32, %v7883_v50 }
0x2bd1   :  { %v7897_v19 = vmul.f32 1.442695, %v7890_v0 }
0x2bd2   :  { %v7895_v14 = vmul.f32 1.442695, %v7889_v55 }
0x2bd3   :  { %11589 = vpow2.f32 %v7897_v19 }
0x2bd4   :  { %11591 = vpow2.f32 %v7895_v14 }
0x2bd9   :  { %v11586_v10 = vpop.eup %11585 }
0x2bda   :  { %v11588_v11 = vpop.eup %11587  ;;  %v7902_v9 = vsel %vm516_vm7, %v11586_v10, 0.0 }
0x2bdb   :  { %7903 = vadd.xlane.f32.xlu0 %v7902_v9  ;;  %v7899_v17 = vsel %vm516_vm7, %v11588_v11, 0.0 }
0x2bdc   :  { %7900 = vadd.xlane.f32.xlu1 %v7899_v17 }
0x2bdd   :  { %v11590_v34 = vpop.eup %11589 }
0x2bde   :  { %v11592_v39 = vpop.eup %11591  ;;  %v7908_v44 = vsel %vm516_vm7, %v11590_v34, 0.0 }
0x2bdf   :  { %7909 = vadd.xlane.f32.xlu0 %v7908_v44  ;;  %v7905_v13 = vsel %vm516_vm7, %v11592_v39, 0.0 }
0x2be0   :  { %7906 = vadd.xlane.f32.xlu1 %v7905_v13 }
0x2bf1   :  { %11264 = vrot.lane.b32.xlu1 %v11263_v24, %s14174_s1 }
0x2bf5   :  { %11269 = vrot.lane.b32.xlu0 %v11268_v4, %s14174_s1 }
0x2c68   :  { %v7904_v56 = vpop.xlane.xlu0 %7903  ;;  %v10210_v47 = vpop.f32.mrb[112].mxu1 }
0x2c69   :  { %v7901_v38 = vpop.xlane.xlu1 %7900  ;;  %v7638_v23 = vpop.f32.mrb[113].mxu1 }
0x2c6a   :  { %11593 = vrcp.f32 %v7901_v38  ;;  %10216 = vmatprep.mubr.msk.f32.mxu1 %vm410_vm5, %v7638_v23  ;;  %v9113_v38 = vld [vmem:[%s14104_s10 + $0xd8] sm:$0xff] }
0x2c6b   :  { %10217 = vmatmul.mubr.msk.f32.vlgmr.msra.gmra.mrb[100].mxu1 %vm410_vm5, %v10210_v47  ;;  %11595 = vrcp.f32 %v7904_v56  ;;  %v9111_v47 = vld [vmem:[%s14104_s10 + $0xc8] sm:$0xff] }
0x2c6c   :  { %v7910_v6 = vpop.xlane.xlu0 %7909  ;;  %v10800_v23 = vpack.c.bf16 %v9113_v38, %v9111_v47 }
0x2c6d   :  { %v7907_v45 = vpop.xlane.xlu1 %7906 }
0x2c6e   :  { %11597 = vrcp.f32 %v7907_v45  ;;  %v9112_v45 = vld [vmem:[%s14104_s10 + $0xd0] sm:$0xff]  ;;  %10801 = vmatprep.subr.bf16.mxu0 %v10800_v23 }
0x2c6f   :  { %v10213_v40 = vpop.f32.mrb[114].mxu1  ;;  %11599 = vrcp.f32 %v7910_v6  ;;  %v9110_v6 = vld [vmem:[%s14104_s10 + $0xc0] sm:$0xff] }
0x2c70   :  { %v11270_v7 = vpop.permute.xlu0 %11269  ;;  %v7648_v37 = vpop.f32.mrb[115].mxu1 }
0x2c71   :  { %v11265_v24 = vpop.permute.xlu1 %11264  ;;  %10219 = vmatprep.mubr.msk.f32.mxu1 %vm410_vm5, %v7648_v37  ;;  %v11272_v46 = vunpack.i.h.bf16 %v11270_v7  ;;  %v11271_v52 = vunpack.i.l.bf16 %v11270_v7  ;;  %v9115_v7 = vld [vmem:[%s14104_s10 + $0xe8] sm:$0xff]  ;;  %v9117_v37 = vld [vmem:[%s14104_s10 + $0xf8] sm:$0xff] }
0x2c72   :  { %v11267_v4 = vunpack.i.h.bf16 %v11265_v24  ;;  %v11266_v1 = vunpack.i.l.bf16 %v11265_v24  ;;  %10220 = vmatmul.mubr.msk.f32.gmra.mrb[102].mxu1 %vm410_vm5, %v10213_v40  ;;  %v10802_v40 = vpack.c.bf16 %v9112_v45, %v9110_v6  ;;  %v10804_v24 = vpack.c.bf16 %v9117_v37, %v9115_v7 }
0x2c73   :  { %v10796_v41 = vpack.c.bf16 %v11272_v46, %v11271_v52  ;;  %v9114_v46 = vld [vmem:[%s14104_s10 + $0xe0] sm:$0xff]  ;;  %v9116_v52 = vld [vmem:[%s14104_s10 + $0xf0] sm:$0xff] }
0x2c74   :  { %v11594_v63 = vpop.eup %11593  ;;  %v10792_v54 = vpack.c.bf16 %v11267_v4, %v11266_v1  ;;  %10803 = vmatpush1.bf16.msra.mxu0 %v10802_v40  ;;  %v10806_v4 = vpack.c.bf16 %v9116_v52, %v9114_v46  ;;  %v9119_v1 = vld [vmem:[%s14104_s10 + $0x108] sm:$0xff]  ;;  %v9108_v52 = vld [vmem:[%s14102_s8 + $0x2] ss:$0 sm:$0xff]  ;;  %s14178_s8 = sld [smem:[#allocation9_spill]] }
0x2c75   :  { %v7915_v61 = vmul.f32 %v11594_v63, %v11588_v11  ;;  %v11596_v2 = vpop.eup %11595  ;;  %10805 = vmatprep.subr.bf16.mxu0 %v10804_v24  ;;  %v9121_v63 = vld [vmem:[%s14104_s10 + $0x118] sm:$0xff] }
0x2c76   :  { %10793 = vmatprep.subr.bf16.mxu1 %v10792_v54  ;;  %v7916_v8 = vmul.f32 %v11596_v2, %v11586_v10 }
0x2c77   :  { %10795 = vmatpush3.bf16.msra.mxu1 %v10792_v54  ;;  %10244 = vmatprep.mubr.msk.f32.mxu1 %vm516_vm7, %v7915_v61  ;;  %v10808_v54 = vpack.c.bf16 %v9121_v63, %v9119_v1  ;;  %v9118_v61 = vld [vmem:[%s14104_s10 + $0x100] sm:$0xff] }
0x2c78   :  { %10797 = vmatprep.subr.bf16.mxu1 %v10796_v41  ;;  %v11598_v32 = vpop.eup %11597  ;;  %10807 = vmatpush1.bf16.msra.mxu0 %v10806_v4  ;;  %v9109_v63 = vld [vmem:[%s14103_s9 + $0x2] ss:$0 sm:$0xff] }
0x2c79   :  { %v11600_v26 = vpop.eup %11599  ;;  %v7917_v21 = vmul.f32 %v11598_v32, %v11592_v39  ;;  %10809 = vmatprep.subr.bf16.mxu0 %v10808_v54  ;;  %v9128_v32 = vld [vmem:[%s14106_s12 + $0x188] sm:$0xff] }
0x2c7a   :  { %v7918_v58 = vmul.f32 %v11600_v26, %v11590_v34 }
0x2c7b   :  { %10799 = vmatpush3.bf16.msra.mxu1 %v10796_v41  ;;  %v9120_v41 = vld [vmem:[%s14104_s10 + $0x110] sm:$0xff] }
0x2c7c   :  { %10250 = vmatprep.subr.mxu1 %v9009_v43  ;;  %v10810_v2 = vpack.c.bf16 %v9120_v41, %v9118_v61 }
0x2c7e   :  { %10245 = vmatmul.mubr.msk.f32.vlgmr.msra.gmra.mrb[116].mxu1 %vm516_vm7, %v7916_v8  ;;  %10811 = vmatpush1.bf16.msra.mxu0 %v10810_v2  ;;  %v9129_v8 = vld [vmem:[%s14106_s12 + $0x190] sm:$0xff] }
0x2c7f   :  { %10247 = vmatprep.mubr.msk.f32.mxu1 %vm516_vm7, %v7917_v21  ;;  %10251 = vmatpush3.msra.mxu1 %v9009_v43  ;;  %v9127_v43 = vld [vmem:[%s14106_s12 + $0x180] sm:$0xff]  ;;  %v9130_v21 = vld [vmem:[%s14106_s12 + $0x198] sm:$0xff] }
0x2c80   :  { %10812 = vmatprep.subr.bf16.mxu1 %v11675_v5  ;;  %v10813_v26 = vpack.c.bf16 %v9128_v32, %v9127_v43 }
0x2c82   :  { %10248 = vmatmul.mubr.msk.f32.gmra.mrb[118].mxu1 %vm516_vm7, %v7918_v58  ;;  %v10816_v58 = vpack.c.bf16 %v9130_v21, %v9129_v8 }
0x2d51   :  { %v10246_v15 = vpop.f32.mrb[116].mxu1 }
0x2d52   :  { %v8013_v22 = vpop.f32.mrb[117].mxu1 }
0x2d53   :  { %10252 = vmatprep.mubr.msk.f32.mxu1 %vm410_vm5, %v8013_v22  ;;  %v9132_v22 = vld [vmem:[%s14106_s12 + $0x1a8] sm:$0xff] }
0x2d54   :  { %10253 = vmatmul.mubr.msk.f32.vlgmr.msra.gmra.mrb[100].mxu1 %vm410_vm5, %v10246_v15  ;;  %v9131_v15 = vld [vmem:[%s14106_s12 + $0x1a0] sm:$0xff] }
0x2d55   :  { %v10249_v35 = vpop.f32.mrb[118].mxu1  ;;  %10814 = vmatpush1.bf16.msra.mxu1 %v10813_v26 }
0x2d56   :  { %v8023_v59 = vpop.f32.mrb[119].mxu1  ;;  %10815 = vmatprep.subr.bf16.mxu1 %v11675_v5 }
0x2d57   :  { %10255 = vmatprep.mubr.msk.f32.mxu1 %vm410_vm5, %v8023_v59  ;;  %v9133_v59 = vld [vmem:[%s14106_s12 + $0x1b0] sm:$0xff] }
0x2d58   :  { %10256 = vmatmul.mubr.msk.f32.gmra.mrb[102].mxu1 %vm410_vm5, %v10249_v35  ;;  %v10819_v35 = vpack.c.bf16 %v9132_v22, %v9131_v15  ;;  %v9149_v22 = vld [vmem:[%s14106_s12 + $0x230] sm:$0xff] }
0x2d59   :  { %10817 = vmatpush1.bf16.msra.mxu1 %v10816_v58  ;;  %v9147_v58 = vld [vmem:[%s14106_s12 + $0x220] sm:$0xff] }
0x2d5a   :  { %10818 = vmatprep.subr.bf16.mxu1 %v11675_v5 }
0x2d5d   :  { %10820 = vmatpush1.bf16.msra.mxu1 %v10819_v35 }
0x2d5e   :  { %10821 = vmatprep.subr.bf16.mxu1 %v11675_v5 }
0x2e27   :  { %v10254_v60 = vpop.f32.mrb[100].mxu1 }
0x2e28   :  { %v13847_v18 = vadd.f32 %v10254_v60, %v13335_v31  ;;  %v8110_v57 = vpop.f32.mrb[101].mxu1  ;;  %v9134_v60 = vld [vmem:[%s14106_s12 + $0x1b8] sm:$0xff] }
0x2e29   :  { %v13850_v12 = vadd.f32 %v8110_v57, %v13330_v36  ;;  %v10822_v57 = vpack.c.bf16 %v9134_v60, %v9133_v59  ;;  %v9122_v59 = vld [vmem:[%s14105_s11 + $0x4] sm:$0x3] }
0x2e2a   :  { %v8144_v27 = vsel %vm201_vm4, %v13847_v18, 0.0  ;;  %v8232_v60 = vrot.slane %v9122_v59, %v12583_v62 }
0x2e2b   :  { %8145 = vadd.xlane.f32.xlu0 %v8144_v27  ;;  %v10257_v29 = vpop.f32.mrb[102].mxu1  ;;  %v8141_v49 = vsel %vm201_vm4, %v13850_v12, 0.0  ;;  %v9135_v27 = vld [vmem:[%s14106_s12 + $0x1c0] sm:$0xff]  ;;  %10823 = vmatpush1.bf16.msra.mxu1 %v10822_v57  ;;  %v8236_v57 = vrot.slane %v9122_v59, %v12588_v30 }
0x2e2c   :  { %v13857_v16 = vadd.f32 %v10257_v29, %v13345_v3  ;;  %8142 = vadd.xlane.f32.xlu1 %v8141_v49  ;;  %v8120_v53 = vpop.f32.mrb[103].mxu1  ;;  %v9136_v29 = vld [vmem:[%s14106_s12 + $0x1c8] sm:$0xff]  ;;  %10824 = vmatprep.subr.bf16.mxu1 %v11675_v5 }
0x2e2d   :  { %v13860_v31 = vadd.f32 %v8120_v53, %v13340_v28  ;;  %v10825_v49 = vpack.c.bf16 %v9136_v29, %v9135_v27  ;;  %v9137_v53 = vld [vmem:[%s14106_s12 + $0x1d0] sm:$0xff] }
0x2e2e   :  { %v8150_v36 = vsel %vm201_vm4, %v13857_v16, 0.0 }
0x2e2f   :  { %8151 = vadd.xlane.f32.xlu0 %v8150_v36  ;;  %v8147_v33 = vsel %vm201_vm4, %v13860_v31, 0.0  ;;  %v9138_v36 = vld [vmem:[%s14106_s12 + $0x1d8] sm:$0xff]  ;;  %10826 = vmatpush1.bf16.msra.mxu1 %v10825_v49 }
0x2e30   :  { %8148 = vadd.xlane.f32.xlu1 %v8147_v33  ;;  %v10828_v33 = vpack.c.bf16 %v9138_v36, %v9137_v53  ;;  %10827 = vmatprep.subr.bf16.mxu1 %v11675_v5 }
0x2e33   :  { %10829 = vmatpush1.bf16.msra.mxu1 %v10828_v33 }
0x2e34   :  { %10830 = vmatprep.subr.bf16.mxu1 %v11675_v5 }
0x2eb8   :  { %v8146_v20 = vpop.xlane.xlu0 %8145 }
0x2eb9   :  { %v8154_v51 = vmul.f32 0.020833334, %v8146_v20  ;;  %v8143_v48 = vpop.xlane.xlu1 %8142  ;;  %v9139_v20 = vld [vmem:[%s14106_s12 + $0x1e0] sm:$0xff] }
0x2eba   :  { %v8153_v0 = vmul.f32 0.020833334, %v8143_v48 }
0x2ebb   :  { %v13867_v3 = vsub.f32 %v13847_v18, %v8154_v51  ;;  %v9140_v51 = vld [vmem:[%s14106_s12 + $0x1e8] sm:$0xff] }
0x2ebc   :  { %v13870_v50 = vsub.f32 %v13850_v12, %v8153_v0  ;;  %v8152_v28 = vpop.xlane.xlu0 %8151  ;;  %v10831_v48 = vpack.c.bf16 %v9140_v51, %v9139_v20  ;;  %v9141_v0 = vld [vmem:[%s14106_s12 + $0x1f0] sm:$0xff] }
0x2ebd   :  { %v8156_v55 = vmul.f32 0.020833334, %v8152_v28  ;;  %v8149_v19 = vpop.xlane.xlu1 %8148  ;;  %v8162_v14 = vmul.f32 %v13867_v3, %v13867_v3  ;;  %v9142_v28 = vld [vmem:[%s14106_s12 + $0x1f8] sm:$0xff] }
0x2ebe   :  { %v8155_v10 = vmul.f32 0.020833334, %v8149_v19  ;;  %v8161_v11 = vmul.f32 %v13870_v50, %v13870_v50  ;;  %10832 = vmatpush1.bf16.msra.mxu1 %v10831_v48  ;;  %v9143_v19 = vld [vmem:[%s14106_s12 + $0x200] sm:$0xff] }
0x2ebf   :  { %v13877_v9 = vsub.f32 %v13857_v16, %v8156_v55  ;;  %v8168_v17 = vsel %vm201_vm4, %v8162_v14, 0.0  ;;  %v10834_v55 = vpack.c.bf16 %v9142_v28, %v9141_v0  ;;  %10833 = vmatprep.subr.bf16.mxu1 %v11675_v5  ;;  %v9144_v14 = vld [vmem:[%s14106_s12 + $0x208] sm:$0xff] }
0x2ec0   :  { %v13881_v34 = vsub.f32 %v13860_v31, %v8155_v10  ;;  %8169 = vadd.xlane.f32.xlu0 %v8168_v17  ;;  %v8165_v39 = vsel %vm201_vm4, %v8161_v11, 0.0  ;;  %v10837_v10 = vpack.c.bf16 %v9144_v14, %v9143_v19  ;;  %v9145_v11 = vld [vmem:[%s14106_s12 + $0x210] sm:$0xff]  ;;  %v9146_v17 = vld [vmem:[%s14106_s12 + $0x218] sm:$0xff] }
0x2ec1   :  { %8166 = vadd.xlane.f32.xlu1 %v8165_v39  ;;  %v8164_v44 = vmul.f32 %v13877_v9, %v13877_v9  ;;  %v10840_v39 = vpack.c.bf16 %v9146_v17, %v9145_v11 }
0x2ec2   :  { %v8163_v13 = vmul.f32 %v13881_v34, %v13881_v34  ;;  %10835 = vmatpush1.bf16.msra.mxu1 %v10834_v55 }
0x2ec3   :  { %v8174_v42 = vsel %vm201_vm4, %v8164_v44, 0.0  ;;  %10836 = vmatprep.subr.bf16.mxu1 %v11675_v5 }
0x2ec4   :  { %8175 = vadd.xlane.f32.xlu0 %v8174_v42  ;;  %v8171_v56 = vsel %vm201_vm4, %v8163_v13, 0.0 }
0x2ec5   :  { %8172 = vadd.xlane.f32.xlu1 %v8171_v56 }
0x2ec6   :  { %10838 = vmatpush1.bf16.msra.mxu1 %v10837_v10 }
0x2ec7   :  { %10839 = vmatprep.subr.bf16.mxu1 %v11675_v5 }
0x2eca   :  { %10841 = vmatpush1.bf16.msra.mxu1 %v10840_v39 }
0x2ecb   :  { %10842 = vmatprep.subr.bf16.mxu1 %v11675_v5 }
0x2f4d   :  { %v8170_v44 = vpop.xlane.xlu0 %8169 }
0x2f4e   :  { %v8178_v13 = vmul.f32 0.020833334, %v8170_v44  ;;  %v8167_v42 = vpop.xlane.xlu1 %8166 }
0x2f4f   :  { %v8177_v56 = vmul.f32 0.020833334, %v8167_v42 }
0x2f50   :  { %v8182_v47 = vadd.f32 1e-05, %v8178_v13 }
0x2f51   :  { %v8181_v38 = vadd.f32 1e-05, %v8177_v56  ;;  %v8176_v23 = vpop.xlane.xlu0 %8175 }
0x2f52   :  { %11601 = vrsqrt.f32 %v8182_v47  ;;  %v8180_v6 = vmul.f32 0.020833334, %v8176_v23  ;;  %v8173_v45 = vpop.xlane.xlu1 %8172  ;;  %v9156_v47 = vld [vmem:[%s14107_s13 + $0x2] ss:$0 sm:$0xff] }
0x2f53   :  { %11603 = vrsqrt.f32 %v8181_v38  ;;  %v8179_v40 = vmul.f32 0.020833334, %v8173_v45 }
0x2f54   :  { %v8184_v7 = vadd.f32 1e-05, %v8180_v6 }
0x2f55   :  { %v8183_v37 = vadd.f32 1e-05, %v8179_v40 }
0x2f57   :  { %11605 = vrsqrt.f32 %v8183_v37 }
0x2f58   :  { %11607 = vrsqrt.f32 %v8184_v7 }
0x2f5c   :  { %v11602_v24 = vpop.eup %11601 }
0x2f5d   :  { %v11604_v46 = vpop.eup %11603  ;;  %v8190_v1 = vmul.f32 %v11602_v24, %v13867_v3 }
0x2f5e   :  { %v8189_v4 = vmul.f32 %v11604_v46, %v13870_v50 }
0x2f5f   :  { %v8200_v2 = vmul.f32 %v9108_v52, %v8190_v1 }
0x2f60   :  { %v8199_v54 = vmul.f32 %v9108_v52, %v8189_v4 }
0x2f61   :  { %v11606_v61 = vpop.eup %11605  ;;  %v8210_v8 = vadd.f32 %v9109_v63, %v8200_v2 }
0x2f62   :  { %v8209_v41 = vadd.f32 %v9109_v63, %v8199_v54  ;;  %v8191_v43 = vmul.f32 %v11606_v61, %v13881_v34  ;;  %v11608_v32 = vpop.eup %11607 }
0x2f63   :  { %v8192_v50 = vmul.f32 %v11608_v32, %v13877_v9  ;;  %v9148_v9 = vld [vmem:[%s14106_s12 + $0x228] sm:$0xff] }
0x2f64   :  { %9123 = vmatmul.mubr.msk.f32.vlgmr.msra.gmra.mrb[96].mxu0 %vm201_vm4, %v8209_v41  ;;  %v8201_v26 = vmul.f32 %v9108_v52, %v8191_v43  ;;  %v10843_v15 = vpack.c.bf16 %v9148_v9, %v9147_v58 }
0x2f65   :  { %8321 = vmatprep.mubr.f32.mxu0 %v11659_v25  ;;  %v8202_v21 = vmul.f32 %v9108_v52, %v8192_v50 }
0x2f66   :  { %v8211_v3 = vadd.f32 %v9109_v63, %v8201_v26  ;;  %10844 = vmatpush1.bf16.msra.mxu1 %v10843_v15 }
0x2f67   :  { %v8212_v34 = vadd.f32 %v9109_v63, %v8202_v21  ;;  %10845 = vmatprep.subr.bf16.mxu1 %v11675_v5 }
0x2f68   :  { %9124 = vmatmul.mubr.msk.f32.gmra.mrb[98].mxu0 %vm201_vm4, %v8210_v8 }
0x2f69   :  { %8327 = vmatprep.mubr.f32.mxu0 %v11659_v25 }
0x2f6c   :  { %9125 = vmatmul.mubr.msk.f32.gmra.mrb[100].mxu0 %vm201_vm4, %v8211_v3 }
0x2f6d   :  { %8333 = vmatprep.mubr.f32.mxu0 %v11659_v25  ;;  %v9150_v25 = vld [vmem:[%s14106_s12 + $0x238] sm:$0xff] }
0x2f6e   :  { %v10846_v35 = vpack.c.bf16 %v9150_v25, %v9149_v22 }
0x2f70   :  { %9126 = vmatmul.mubr.msk.f32.gmra.mrb[102].mxu0 %vm201_vm4, %v8212_v34  ;;  %10847 = vmatpush1.bf16.msra.mxu1 %v10846_v35 }
0x3037   :  { %v8317_v27 = vpop.f32.mrb[96].mxu0 }
0x3038   :  { %v8318_v5 = vadd.f32 %v8317_v27, %v8232_v60  ;;  %v8319_v29 = vpop.f32.mrb[97].mxu0 }
0x3039   :  { %v8320_v49 = vadd.f32 %v8319_v29, %v8236_v57  ;;  %v8561_v29 = vld [vmem:[%s14176_s15 + $0x8] sm:$0xff] }
0x303a   :  { %v8340_v33 = vmax.f32 %v8318_v5, 0.0  ;;  %v8560_v5 = vld [vmem:[%s14176_s15] sm:$0xff] }
0x303b   :  { %v8341_v53 = vmax.f32 %v8320_v49, 0.0  ;;  %v8323_v36 = vpop.f32.mrb[98].mxu0  ;;  %v10848_v49 = vpack.c.bf16 %v8561_v29, %v8560_v5 }
0x303c   :  { %v8324_v20 = vadd.f32 %v8323_v36, %v8232_v60  ;;  %v8325_v51 = vpop.f32.mrb[99].mxu0  ;;  %v8563_v36 = vld [vmem:[%s14176_s15 + $0x18] sm:$0xff] }
0x303d   :  { %v8326_v48 = vadd.f32 %v8325_v51, %v8236_v57  ;;  %9151 = vmatprep.mubr.msk.f32.mxu1 %vm2845_vm8, %v8341_v53  ;;  %10849 = vmatprep.subr.bf16.mxu0 %v10848_v49  ;;  %v8562_v53 = vld [vmem:[%s14176_s15 + $0x10] sm:$0xff]  ;;  %v8565_v51 = vld [vmem:[%s14176_s15 + $0x28] sm:$0xff] }
0x303e   :  { %8450 = vmatmul.mubr.f32.vlgmr.msra.gmra.mrb[120].mxu1 %v8340_v33  ;;  %v8342_v55 = vmax.f32 %v8324_v20, 0.0  ;;  %10851 = vmatpush3.bf16.msra.mxu0 %v10848_v49  ;;  %v10852_v33 = vpack.c.bf16 %v8563_v36, %v8562_v53  ;;  %v8564_v20 = vld [vmem:[%s14176_s15 + $0x20] sm:$0xff] }
0x303f   :  { %v8343_v0 = vmax.f32 %v8326_v48, 0.0  ;;  %v8329_v28 = vpop.f32.mrb[100].mxu0  ;;  %v10856_v48 = vpack.c.bf16 %v8565_v51, %v8564_v20 }
0x3040   :  { %v8330_v19 = vadd.f32 %v8329_v28, %v8232_v60  ;;  %v8331_v62 = vpop.f32.mrb[101].mxu0  ;;  %10853 = vmatprep.subr.bf16.mxu0 %v10852_v33 }
0x3041   :  { %v8332_v14 = vadd.f32 %v8331_v62, %v8236_v57  ;;  %9152 = vmatprep.mubr.msk.f32.mxu1 %vm2845_vm8, %v8343_v0 }
0x3042   :  { %8455 = vmatmul.mubr.f32.gmra.mrb[122].mxu1 %v8342_v55  ;;  %v8344_v11 = vmax.f32 %v8330_v19, 0.0  ;;  %10855 = vmatpush3.bf16.msra.mxu0 %v10852_v33 }
0x3043   :  { %v8345_v30 = vmax.f32 %v8332_v14, 0.0  ;;  %v8335_v10 = vpop.f32.mrb[102].mxu0  ;;  %10857 = vmatprep.subr.bf16.mxu0 %v10856_v48 }
0x3044   :  { %v8336_v17 = vadd.f32 %v8335_v10, %v8232_v60  ;;  %v8337_v39 = vpop.f32.mrb[103].mxu0 }
0x3045   :  { %v8338_v44 = vadd.f32 %v8337_v39, %v8236_v57  ;;  %9153 = vmatprep.mubr.msk.f32.mxu1 %vm2845_vm8, %v8345_v30 }
0x3046   :  { %8460 = vmatmul.mubr.f32.gmra.mrb[124].mxu1 %v8344_v11  ;;  %v8346_v42 = vmax.f32 %v8336_v17, 0.0  ;;  %10859 = vmatpush3.bf16.msra.mxu0 %v10856_v48 }
0x3047   :  { %v8347_v13 = vmax.f32 %v8338_v44, 0.0 }
0x3049   :  { %9154 = vmatprep.mubr.msk.f32.mxu1 %vm2845_vm8, %v8347_v13 }
0x304a   :  { %8465 = vmatmul.mubr.f32.gmra.mrb[126].mxu1 %v8346_v42  ;;  %v9157_v42 = vld [vmem:[%s14177_s17] ss:$0 sm:$0xff] }
0x3111   :  { %v8451_v56 = vpop.f32.mrb[120].mxu1 }
0x3112   :  { %v8470_v38 = vadd.f32 %v8451_v56, %v13850_v12  ;;  %v8453_v23 = vpop.f32.mrb[121].mxu1 }
0x3114   :  { %v8482_v6 = vadd.f32 %v9156_v47, %v8470_v38 }
0x3115   :  { %v8456_v45 = vpop.f32.mrb[122].mxu1 }
0x3116   :  { %v8471_v40 = vadd.f32 %v8456_v45, %v13847_v18  ;;  %v8458_v7 = vpop.f32.mrb[123].mxu1  ;;  %v8488_v37 = vsel %vm201_vm4, %v8482_v6, 0.0 }
0x3117   :  { %8489 = vadd.xlane.f32.xlu1 %v8488_v37 }
0x3118   :  { %v8483_v24 = vadd.f32 %v9156_v47, %v8471_v40 }
0x3119   :  { %v8461_v46 = vpop.f32.mrb[124].mxu1 }
0x311a   :  { %v8472_v52 = vadd.f32 %v8461_v46, %v13860_v31  ;;  %v8463_v4 = vpop.f32.mrb[125].mxu1  ;;  %v8491_v1 = vsel %vm201_vm4, %v8483_v24, 0.0 }
0x311b   :  { %8492 = vadd.xlane.f32.xlu0 %v8491_v1 }
0x311c   :  { %v8484_v63 = vadd.f32 %v9156_v47, %v8472_v52 }
0x311d   :  { %v8466_v54 = vpop.f32.mrb[126].mxu1 }
0x311e   :  { %v8473_v12 = vadd.f32 %v8466_v54, %v13857_v16  ;;  %v8468_v61 = vpop.f32.mrb[127].mxu1  ;;  %v8494_v41 = vsel %vm201_vm4, %v8484_v63, 0.0 }
0x311f   :  { %8495 = vadd.xlane.f32.xlu1 %v8494_v41 }
0x3120   :  { %v8485_v18 = vadd.f32 %v9156_v47, %v8473_v12  ;;  %v9158_v47 = vld [vmem:[%s14178_s8] ss:$0 sm:$0xff] }
0x3121   :  { %v9159_v12 = vld [vmem:[%s14179_s2] ss:$0 sm:$0xff] }
0x3122   :  { %v8497_v2 = vsel %vm201_vm4, %v8485_v18, 0.0 }
0x3123   :  { %8498 = vadd.xlane.f32.xlu0 %v8497_v2 }
0x31a4   :  { %v8490_v43 = vpop.xlane.xlu1 %8489 }
0x31a5   :  { %v8500_v32 = vmul.f32 0.020833334, %v8490_v43 }
0x31a7   :  { %v8504_v8 = vsub.f32 %v8482_v6, %v8500_v32 }
0x31a8   :  { %v8493_v31 = vpop.xlane.xlu0 %8492 }
0x31a9   :  { %v8501_v26 = vmul.f32 0.020833334, %v8493_v31  ;;  %v8508_v50 = vmul.f32 %v8504_v8, %v8504_v8 }
0x31ab   :  { %v8505_v3 = vsub.f32 %v8483_v24, %v8501_v26  ;;  %v8512_v21 = vsel %vm201_vm4, %v8508_v50, 0.0 }
0x31ac   :  { %8513 = vadd.xlane.f32.xlu1 %v8512_v21  ;;  %v8496_v34 = vpop.xlane.xlu1 %8495 }
0x31ad   :  { %v8502_v16 = vmul.f32 0.020833334, %v8496_v34  ;;  %v8509_v58 = vmul.f32 %v8505_v3, %v8505_v3 }
0x31af   :  { %v8506_v9 = vsub.f32 %v8484_v63, %v8502_v16  ;;  %v8515_v15 = vsel %vm201_vm4, %v8509_v58, 0.0 }
0x31b0   :  { %8516 = vadd.xlane.f32.xlu0 %v8515_v15  ;;  %v8499_v22 = vpop.xlane.xlu0 %8498 }
0x31b1   :  { %v8503_v25 = vmul.f32 0.020833334, %v8499_v22  ;;  %v8510_v35 = vmul.f32 %v8506_v9, %v8506_v9 }
0x31b3   :  { %v8507_v59 = vsub.f32 %v8485_v18, %v8503_v25  ;;  %v8518_v60 = vsel %vm201_vm4, %v8510_v35, 0.0 }
0x31b4   :  { %8519 = vadd.xlane.f32.xlu1 %v8518_v60 }
0x31b5   :  { %v8511_v57 = vmul.f32 %v8507_v59, %v8507_v59 }
0x31b7   :  { %v8521_v27 = vsel %vm201_vm4, %v8511_v57, 0.0 }
0x31b8   :  { %8522 = vadd.xlane.f32.xlu0 %v8521_v27 }
0x3239   :  { %v8514_v0 = vpop.xlane.xlu1 %8513 }
0x323a   :  { %v8524_v28 = vmul.f32 0.020833334, %v8514_v0 }
0x323c   :  { %v8528_v55 = vadd.f32 1e-05, %v8524_v28 }
0x323d   :  { %v8517_v19 = vpop.xlane.xlu0 %8516 }
0x323e   :  { %11609 = vrsqrt.f32 %v8528_v55  ;;  %v8525_v62 = vmul.f32 0.020833334, %v8517_v19 }
0x3240   :  { %v8529_v14 = vadd.f32 1e-05, %v8525_v62 }
0x3241   :  { %v8520_v30 = vpop.xlane.xlu1 %8519 }
0x3242   :  { %11611 = vrsqrt.f32 %v8529_v14  ;;  %v8526_v10 = vmul.f32 0.020833334, %v8520_v30 }
0x3244   :  { %v8530_v11 = vadd.f32 1e-05, %v8526_v10 }
0x3245   :  { %v8523_v17 = vpop.xlane.xlu0 %8522 }
0x3246   :  { %11613 = vrsqrt.f32 %v8530_v11  ;;  %v8527_v39 = vmul.f32 0.020833334, %v8523_v17 }
0x3248   :  { %v11610_v44 = vpop.eup %11609  ;;  %v8531_v13 = vadd.f32 1e-05, %v8527_v39 }
0x3249   :  { %v8536_v56 = vmul.f32 %v11610_v44, %v8504_v8 }
0x324a   :  { %11615 = vrsqrt.f32 %v8531_v13 }
0x324b   :  { %v8546_v38 = vmul.f32 %v9157_v42, %v8536_v56 }
0x324c   :  { %v11612_v23 = vpop.eup %11611 }
0x324d   :  { %v8537_v6 = vmul.f32 %v11612_v23, %v8505_v3  ;;  %v8556_v45 = vadd.f32 %v9158_v47, %v8546_v38 }
0x324f   :  { %v8547_v40 = vmul.f32 %v9157_v42, %v8537_v6  ;;  %10270 = vmatprep.mubr.msk.f32.mxu0 %vm201_vm4, %v8556_v45 }
0x3250   :  { %v11614_v7 = vpop.eup %11613 }
0x3251   :  { %v8557_v37 = vadd.f32 %v9158_v47, %v8547_v40  ;;  %v8538_v24 = vmul.f32 %v11614_v7, %v8506_v9 }
0x3253   :  { %10271 = vmatmul.mubr.msk.f32.vlgmr.msra.gmra.mrb[104].mxu0 %vm201_vm4, %v8557_v37  ;;  %v8548_v46 = vmul.f32 %v9157_v42, %v8538_v24 }
0x3254   :  { %v11616_v52 = vpop.eup %11615 }
0x3255   :  { %v8558_v4 = vadd.f32 %v9158_v47, %v8548_v46  ;;  %v8539_v1 = vmul.f32 %v11616_v52, %v8507_v59 }
0x3257   :  { %10273 = vmatprep.mubr.msk.f32.mxu0 %vm201_vm4, %v8558_v4  ;;  %v8549_v63 = vmul.f32 %v9157_v42, %v8539_v1 }
0x3259   :  { %v8559_v54 = vadd.f32 %v9158_v47, %v8549_v63 }
0x325b   :  { %10274 = vmatmul.mubr.msk.f32.gmra.mrb[106].mxu0 %vm201_vm4, %v8559_v54 }
0x3326   :  { %v10272_v61 = vpop.f32.mrb[104].mxu0 }
0x3327   :  { %v8657_v41 = vadd.f32 %v10272_v61, %v9159_v12  ;;  %v8651_v18 = vpop.f32.mrb[105].mxu0 }
0x3328   :  { %v8652_v2 = vadd.f32 %v9159_v12, %v8651_v18 }
0x3329   :  { %8671 = vst [vmem:[#allocation2 + $0x8] sm:$0xff] %v8657_v41 }
0x332a   :  { %8670 = vst [vmem:[#allocation2] sm:$0xff] %v8652_v2 }
0x332e   :  { %v10275_v43 = vpop.f32.mrb[106].mxu0 }
0x332f   :  { %v8667_v32 = vadd.f32 %v10275_v43, %v9159_v12  ;;  %v8661_v8 = vpop.f32.mrb[107].mxu0 }
0x3330   :  { %v8662_v31 = vadd.f32 %v9159_v12, %v8661_v8 }
0x3331   :  { %8673 = vst [vmem:[#allocation2 + $0x18] sm:$0xff] %v8667_v32 }
0x3332   :  { %8672 = vst [vmem:[#allocation2 + $0x10] sm:$0xff] %v8662_v31 }
0x3333   :  { %11644 = shalt.err (!%p11641_p4)
}
0x3334   :  { %s14180_s6 = sld [smem:[#allocation12_spill]] }
0x333a   :  { %s11645_s11 = scalar_lea.hbm %s14180_s6, 512 }
0x333b   :  { %p11646_p5 = scmp.ne.s32.totalorder %s14180_s6, %s11645_s11  ;;  %p11649_p6 = scmp.lt.u32.totalorder %s11645_s11, %s14180_s6 }
0x333d   :  { %p11651_p7 = pnand %p11649_p6, %p11646_p5 }
0x333f   :  { %11654 = shalt.err (!%p11651_p7)
}
0x3340   :  { %s11677_s21 = smov 128  }
0x3341   :  { %8685 = dma.vmem_to_hbm [thread:$0]  %s8680_s25, 512, %s14180_s6, [#allocation3], %s11677_s21, %s11677_s21, %s14168_s20  }
0x3342   :  { %11655 = dma.done.wait [#allocation3], 512  }
0x3343   :  { %11656 = vsyncadd [#allocation3], 4294966784 }
0x3344   :  { %8689 = vsyncpa [#allocation3], 1 }

</bundles_post_ra>
